<compile_context>
chip_gen: v7x
topology: tpu7x:2x2x1
jax: 0.10.0
libtpu: 0.0.40
codegen_flags: <defaults>
</compile_context>

<pallas_src>
import functools

import numpy as np
import jax
import jax.numpy as jnp
from jax import lax
from jax.experimental import pallas as pl
from jax.experimental.pallas import tpu as pltpu

NEG_SLOPE = 0.2
BN_EPS = 1e-5
K = 4          # all convs are 4x4
LANES = 128

_VMEM = pl.BlockSpec(memory_space=pltpu.MemorySpace.VMEM)
_CPARAMS = pltpu.CompilerParams(vmem_limit_bytes=64 * 1024 * 1024)


def _round_up(x, d):
    return (x + d - 1) // d * d


# ------------------------------ kernel helpers -------------------------------

def _lrelu(y):
    return jnp.where(y >= 0, y, NEG_SLOPE * y)


def _taps_matmul(x_ref, w_ref, offsets, m, kc):
    """sum_t x_ref[off_t : off_t + m, :] @ w_ref[t*kc : (t+1)*kc, :]  (f32 acc)."""
    acc = None
    for t, off in enumerate(offsets):
        xt = x_ref[pl.ds(off, m), :]
        wt = w_ref[pl.ds(t * kc, kc), :]
        d = jnp.dot(xt, wt, preferred_element_type=jnp.float32)
        acc = d if acc is None else acc + d
    return acc


def _paired_taps_matmul(x_ref, w_ref, offsets, m, kc):
    """Taps paired two at a time: (m, 2*kc) @ (2*kc, cout) dots (K=256 for kc=128).
    Requires offsets[t+1] == offsets[t] + 1 for even t (row-major 4x4 taps)."""
    acc = None
    for t in range(0, len(offsets), 2):
        off = offsets[t]
        lhs = jnp.concatenate(
            [x_ref[pl.ds(off, m), :], x_ref[pl.ds(off + 1, m), :]], axis=1)
        wt = w_ref[pl.ds(t * kc, 2 * kc), :]
        d = jnp.dot(lhs, wt, preferred_element_type=jnp.float32)
        acc = d if acc is None else acc + d
    return acc


def _masked_bn(y, mask, count, gamma, beta):
    """One-pass masked batch-norm over the valid rows (biased variance)."""
    inv = 1.0 / count
    ym = y * mask
    mean = jnp.sum(ym, axis=0, keepdims=True) * inv
    ex2 = jnp.sum(ym * y, axis=0, keepdims=True) * inv     # mask is 0/1
    var = jnp.maximum(ex2 - mean * mean, 0.0)
    return (y - mean) * lax.rsqrt(var + BN_EPS) * gamma + beta


# -------------------------------- Pallas kernels ------------------------------

def _conv_bias_lrelu_kernel(offsets, m, kc, x_ref, w_ref, b_ref, mask_ref, o_ref):
    y = _taps_matmul(x_ref, w_ref, offsets, m, kc) + b_ref[...]
    o_ref[...] = (_lrelu(y) * mask_ref[...]).astype(o_ref.dtype)


def _conv_bn_lrelu_kernel(offsets, m, kc, count, x_ref, w_ref, g_ref, bt_ref,
                          mask_ref, o_ref):
    y = _taps_matmul(x_ref, w_ref, offsets, m, kc)
    mask = mask_ref[...]
    y = _lrelu(_masked_bn(y, mask, count, g_ref[...], bt_ref[...])) * mask
    o_ref[...] = y.astype(o_ref.dtype)


def _down4_output_kernel(offsets, m, kc4, kc5, count, shift, tail,
                         x_ref, w4_ref, g_ref, bt_ref, mask_ref, w5_ref, b5_ref,
                         o_ref, y4_scr):
    """Fused DownBlock4 (pad+conv+BN+LReLU+pad) + Output conv."""
    # DownBlock4 conv (input pre-padded by 2), taps paired to K=256.
    y = _paired_taps_matmul(x_ref, w4_ref, offsets, m, kc4)
    mask = mask_ref[...]
    y4 = _lrelu(_masked_bn(y, mask, count, g_ref[...], bt_ref[...])) * mask
    cout4 = y4_scr.shape[1]
    # Stage y4 shifted by one grid row + one grid col; only the head/tail guard
    # rows need explicit zeros (interior garbage rows are zeroed by the mask).
    y4_scr[pl.ds(0, shift), :] = jnp.zeros((shift, cout4), y4_scr.dtype)
    y4_scr[pl.ds(shift + m, tail - shift), :] = jnp.zeros(
        (tail - shift, cout4), y4_scr.dtype)
    y4_scr[pl.ds(shift, m), :] = y4.astype(y4_scr.dtype)   # shift % 8 == 0
    out = _taps_matmul(y4_scr, w5_ref, offsets, m, kc5)
    o_ref[...] = out + b5_ref[...]


# --------------------------------- JAX glue -----------------------------------

def _space_to_depth2(x):
    n, h, w, c = x.shape
    x = x.reshape(n, h // 2, 2, w // 2, 2, c)
    x = jnp.transpose(x, (0, 1, 3, 2, 4, 5))
    return x.reshape(n, h // 2, w // 2, 4 * c)


def _flatten_rows(x, tail):
    n, h, w, c = x.shape
    return jnp.pad(x.reshape(n * h * w, c), ((0, tail), (0, 0)))


def _stack_s2_weight(w):
    """(Cout,Cin,4,4) torch weight -> (16*Cin, Cout): 2x2 taps on the s2d input."""
    wt = jnp.transpose(w, (2, 3, 1, 0))  # (KH, KW, Cin, Cout)
    taps = []
    for a in range(2):
        for b in range(2):
            taps.append(jnp.concatenate(
                [wt[2 * a + di, 2 * b + dj] for di in range(2) for dj in range(2)],
                axis=0))
    return jnp.concatenate(taps, axis=0)


def _stack_s1_weight(w):
    """(Cout,Cin,KH,KW) torch weight -> (KH*KW*Cin, Cout), tap-major."""
    kh, kw, cin = w.shape[2], w.shape[3], w.shape[1]
    wt = jnp.transpose(w, (2, 3, 1, 0))
    return wt.reshape(kh * kw * cin, w.shape[0])


def _valid_mask_np(n, hg, wg, oh, ow):
    """Compile-time (m, 1) f32 validity mask (XLA constant, no extra op)."""
    m = (np.arange(hg) < oh)[:, None] & (np.arange(wg) < ow)[None, :]
    m = np.broadcast_to(m[None], (n, hg, wg)).reshape(n * hg * wg, 1)
    return jnp.asarray(m.astype(np.float32))


def _pad_cols(a, cp):
    return jnp.pad(a, ((0, 0), (0, cp - a.shape[1])))


def _down_s2(x, vh, vw, w, *, bias=None, gamma=None, beta=None):
    """Conv(k=4, s=2, p=1) over the (vh, vw) valid region of x, fused with
    bias+LReLU or BatchNorm(batch stats)+LReLU.  x may already carry one zero
    row/col at bottom/right (previous layer's mask).  Returns a masked
    (n, oh+1, ow+1, 128) bf16 grid (extra row/col zero => next layer's padding),
    plus (oh, ow, cout)."""
    n, xh, xw, cin = x.shape
    assert vh % 2 == 0 and vw % 2 == 0
    xp = jnp.pad(x, ((0, 0), (1, vh + 1 - xh), (1, vw + 1 - xw), (0, 0)))
    xs = _space_to_depth2(xp)                           # (n, hg, wg, 4*cin)
    hg, wg = xs.shape[1], xs.shape[2]
    oh, ow = vh // 2, vw // 2
    m = n * hg * wg
    kc = 4 * cin
    offsets = (0, 1, wg, wg + 1)
    tail = wg + 1
    x2 = _flatten_rows(xs, tail).astype(jnp.bfloat16)
    cout = w.shape[0]
    cout_p = _round_up(cout, LANES)                     # lane-dense output slab
    w2 = _pad_cols(_stack_s2_weight(w).astype(jnp.bfloat16), cout_p)
    mask = _valid_mask_np(n, hg, wg, oh, ow)
    cost = pl.CostEstimate(
        flops=2 * m * 4 * kc * cout_p, transcendentals=cout_p,
        bytes_accessed=x2.size * 2 + w2.size * 2 + m * cout_p * 2)
    if bias is not None:
        b2 = _pad_cols(bias.reshape(1, cout).astype(jnp.float32), cout_p)
        out = pl.pallas_call(
            functools.partial(_conv_bias_lrelu_kernel, offsets, m, kc),
            out_shape=jax.ShapeDtypeStruct((m, cout_p), jnp.bfloat16),
            in_specs=[_VMEM] * 4, out_specs=_VMEM,
            compiler_params=_CPARAMS, cost_estimate=cost,
        )(x2, w2, b2, mask)
    else:
        g2 = _pad_cols(gamma.reshape(1, cout).astype(jnp.float32), cout_p)
        bt2 = _pad_cols(beta.reshape(1, cout).astype(jnp.float32), cout_p)
        count = float(n * oh * ow)
        out = pl.pallas_call(
            functools.partial(_conv_bn_lrelu_kernel, offsets, m, kc, count),
            out_shape=jax.ShapeDtypeStruct((m, cout_p), jnp.bfloat16),
            in_specs=[_VMEM] * 5, out_specs=_VMEM,
            compiler_params=_CPARAMS, cost_estimate=cost,
        )(x2, w2, g2, bt2, mask)
    return out.reshape(n, hg, wg, cout_p), oh, ow, cout


def _down4_and_output(y3, vh, vw, w4, g4, be4, w5, b5):
    """Fused DownBlock4 (ZeroPad+Conv(s=1,p=1)+BN+LReLU+ZeroPad) + Output conv."""
    n, xh, xw, c = y3.shape            # xh = vh+1, xw = vw+1 (masked grid)
    hg = vh + 4
    wg = vw + 4
    wg += (-(wg + 1)) % 8              # sublane-align shift = wg + 1
    xp = jnp.pad(y3, ((0, 0), (2, hg - 2 - xh), (2, wg - 2 - xw), (0, 0)))
    m = n * hg * wg
    tail = 3 * wg + 3
    shift = wg + 1
    offsets = tuple(i * wg + j for i in range(K) for j in range(K))
    assert all(offsets[t + 1] == offsets[t] + 1 for t in range(0, K * K, 2))
    oh4, ow4 = vh + 1, vw + 1
    cout4 = w4.shape[0]
    kc4 = c
    x2 = _flatten_rows(xp, tail).astype(jnp.bfloat16)
    w4s = _stack_s1_weight(w4).astype(jnp.bfloat16)       # (16*c, cout4)
    mask = _valid_mask_np(n, hg, wg, oh4, ow4)
    count = float(n * oh4 * ow4)
    # Output conv weight / bias padded to a lane-dense 128-wide output slab.
    cout5 = w5.shape[0]
    cout5_p = _round_up(cout5, LANES)
    w5s = _pad_cols(_stack_s1_weight(w5).astype(jnp.bfloat16), cout5_p)
    b5p = _pad_cols(b5.reshape(1, cout5).astype(jnp.float32), cout5_p)
    kc5 = cout4
    cost = pl.CostEstimate(
        flops=2 * m * K * K * (kc4 * cout4 + kc5 * cout5_p),
        transcendentals=cout4,
        bytes_accessed=x2.size * 2 + w4s.size * 2 + w5s.size * 2 + m * cout5_p * 4)
    out = pl.pallas_call(
        functools.partial(_down4_output_kernel, offsets, m, kc4, kc5, count,
                          shift, tail),
        out_shape=jax.ShapeDtypeStruct((m, cout5_p), jnp.float32),
        in_specs=[_VMEM] * 7, out_specs=_VMEM,
        scratch_shapes=[pltpu.VMEM((m + tail, cout4), jnp.bfloat16)],
        compiler_params=_CPARAMS, cost_estimate=cost,
    )(x2, w4s, g4.reshape(1, cout4).astype(jnp.float32),
      be4.reshape(1, cout4).astype(jnp.float32), mask, w5s, b5p)
    return out.reshape(n, hg, wg, cout5_p)[:, :vh, :vw, :cout5]


# ------------------------------ forward pass ----------------------------------

@jax.jit
def discriminator_forward(params, x_nchw):
    """x: (N, 9, H, W) float32 NCHW -> PatchGAN logits (N, 1, H/8, W/8)."""
    x = jnp.transpose(x_nchw, (0, 2, 3, 1)).astype(jnp.bfloat16)     # NHWC bf16
    n, h, w, _ = x.shape
    assert h % 8 == 0 and w % 8 == 0
    y1, oh1, ow1, c1 = _down_s2(x, h, w, params["w1"], bias=params["b1"])
    y2, oh2, ow2, c2 = _down_s2(y1[..., :c1], oh1, ow1, params["w2"],
                                gamma=params["g2"], beta=params["be2"])
    y3, oh3, ow3, c3 = _down_s2(y2[..., :c2], oh2, ow2, params["w3"],
                                gamma=params["g3"], beta=params["be3"])
    y5 = _down4_and_output(y3[..., :c3], oh3, ow3, params["w4"], params["g4"],
                           params["be4"], params["w5"], params["b5"])
    return jnp.transpose(y5, (0, 3, 1, 2))


# --------------------------- parameters / reference ----------------------------

def make_params(key, in_c=9, hid=32, out_c=1):
    def conv_w(k, cout, cin):
        bound = 1.0 / (cin * K * K) ** 0.5
        return jax.random.uniform(k, (cout, cin, K, K), jnp.float32, -bound, bound)

    def conv_b(k, cout, cin):
        bound = 1.0 / (cin * K * K) ** 0.5
        return jax.random.uniform(k, (cout,), jnp.float32, -bound, bound)

    ks = jax.random.split(key, 13)
    return {
        "w1": conv_w(ks[0], hid, in_c), "b1": conv_b(ks[1], hid, in_c),
        "w2": conv_w(ks[2], 2 * hid, hid),
        "g2": jax.random.uniform(ks[3], (2 * hid,), jnp.float32, 0.8, 1.2),
        "be2": jax.random.uniform(ks[4], (2 * hid,), jnp.float32, -0.1, 0.1),
        "w3": conv_w(ks[5], 4 * hid, 2 * hid),
        "g3": jax.random.uniform(ks[6], (4 * hid,), jnp.float32, 0.8, 1.2),
        "be3": jax.random.uniform(ks[7], (4 * hid,), jnp.float32, -0.1, 0.1),
        "w4": conv_w(ks[8], 8 * hid, 4 * hid),
        "g4": jax.random.uniform(ks[9], (8 * hid,), jnp.float32, 0.8, 1.2),
        "be4": jax.random.uniform(ks[10], (8 * hid,), jnp.float32, -0.1, 0.1),
        "w5": conv_w(ks[11], out_c, 8 * hid), "b5": conv_b(ks[12], out_c, 8 * hid),
    }


def _reference_forward(params, x_nchw):
    """Pure-JAX (lax.conv) reference of the same module, for validation."""
    def conv(x, w, stride, pad):
        return lax.conv_general_dilated(
            x, w, window_strides=(stride, stride),
            padding=((pad, pad), (pad, pad)),
            dimension_numbers=("NCHW", "OIHW", "NCHW"))

    def bn(x, g, b):
        mean = jnp.mean(x, axis=(0, 2, 3), keepdims=True)
        var = jnp.mean(jnp.square(x - mean), axis=(0, 2, 3), keepdims=True)
        return (x - mean) * lax.rsqrt(var + BN_EPS) * g.reshape(1, -1, 1, 1) \
            + b.reshape(1, -1, 1, 1)

    lrelu = lambda v: jnp.where(v >= 0, v, NEG_SLOPE * v)

    y1 = lrelu(conv(x_nchw, params["w1"], 2, 1) + params["b1"].reshape(1, -1, 1, 1))
    y2 = lrelu(bn(conv(y1, params["w2"], 2, 1), params["g2"], params["be2"]))
    y3 = lrelu(bn(conv(y2, params["w3"], 2, 1), params["g3"], params["be3"]))
    y3p = jnp.pad(y3, ((0, 0), (0, 0), (1, 1), (1, 1)))
    y4 = lrelu(bn(conv(y3p, params["w4"], 1, 1), params["g4"], params["be4"]))
    y4p = jnp.pad(y4, ((0, 0), (0, 0), (1, 1), (1, 1)))
    return conv(y4p, params["w5"], 1, 0) + params["b5"].reshape(1, -1, 1, 1)


# ------------------------------------ main -------------------------------------

if __name__ == "__main__":
    key = jax.random.PRNGKey(0)
    kp, kx = jax.random.split(key)

    N, C, H, W = 2, 9, 16, 16
    params = make_params(kp, in_c=C)
    x = jax.random.normal(kx, (N, C, H, W), jnp.float32)

    out = jax.block_until_ready(discriminator_forward(params, x))
    assert out.shape == (N, 1, H // 8, W // 8), out.shape
    assert bool(jnp.all(jnp.isfinite(out)))

    ref = _reference_forward(params, x)
    max_err = float(jnp.max(jnp.abs(out - ref)))
    assert max_err < 0.2, max_err   # bf16 MXU inputs across 4 layers -> loose tol

    print("KERNEL_OK")
</pallas_src>

<mosaic_0001>
module attributes {stable_mosaic.version = 11 : i64} {
  func.func @_conv_bias_lrelu_kernel(%arg0: memref<172x36xbf16, #tpu.memory_space<vmem>>, %arg1: memref<144x128xbf16, #tpu.memory_space<vmem>>, %arg2: memref<1x128xf32, #tpu.memory_space<vmem>>, %arg3: memref<162x1xf32, #tpu.memory_space<vmem>>, %arg4: memref<162x128xbf16, #tpu.memory_space<vmem>>) attributes {dimension_semantics = [], scalar_prefetch = 0 : i64, scratch_operands = 0 : i64, tpu.core_type = #tpu.core_type<tc>} {
    %c0 = arith.constant 0 : index
    %c0_0 = arith.constant 0 : index
    %0 = vector.load %arg0[%c0, %c0_0] : memref<172x36xbf16, #tpu.memory_space<vmem>>, vector<162x36xbf16>
    %c0_1 = arith.constant 0 : index
    %c0_2 = arith.constant 0 : index
    %1 = vector.load %arg1[%c0_1, %c0_2] : memref<144x128xbf16, #tpu.memory_space<vmem>>, vector<36x128xbf16>
    %cst = arith.constant dense<0.000000e+00> : vector<162x128xf32>
    %2 = tpu.matmul %0, %1, %cst {dimension_numbers = #tpu.dot_dimension_numbers<[1], [0], [0], [1], [0, 0, 1, 1], [], []>} : vector<162x36xbf16>, vector<36x128xbf16>, vector<162x128xf32> -> vector<162x128xf32>
    %c1 = arith.constant 1 : index
    %c0_3 = arith.constant 0 : index
    %3 = vector.load %arg0[%c1, %c0_3] : memref<172x36xbf16, #tpu.memory_space<vmem>>, vector<162x36xbf16>
    %c36 = arith.constant 36 : index
    %c0_4 = arith.constant 0 : index
    %4 = vector.load %arg1[%c36, %c0_4] : memref<144x128xbf16, #tpu.memory_space<vmem>>, vector<36x128xbf16>
    %cst_5 = arith.constant dense<0.000000e+00> : vector<162x128xf32>
    %5 = tpu.matmul %3, %4, %cst_5 {dimension_numbers = #tpu.dot_dimension_numbers<[1], [0], [0], [1], [0, 0, 1, 1], [], []>} : vector<162x36xbf16>, vector<36x128xbf16>, vector<162x128xf32> -> vector<162x128xf32>
    %6 = arith.addf %2, %5 : vector<162x128xf32>
    %c9 = arith.constant 9 : index
    %c0_6 = arith.constant 0 : index
    %7 = vector.load %arg0[%c9, %c0_6] : memref<172x36xbf16, #tpu.memory_space<vmem>>, vector<162x36xbf16>
    %c72 = arith.constant 72 : index
    %c0_7 = arith.constant 0 : index
    %8 = vector.load %arg1[%c72, %c0_7] : memref<144x128xbf16, #tpu.memory_space<vmem>>, vector<36x128xbf16>
    %cst_8 = arith.constant dense<0.000000e+00> : vector<162x128xf32>
    %9 = tpu.matmul %7, %8, %cst_8 {dimension_numbers = #tpu.dot_dimension_numbers<[1], [0], [0], [1], [0, 0, 1, 1], [], []>} : vector<162x36xbf16>, vector<36x128xbf16>, vector<162x128xf32> -> vector<162x128xf32>
    %10 = arith.addf %6, %9 : vector<162x128xf32>
    %c10 = arith.constant 10 : index
    %c0_9 = arith.constant 0 : index
    %11 = vector.load %arg0[%c10, %c0_9] : memref<172x36xbf16, #tpu.memory_space<vmem>>, vector<162x36xbf16>
    %c108 = arith.constant 108 : index
    %c0_10 = arith.constant 0 : index
    %12 = vector.load %arg1[%c108, %c0_10] : memref<144x128xbf16, #tpu.memory_space<vmem>>, vector<36x128xbf16>
    %cst_11 = arith.constant dense<0.000000e+00> : vector<162x128xf32>
    %13 = tpu.matmul %11, %12, %cst_11 {dimension_numbers = #tpu.dot_dimension_numbers<[1], [0], [0], [1], [0, 0, 1, 1], [], []>} : vector<162x36xbf16>, vector<36x128xbf16>, vector<162x128xf32> -> vector<162x128xf32>
    %14 = arith.addf %10, %13 : vector<162x128xf32>
    %c0_12 = arith.constant 0 : index
    %c0_13 = arith.constant 0 : index
    %15 = vector.load %arg2[%c0_12, %c0_13] : memref<1x128xf32, #tpu.memory_space<vmem>>, vector<1x128xf32>
    %16 = vector.broadcast %15 : vector<1x128xf32> to vector<162x128xf32>
    %17 = arith.addf %14, %16 : vector<162x128xf32>
    %cst_14 = arith.constant 0.000000e+00 : f32
    %18 = vector.broadcast %cst_14 : f32 to vector<162x128xf32>
    %19 = arith.cmpf oge, %17, %18 : vector<162x128xf32>
    %cst_15 = arith.constant 2.000000e-01 : f32
    %20 = vector.broadcast %cst_15 : f32 to vector<162x128xf32>
    %21 = arith.mulf %20, %17 : vector<162x128xf32>
    %22 = arith.select %19, %17, %21 : vector<162x128xi1>, vector<162x128xf32>
    %c0_16 = arith.constant 0 : index
    %c0_17 = arith.constant 0 : index
    %23 = vector.load %arg3[%c0_16, %c0_17] : memref<162x1xf32, #tpu.memory_space<vmem>>, vector<162x1xf32>
    %24 = vector.broadcast %23 : vector<162x1xf32> to vector<162x128xf32>
    %25 = arith.mulf %22, %24 : vector<162x128xf32>
    %26 = arith.truncf %25 : vector<162x128xf32> to vector<162x128xbf16>
    %c0_18 = arith.constant 0 : index
    %c0_19 = arith.constant 0 : index
    %27 = vector.load %arg4[%c0_18, %c0_19] : memref<162x128xbf16, #tpu.memory_space<vmem>>, vector<162x128xbf16>
    tpu.vector_store %arg4[%c0_18, %c0_19], %26 {strides = array<i32>} : memref<162x128xbf16, #tpu.memory_space<vmem>>, vector<162x128xbf16>,
    return
  }
}

module attributes {stable_mosaic.version = 11 : i64} {
  func.func @_conv_bn_lrelu_kernel(%arg0: memref<56x128xbf16, #tpu.memory_space<vmem>>, %arg1: memref<512x128xbf16, #tpu.memory_space<vmem>>, %arg2: memref<1x128xf32, #tpu.memory_space<vmem>>, %arg3: memref<1x128xf32, #tpu.memory_space<vmem>>, %arg4: memref<50x1xf32, #tpu.memory_space<vmem>>, %arg5: memref<50x128xbf16, #tpu.memory_space<vmem>>) attributes {dimension_semantics = [], scalar_prefetch = 0 : i64, scratch_operands = 0 : i64, tpu.core_type = #tpu.core_type<tc>} {
    %c0 = arith.constant 0 : index
    %c0_0 = arith.constant 0 : index
    %0 = vector.load %arg0[%c0, %c0_0] : memref<56x128xbf16, #tpu.memory_space<vmem>>, vector<50x128xbf16>
    %c0_1 = arith.constant 0 : index
    %c0_2 = arith.constant 0 : index
    %1 = vector.load %arg1[%c0_1, %c0_2] : memref<512x128xbf16, #tpu.memory_space<vmem>>, vector<128x128xbf16>
    %cst = arith.constant dense<0.000000e+00> : vector<50x128xf32>
    %2 = tpu.matmul %0, %1, %cst {dimension_numbers = #tpu.dot_dimension_numbers<[1], [0], [0], [1], [0, 0, 1, 1], [], []>} : vector<50x128xbf16>, vector<128x128xbf16>, vector<50x128xf32> -> vector<50x128xf32>
    %c1 = arith.constant 1 : index
    %c0_3 = arith.constant 0 : index
    %3 = vector.load %arg0[%c1, %c0_3] : memref<56x128xbf16, #tpu.memory_space<vmem>>, vector<50x128xbf16>
    %c128 = arith.constant 128 : index
    %c0_4 = arith.constant 0 : index
    %4 = vector.load %arg1[%c128, %c0_4] : memref<512x128xbf16, #tpu.memory_space<vmem>>, vector<128x128xbf16>
    %cst_5 = arith.constant dense<0.000000e+00> : vector<50x128xf32>
    %5 = tpu.matmul %3, %4, %cst_5 {dimension_numbers = #tpu.dot_dimension_numbers<[1], [0], [0], [1], [0, 0, 1, 1], [], []>} : vector<50x128xbf16>, vector<128x128xbf16>, vector<50x128xf32> -> vector<50x128xf32>
    %6 = arith.addf %2, %5 : vector<50x128xf32>
    %c5 = arith.constant 5 : index
    %c0_6 = arith.constant 0 : index
    %7 = vector.load %arg0[%c5, %c0_6] : memref<56x128xbf16, #tpu.memory_space<vmem>>, vector<50x128xbf16>
    %c256 = arith.constant 256 : index
    %c0_7 = arith.constant 0 : index
    %8 = vector.load %arg1[%c256, %c0_7] : memref<512x128xbf16, #tpu.memory_space<vmem>>, vector<128x128xbf16>
    %cst_8 = arith.constant dense<0.000000e+00> : vector<50x128xf32>
    %9 = tpu.matmul %7, %8, %cst_8 {dimension_numbers = #tpu.dot_dimension_numbers<[1], [0], [0], [1], [0, 0, 1, 1], [], []>} : vector<50x128xbf16>, vector<128x128xbf16>, vector<50x128xf32> -> vector<50x128xf32>
    %10 = arith.addf %6, %9 : vector<50x128xf32>
    %c6 = arith.constant 6 : index
    %c0_9 = arith.constant 0 : index
    %11 = vector.load %arg0[%c6, %c0_9] : memref<56x128xbf16, #tpu.memory_space<vmem>>, vector<50x128xbf16>
    %c384 = arith.constant 384 : index
    %c0_10 = arith.constant 0 : index
    %12 = vector.load %arg1[%c384, %c0_10] : memref<512x128xbf16, #tpu.memory_space<vmem>>, vector<128x128xbf16>
    %cst_11 = arith.constant dense<0.000000e+00> : vector<50x128xf32>
    %13 = tpu.matmul %11, %12, %cst_11 {dimension_numbers = #tpu.dot_dimension_numbers<[1], [0], [0], [1], [0, 0, 1, 1], [], []>} : vector<50x128xbf16>, vector<128x128xbf16>, vector<50x128xf32> -> vector<50x128xf32>
    %14 = arith.addf %10, %13 : vector<50x128xf32>
    %c0_12 = arith.constant 0 : index
    %c0_13 = arith.constant 0 : index
    %15 = vector.load %arg4[%c0_12, %c0_13] : memref<50x1xf32, #tpu.memory_space<vmem>>, vector<50x1xf32>
    %c0_14 = arith.constant 0 : index
    %c0_15 = arith.constant 0 : index
    %16 = vector.load %arg2[%c0_14, %c0_15] : memref<1x128xf32, #tpu.memory_space<vmem>>, vector<1x128xf32>
    %c0_16 = arith.constant 0 : index
    %c0_17 = arith.constant 0 : index
    %17 = vector.load %arg3[%c0_16, %c0_17] : memref<1x128xf32, #tpu.memory_space<vmem>>, vector<1x128xf32>
    %18 = vector.broadcast %15 : vector<50x1xf32> to vector<50x128xf32>
    %19 = arith.mulf %14, %18 : vector<50x128xf32>
    %cst_18 = arith.constant dense<0.000000e+00> : vector<128xf32>
    %20 = vector.multi_reduction <add>, %19, %cst_18 [0] : vector<50x128xf32> to vector<128xf32>
    %21 = vector.shape_cast %20 : vector<128xf32> to vector<1x128xf32>
    %cst_19 = arith.constant 3.125000e-02 : f32
    %22 = vector.broadcast %cst_19 : f32 to vector<1x128xf32>
    %23 = arith.mulf %21, %22 : vector<1x128xf32>
    %24 = arith.mulf %19, %14 : vector<50x128xf32>
    %cst_20 = arith.constant dense<0.000000e+00> : vector<128xf32>
    %25 = vector.multi_reduction <add>, %24, %cst_20 [0] : vector<50x128xf32> to vector<128xf32>
    %26 = vector.shape_cast %25 : vector<128xf32> to vector<1x128xf32>
    %cst_21 = arith.constant 3.125000e-02 : f32
    %27 = vector.broadcast %cst_21 : f32 to vector<1x128xf32>
    %28 = arith.mulf %26, %27 : vector<1x128xf32>
    %29 = arith.mulf %23, %23 : vector<1x128xf32>
    %30 = arith.subf %28, %29 : vector<1x128xf32>
    %cst_22 = arith.constant 0.000000e+00 : f32
    %31 = vector.broadcast %cst_22 : f32 to vector<1x128xf32>
    %32 = arith.maximumf %30, %31 : vector<1x128xf32>
    %33 = vector.broadcast %23 : vector<1x128xf32> to vector<50x128xf32>
    %34 = arith.subf %14, %33 : vector<50x128xf32>
    %cst_23 = arith.constant 9.99999974E-6 : f32
    %35 = vector.broadcast %cst_23 : f32 to vector<1x128xf32>
    %36 = arith.addf %32, %35 : vector<1x128xf32>
    %37 = math.rsqrt %36 : vector<1x128xf32>
    %38 = vector.broadcast %37 : vector<1x128xf32> to vector<50x128xf32>
    %39 = arith.mulf %34, %38 : vector<50x128xf32>
    %40 = vector.broadcast %16 : vector<1x128xf32> to vector<50x128xf32>
    %41 = arith.mulf %39, %40 : vector<50x128xf32>
    %42 = vector.broadcast %17 : vector<1x128xf32> to vector<50x128xf32>
    %43 = arith.addf %41, %42 : vector<50x128xf32>
    %cst_24 = arith.constant 0.000000e+00 : f32
    %44 = vector.broadcast %cst_24 : f32 to vector<50x128xf32>
    %45 = arith.cmpf oge, %43, %44 : vector<50x128xf32>
    %cst_25 = arith.constant 2.000000e-01 : f32
    %46 = vector.broadcast %cst_25 : f32 to vector<50x128xf32>
    %47 = arith.mulf %46, %43 : vector<50x128xf32>
    %48 = arith.select %45, %43, %47 : vector<50x128xi1>, vector<50x128xf32>
    %49 = vector.broadcast %15 : vector<50x1xf32> to vector<50x128xf32>
    %50 = arith.mulf %48, %49 : vector<50x128xf32>
    %51 = arith.truncf %50 : vector<50x128xf32> to vector<50x128xbf16>
    %c0_26 = arith.constant 0 : index
    %c0_27 = arith.constant 0 : index
    %52 = vector.load %arg5[%c0_26, %c0_27] : memref<50x128xbf16, #tpu.memory_space<vmem>>, vector<50x128xbf16>
    tpu.vector_store %arg5[%c0_26, %c0_27], %51 {strides = array<i32>} : memref<50x128xbf16, #tpu.memory_space<vmem>>, vector<50x128xbf16>,
    return
  }
}

module attributes {stable_mosaic.version = 11 : i64} {
  func.func @_conv_bn_lrelu_kernel(%arg0: memref<22x256xbf16, #tpu.memory_space<vmem>>, %arg1: memref<1024x128xbf16, #tpu.memory_space<vmem>>, %arg2: memref<1x128xf32, #tpu.memory_space<vmem>>, %arg3: memref<1x128xf32, #tpu.memory_space<vmem>>, %arg4: memref<18x1xf32, #tpu.memory_space<vmem>>, %arg5: memref<18x128xbf16, #tpu.memory_space<vmem>>) attributes {dimension_semantics = [], scalar_prefetch = 0 : i64, scratch_operands = 0 : i64, tpu.core_type = #tpu.core_type<tc>} {
    %c0 = arith.constant 0 : index
    %c0_0 = arith.constant 0 : index
    %0 = vector.load %arg0[%c0, %c0_0] : memref<22x256xbf16, #tpu.memory_space<vmem>>, vector<18x256xbf16>
    %c0_1 = arith.constant 0 : index
    %c0_2 = arith.constant 0 : index
    %1 = vector.load %arg1[%c0_1, %c0_2] : memref<1024x128xbf16, #tpu.memory_space<vmem>>, vector<256x128xbf16>
    %cst = arith.constant dense<0.000000e+00> : vector<18x128xf32>
    %2 = tpu.matmul %0, %1, %cst {dimension_numbers = #tpu.dot_dimension_numbers<[1], [0], [0], [1], [0, 0, 1, 1], [], []>} : vector<18x256xbf16>, vector<256x128xbf16>, vector<18x128xf32> -> vector<18x128xf32>
    %c1 = arith.constant 1 : index
    %c0_3 = arith.constant 0 : index
    %3 = vector.load %arg0[%c1, %c0_3] : memref<22x256xbf16, #tpu.memory_space<vmem>>, vector<18x256xbf16>
    %c256 = arith.constant 256 : index
    %c0_4 = arith.constant 0 : index
    %4 = vector.load %arg1[%c256, %c0_4] : memref<1024x128xbf16, #tpu.memory_space<vmem>>, vector<256x128xbf16>
    %cst_5 = arith.constant dense<0.000000e+00> : vector<18x128xf32>
    %5 = tpu.matmul %3, %4, %cst_5 {dimension_numbers = #tpu.dot_dimension_numbers<[1], [0], [0], [1], [0, 0, 1, 1], [], []>} : vector<18x256xbf16>, vector<256x128xbf16>, vector<18x128xf32> -> vector<18x128xf32>
    %6 = arith.addf %2, %5 : vector<18x128xf32>
    %c3 = arith.constant 3 : index
    %c0_6 = arith.constant 0 : index
    %7 = vector.load %arg0[%c3, %c0_6] : memref<22x256xbf16, #tpu.memory_space<vmem>>, vector<18x256xbf16>
    %c512 = arith.constant 512 : index
    %c0_7 = arith.constant 0 : index
    %8 = vector.load %arg1[%c512, %c0_7] : memref<1024x128xbf16, #tpu.memory_space<vmem>>, vector<256x128xbf16>
    %cst_8 = arith.constant dense<0.000000e+00> : vector<18x128xf32>
    %9 = tpu.matmul %7, %8, %cst_8 {dimension_numbers = #tpu.dot_dimension_numbers<[1], [0], [0], [1], [0, 0, 1, 1], [], []>} : vector<18x256xbf16>, vector<256x128xbf16>, vector<18x128xf32> -> vector<18x128xf32>
    %10 = arith.addf %6, %9 : vector<18x128xf32>
    %c4 = arith.constant 4 : index
    %c0_9 = arith.constant 0 : index
    %11 = vector.load %arg0[%c4, %c0_9] : memref<22x256xbf16, #tpu.memory_space<vmem>>, vector<18x256xbf16>
    %c768 = arith.constant 768 : index
    %c0_10 = arith.constant 0 : index
    %12 = vector.load %arg1[%c768, %c0_10] : memref<1024x128xbf16, #tpu.memory_space<vmem>>, vector<256x128xbf16>
    %cst_11 = arith.constant dense<0.000000e+00> : vector<18x128xf32>
    %13 = tpu.matmul %11, %12, %cst_11 {dimension_numbers = #tpu.dot_dimension_numbers<[1], [0], [0], [1], [0, 0, 1, 1], [], []>} : vector<18x256xbf16>, vector<256x128xbf16>, vector<18x128xf32> -> vector<18x128xf32>
    %14 = arith.addf %10, %13 : vector<18x128xf32>
    %c0_12 = arith.constant 0 : index
    %c0_13 = arith.constant 0 : index
    %15 = vector.load %arg4[%c0_12, %c0_13] : memref<18x1xf32, #tpu.memory_space<vmem>>, vector<18x1xf32>
    %c0_14 = arith.constant 0 : index
    %c0_15 = arith.constant 0 : index
    %16 = vector.load %arg2[%c0_14, %c0_15] : memref<1x128xf32, #tpu.memory_space<vmem>>, vector<1x128xf32>
    %c0_16 = arith.constant 0 : index
    %c0_17 = arith.constant 0 : index
    %17 = vector.load %arg3[%c0_16, %c0_17] : memref<1x128xf32, #tpu.memory_space<vmem>>, vector<1x128xf32>
    %18 = vector.broadcast %15 : vector<18x1xf32> to vector<18x128xf32>
    %19 = arith.mulf %14, %18 : vector<18x128xf32>
    %cst_18 = arith.constant dense<0.000000e+00> : vector<128xf32>
    %20 = vector.multi_reduction <add>, %19, %cst_18 [0] : vector<18x128xf32> to vector<128xf32>
    %21 = vector.shape_cast %20 : vector<128xf32> to vector<1x128xf32>
    %cst_19 = arith.constant 1.250000e-01 : f32
    %22 = vector.broadcast %cst_19 : f32 to vector<1x128xf32>
    %23 = arith.mulf %21, %22 : vector<1x128xf32>
    %24 = arith.mulf %19, %14 : vector<18x128xf32>
    %cst_20 = arith.constant dense<0.000000e+00> : vector<128xf32>
    %25 = vector.multi_reduction <add>, %24, %cst_20 [0] : vector<18x128xf32> to vector<128xf32>
    %26 = vector.shape_cast %25 : vector<128xf32> to vector<1x128xf32>
    %cst_21 = arith.constant 1.250000e-01 : f32
    %27 = vector.broadcast %cst_21 : f32 to vector<1x128xf32>
    %28 = arith.mulf %26, %27 : vector<1x128xf32>
    %29 = arith.mulf %23, %23 : vector<1x128xf32>
    %30 = arith.subf %28, %29 : vector<1x128xf32>
    %cst_22 = arith.constant 0.000000e+00 : f32
    %31 = vector.broadcast %cst_22 : f32 to vector<1x128xf32>
    %32 = arith.maximumf %30, %31 : vector<1x128xf32>
    %33 = vector.broadcast %23 : vector<1x128xf32> to vector<18x128xf32>
    %34 = arith.subf %14, %33 : vector<18x128xf32>
    %cst_23 = arith.constant 9.99999974E-6 : f32
    %35 = vector.broadcast %cst_23 : f32 to vector<1x128xf32>
    %36 = arith.addf %32, %35 : vector<1x128xf32>
    %37 = math.rsqrt %36 : vector<1x128xf32>
    %38 = vector.broadcast %37 : vector<1x128xf32> to vector<18x128xf32>
    %39 = arith.mulf %34, %38 : vector<18x128xf32>
    %40 = vector.broadcast %16 : vector<1x128xf32> to vector<18x128xf32>
    %41 = arith.mulf %39, %40 : vector<18x128xf32>
    %42 = vector.broadcast %17 : vector<1x128xf32> to vector<18x128xf32>
    %43 = arith.addf %41, %42 : vector<18x128xf32>
    %cst_24 = arith.constant 0.000000e+00 : f32
    %44 = vector.broadcast %cst_24 : f32 to vector<18x128xf32>
    %45 = arith.cmpf oge, %43, %44 : vector<18x128xf32>
    %cst_25 = arith.constant 2.000000e-01 : f32
    %46 = vector.broadcast %cst_25 : f32 to vector<18x128xf32>
    %47 = arith.mulf %46, %43 : vector<18x128xf32>
    %48 = arith.select %45, %43, %47 : vector<18x128xi1>, vector<18x128xf32>
    %49 = vector.broadcast %15 : vector<18x1xf32> to vector<18x128xf32>
    %50 = arith.mulf %48, %49 : vector<18x128xf32>
    %51 = arith.truncf %50 : vector<18x128xf32> to vector<18x128xbf16>
    %c0_26 = arith.constant 0 : index
    %c0_27 = arith.constant 0 : index
    %52 = vector.load %arg5[%c0_26, %c0_27] : memref<18x128xbf16, #tpu.memory_space<vmem>>, vector<18x128xbf16>
    tpu.vector_store %arg5[%c0_26, %c0_27], %51 {strides = array<i32>} : memref<18x128xbf16, #tpu.memory_space<vmem>>, vector<18x128xbf16>,
    return
  }
}

module attributes {stable_mosaic.version = 11 : i64} {
  func.func @_down4_output_kernel(%arg0: memref<108x128xbf16, #tpu.memory_space<vmem>>, %arg1: memref<2048x256xbf16, #tpu.memory_space<vmem>>, %arg2: memref<1x256xf32, #tpu.memory_space<vmem>>, %arg3: memref<1x256xf32, #tpu.memory_space<vmem>>, %arg4: memref<84x1xf32, #tpu.memory_space<vmem>>, %arg5: memref<4096x128xbf16, #tpu.memory_space<vmem>>, %arg6: memref<1x128xf32, #tpu.memory_space<vmem>>, %arg7: memref<84x128xf32, #tpu.memory_space<vmem>>, %arg8: memref<108x256xbf16, #tpu.memory_space<vmem>>) attributes {dimension_semantics = [], scalar_prefetch = 0 : i64, scratch_operands = 1 : i64, tpu.core_type = #tpu.core_type<tc>} {
    %c0 = arith.constant 0 : index
    %c0_0 = arith.constant 0 : index
    %0 = vector.load %arg0[%c0, %c0_0] : memref<108x128xbf16, #tpu.memory_space<vmem>>, vector<84x128xbf16>
    %c1 = arith.constant 1 : index
    %c0_1 = arith.constant 0 : index
    %1 = vector.load %arg0[%c1, %c0_1] : memref<108x128xbf16, #tpu.memory_space<vmem>>, vector<84x128xbf16>
    %2 = tpu.concatenate %0, %1 in 1 : vector<84x128xbf16>, vector<84x128xbf16> -> vector<84x256xbf16>
    %c0_2 = arith.constant 0 : index
    %c0_3 = arith.constant 0 : index
    %3 = vector.load %arg1[%c0_2, %c0_3] : memref<2048x256xbf16, #tpu.memory_space<vmem>>, vector<256x256xbf16>
    %cst = arith.constant dense<0.000000e+00> : vector<84x256xf32>
    %4 = tpu.matmul %2, %3, %cst {dimension_numbers = #tpu.dot_dimension_numbers<[1], [0], [0], [1], [0, 0, 1, 1], [], []>} : vector<84x256xbf16>, vector<256x256xbf16>, vector<84x256xf32> -> vector<84x256xf32>
    %c2 = arith.constant 2 : index
    %c0_4 = arith.constant 0 : index
    %5 = vector.load %arg0[%c2, %c0_4] : memref<108x128xbf16, #tpu.memory_space<vmem>>, vector<84x128xbf16>
    %c3 = arith.constant 3 : index
    %c0_5 = arith.constant 0 : index
    %6 = vector.load %arg0[%c3, %c0_5] : memref<108x128xbf16, #tpu.memory_space<vmem>>, vector<84x128xbf16>
    %7 = tpu.concatenate %5, %6 in 1 : vector<84x128xbf16>, vector<84x128xbf16> -> vector<84x256xbf16>
    %c256 = arith.constant 256 : index
    %c0_6 = arith.constant 0 : index
    %8 = vector.load %arg1[%c256, %c0_6] : memref<2048x256xbf16, #tpu.memory_space<vmem>>, vector<256x256xbf16>
    %cst_7 = arith.constant dense<0.000000e+00> : vector<84x256xf32>
    %9 = tpu.matmul %7, %8, %cst_7 {dimension_numbers = #tpu.dot_dimension_numbers<[1], [0], [0], [1], [0, 0, 1, 1], [], []>} : vector<84x256xbf16>, vector<256x256xbf16>, vector<84x256xf32> -> vector<84x256xf32>
    %10 = arith.addf %4, %9 : vector<84x256xf32>
    %c7 = arith.constant 7 : index
    %c0_8 = arith.constant 0 : index
    %11 = vector.load %arg0[%c7, %c0_8] : memref<108x128xbf16, #tpu.memory_space<vmem>>, vector<84x128xbf16>
    %c8 = arith.constant 8 : index
    %c0_9 = arith.constant 0 : index
    %12 = vector.load %arg0[%c8, %c0_9] : memref<108x128xbf16, #tpu.memory_space<vmem>>, vector<84x128xbf16>
    %13 = tpu.concatenate %11, %12 in 1 : vector<84x128xbf16>, vector<84x128xbf16> -> vector<84x256xbf16>
    %c512 = arith.constant 512 : index
    %c0_10 = arith.constant 0 : index
    %14 = vector.load %arg1[%c512, %c0_10] : memref<2048x256xbf16, #tpu.memory_space<vmem>>, vector<256x256xbf16>
    %cst_11 = arith.constant dense<0.000000e+00> : vector<84x256xf32>
    %15 = tpu.matmul %13, %14, %cst_11 {dimension_numbers = #tpu.dot_dimension_numbers<[1], [0], [0], [1], [0, 0, 1, 1], [], []>} : vector<84x256xbf16>, vector<256x256xbf16>, vector<84x256xf32> -> vector<84x256xf32>
    %16 = arith.addf %10, %15 : vector<84x256xf32>
    %c9 = arith.constant 9 : index
    %c0_12 = arith.constant 0 : index
    %17 = vector.load %arg0[%c9, %c0_12] : memref<108x128xbf16, #tpu.memory_space<vmem>>, vector<84x128xbf16>
    %c10 = arith.constant 10 : index
    %c0_13 = arith.constant 0 : index
    %18 = vector.load %arg0[%c10, %c0_13] : memref<108x128xbf16, #tpu.memory_space<vmem>>, vector<84x128xbf16>
    %19 = tpu.concatenate %17, %18 in 1 : vector<84x128xbf16>, vector<84x128xbf16> -> vector<84x256xbf16>
    %c768 = arith.constant 768 : index
    %c0_14 = arith.constant 0 : index
    %20 = vector.load %arg1[%c768, %c0_14] : memref<2048x256xbf16, #tpu.memory_space<vmem>>, vector<256x256xbf16>
    %cst_15 = arith.constant dense<0.000000e+00> : vector<84x256xf32>
    %21 = tpu.matmul %19, %20, %cst_15 {dimension_numbers = #tpu.dot_dimension_numbers<[1], [0], [0], [1], [0, 0, 1, 1], [], []>} : vector<84x256xbf16>, vector<256x256xbf16>, vector<84x256xf32> -> vector<84x256xf32>
    %22 = arith.addf %16, %21 : vector<84x256xf32>
    %c14 = arith.constant 14 : index
    %c0_16 = arith.constant 0 : index
    %23 = vector.load %arg0[%c14, %c0_16] : memref<108x128xbf16, #tpu.memory_space<vmem>>, vector<84x128xbf16>
    %c15 = arith.constant 15 : index
    %c0_17 = arith.constant 0 : index
    %24 = vector.load %arg0[%c15, %c0_17] : memref<108x128xbf16, #tpu.memory_space<vmem>>, vector<84x128xbf16>
    %25 = tpu.concatenate %23, %24 in 1 : vector<84x128xbf16>, vector<84x128xbf16> -> vector<84x256xbf16>
    %c1024 = arith.constant 1024 : index
    %c0_18 = arith.constant 0 : index
    %26 = vector.load %arg1[%c1024, %c0_18] : memref<2048x256xbf16, #tpu.memory_space<vmem>>, vector<256x256xbf16>
    %cst_19 = arith.constant dense<0.000000e+00> : vector<84x256xf32>
    %27 = tpu.matmul %25, %26, %cst_19 {dimension_numbers = #tpu.dot_dimension_numbers<[1], [0], [0], [1], [0, 0, 1, 1], [], []>} : vector<84x256xbf16>, vector<256x256xbf16>, vector<84x256xf32> -> vector<84x256xf32>
    %28 = arith.addf %22, %27 : vector<84x256xf32>
    %c16 = arith.constant 16 : index
    %c0_20 = arith.constant 0 : index
    %29 = vector.load %arg0[%c16, %c0_20] : memref<108x128xbf16, #tpu.memory_space<vmem>>, vector<84x128xbf16>
    %c17 = arith.constant 17 : index
    %c0_21 = arith.constant 0 : index
    %30 = vector.load %arg0[%c17, %c0_21] : memref<108x128xbf16, #tpu.memory_space<vmem>>, vector<84x128xbf16>
    %31 = tpu.concatenate %29, %30 in 1 : vector<84x128xbf16>, vector<84x128xbf16> -> vector<84x256xbf16>
    %c1280 = arith.constant 1280 : index
    %c0_22 = arith.constant 0 : index
    %32 = vector.load %arg1[%c1280, %c0_22] : memref<2048x256xbf16, #tpu.memory_space<vmem>>, vector<256x256xbf16>
    %cst_23 = arith.constant dense<0.000000e+00> : vector<84x256xf32>
    %33 = tpu.matmul %31, %32, %cst_23 {dimension_numbers = #tpu.dot_dimension_numbers<[1], [0], [0], [1], [0, 0, 1, 1], [], []>} : vector<84x256xbf16>, vector<256x256xbf16>, vector<84x256xf32> -> vector<84x256xf32>
    %34 = arith.addf %28, %33 : vector<84x256xf32>
    %c21 = arith.constant 21 : index
    %c0_24 = arith.constant 0 : index
    %35 = vector.load %arg0[%c21, %c0_24] : memref<108x128xbf16, #tpu.memory_space<vmem>>, vector<84x128xbf16>
    %c22 = arith.constant 22 : index
    %c0_25 = arith.constant 0 : index
    %36 = vector.load %arg0[%c22, %c0_25] : memref<108x128xbf16, #tpu.memory_space<vmem>>, vector<84x128xbf16>
    %37 = tpu.concatenate %35, %36 in 1 : vector<84x128xbf16>, vector<84x128xbf16> -> vector<84x256xbf16>
    %c1536 = arith.constant 1536 : index
    %c0_26 = arith.constant 0 : index
    %38 = vector.load %arg1[%c1536, %c0_26] : memref<2048x256xbf16, #tpu.memory_space<vmem>>, vector<256x256xbf16>
    %cst_27 = arith.constant dense<0.000000e+00> : vector<84x256xf32>
    %39 = tpu.matmul %37, %38, %cst_27 {dimension_numbers = #tpu.dot_dimension_numbers<[1], [0], [0], [1], [0, 0, 1, 1], [], []>} : vector<84x256xbf16>, vector<256x256xbf16>, vector<84x256xf32> -> vector<84x256xf32>
    %40 = arith.addf %34, %39 : vector<84x256xf32>
    %c23 = arith.constant 23 : index
    %c0_28 = arith.constant 0 : index
    %41 = vector.load %arg0[%c23, %c0_28] : memref<108x128xbf16, #tpu.memory_space<vmem>>, vector<84x128xbf16>
    %c24 = arith.constant 24 : index
    %c0_29 = arith.constant 0 : index
    %42 = vector.load %arg0[%c24, %c0_29] : memref<108x128xbf16, #tpu.memory_space<vmem>>, vector<84x128xbf16>
    %43 = tpu.concatenate %41, %42 in 1 : vector<84x128xbf16>, vector<84x128xbf16> -> vector<84x256xbf16>
    %c1792 = arith.constant 1792 : index
    %c0_30 = arith.constant 0 : index
    %44 = vector.load %arg1[%c1792, %c0_30] : memref<2048x256xbf16, #tpu.memory_space<vmem>>, vector<256x256xbf16>
    %cst_31 = arith.constant dense<0.000000e+00> : vector<84x256xf32>
    %45 = tpu.matmul %43, %44, %cst_31 {dimension_numbers = #tpu.dot_dimension_numbers<[1], [0], [0], [1], [0, 0, 1, 1], [], []>} : vector<84x256xbf16>, vector<256x256xbf16>, vector<84x256xf32> -> vector<84x256xf32>
    %46 = arith.addf %40, %45 : vector<84x256xf32>
    %c0_32 = arith.constant 0 : index
    %c0_33 = arith.constant 0 : index
    %47 = vector.load %arg4[%c0_32, %c0_33] : memref<84x1xf32, #tpu.memory_space<vmem>>, vector<84x1xf32>
    %c0_34 = arith.constant 0 : index
    %c0_35 = arith.constant 0 : index
    %48 = vector.load %arg2[%c0_34, %c0_35] : memref<1x256xf32, #tpu.memory_space<vmem>>, vector<1x256xf32>
    %c0_36 = arith.constant 0 : index
    %c0_37 = arith.constant 0 : index
    %49 = vector.load %arg3[%c0_36, %c0_37] : memref<1x256xf32, #tpu.memory_space<vmem>>, vector<1x256xf32>
    %50 = vector.broadcast %47 : vector<84x1xf32> to vector<84x256xf32>
    %51 = arith.mulf %46, %50 : vector<84x256xf32>
    %cst_38 = arith.constant dense<0.000000e+00> : vector<256xf32>
    %52 = vector.multi_reduction <add>, %51, %cst_38 [0] : vector<84x256xf32> to vector<256xf32>
    %53 = vector.shape_cast %52 : vector<256xf32> to vector<1x256xf32>
    %cst_39 = arith.constant 0.055555556 : f32
    %54 = vector.broadcast %cst_39 : f32 to vector<1x256xf32>
    %55 = arith.mulf %53, %54 : vector<1x256xf32>
    %56 = arith.mulf %51, %46 : vector<84x256xf32>
    %cst_40 = arith.constant dense<0.000000e+00> : vector<256xf32>
    %57 = vector.multi_reduction <add>, %56, %cst_40 [0] : vector<84x256xf32> to vector<256xf32>
    %58 = vector.shape_cast %57 : vector<256xf32> to vector<1x256xf32>
    %cst_41 = arith.constant 0.055555556 : f32
    %59 = vector.broadcast %cst_41 : f32 to vector<1x256xf32>
    %60 = arith.mulf %58, %59 : vector<1x256xf32>
    %61 = arith.mulf %55, %55 : vector<1x256xf32>
    %62 = arith.subf %60, %61 : vector<1x256xf32>
    %cst_42 = arith.constant 0.000000e+00 : f32
    %63 = vector.broadcast %cst_42 : f32 to vector<1x256xf32>
    %64 = arith.maximumf %62, %63 : vector<1x256xf32>
    %65 = vector.broadcast %55 : vector<1x256xf32> to vector<84x256xf32>
    %66 = arith.subf %46, %65 : vector<84x256xf32>
    %cst_43 = arith.constant 9.99999974E-6 : f32
    %67 = vector.broadcast %cst_43 : f32 to vector<1x256xf32>
    %68 = arith.addf %64, %67 : vector<1x256xf32>
    %69 = math.rsqrt %68 : vector<1x256xf32>
    %70 = vector.broadcast %69 : vector<1x256xf32> to vector<84x256xf32>
    %71 = arith.mulf %66, %70 : vector<84x256xf32>
    %72 = vector.broadcast %48 : vector<1x256xf32> to vector<84x256xf32>
    %73 = arith.mulf %71, %72 : vector<84x256xf32>
    %74 = vector.broadcast %49 : vector<1x256xf32> to vector<84x256xf32>
    %75 = arith.addf %73, %74 : vector<84x256xf32>
    %cst_44 = arith.constant 0.000000e+00 : f32
    %76 = vector.broadcast %cst_44 : f32 to vector<84x256xf32>
    %77 = arith.cmpf oge, %75, %76 : vector<84x256xf32>
    %cst_45 = arith.constant 2.000000e-01 : f32
    %78 = vector.broadcast %cst_45 : f32 to vector<84x256xf32>
    %79 = arith.mulf %78, %75 : vector<84x256xf32>
    %80 = arith.select %77, %75, %79 : vector<84x256xi1>, vector<84x256xf32>
    %81 = vector.broadcast %47 : vector<84x1xf32> to vector<84x256xf32>
    %82 = arith.mulf %80, %81 : vector<84x256xf32>
    %cst_46 = arith.constant 0.000000e+00 : bf16
    %83 = vector.broadcast %cst_46 : bf16 to vector<8x256xbf16>
    %c0_47 = arith.constant 0 : index
    %c0_48 = arith.constant 0 : index
    %84 = vector.load %arg8[%c0_47, %c0_48] : memref<108x256xbf16, #tpu.memory_space<vmem>>, vector<8x256xbf16>
    tpu.vector_store %arg8[%c0_47, %c0_48], %83 {strides = array<i32>} : memref<108x256xbf16, #tpu.memory_space<vmem>>, vector<8x256xbf16>,
    %cst_49 = arith.constant 0.000000e+00 : bf16
    %85 = vector.broadcast %cst_49 : bf16 to vector<16x256xbf16>
    %c92 = arith.constant 92 : index
    %c0_50 = arith.constant 0 : index
    %86 = vector.load %arg8[%c92, %c0_50] : memref<108x256xbf16, #tpu.memory_space<vmem>>, vector<16x256xbf16>
    tpu.vector_store %arg8[%c92, %c0_50], %85 {strides = array<i32>} : memref<108x256xbf16, #tpu.memory_space<vmem>>, vector<16x256xbf16>,
    %87 = arith.truncf %82 : vector<84x256xf32> to vector<84x256xbf16>
    %c8_51 = arith.constant 8 : index
    %c0_52 = arith.constant 0 : index
    %88 = vector.load %arg8[%c8_51, %c0_52] : memref<108x256xbf16, #tpu.memory_space<vmem>>, vector<84x256xbf16>
    tpu.vector_store %arg8[%c8_51, %c0_52], %87 {strides = array<i32>} : memref<108x256xbf16, #tpu.memory_space<vmem>>, vector<84x256xbf16>,
    %c0_53 = arith.constant 0 : index
    %c0_54 = arith.constant 0 : index
    %89 = vector.load %arg8[%c0_53, %c0_54] : memref<108x256xbf16, #tpu.memory_space<vmem>>, vector<84x256xbf16>
    %c0_55 = arith.constant 0 : index
    %c0_56 = arith.constant 0 : index
    %90 = vector.load %arg5[%c0_55, %c0_56] : memref<4096x128xbf16, #tpu.memory_space<vmem>>, vector<256x128xbf16>
    %cst_57 = arith.constant dense<0.000000e+00> : vector<84x128xf32>
    %91 = tpu.matmul %89, %90, %cst_57 {dimension_numbers = #tpu.dot_dimension_numbers<[1], [0], [0], [1], [0, 0, 1, 1], [], []>} : vector<84x256xbf16>, vector<256x128xbf16>, vector<84x128xf32> -> vector<84x128xf32>
    %c1_58 = arith.constant 1 : index
    %c0_59 = arith.constant 0 : index
    %92 = vector.load %arg8[%c1_58, %c0_59] : memref<108x256xbf16, #tpu.memory_space<vmem>>, vector<84x256xbf16>
    %c256_60 = arith.constant 256 : index
    %c0_61 = arith.constant 0 : index
    %93 = vector.load %arg5[%c256_60, %c0_61] : memref<4096x128xbf16, #tpu.memory_space<vmem>>, vector<256x128xbf16>
    %cst_62 = arith.constant dense<0.000000e+00> : vector<84x128xf32>
    %94 = tpu.matmul %92, %93, %cst_62 {dimension_numbers = #tpu.dot_dimension_numbers<[1], [0], [0], [1], [0, 0, 1, 1], [], []>} : vector<84x256xbf16>, vector<256x128xbf16>, vector<84x128xf32> -> vector<84x128xf32>
    %95 = arith.addf %91, %94 : vector<84x128xf32>
    %c2_63 = arith.constant 2 : index
    %c0_64 = arith.constant 0 : index
    %96 = vector.load %arg8[%c2_63, %c0_64] : memref<108x256xbf16, #tpu.memory_space<vmem>>, vector<84x256xbf16>
    %c512_65 = arith.constant 512 : index
    %c0_66 = arith.constant 0 : index
    %97 = vector.load %arg5[%c512_65, %c0_66] : memref<4096x128xbf16, #tpu.memory_space<vmem>>, vector<256x128xbf16>
    %cst_67 = arith.constant dense<0.000000e+00> : vector<84x128xf32>
    %98 = tpu.matmul %96, %97, %cst_67 {dimension_numbers = #tpu.dot_dimension_numbers<[1], [0], [0], [1], [0, 0, 1, 1], [], []>} : vector<84x256xbf16>, vector<256x128xbf16>, vector<84x128xf32> -> vector<84x128xf32>
    %99 = arith.addf %95, %98 : vector<84x128xf32>
    %c3_68 = arith.constant 3 : index
    %c0_69 = arith.constant 0 : index
    %100 = vector.load %arg8[%c3_68, %c0_69] : memref<108x256xbf16, #tpu.memory_space<vmem>>, vector<84x256xbf16>
    %c768_70 = arith.constant 768 : index
    %c0_71 = arith.constant 0 : index
    %101 = vector.load %arg5[%c768_70, %c0_71] : memref<4096x128xbf16, #tpu.memory_space<vmem>>, vector<256x128xbf16>
    %cst_72 = arith.constant dense<0.000000e+00> : vector<84x128xf32>
    %102 = tpu.matmul %100, %101, %cst_72 {dimension_numbers = #tpu.dot_dimension_numbers<[1], [0], [0], [1], [0, 0, 1, 1], [], []>} : vector<84x256xbf16>, vector<256x128xbf16>, vector<84x128xf32> -> vector<84x128xf32>
    %103 = arith.addf %99, %102 : vector<84x128xf32>
    %c7_73 = arith.constant 7 : index
    %c0_74 = arith.constant 0 : index
    %104 = vector.load %arg8[%c7_73, %c0_74] : memref<108x256xbf16, #tpu.memory_space<vmem>>, vector<84x256xbf16>
    %c1024_75 = arith.constant 1024 : index
    %c0_76 = arith.constant 0 : index
    %105 = vector.load %arg5[%c1024_75, %c0_76] : memref<4096x128xbf16, #tpu.memory_space<vmem>>, vector<256x128xbf16>
    %cst_77 = arith.constant dense<0.000000e+00> : vector<84x128xf32>
    %106 = tpu.matmul %104, %105, %cst_77 {dimension_numbers = #tpu.dot_dimension_numbers<[1], [0], [0], [1], [0, 0, 1, 1], [], []>} : vector<84x256xbf16>, vector<256x128xbf16>, vector<84x128xf32> -> vector<84x128xf32>
    %107 = arith.addf %103, %106 : vector<84x128xf32>
    %c8_78 = arith.constant 8 : index
    %c0_79 = arith.constant 0 : index
    %108 = vector.load %arg8[%c8_78, %c0_79] : memref<108x256xbf16, #tpu.memory_space<vmem>>, vector<84x256xbf16>
    %c1280_80 = arith.constant 1280 : index
    %c0_81 = arith.constant 0 : index
    %109 = vector.load %arg5[%c1280_80, %c0_81] : memref<4096x128xbf16, #tpu.memory_space<vmem>>, vector<256x128xbf16>
    %cst_82 = arith.constant dense<0.000000e+00> : vector<84x128xf32>
    %110 = tpu.matmul %108, %109, %cst_82 {dimension_numbers = #tpu.dot_dimension_numbers<[1], [0], [0], [1], [0, 0, 1, 1], [], []>} : vector<84x256xbf16>, vector<256x128xbf16>, vector<84x128xf32> -> vector<84x128xf32>
    %111 = arith.addf %107, %110 : vector<84x128xf32>
    %c9_83 = arith.constant 9 : index
    %c0_84 = arith.constant 0 : index
    %112 = vector.load %arg8[%c9_83, %c0_84] : memref<108x256xbf16, #tpu.memory_space<vmem>>, vector<84x256xbf16>
    %c1536_85 = arith.constant 1536 : index
    %c0_86 = arith.constant 0 : index
    %113 = vector.load %arg5[%c1536_85, %c0_86] : memref<4096x128xbf16, #tpu.memory_space<vmem>>, vector<256x128xbf16>
    %cst_87 = arith.constant dense<0.000000e+00> : vector<84x128xf32>
    %114 = tpu.matmul %112, %113, %cst_87 {dimension_numbers = #tpu.dot_dimension_numbers<[1], [0], [0], [1], [0, 0, 1, 1], [], []>} : vector<84x256xbf16>, vector<256x128xbf16>, vector<84x128xf32> -> vector<84x128xf32>
    %115 = arith.addf %111, %114 : vector<84x128xf32>
    %c10_88 = arith.constant 10 : index
    %c0_89 = arith.constant 0 : index
    %116 = vector.load %arg8[%c10_88, %c0_89] : memref<108x256xbf16, #tpu.memory_space<vmem>>, vector<84x256xbf16>
    %c1792_90 = arith.constant 1792 : index
    %c0_91 = arith.constant 0 : index
    %117 = vector.load %arg5[%c1792_90, %c0_91] : memref<4096x128xbf16, #tpu.memory_space<vmem>>, vector<256x128xbf16>
    %cst_92 = arith.constant dense<0.000000e+00> : vector<84x128xf32>
    %118 = tpu.matmul %116, %117, %cst_92 {dimension_numbers = #tpu.dot_dimension_numbers<[1], [0], [0], [1], [0, 0, 1, 1], [], []>} : vector<84x256xbf16>, vector<256x128xbf16>, vector<84x128xf32> -> vector<84x128xf32>
    %119 = arith.addf %115, %118 : vector<84x128xf32>
    %c14_93 = arith.constant 14 : index
    %c0_94 = arith.constant 0 : index
    %120 = vector.load %arg8[%c14_93, %c0_94] : memref<108x256xbf16, #tpu.memory_space<vmem>>, vector<84x256xbf16>
    %c2048 = arith.constant 2048 : index
    %c0_95 = arith.constant 0 : index
    %121 = vector.load %arg5[%c2048, %c0_95] : memref<4096x128xbf16, #tpu.memory_space<vmem>>, vector<256x128xbf16>
    %cst_96 = arith.constant dense<0.000000e+00> : vector<84x128xf32>
    %122 = tpu.matmul %120, %121, %cst_96 {dimension_numbers = #tpu.dot_dimension_numbers<[1], [0], [0], [1], [0, 0, 1, 1], [], []>} : vector<84x256xbf16>, vector<256x128xbf16>, vector<84x128xf32> -> vector<84x128xf32>
    %123 = arith.addf %119, %122 : vector<84x128xf32>
    %c15_97 = arith.constant 15 : index
    %c0_98 = arith.constant 0 : index
    %124 = vector.load %arg8[%c15_97, %c0_98] : memref<108x256xbf16, #tpu.memory_space<vmem>>, vector<84x256xbf16>
    %c2304 = arith.constant 2304 : index
    %c0_99 = arith.constant 0 : index
    %125 = vector.load %arg5[%c2304, %c0_99] : memref<4096x128xbf16, #tpu.memory_space<vmem>>, vector<256x128xbf16>
    %cst_100 = arith.constant dense<0.000000e+00> : vector<84x128xf32>
    %126 = tpu.matmul %124, %125, %cst_100 {dimension_numbers = #tpu.dot_dimension_numbers<[1], [0], [0], [1], [0, 0, 1, 1], [], []>} : vector<84x256xbf16>, vector<256x128xbf16>, vector<84x128xf32> -> vector<84x128xf32>
    %127 = arith.addf %123, %126 : vector<84x128xf32>
    %c16_101 = arith.constant 16 : index
    %c0_102 = arith.constant 0 : index
    %128 = vector.load %arg8[%c16_101, %c0_102] : memref<108x256xbf16, #tpu.memory_space<vmem>>, vector<84x256xbf16>
    %c2560 = arith.constant 2560 : index
    %c0_103 = arith.constant 0 : index
    %129 = vector.load %arg5[%c2560, %c0_103] : memref<4096x128xbf16, #tpu.memory_space<vmem>>, vector<256x128xbf16>
    %cst_104 = arith.constant dense<0.000000e+00> : vector<84x128xf32>
    %130 = tpu.matmul %128, %129, %cst_104 {dimension_numbers = #tpu.dot_dimension_numbers<[1], [0], [0], [1], [0, 0, 1, 1], [], []>} : vector<84x256xbf16>, vector<256x128xbf16>, vector<84x128xf32> -> vector<84x128xf32>
    %131 = arith.addf %127, %130 : vector<84x128xf32>
    %c17_105 = arith.constant 17 : index
    %c0_106 = arith.constant 0 : index
    %132 = vector.load %arg8[%c17_105, %c0_106] : memref<108x256xbf16, #tpu.memory_space<vmem>>, vector<84x256xbf16>
    %c2816 = arith.constant 2816 : index
    %c0_107 = arith.constant 0 : index
    %133 = vector.load %arg5[%c2816, %c0_107] : memref<4096x128xbf16, #tpu.memory_space<vmem>>, vector<256x128xbf16>
    %cst_108 = arith.constant dense<0.000000e+00> : vector<84x128xf32>
    %134 = tpu.matmul %132, %133, %cst_108 {dimension_numbers = #tpu.dot_dimension_numbers<[1], [0], [0], [1], [0, 0, 1, 1], [], []>} : vector<84x256xbf16>, vector<256x128xbf16>, vector<84x128xf32> -> vector<84x128xf32>
    %135 = arith.addf %131, %134 : vector<84x128xf32>
    %c21_109 = arith.constant 21 : index
    %c0_110 = arith.constant 0 : index
    %136 = vector.load %arg8[%c21_109, %c0_110] : memref<108x256xbf16, #tpu.memory_space<vmem>>, vector<84x256xbf16>
    %c3072 = arith.constant 3072 : index
    %c0_111 = arith.constant 0 : index
    %137 = vector.load %arg5[%c3072, %c0_111] : memref<4096x128xbf16, #tpu.memory_space<vmem>>, vector<256x128xbf16>
    %cst_112 = arith.constant dense<0.000000e+00> : vector<84x128xf32>
    %138 = tpu.matmul %136, %137, %cst_112 {dimension_numbers = #tpu.dot_dimension_numbers<[1], [0], [0], [1], [0, 0, 1, 1], [], []>} : vector<84x256xbf16>, vector<256x128xbf16>, vector<84x128xf32> -> vector<84x128xf32>
    %139 = arith.addf %135, %138 : vector<84x128xf32>
    %c22_113 = arith.constant 22 : index
    %c0_114 = arith.constant 0 : index
    %140 = vector.load %arg8[%c22_113, %c0_114] : memref<108x256xbf16, #tpu.memory_space<vmem>>, vector<84x256xbf16>
    %c3328 = arith.constant 3328 : index
    %c0_115 = arith.constant 0 : index
    %141 = vector.load %arg5[%c3328, %c0_115] : memref<4096x128xbf16, #tpu.memory_space<vmem>>, vector<256x128xbf16>
    %cst_116 = arith.constant dense<0.000000e+00> : vector<84x128xf32>
    %142 = tpu.matmul %140, %141, %cst_116 {dimension_numbers = #tpu.dot_dimension_numbers<[1], [0], [0], [1], [0, 0, 1, 1], [], []>} : vector<84x256xbf16>, vector<256x128xbf16>, vector<84x128xf32> -> vector<84x128xf32>
    %143 = arith.addf %139, %142 : vector<84x128xf32>
    %c23_117 = arith.constant 23 : index
    %c0_118 = arith.constant 0 : index
    %144 = vector.load %arg8[%c23_117, %c0_118] : memref<108x256xbf16, #tpu.memory_space<vmem>>, vector<84x256xbf16>
    %c3584 = arith.constant 3584 : index
    %c0_119 = arith.constant 0 : index
    %145 = vector.load %arg5[%c3584, %c0_119] : memref<4096x128xbf16, #tpu.memory_space<vmem>>, vector<256x128xbf16>
    %cst_120 = arith.constant dense<0.000000e+00> : vector<84x128xf32>
    %146 = tpu.matmul %144, %145, %cst_120 {dimension_numbers = #tpu.dot_dimension_numbers<[1], [0], [0], [1], [0, 0, 1, 1], [], []>} : vector<84x256xbf16>, vector<256x128xbf16>, vector<84x128xf32> -> vector<84x128xf32>
    %147 = arith.addf %143, %146 : vector<84x128xf32>
    %c24_121 = arith.constant 24 : index
    %c0_122 = arith.constant 0 : index
    %148 = vector.load %arg8[%c24_121, %c0_122] : memref<108x256xbf16, #tpu.memory_space<vmem>>, vector<84x256xbf16>
    %c3840 = arith.constant 3840 : index
    %c0_123 = arith.constant 0 : index
    %149 = vector.load %arg5[%c3840, %c0_123] : memref<4096x128xbf16, #tpu.memory_space<vmem>>, vector<256x128xbf16>
    %cst_124 = arith.constant dense<0.000000e+00> : vector<84x128xf32>
    %150 = tpu.matmul %148, %149, %cst_124 {dimension_numbers = #tpu.dot_dimension_numbers<[1], [0], [0], [1], [0, 0, 1, 1], [], []>} : vector<84x256xbf16>, vector<256x128xbf16>, vector<84x128xf32> -> vector<84x128xf32>
    %151 = arith.addf %147, %150 : vector<84x128xf32>
    %c0_125 = arith.constant 0 : index
    %c0_126 = arith.constant 0 : index
    %152 = vector.load %arg6[%c0_125, %c0_126] : memref<1x128xf32, #tpu.memory_space<vmem>>, vector<1x128xf32>
    %153 = vector.broadcast %152 : vector<1x128xf32> to vector<84x128xf32>
    %154 = arith.addf %151, %153 : vector<84x128xf32>
    %c0_127 = arith.constant 0 : index
    %c0_128 = arith.constant 0 : index
    %155 = vector.load %arg7[%c0_127, %c0_128] : memref<84x128xf32, #tpu.memory_space<vmem>>, vector<84x128xf32>
    tpu.vector_store %arg7[%c0_127, %c0_128], %154 {strides = array<i32>} : memref<84x128xf32, #tpu.memory_space<vmem>>, vector<84x128xf32>,
    return
  }
}

</mosaic_0001>

<bundles_post_ra>
// kernel: discriminator_forward.4
= control target key start
LH: loop header
LB: loop body
LE: loop exit
PB: predicated region body
PF: predicated region fallthrough
CT: control target
= control target key end

     0   :  { %9 = vsyncpa [#allocation3], 0  ;;  %s2531_s0 = inlined_call_operand.hbm [shape: bf16[172,36], index: 0, kind: input, shape index: {}]   ;;  %s2532_s1 = inlined_call_operand.hbm [shape: bf16[144,128], index: 1, kind: input, shape index: {}]   ;;  %s2533_s2 = inlined_call_operand.hbm [shape: f32[1,128], index: 2, kind: input, shape index: {}]   ;;  %s2534_s3 = inlined_call_operand.hbm [shape: f32[162,1], index: 3, kind: input, shape index: {}]   ;;  %s2535_s4 = inlined_call_operand.hbm [shape: bf16[162,128], index: 4, kind: output, shape index: {}]  }
   0x1   :  { %10 = vsyncpa [#allocation6], 0 }
   0x2   :  { %11 = vsyncpa [#allocation9], 0 }
   0x3   :  { %12 = vsyncpa [#allocation4], 0  ;;  %s2143_s15 = smov [#allocation5]   ;;  %s2144_s17 = smov [#allocation2]  }
   0x4   :  { %s30_s16 = sshll.u32 %s2143_s15, 4  ;;  %s18_s18 = sshll.u32 %s2144_s17, 4  ;;  %s31_s16 = int_to_ptr.vmem [resolvable:$true] %s30_s16  ;;  %s2180_s18 = int_to_ptr.vmem [resolvable:$true] %s18_s18 }
   0x5   :  { %s2025_s21 = scalar_lea.hbm %s2532_s1, 1152 }
   0x6   :  { %p2026_p0 = scmp.ne.s32.totalorder %s2532_s1, %s2025_s21  ;;  %p2029_p1 = scmp.lt.u32.totalorder %s2025_s21, %s2532_s1 }
   0x8   :  { %p2031_p2 = pnand %p2029_p1, %p2026_p0 }
   0xa   :  { %2034 = shalt.err (!%p2031_p2)
}
   0xb   :  { %s2035_s26 = scalar_lea.vmem %s31_s16, 1152  ;;  %p2040_p4 = scmp.lt.s32.totalorder %s31_s16, %s31_s16 }
   0xc   :  { %p2036_p3 = scmp.ne.s32.totalorder %s31_s16, %s2035_s26  ;;  %p2041_p5 = scmp.lt.s32.totalorder %s2035_s26, %s2035_s26 }
   0xe   :  { %p2042_p6 = por %p2041_p5, %p2040_p4 }
  0x10   :  { %p2043_p7 = pnand %p2042_p6, %p2036_p3 }
  0x12   :  { %2046 = shalt.err (!%p2043_p7)
}
  0x13   :  { %s2145_s27 = smov 64   ;;  %s2146_s28 = smov 4  }
  0x14   :  { %36 = dma.hbm_to_vmem [thread:$0]  %s2532_s1, 1152, %s31_s16, [#allocation6], %s2145_s27, %s2145_s27, %s2146_s28  }
  0x15   :  { %s2047_s7 = scalar_lea.hbm %s2531_s0, 1408 }
  0x16   :  { %p2048_p8 = scmp.ne.s32.totalorder %s2531_s0, %s2047_s7  ;;  %p2051_p9 = scmp.lt.u32.totalorder %s2047_s7, %s2531_s0 }
  0x18   :  { %p2053_p10 = pnand %p2051_p9, %p2048_p8 }
  0x1a   :  { %2056 = shalt.err (!%p2053_p10)
}
  0x1b   :  { %s2057_s12 = scalar_lea.vmem %s2180_s18, 1408  ;;  %p2062_p12 = scmp.lt.s32.totalorder %s2180_s18, %s2180_s18 }
  0x1c   :  { %p2058_p11 = scmp.ne.s32.totalorder %s2180_s18, %s2057_s12  ;;  %p2063_p13 = scmp.lt.s32.totalorder %s2057_s12, %s2057_s12 }
  0x1e   :  { %p2064_p0 = por %p2063_p13, %p2062_p12 }
  0x20   :  { %p2065_p1 = pnand %p2064_p0, %p2058_p11 }
  0x22   :  { %2068 = shalt.err (!%p2065_p1)
}
  0x23   :  { %24 = dma.hbm_to_vmem [thread:$0]  %s2531_s0, 1408, %s2180_s18, [#allocation3], %s2145_s27, %s2145_s27, %s2146_s28  }
  0x24   :  { %s2147_s14 = smov [#allocation7]   ;;  %s2148_s16 = smov [#allocation8]  }
  0x25   :  { %s43_s15 = sshll.u32 %s2147_s14, 4  ;;  %s52_s17 = sshll.u32 %s2148_s16, 4  ;;  %s44_s15 = int_to_ptr.vmem [resolvable:$true] %s43_s15  ;;  %s2217_s17 = int_to_ptr.vmem [resolvable:$true] %s52_s17 }
  0x26   :  { %s2069_s21 = scalar_lea.hbm %s2533_s2, 16 }
  0x27   :  { %p2070_p2 = scmp.ne.s32.totalorder %s2533_s2, %s2069_s21  ;;  %p2073_p3 = scmp.lt.u32.totalorder %s2069_s21, %s2533_s2 }
  0x29   :  { %p2075_p4 = pnand %p2073_p3, %p2070_p2 }
  0x2b   :  { %2078 = shalt.err (!%p2075_p4)
}
  0x2c   :  { %s2079_s0 = scalar_lea.vmem %s44_s15, 16  ;;  %s2083_s18 = scalar_lea.vmem %s44_s15, 32 }
  0x2d   :  { %p2080_p5 = scmp.ne.s32.totalorder %s44_s15, %s2079_s0  ;;  %p2084_p6 = scmp.lt.s32.totalorder %s44_s15, %s44_s15 }
  0x2e   :  { %p2085_p7 = scmp.lt.s32.totalorder %s2083_s18, %s2079_s0 }
  0x30   :  { %p2086_p8 = por %p2085_p7, %p2084_p6 }
  0x32   :  { %p2087_p9 = pnand %p2086_p8, %p2080_p5 }
  0x34   :  { %2090 = shalt.err (!%p2087_p9)
}
  0x35   :  { %46 = dma.hbm_to_vmem [thread:$0]  %s2533_s2, 16, %s44_s15, [#allocation6]  }
  0x36   :  { %s2091_s6 = scalar_lea.hbm %s2534_s3, 2688 }
  0x37   :  { %p2092_p10 = scmp.ne.s32.totalorder %s2534_s3, %s2091_s6  ;;  %p2095_p11 = scmp.lt.u32.totalorder %s2091_s6, %s2534_s3 }
  0x39   :  { %p2097_p12 = pnand %p2095_p11, %p2092_p10 }
  0x3b   :  { %2100 = shalt.err (!%p2097_p12)
}
  0x3c   :  { %s2101_s11 = scalar_lea.vmem %s2217_s17, 2688  ;;  %p2106_p0 = scmp.lt.s32.totalorder %s2217_s17, %s2217_s17 }
  0x3d   :  { %p2102_p13 = scmp.ne.s32.totalorder %s2217_s17, %s2101_s11  ;;  %p2107_p1 = scmp.lt.s32.totalorder %s2101_s11, %s2101_s11 }
  0x3f   :  { %p2108_p2 = por %p2107_p1, %p2106_p0 }
  0x41   :  { %p2109_p3 = pnand %p2108_p2, %p2102_p13 }
  0x43   :  { %2112 = shalt.err (!%p2109_p3)
}
  0x44   :  { %s2149_s2 = smov 128   ;;  %s2150_s12 = smov 8  }
  0x45   :  { %58 = dma.hbm_to_vmem [thread:$0]  %s2534_s3, 2688, %s2217_s17, [#allocation9], %s2149_s2, %s2149_s2, %s2150_s12  }
  0x46   :  { %2135 = dma.done.wait [#allocation3], 1408  }
  0x47   :  { %2136 = vsyncadd [#allocation3], 4294965888 }
  0x48   :  { %2137 = dma.done.wait [#allocation6], 1168  }
  0x49   :  { %2138 = vsyncadd [#allocation6], 4294966128 }
  0x4a   :  { %2139 = dma.done.wait [#allocation9], 2688  }
  0x4b   :  { %2140 = vsyncadd [#allocation9], 4294964608  ;;  %v2151_v0 = vmov 0.0   ;;  %vm2152_vm0 = vmmov 0   ;;  %v1989_v1 = vld [vmem:[#allocation5 + $0x10] sm:$0xfc]  }
  0x4c   :  { %1775 = vmatprep.subr.bf16.mxu0 %v2151_v0  ;;  %1825 = vmatprep.subr.bf16.mxu1 %v2151_v0  ;;  %v1990_v2 = vld [vmem:[#allocation5 + $0x18] sm:$0xff]   ;;  %vm258_vm1 = vcmask 1045504   ;;  %v1991_v3 = vld [vmem:[#allocation5] sm:$0xff]   ;;  %v259_v4 = vrot.slane %v1989_v1, 2  ;;  %v1993_v7 = vld [vmem:[#allocation5 + $0x8] sm:$0xff]   ;;  %vm300_vm2 = vcmask 1041408  }
  0x4d   :  { %1781 = vmatprep.mubr.msk.bf16.mxu0 %vm2152_vm0, %v2151_v0  ;;  %1831 = vmatprep.mubr.msk.bf16.mxu1 %vm2152_vm0, %v2151_v0  ;;  %v260_v5 = vrot.slane %v1990_v2, 2  ;;  %v1992_v6 = vld [vmem:[#allocation5 + $0x20] ss:$0 sps:$4 sm:$0xff]   ;;  %v1994_v10 = vld [vmem:[#allocation5 + $0x10] ss:$0 sps:$4 sm:$0x33]  }
  0x4e   :  { %1826 = vmatpush3.bf16.msra.mxu1 %v1991_v3  ;;  %v262_v9 = vrot.slane %v1992_v6, 2  ;;  %v1995_v12 = vld [vmem:[#allocation2] sm:$0xff]   ;;  %v1996_v13 = vld [vmem:[#allocation2 + $0x8] sm:$0xff]   ;;  %vm157_vm3 = vsmask.f32 7424  ;;  %v466_v15 = vsel %vm300_vm2, %v1994_v10, 0 }
  0x4f   :  { %v261_v8 = vsel %vm258_vm1, %v259_v4, %v260_v5  ;;  %1827 = vmatprep.subr.bf16.mxu1 %v2151_v0  ;;  %v159_v16 = vshrl.u32 %v1995_v12, 16  ;;  %v161_v17 = vshll.u32 %v1995_v12, 16  ;;  %v166_v18 = vshll.u32 %v1996_v13, 16  ;;  %v1999_v19 = vld [vmem:[#allocation5 + $0x3c] sm:$0xff]   ;;  %v1998_v22 = vld [vmem:[#allocation5 + $0x34] sm:$0xfc]  }
  0x50   :  { %1776 = vmatpush3.bf16.msra.mxu0 %v261_v8  ;;  %v263_v11 = vsel %vm258_vm1, %v260_v5, %v262_v9  ;;  %v302_v14 = vsel %vm300_vm2, %v262_v9, 0  ;;  %v991_v23 = vrot.slane %v1999_v19, 2  ;;  %v2000_v24 = vld [vmem:[#allocation2 + $0x10] sm:$0xff]   ;;  %vm266_vm4 = vcmask 293888   ;;  %v1997_v26 = vld [vmem:[#allocation5 + $0x24] sm:$0xff]   ;;  %v2003_v35 = vld [vmem:[#allocation5 + $0x2c] sm:$0xff]  }
  0x51   :  { %1777 = vmatprep.subr.bf16.mxu0 %v2151_v0  ;;  %v163_v20 = vrot.slane %v161_v17, 1  ;;  %v168_v21 = vrot.slane %v166_v18, 1  ;;  %v990_v27 = vrot.slane %v1998_v22, 2  ;;  %v170_v28 = vshrl.u32 %v1996_v13, 16  ;;  %v2001_v32 = vld [vmem:[#allocation2 + $0x18] sm:$0xff]   ;;  %v2002_v47 = vld [vmem:[#allocation2 + $0x20] sm:$0xff]  }
  0x52   :  { %1828 = vmatpush3.bf16.msra.mxu1 %v1993_v7  ;;  %v174_v29 = vshll.u32 %v2000_v24, 16  ;;  %v2005_v36 = vld [vmem:[#allocation5 + $0x44] ss:$0 sps:$4 sm:$0xff]   ;;  %v178_v39 = vshrl.u32 %v2000_v24, 16  ;;  %v182_v40 = vshll.u32 %v2001_v32, 16  ;;  %v186_v49 = vshrl.u32 %v2001_v32, 16 }
  0x53   :  { %1829 = vmatprep.subr.bf16.mxu1 %v2151_v0  ;;  %v164_v25 = vor.u32 %v163_v20, %v159_v16  ;;  %v992_v31 = vsel %vm258_vm1, %v990_v27, %v991_v23  ;;  %v172_v33 = vor.u32 %v170_v28, %v168_v21  ;;  %v993_v37 = vrot.slane %v2005_v36, 2  ;;  %v2009_v42 = vld [vmem:[#allocation5 + $0x34] ss:$0 sps:$4 sm:$0x33]   ;;  %v2006_v59 = vld [vmem:[#allocation2 + $0x30] sm:$0xff]   ;;  %v2007_v2 = vld [vmem:[#allocation2 + $0x38] sm:$0xff]  }
  0x54   :  { %1778 = vmatpush3.bf16.msra.mxu0 %v263_v11  ;;  %v176_v34 = vrot.slane %v174_v29, 1  ;;  %v803_v43 = vsel %vm300_vm2, %v2009_v42, 0  ;;  %v184_v46 = vrot.slane %v182_v40, 1  ;;  %v190_v50 = vshll.u32 %v2002_v47, 16  ;;  %v2004_v53 = vld [vmem:[#allocation2 + $0x28] sm:$0xff]   ;;  %v1267_v7 = vld [vmem:[#allocation8 + $0x10] sm:$0xff] }
  0x55   :  { %1779 = vmatprep.subr.bf16.mxu0 %v2151_v0  ;;  %v169_v30 = vsel %vm157_vm3, %v164_v25, %v168_v21  ;;  %v994_v41 = vsel %vm258_vm1, %v991_v23, %v993_v37  ;;  %v1031_v44 = vsel %vm300_vm2, %v993_v37, 0  ;;  %v194_v55 = vshrl.u32 %v2002_v47, 16  ;;  %v1265_v6 = vld [vmem:[#allocation8] sm:$0xff]  ;;  %v1270_v18 = vld [vmem:[#allocation8 + $0x28] sm:$0xff]  ;;  %v1271_v22 = vld [vmem:[#allocation8 + $0x30] sm:$0xff]  ;;  %s2154_s3 = smov [#allocation10]  }
  0x56   :  { %1830 = vmatpush3.bf16.msra.mxu1 %v466_v15  ;;  %v177_v38 = vsel %vm157_vm3, %v172_v33, %v176_v34  ;;  %v180_v45 = vor.u32 %v178_v39, %v176_v34  ;;  %v188_v51 = vor.u32 %v186_v49, %v184_v46  ;;  %v192_v52 = vrot.slane %v190_v50, 1  ;;  %v2008_v10 = vld [vmem:[#allocation2 + $0x40] sm:$0xff]   ;;  %v2010_v21 = vld [vmem:[#allocation2 + $0x48] sm:$0xff]   ;;  %v1279_v42 = vld [vmem:[#allocation8 + $0x70] sm:$0xff]  ;;  %s1523_s14 = sshll.u32 %s2154_s3, 4  ;;  %s1524_s14 = int_to_ptr.vmem [resolvable:$true] %s1523_s14 }
  0x57   :  { %1925 = vmatprep.subr.bf16.mxu1 %v2151_v0  ;;  %v198_v56 = vshll.u32 %v2004_v53, 16  ;;  %v202_v61 = vshrl.u32 %v2004_v53, 16  ;;  %v206_v62 = vshll.u32 %v2006_v59, 16  ;;  %v210_v4 = vshrl.u32 %v2006_v59, 16  ;;  %v1269_v17 = vld [vmem:[#allocation8 + $0x20] sm:$0xff]  ;;  %v1272_v23 = vld [vmem:[#allocation8 + $0x38] sm:$0xff]  ;;  %p2118_p5 = scmp.lt.s32.totalorder %s1524_s14, %s1524_s14 }
  0x58   :  { %1780 = vmatpush3.bf16.msra.mxu0 %v302_v14  ;;  %v185_v48 = vsel %vm157_vm3, %v180_v45, %v184_v46  ;;  %v193_v54 = vsel %vm157_vm3, %v188_v51, %v192_v52  ;;  %v196_v57 = vor.u32 %v194_v55, %v192_v52  ;;  %v214_v5 = vshll.u32 %v2007_v2, 16  ;;  %v1273_v27 = vld [vmem:[#allocation8 + $0x40] sm:$0xff]  ;;  %v1274_v28 = vld [vmem:[#allocation8 + $0x48] sm:$0xff]  ;;  %v1276_v33 = vld [vmem:[#allocation8 + $0x58] sm:$0xff]  ;;  %s2113_s15 = scalar_lea.vmem %s1524_s14, 1344 }
  0x59   :  { %1832 = vmatmul.mubr.msk.bf16.vlgmr.msra.gmra.mrb[0].mxu1 %vm266_vm4, %v1995_v12  ;;  %1875 = vmatprep.subr.bf16.mxu0 %v2151_v0  ;;  %v200_v58 = vrot.slane %v198_v56, 1  ;;  %v208_v1 = vrot.slane %v206_v62, 1  ;;  %v2153_v11 = vmov 0   ;;  %v1266_v12 = vld [vmem:[#allocation8 + $0x8] sm:$0xff]  ;;  %v218_v15 = vshrl.u32 %v2007_v2, 16  ;;  %v1277_v37 = vld [vmem:[#allocation8 + $0x60] sm:$0xff]  ;;  %p2114_p4 = scmp.ne.s32.totalorder %s1524_s14, %s2113_s15  ;;  %p2119_p6 = scmp.lt.s32.totalorder %s2113_s15, %s2113_s15 }
  0x5a   :  { %1926 = vmatpush3.bf16.msra.mxu1 %v992_v31  ;;  %1835 = vmatprep.mubr.msk.bf16.mxu1 %vm2152_vm0, %v2151_v0  ;;  %v216_v9 = vrot.slane %v214_v5, 1  ;;  %v222_v16 = vshll.u32 %v2008_v10, 16  ;;  %v226_v25 = vshrl.u32 %v2008_v10, 16  ;;  %v2011_v31 = vld [vmem:[#allocation2 + $0x50] ss:$0 sps:$4 sm:$0x33]  }
  0x5b   :  { %1782 = vmatmul.mubr.msk.bf16.vlgmr.msra.gmra.mrb[0].mxu0 %vm266_vm4, %v169_v30  ;;  %1927 = vmatprep.subr.bf16.mxu1 %v2151_v0  ;;  %v201_v60 = vsel %vm157_vm3, %v196_v57, %v200_v58  ;;  %v204_v63 = vor.u32 %v202_v61, %v200_v58  ;;  %v212_v8 = vor.u32 %v210_v4, %v208_v1  ;;  %v238_v36 = vshll.u32 %v2011_v31, 16  ;;  %v588_v40 = vld [vmem:[#allocation2 + $0x4] sm:$0xf]  ;;  %v2012_v49 = vld [vmem:[#allocation2 + $0x50] ss:$0 sps:$4 sm:$0x11]   ;;  %p2120_p7 = por %p2119_p6, %p2118_p5 }
  0x5c   :  { %1876 = vmatpush3.bf16.msra.mxu0 %v1997_v26  ;;  %1785 = vmatprep.mubr.msk.bf16.mxu0 %vm2152_vm0, %v2151_v0  ;;  %v220_v19 = vor.u32 %v218_v15, %v216_v9  ;;  %v224_v20 = vrot.slane %v222_v16, 1  ;;  %v230_v26 = vshll.u32 %v2010_v21, 16  ;;  %v242_v45 = vshrl.u32 %v2011_v31, 16  ;;  %v946_v46 = vld [vmem:[#allocation2 + $0x4] sm:$0xe]  ;;  %v1278_v61 = vld [vmem:[#allocation8 + $0x68] sm:$0xff] }
  0x5d   :  { %1877 = vmatprep.subr.bf16.mxu0 %v2151_v0  ;;  %v209_v3 = vsel %vm157_vm3, %v204_v63, %v208_v1  ;;  %1987 = vset.pattern.permute.xlu0 %v2153_v11  ;;  %v217_v14 = vsel %vm157_vm3, %v212_v8, %v216_v9  ;;  %v240_v39 = vrot.slane %v238_v36, 1  ;;  %vm955_vm5 = vcmask 1046528   ;;  %v1281_v62 = vld [vmem:[#allocation8 + $0x80] sm:$0xff]  ;;  %v1283_v5 = vld [vmem:[#allocation8 + $0x90] sm:$0xff]  ;;  %v1284_v15 = vld [vmem:[#allocation8 + $0x98] sm:$0xff]  ;;  %p2121_p8 = pnand %p2120_p7, %p2114_p4 }
  0x5e   :  { %1928 = vmatpush3.bf16.msra.mxu1 %v994_v41  ;;  %1288 = vperm.xlu0 %1987, %v1265_v6   ;;  %v228_v29 = vor.u32 %v226_v25, %v224_v20  ;;  %v232_v30 = vrot.slane %v230_v26, 1  ;;  %v589_v41 = vld [vmem:[#allocation2 + $0x8] sm:$0xf]  ;;  %v2017_v8 = vld [vmem:[#allocation2 + $0x1c] sm:$0xff]  }
  0x5f   :  { %1929 = vmatprep.subr.bf16.mxu1 %v2151_v0  ;;  %1988 = vset.pattern.permute.xlu1 %v2153_v11  ;;  %v1602_v50 = vcombine.low %v946_v46, %v589_v41  ;;  %v244_v51 = vor.u32 %v242_v45, %v240_v39  ;;  %v1285_v11 = vld [vmem:[#allocation8 + $0xa0] sm:$0x3]  ;;  %v961_v16 = vrot.slane %v2017_v8, 1 }
  0x60   :  { %1878 = vmatpush3.bf16.msra.mxu0 %v2003_v35  ;;  %1298 = vperm.xlu1 %1988, %v1267_v7   ;;  %v233_v34 = vsel %vm157_vm3, %v228_v29, %v232_v30  ;;  %v234_v35 = vshrl.u32 %v2010_v21, 16 }
  0x61   :  { %1836 = vmatmul.mubr.msk.bf16.gmra.mrb[4].mxu1 %vm266_vm4, %v1996_v13  ;;  %1879 = vmatprep.subr.bf16.mxu0 %v2151_v0  ;;  %v1268_v13 = vld [vmem:[#allocation8 + $0x18] sm:$0xff]  ;;  %v956_v55 = vrot.slane %v1602_v50, 1 }
  0x62   :  { %1839 = vmatprep.mubr.msk.bf16.mxu1 %vm2152_vm0, %v2151_v0  ;;  %1930 = vmatpush3.bf16.msra.mxu1 %v1031_v44  ;;  %v1577_v44 = vcombine.low %v588_v40, %v589_v41 }
  0x63   :  { %1786 = vmatmul.mubr.msk.bf16.gmra.mrb[4].mxu0 %vm266_vm4, %v177_v38  ;;  %1293 = vperm.xlu0 %1987, %v1266_v12   ;;  %v236_v38 = vor.u32 %v234_v35, %v232_v30  ;;  %v2020_v35 = vld [vmem:[#allocation2 + $0x34] sm:$0xff]  }
  0x64   :  { %1789 = vmatprep.mubr.msk.bf16.mxu0 %vm2152_vm0, %v2151_v0  ;;  %1880 = vmatpush3.bf16.msra.mxu0 %v803_v43  ;;  %v668_v52 = vshrl.u32 %v1577_v44, 16  ;;  %v967_v40 = vrot.slane %v2020_v35, 1  ;;  %v719_v46 = vshrl.u32 %v2020_v35, 16 }
  0x65   :  { %1303 = vperm.xlu1 %1988, %v1268_v13   ;;  %v241_v43 = vsel %vm157_vm3, %v236_v38, %v240_v39  ;;  %v715_v39 = vshll.u32 %v2020_v35, 16 }
  0x67   :  { %1308 = vperm.xlu0 %1987, %v1269_v17  }
  0x69   :  { %1840 = vmatmul.mubr.msk.bf16.gmra.mrb[8].mxu1 %vm266_vm4, %v2000_v24  ;;  %1313 = vperm.xlu1 %1988, %v1270_v18   ;;  %v225_v24 = vsel %vm157_vm3, %v220_v19, %v224_v20  ;;  %v2018_v19 = vld [vmem:[#allocation2 + $0x24] sm:$0xff]  }
  0x6a   :  { %1843 = vmatprep.mubr.msk.bf16.mxu1 %vm2152_vm0, %v2151_v0  ;;  %v703_v30 = vshrl.u32 %v2018_v19, 16 }
  0x6b   :  { %1790 = vmatmul.mubr.msk.bf16.gmra.mrb[8].mxu0 %vm266_vm4, %v185_v48  ;;  %1318 = vperm.xlu0 %1987, %v1271_v22   ;;  %v670_v48 = vshll.u32 %v1577_v44, 16  ;;  %v695_v22 = vshrl.u32 %v2017_v8, 16 }
  0x6c   :  { %1793 = vmatprep.mubr.msk.bf16.mxu0 %vm2152_vm0, %v2151_v0 }
  0x6d   :  { %1323 = vperm.xlu1 %1988, %v1272_v23   ;;  %v699_v23 = vshll.u32 %v2018_v19, 16 }
  0x6f   :  { %1328 = vperm.xlu0 %1987, %v1273_v27   ;;  %v701_v26 = vrot.slane %v699_v23, 1  ;;  %v2019_v27 = vld [vmem:[#allocation2 + $0x2c] sm:$0xff]  }
  0x70   :  { %v707_v31 = vshll.u32 %v2019_v27, 16  ;;  %v711_v38 = vshrl.u32 %v2019_v27, 16 }
  0x71   :  { %1844 = vmatmul.mubr.msk.bf16.gmra.mrb[12].mxu1 %vm266_vm4, %v2001_v32  ;;  %v1275_v32 = vld [vmem:[#allocation8 + $0x50] sm:$0xff]  ;;  %1333 = vperm.xlu1 %1988, %v1274_v28  }
  0x72   :  { %1847 = vmatprep.mubr.msk.bf16.mxu1 %vm2152_vm0, %v2151_v0 }
  0x73   :  { %1794 = vmatmul.mubr.msk.bf16.gmra.mrb[12].mxu0 %vm266_vm4, %v193_v54  ;;  %1338 = vperm.xlu0 %1987, %v1275_v32   ;;  %v965_v32 = vrot.slane %v2019_v27, 1 }
  0x74   :  { %1797 = vmatprep.mubr.msk.bf16.mxu0 %vm2152_vm0, %v2151_v0 }
  0x75   :  { %1343 = vperm.xlu1 %1988, %v1276_v33   ;;  %v705_v33 = vor.u32 %v703_v30, %v701_v26  ;;  %v968_v44 = vsel %vm955_vm5, %v965_v32, %v967_v40 }
  0x77   :  { %1348 = vperm.xlu0 %1987, %v1277_v37  }
  0x79   :  { %1848 = vmatmul.mubr.msk.bf16.gmra.mrb[16].mxu1 %vm266_vm4, %v2002_v47  ;;  %v2014_v47 = vld [vmem:[#allocation2 + $0xc] sm:$0xff]   ;;  %1353 = vperm.xlu1 %1988, %v1278_v61  }
  0x7a   :  { %1851 = vmatprep.mubr.msk.bf16.mxu1 %vm2152_vm0, %v2151_v0  ;;  %v675_v54 = vshll.u32 %v2014_v47, 16  ;;  %v957_v56 = vrot.slane %v2014_v47, 1  ;;  %v679_v1 = vshrl.u32 %v2014_v47, 16 }
  0x7b   :  { %1798 = vmatmul.mubr.msk.bf16.gmra.mrb[16].mxu0 %vm266_vm4, %v201_v60  ;;  %1358 = vperm.xlu0 %1987, %v1279_v42   ;;  %v717_v42 = vrot.slane %v715_v39, 1 }
  0x7c   :  { %1801 = vmatprep.mubr.msk.bf16.mxu0 %vm2152_vm0, %v2151_v0  ;;  %v677_v58 = vrot.slane %v675_v54, 1  ;;  %v958_v60 = vsel %vm955_vm5, %v956_v55, %v957_v56 }
  0x7e   :  { %v681_v6 = vor.u32 %v679_v1, %v677_v58 }
  0x7f   :  { %1368 = vperm.xlu0 %1987, %v1281_v62  }
  0x81   :  { %1852 = vmatmul.mubr.msk.bf16.gmra.mrb[20].mxu1 %vm266_vm4, %v2004_v53  ;;  %v672_v53 = vrot.slane %v670_v48, 1 }
  0x82   :  { %1855 = vmatprep.mubr.msk.bf16.mxu1 %vm2152_vm0, %v2151_v0 }
  0x83   :  { %1802 = vmatmul.mubr.msk.bf16.gmra.mrb[20].mxu0 %vm266_vm4, %v209_v3  ;;  %v673_v57 = vor.u32 %v672_v53, %v668_v52  ;;  %v1280_v3 = vld [vmem:[#allocation8 + $0x78] sm:$0xff]  ;;  %1378 = vperm.xlu0 %1987, %v1283_v5  }
  0x84   :  { %1805 = vmatprep.mubr.msk.bf16.mxu0 %vm2152_vm0, %v2151_v0  ;;  %1363 = vperm.xlu1 %1988, %v1280_v3  }
  0x85   :  { %v678_v63 = vsel %vm157_vm3, %v673_v57, %v677_v58 }
  0x87   :  { %1388 = vperm.xlu0 %1987, %v1285_v11  }
  0x89   :  { %1856 = vmatmul.mubr.msk.bf16.gmra.mrb[24].mxu1 %vm266_vm4, %v2006_v59  ;;  %v2016_v59 = vld [vmem:[#allocation2 + $0x14] sm:$0xff]  }
  0x8a   :  { %1859 = vmatprep.mubr.msk.bf16.mxu1 %vm2152_vm0, %v2151_v0  ;;  %v959_v4 = vrot.slane %v2016_v59, 1  ;;  %v687_v13 = vshrl.u32 %v2016_v59, 16 }
  0x8b   :  { %1806 = vmatmul.mubr.msk.bf16.gmra.mrb[24].mxu0 %vm266_vm4, %v217_v14  ;;  %v691_v14 = vshll.u32 %v2017_v8, 16 }
  0x8c   :  { %1809 = vmatprep.mubr.msk.bf16.mxu0 %vm2152_vm0, %v2151_v0  ;;  %v960_v9 = vsel %vm955_vm5, %v957_v56, %v959_v4  ;;  %v962_v20 = vsel %vm955_vm5, %v959_v4, %v961_v16  ;;  %v2024_v4 = vld [vmem:[#allocation2 + $0x54] ss:$0 sps:$4 sm:$0x33]  }
  0x8d   :  { %v693_v18 = vrot.slane %v691_v14, 1  ;;  %v747_v8 = vshll.u32 %v2024_v4, 16  ;;  %v751_v14 = vshrl.u32 %v2024_v4, 16 }
  0x8f   :  { %v697_v25 = vor.u32 %v695_v22, %v693_v18  ;;  %v749_v11 = vrot.slane %v747_v8, 1 }
  0x91   :  { %1860 = vmatmul.mubr.msk.bf16.gmra.mrb[28].mxu1 %vm266_vm4, %v2007_v2  ;;  %v683_v2 = vshll.u32 %v2016_v59, 16  ;;  %v702_v29 = vsel %vm157_vm3, %v697_v25, %v701_v26  ;;  %v2023_v59 = vld [vmem:[#allocation2 + $0x4c] sm:$0xff]  }
  0x92   :  { %1863 = vmatprep.mubr.msk.bf16.mxu1 %vm2152_vm0, %v2151_v0  ;;  %v973_v1 = vrot.slane %v2023_v59, 1 }
  0x93   :  { %1810 = vmatmul.mubr.msk.bf16.gmra.mrb[28].mxu0 %vm266_vm4, %v225_v24  ;;  %v685_v7 = vrot.slane %v683_v2, 1  ;;  %v963_v24 = vrot.slane %v2018_v19, 1 }
  0x94   :  { %1813 = vmatprep.mubr.msk.bf16.mxu0 %vm2152_vm0, %v2151_v0 }
  0x95   :  { %v686_v12 = vsel %vm157_vm3, %v681_v6, %v685_v7  ;;  %v689_v17 = vor.u32 %v687_v13, %v685_v7  ;;  %v964_v28 = vsel %vm955_vm5, %v961_v16, %v963_v24  ;;  %v966_v36 = vsel %vm955_vm5, %v963_v24, %v965_v32 }
  0x96   :  { %v743_v7 = vshrl.u32 %v2023_v59, 16 }
  0x99   :  { %1864 = vmatmul.mubr.msk.bf16.gmra.mrb[32].mxu1 %vm266_vm4, %v2008_v10  ;;  %v1282_v10 = vld [vmem:[#allocation8 + $0x88] sm:$0xff] }
  0x9a   :  { %1867 = vmatprep.mubr.msk.bf16.mxu1 %vm2152_vm0, %v2151_v0  ;;  %1373 = vperm.xlu1 %1988, %v1282_v10  }
  0x9b   :  { %1814 = vmatmul.mubr.msk.bf16.gmra.mrb[32].mxu0 %vm266_vm4, %v233_v34  ;;  %v709_v34 = vrot.slane %v707_v31, 1 }
  0x9c   :  { %1817 = vmatprep.mubr.msk.bf16.mxu0 %vm2152_vm0, %v2151_v0 }
  0x9d   :  { %v710_v37 = vsel %vm157_vm3, %v705_v33, %v709_v34  ;;  %v713_v41 = vor.u32 %v711_v38, %v709_v34 }
  0x9e   :  { %1383 = vperm.xlu1 %1988, %v1284_v15   ;;  %v753_v15 = vor.u32 %v751_v14, %v749_v11 }
  0x9f   :  { %v718_v45 = vsel %vm157_vm3, %v713_v41, %v717_v42 }
  0xa1   :  { %1868 = vmatmul.mubr.msk.bf16.gmra.mrb[36].mxu1 %vm266_vm4, %v2010_v21  ;;  %v694_v21 = vsel %vm157_vm3, %v689_v17, %v693_v18 }
  0xa2   :  { %1871 = vmatprep.mubr.msk.bf16.mxu1 %vm2152_vm0, %v2151_v0 }
  0xa3   :  { %1818 = vmatmul.mubr.msk.bf16.gmra.mrb[36].mxu0 %vm266_vm4, %v241_v43  ;;  %v2021_v43 = vld [vmem:[#allocation2 + $0x3c] sm:$0xff]  }
  0xa4   :  { %1821 = vmatprep.mubr.msk.bf16.mxu0 %vm2152_vm0, %v2151_v0  ;;  %v723_v47 = vshll.u32 %v2021_v43, 16  ;;  %v969_v48 = vrot.slane %v2021_v43, 1  ;;  %v727_v54 = vshrl.u32 %v2021_v43, 16 }
  0xa6   :  { %v725_v50 = vrot.slane %v723_v47, 1  ;;  %v970_v52 = vsel %vm955_vm5, %v967_v40, %v969_v48 }
  0xa8   :  { %v729_v57 = vor.u32 %v727_v54, %v725_v50 }
  0xa9   :  { %1872 = vmatmul.mubr.msk.bf16.gmra.mrb[40].mxu1 %vm266_vm4, %v2012_v49  ;;  %v721_v49 = vor.u32 %v719_v46, %v717_v42 }
  0xaa   :  { %1931 = vmatprep.mubr.msk.bf16.mxu1 %vm2152_vm0, %v2151_v0 }
  0xab   :  { %1822 = vmatmul.mubr.msk.bf16.gmra.mrb[40].mxu0 %vm266_vm4, %v244_v51  ;;  %v2022_v51 = vld [vmem:[#allocation2 + $0x44] sm:$0xff]   ;;  %v726_v53 = vsel %vm157_vm3, %v721_v49, %v725_v50 }
  0xac   :  { %1881 = vmatprep.mubr.msk.bf16.mxu0 %vm2152_vm0, %v2151_v0  ;;  %v731_v55 = vshll.u32 %v2022_v51, 16  ;;  %v971_v56 = vrot.slane %v2022_v51, 1  ;;  %v735_v62 = vshrl.u32 %v2022_v51, 16 }
  0xae   :  { %v733_v58 = vrot.slane %v731_v55, 1  ;;  %v974_v5 = vsel %vm955_vm5, %v971_v56, %v973_v1 }
  0xb0   :  { %v734_v61 = vsel %vm157_vm3, %v729_v57, %v733_v58  ;;  %v737_v2 = vor.u32 %v735_v62, %v733_v58 }
  0xb1   :  { %1932 = vmatmul.mubr.msk.bf16.vlgmr.msra.gmra.mrb[44].mxu1 %vm266_vm4, %v958_v60  ;;  %v972_v60 = vsel %vm955_vm5, %v969_v48, %v971_v56 }
  0xb2   :  { %1935 = vmatprep.mubr.msk.bf16.mxu1 %vm2152_vm0, %v2151_v0 }
  0xb3   :  { %1882 = vmatmul.mubr.msk.bf16.vlgmr.msra.gmra.mrb[44].mxu0 %vm266_vm4, %v678_v63  ;;  %v739_v63 = vshll.u32 %v2023_v59, 16 }
  0xb4   :  { %1885 = vmatprep.mubr.msk.bf16.mxu0 %vm2152_vm0, %v2151_v0 }
  0xb5   :  { %v741_v3 = vrot.slane %v739_v63, 1 }
  0xb7   :  { %v742_v6 = vsel %vm157_vm3, %v737_v2, %v741_v3  ;;  %v745_v10 = vor.u32 %v743_v7, %v741_v3 }
  0xb9   :  { %1936 = vmatmul.mubr.msk.bf16.gmra.mrb[48].mxu1 %vm266_vm4, %v960_v9  ;;  %v975_v9 = vrot.slane %v2024_v4, 1  ;;  %v750_v13 = vsel %vm157_vm3, %v745_v10, %v749_v11 }
  0xba   :  { %1939 = vmatprep.mubr.msk.bf16.mxu1 %vm2152_vm0, %v2151_v0 }
  0xbb   :  { %1886 = vmatmul.mubr.msk.bf16.gmra.mrb[48].mxu0 %vm266_vm4, %v686_v12  ;;  %v976_v12 = vsel %vm955_vm5, %v973_v1, %v975_v9 }
  0xbc   :  { %1889 = vmatprep.mubr.msk.bf16.mxu0 %vm2152_vm0, %v2151_v0 }
  0xc1   :  { %1940 = vmatmul.mubr.msk.bf16.gmra.mrb[52].mxu1 %vm266_vm4, %v962_v20 }
  0xc2   :  { %1943 = vmatprep.mubr.msk.bf16.mxu1 %vm2152_vm0, %v2151_v0 }
  0xc3   :  { %1890 = vmatmul.mubr.msk.bf16.gmra.mrb[52].mxu0 %vm266_vm4, %v694_v21 }
  0xc4   :  { %1893 = vmatprep.mubr.msk.bf16.mxu0 %vm2152_vm0, %v2151_v0 }
  0xc9   :  { %1944 = vmatmul.mubr.msk.bf16.gmra.mrb[56].mxu1 %vm266_vm4, %v964_v28 }
  0xca   :  { %1947 = vmatprep.mubr.msk.bf16.mxu1 %vm2152_vm0, %v2151_v0 }
  0xcb   :  { %1894 = vmatmul.mubr.msk.bf16.gmra.mrb[56].mxu0 %vm266_vm4, %v702_v29 }
  0xcc   :  { %1897 = vmatprep.mubr.msk.bf16.mxu0 %vm2152_vm0, %v2151_v0 }
  0xd1   :  { %1948 = vmatmul.mubr.msk.bf16.gmra.mrb[60].mxu1 %vm266_vm4, %v966_v36 }
  0xd2   :  { %1951 = vmatprep.mubr.msk.bf16.mxu1 %vm2152_vm0, %v2151_v0 }
  0xd3   :  { %1898 = vmatmul.mubr.msk.bf16.gmra.mrb[60].mxu0 %vm266_vm4, %v710_v37 }
  0xd4   :  { %1901 = vmatprep.mubr.msk.bf16.mxu0 %vm2152_vm0, %v2151_v0 }
  0xd9   :  { %1952 = vmatmul.mubr.msk.bf16.gmra.mrb[64].mxu1 %vm266_vm4, %v968_v44 }
  0xda   :  { %1955 = vmatprep.mubr.msk.bf16.mxu1 %vm2152_vm0, %v2151_v0 }
  0xdb   :  { %1902 = vmatmul.mubr.msk.bf16.gmra.mrb[64].mxu0 %vm266_vm4, %v718_v45 }
  0xdc   :  { %1905 = vmatprep.mubr.msk.bf16.mxu0 %vm2152_vm0, %v2151_v0 }
  0xe1   :  { %1956 = vmatmul.mubr.msk.bf16.gmra.mrb[68].mxu1 %vm266_vm4, %v970_v52 }
  0xe2   :  { %1959 = vmatprep.mubr.msk.bf16.mxu1 %vm2152_vm0, %v2151_v0 }
  0xe3   :  { %1906 = vmatmul.mubr.msk.bf16.gmra.mrb[68].mxu0 %vm266_vm4, %v726_v53 }
  0xe4   :  { %1909 = vmatprep.mubr.msk.bf16.mxu0 %vm2152_vm0, %v2151_v0 }
  0xe9   :  { %1960 = vmatmul.mubr.msk.bf16.gmra.mrb[72].mxu1 %vm266_vm4, %v972_v60 }
  0xea   :  { %1963 = vmatprep.mubr.msk.bf16.mxu1 %vm2152_vm0, %v2151_v0 }
  0xeb   :  { %1910 = vmatmul.mubr.msk.bf16.gmra.mrb[72].mxu0 %vm266_vm4, %v734_v61 }
  0xec   :  { %1913 = vmatprep.mubr.msk.bf16.mxu0 %vm2152_vm0, %v2151_v0 }
  0xf1   :  { %1964 = vmatmul.mubr.msk.bf16.gmra.mrb[76].mxu1 %vm266_vm4, %v974_v5 }
  0xf2   :  { %1967 = vmatprep.mubr.msk.bf16.mxu1 %vm2152_vm0, %v2151_v0 }
  0xf3   :  { %1914 = vmatmul.mubr.msk.bf16.gmra.mrb[76].mxu0 %vm266_vm4, %v742_v6 }
  0xf4   :  { %1917 = vmatprep.mubr.msk.bf16.mxu0 %vm2152_vm0, %v2151_v0 }
  0xf9   :  { %1968 = vmatmul.mubr.msk.bf16.gmra.mrb[80].mxu1 %vm266_vm4, %v976_v12 }
  0xfa   :  { %1971 = vmatprep.mubr.msk.bf16.mxu1 %vm2152_vm0, %v2151_v0 }
  0xfb   :  { %1918 = vmatmul.mubr.msk.bf16.gmra.mrb[80].mxu0 %vm266_vm4, %v750_v13 }
  0xfc   :  { %1921 = vmatprep.mubr.msk.bf16.mxu0 %vm2152_vm0, %v2151_v0 }
 0x101   :  { %1972 = vmatmul.mubr.msk.bf16.gmra.mrb[84].mxu1 %vm266_vm4, %v975_v9 }
 0x103   :  { %1922 = vmatmul.mubr.msk.bf16.gmra.mrb[84].mxu0 %vm266_vm4, %v753_v15 }
 0x12c   :  { %v502_v16 = vpop.f32.mrb[0].mxu1 }
 0x12d   :  { %v1833_v17 = vpop.f32.mrb[1].mxu1 }
 0x12e   :  { %v338_v18 = vpop.f32.mrb[0].mxu0  ;;  %v505_v19 = vpop.f32.mrb[2].mxu1 }
 0x12f   :  { %v2430_v20 = vadd.f32 %v502_v16, %v338_v18  ;;  %v1783_v21 = vpop.f32.mrb[1].mxu0  ;;  %v1834_v22 = vpop.f32.mrb[3].mxu1 }
 0x130   :  { %v341_v23 = vpop.f32.mrb[2].mxu0 }
 0x131   :  { %v2432_v24 = vadd.f32 %v505_v19, %v341_v23  ;;  %v1784_v25 = vpop.f32.mrb[3].mxu0 }
 0x134   :  { %v510_v26 = vpop.f32.mrb[4].mxu1 }
 0x135   :  { %v1837_v27 = vpop.f32.mrb[5].mxu1 }
 0x136   :  { %v346_v0 = vpop.f32.mrb[4].mxu0  ;;  %v513_v28 = vpop.f32.mrb[6].mxu1 }
 0x137   :  { %v2434_v29 = vadd.f32 %v510_v26, %v346_v0  ;;  %v1787_v30 = vpop.f32.mrb[5].mxu0  ;;  %v1838_v31 = vpop.f32.mrb[7].mxu1 }
 0x138   :  { %v349_v32 = vpop.f32.mrb[6].mxu0 }
 0x139   :  { %v2436_v33 = vadd.f32 %v513_v28, %v349_v32  ;;  %v1788_v34 = vpop.f32.mrb[7].mxu0 }
 0x13c   :  { %v518_v35 = vpop.f32.mrb[8].mxu1 }
 0x13d   :  { %v1841_v36 = vpop.f32.mrb[9].mxu1 }
 0x13e   :  { %v354_v37 = vpop.f32.mrb[8].mxu0  ;;  %v521_v38 = vpop.f32.mrb[10].mxu1 }
 0x13f   :  { %v2438_v39 = vadd.f32 %v518_v35, %v354_v37  ;;  %v1791_v40 = vpop.f32.mrb[9].mxu0  ;;  %v1842_v41 = vpop.f32.mrb[11].mxu1 }
 0x140   :  { %v357_v42 = vpop.f32.mrb[10].mxu0 }
 0x141   :  { %v2440_v43 = vadd.f32 %v521_v38, %v357_v42  ;;  %v1792_v44 = vpop.f32.mrb[11].mxu0 }
 0x144   :  { %v526_v45 = vpop.f32.mrb[12].mxu1 }
 0x145   :  { %v1845_v46 = vpop.f32.mrb[13].mxu1 }
 0x146   :  { %v362_v47 = vpop.f32.mrb[12].mxu0  ;;  %v529_v48 = vpop.f32.mrb[14].mxu1 }
 0x147   :  { %v2442_v49 = vadd.f32 %v526_v45, %v362_v47  ;;  %v1795_v50 = vpop.f32.mrb[13].mxu0  ;;  %v1846_v51 = vpop.f32.mrb[15].mxu1 }
 0x148   :  { %v365_v52 = vpop.f32.mrb[14].mxu0 }
 0x149   :  { %v2444_v53 = vadd.f32 %v529_v48, %v365_v52  ;;  %v1796_v54 = vpop.f32.mrb[15].mxu0 }
 0x14c   :  { %v534_v55 = vpop.f32.mrb[16].mxu1 }
 0x14d   :  { %v1849_v56 = vpop.f32.mrb[17].mxu1 }
 0x14e   :  { %v370_v57 = vpop.f32.mrb[16].mxu0  ;;  %v537_v58 = vpop.f32.mrb[18].mxu1 }
 0x14f   :  { %v2446_v59 = vadd.f32 %v534_v55, %v370_v57  ;;  %v1799_v60 = vpop.f32.mrb[17].mxu0  ;;  %v1850_v61 = vpop.f32.mrb[19].mxu1 }
 0x150   :  { %v373_v62 = vpop.f32.mrb[18].mxu0 }
 0x151   :  { %v2448_v63 = vadd.f32 %v537_v58, %v373_v62  ;;  %v1800_v1 = vpop.f32.mrb[19].mxu0 }
 0x154   :  { %v542_v2 = vpop.f32.mrb[20].mxu1 }
 0x155   :  { %v1853_v3 = vpop.f32.mrb[21].mxu1 }
 0x156   :  { %v378_v4 = vpop.f32.mrb[20].mxu0  ;;  %v545_v5 = vpop.f32.mrb[22].mxu1 }
 0x157   :  { %v2450_v6 = vadd.f32 %v542_v2, %v378_v4  ;;  %v1803_v7 = vpop.f32.mrb[21].mxu0  ;;  %v1854_v8 = vpop.f32.mrb[23].mxu1 }
 0x158   :  { %v381_v9 = vpop.f32.mrb[22].mxu0 }
 0x159   :  { %v2452_v10 = vadd.f32 %v545_v5, %v381_v9  ;;  %v1804_v11 = vpop.f32.mrb[23].mxu0 }
 0x15a   :  { %v1289_v11 = vpop.permute.xlu0 %1288 }
 0x15c   :  { %v550_v12 = vpop.f32.mrb[24].mxu1 }
 0x15d   :  { %v1857_v13 = vpop.f32.mrb[25].mxu1 }
 0x15e   :  { %v386_v14 = vpop.f32.mrb[24].mxu0  ;;  %v553_v15 = vpop.f32.mrb[26].mxu1 }
 0x15f   :  { %v2454_v16 = vadd.f32 %v550_v12, %v386_v14  ;;  %v1807_v17 = vpop.f32.mrb[25].mxu0  ;;  %v1858_v18 = vpop.f32.mrb[27].mxu1 }
 0x160   :  { %v389_v19 = vpop.f32.mrb[26].mxu0  ;;  %v2473_v18 = vld [vmem:[#allocation7] ss:$0 sm:$0xff] }
 0x161   :  { %v2456_v21 = vadd.f32 %v553_v15, %v389_v19  ;;  %v1808_v22 = vpop.f32.mrb[27].mxu0 }
 0x164   :  { %v558_v23 = vpop.f32.mrb[28].mxu1 }
 0x165   :  { %v1861_v25 = vpop.f32.mrb[29].mxu1 }
 0x166   :  { %v394_v26 = vpop.f32.mrb[28].mxu0  ;;  %v561_v27 = vpop.f32.mrb[30].mxu1 }
 0x167   :  { %v2458_v0 = vadd.f32 %v558_v23, %v394_v26  ;;  %v1811_v28 = vpop.f32.mrb[29].mxu0  ;;  %v1862_v30 = vpop.f32.mrb[31].mxu1 }
 0x168   :  { %v397_v31 = vpop.f32.mrb[30].mxu0  ;;  %v1294_v30 = vpop.permute.xlu0 %1293 }
 0x169   :  { %v2460_v32 = vadd.f32 %v561_v27, %v397_v31  ;;  %v1812_v34 = vpop.f32.mrb[31].mxu0 }
 0x16c   :  { %v566_v35 = vpop.f32.mrb[32].mxu1 }
 0x16d   :  { %v1865_v36 = vpop.f32.mrb[33].mxu1 }
 0x16e   :  { %v402_v37 = vpop.f32.mrb[32].mxu0  ;;  %v569_v38 = vpop.f32.mrb[34].mxu1 }
 0x16f   :  { %v2462_v40 = vadd.f32 %v566_v35, %v402_v37  ;;  %v1815_v41 = vpop.f32.mrb[33].mxu0  ;;  %v1866_v42 = vpop.f32.mrb[35].mxu1 }
 0x170   :  { %v405_v44 = vpop.f32.mrb[34].mxu0 }
 0x171   :  { %v2464_v45 = vadd.f32 %v569_v38, %v405_v44  ;;  %v1816_v46 = vpop.f32.mrb[35].mxu0 }
 0x174   :  { %v574_v47 = vpop.f32.mrb[36].mxu1 }
 0x175   :  { %v1869_v48 = vpop.f32.mrb[37].mxu1 }
 0x176   :  { %v410_v50 = vpop.f32.mrb[36].mxu0  ;;  %v577_v51 = vpop.f32.mrb[38].mxu1 }
 0x177   :  { %v2466_v52 = vadd.f32 %v574_v47, %v410_v50  ;;  %v1819_v54 = vpop.f32.mrb[37].mxu0  ;;  %v1870_v55 = vpop.f32.mrb[39].mxu1 }
 0x178   :  { %v413_v56 = vpop.f32.mrb[38].mxu0 }
 0x179   :  { %v2468_v57 = vadd.f32 %v577_v51, %v413_v56  ;;  %v1820_v58 = vpop.f32.mrb[39].mxu0 }
 0x17c   :  { %v582_v60 = vpop.f32.mrb[40].mxu1 }
 0x17d   :  { %v1873_v61 = vpop.f32.mrb[41].mxu1 }
 0x17e   :  { %v418_v62 = vpop.f32.mrb[40].mxu0  ;;  %v585_v1 = vpop.f32.mrb[42].mxu1 }
 0x17f   :  { %v2470_v2 = vadd.f32 %v582_v60, %v418_v62  ;;  %v1823_v3 = vpop.f32.mrb[41].mxu0  ;;  %v1874_v4 = vpop.f32.mrb[43].mxu1 }
 0x180   :  { %v421_v5 = vpop.f32.mrb[42].mxu0 }
 0x181   :  { %v1824_v7 = vpop.f32.mrb[43].mxu0 }
 0x184   :  { %v1067_v8 = vpop.f32.mrb[44].mxu1 }
 0x185   :  { %v1933_v9 = vpop.f32.mrb[45].mxu1 }
 0x186   :  { %v839_v12 = vpop.f32.mrb[44].mxu0  ;;  %v1070_v13 = vpop.f32.mrb[46].mxu1 }
 0x187   :  { %v925_v14 = vadd.f32 %v839_v12, %v2430_v20  ;;  %v1883_v15 = vpop.f32.mrb[45].mxu0  ;;  %v1934_v17 = vpop.f32.mrb[47].mxu1 }
 0x188   :  { %v842_v19 = vpop.f32.mrb[46].mxu0  ;;  %v1299_v20 = vpop.permute.xlu1 %1298 }
 0x189   :  { %v1153_v22 = vadd.f32 %v1067_v8, %v925_v14  ;;  %v926_v23 = vadd.f32 %v842_v19, %v2432_v24  ;;  %v1884_v25 = vpop.f32.mrb[47].mxu0 }
 0x18b   :  { %v1181_v26 = vadd.f32 %v2473_v18, %v1153_v22  ;;  %v1154_v27 = vadd.f32 %v1070_v13, %v926_v23 }
 0x18c   :  { %v1075_v28 = vpop.f32.mrb[48].mxu1  ;;  %v1304_v3 = vpop.permute.xlu1 %1303 }
 0x18d   :  { %v1182_v31 = vadd.f32 %v2473_v18, %v1154_v27  ;;  %vm1202_vm6 = vcmp.ge.f32.partialorder %v1181_v26, 0.0  ;;  %v1223_v34 = vmul.f32 0.2, %v1181_v26  ;;  %v1937_v35 = vpop.f32.mrb[49].mxu1 }
 0x18e   :  { %v847_v36 = vpop.f32.mrb[48].mxu0  ;;  %v1078_v37 = vpop.f32.mrb[50].mxu1 }
 0x18f   :  { %v1244_v38 = vsel %vm1202_vm6, %v1181_v26, %v1223_v34  ;;  %v927_v41 = vadd.f32 %v847_v36, %v2434_v29  ;;  %v1887_v42 = vpop.f32.mrb[49].mxu0  ;;  %vm1203_vm7 = vcmp.ge.f32.partialorder %v1182_v31, 0.0  ;;  %v1224_v24 = vmul.f32 0.2, %v1182_v31  ;;  %v1938_v44 = vpop.f32.mrb[51].mxu1 }
 0x190   :  { %v850_v46 = vpop.f32.mrb[50].mxu0  ;;  %v1391_v54 = vmul.f32 %v1289_v11, %v1244_v38  ;;  %v1309_v38 = vpop.permute.xlu0 %1308 }
 0x191   :  { %v1155_v47 = vadd.f32 %v1075_v28, %v927_v41  ;;  %v928_v48 = vadd.f32 %v850_v46, %v2436_v33  ;;  %v1245_v50 = vsel %vm1203_vm7, %v1182_v31, %v1224_v24  ;;  %v1888_v51 = vpop.f32.mrb[51].mxu0  ;;  %v1314_v24 = vpop.permute.xlu1 %1313 }
 0x192   :  { %v1392_v55 = vmul.f32 %v1294_v30, %v1245_v50 }
 0x193   :  { %v1183_v56 = vadd.f32 %v2473_v18, %v1155_v47  ;;  %v1156_v58 = vadd.f32 %v1078_v37, %v928_v48 }
 0x194   :  { %v1663_v60 = vpack.c.bf16 %v1392_v55, %v1391_v54  ;;  %v1083_v61 = vpop.f32.mrb[52].mxu1 }
 0x195   :  { %v1184_v62 = vadd.f32 %v2473_v18, %v1156_v58  ;;  %vm1204_vm8 = vcmp.ge.f32.partialorder %v1183_v56, 0.0  ;;  %v1225_v29 = vmul.f32 0.2, %v1183_v56  ;;  %v1941_v1 = vpop.f32.mrb[53].mxu1 }
 0x196   :  { %1664 = vst [vmem:[#allocation10] sm:$0xff] %v1663_v60   ;;  %v855_v4 = vpop.f32.mrb[52].mxu0  ;;  %v1086_v5 = vpop.f32.mrb[54].mxu1 }
 0x197   :  { %v1246_v7 = vsel %vm1204_vm8, %v1183_v56, %v1225_v29  ;;  %v929_v33 = vadd.f32 %v855_v4, %v2438_v39  ;;  %v1891_v8 = vpop.f32.mrb[53].mxu0  ;;  %vm1205_vm9 = vcmp.ge.f32.partialorder %v1184_v62, 0.0  ;;  %v1226_v9 = vmul.f32 0.2, %v1184_v62  ;;  %v1942_v11 = vpop.f32.mrb[55].mxu1 }
 0x198   :  { %v858_v12 = vpop.f32.mrb[54].mxu0  ;;  %v1393_v19 = vmul.f32 %v1299_v20, %v1246_v7 }
 0x199   :  { %v1157_v13 = vadd.f32 %v1083_v61, %v929_v33  ;;  %v930_v14 = vadd.f32 %v858_v12, %v2440_v43  ;;  %v1247_v15 = vsel %vm1205_vm9, %v1184_v62, %v1226_v9  ;;  %v1892_v17 = vpop.f32.mrb[55].mxu0  ;;  %v1324_v33 = vpop.permute.xlu1 %1323 }
 0x19a   :  { %v1394_v22 = vmul.f32 %v1304_v3, %v1247_v15 }
 0x19b   :  { %v1185_v23 = vadd.f32 %v2473_v18, %v1157_v13  ;;  %v1158_v25 = vadd.f32 %v1086_v5, %v930_v14  ;;  %v1319_v5 = vpop.permute.xlu0 %1318 }
 0x19c   :  { %v1668_v26 = vpack.c.bf16 %v1394_v22, %v1393_v19  ;;  %v1091_v27 = vpop.f32.mrb[56].mxu1 }
 0x19d   :  { %vm1206_vm10 = vcmp.ge.f32.partialorder %v1185_v23, 0.0  ;;  %v1227_v28 = vmul.f32 0.2, %v1185_v23  ;;  %v1186_v39 = vadd.f32 %v2473_v18, %v1158_v25  ;;  %v1945_v30 = vpop.f32.mrb[57].mxu1 }
 0x19e   :  { %1710 = vst [vmem:[#allocation10 + $0x8] sm:$0xff] %v1668_v26   ;;  %v863_v31 = vpop.f32.mrb[56].mxu0  ;;  %v1094_v34 = vpop.f32.mrb[58].mxu1 }
 0x19f   :  { %v1248_v35 = vsel %vm1206_vm10, %v1185_v23, %v1227_v28  ;;  %v931_v43 = vadd.f32 %v863_v31, %v2442_v49  ;;  %v1895_v36 = vpop.f32.mrb[57].mxu0  ;;  %vm1207_vm11 = vcmp.ge.f32.partialorder %v1186_v39, 0.0  ;;  %v1228_v20 = vmul.f32 0.2, %v1186_v39  ;;  %v1946_v37 = vpop.f32.mrb[59].mxu1 }
 0x1a0   :  { %v866_v41 = vpop.f32.mrb[58].mxu0  ;;  %v1395_v48 = vmul.f32 %v1309_v38, %v1248_v35 }
 0x1a1   :  { %v1159_v42 = vadd.f32 %v1091_v27, %v931_v43  ;;  %v1249_v44 = vsel %vm1207_vm11, %v1186_v39, %v1228_v20  ;;  %v932_v46 = vadd.f32 %v866_v41, %v2444_v53  ;;  %v1896_v47 = vpop.f32.mrb[59].mxu0  ;;  %v1334_v43 = vpop.permute.xlu1 %1333 }
 0x1a2   :  { %v1396_v50 = vmul.f32 %v1314_v24, %v1249_v44 }
 0x1a3   :  { %v1187_v51 = vadd.f32 %v2473_v18, %v1159_v42  ;;  %v1160_v54 = vadd.f32 %v1094_v34, %v932_v46  ;;  %v1329_v34 = vpop.permute.xlu0 %1328 }
 0x1a4   :  { %v1673_v55 = vpack.c.bf16 %v1396_v50, %v1395_v48  ;;  %v1099_v56 = vpop.f32.mrb[60].mxu1 }
 0x1a5   :  { %vm1208_vm12 = vcmp.ge.f32.partialorder %v1187_v51, 0.0  ;;  %v1229_v49 = vmul.f32 0.2, %v1187_v51  ;;  %v1188_v58 = vadd.f32 %v2473_v18, %v1160_v54  ;;  %v1949_v60 = vpop.f32.mrb[61].mxu1 }
 0x1a6   :  { %1711 = vst [vmem:[#allocation10 + $0x10] sm:$0xff] %v1673_v55   ;;  %v871_v61 = vpop.f32.mrb[60].mxu0  ;;  %v1102_v62 = vpop.f32.mrb[62].mxu1 }
 0x1a7   :  { %vm1209_vm13 = vcmp.ge.f32.partialorder %v1188_v58, 0.0  ;;  %v1230_v29 = vmul.f32 0.2, %v1188_v58  ;;  %v1250_v1 = vsel %vm1208_vm12, %v1187_v51, %v1229_v49  ;;  %v933_v53 = vadd.f32 %v871_v61, %v2446_v59  ;;  %v1899_v3 = vpop.f32.mrb[61].mxu0  ;;  %v1950_v4 = vpop.f32.mrb[63].mxu1 }
 0x1a8   :  { %v874_v7 = vpop.f32.mrb[62].mxu0  ;;  %v1397_v13 = vmul.f32 %v1319_v5, %v1250_v1  ;;  %v1339_v60 = vpop.permute.xlu0 %1338 }
 0x1a9   :  { %v1251_v8 = vsel %vm1209_vm13, %v1188_v58, %v1230_v29  ;;  %v1161_v9 = vadd.f32 %v1099_v56, %v933_v53  ;;  %v934_v11 = vadd.f32 %v874_v7, %v2448_v63  ;;  %v1900_v12 = vpop.f32.mrb[63].mxu0 }
 0x1aa   :  { %v1398_v14 = vmul.f32 %v1324_v33, %v1251_v8 }
 0x1ab   :  { %v1189_v15 = vadd.f32 %v2473_v18, %v1161_v9  ;;  %v1162_v17 = vadd.f32 %v1102_v62, %v934_v11  ;;  %v1344_v62 = vpop.permute.xlu1 %1343 }
 0x1ac   :  { %v1678_v19 = vpack.c.bf16 %v1398_v14, %v1397_v13  ;;  %v1107_v22 = vpop.f32.mrb[64].mxu1 }
 0x1ad   :  { %vm1210_vm14 = vcmp.ge.f32.partialorder %v1189_v15, 0.0  ;;  %v1231_v23 = vmul.f32 0.2, %v1189_v15  ;;  %v1190_v59 = vadd.f32 %v2473_v18, %v1162_v17  ;;  %v1953_v25 = vpop.f32.mrb[65].mxu1 }
 0x1ae   :  { %1712 = vst [vmem:[#allocation10 + $0x18] sm:$0xff] %v1678_v19   ;;  %v879_v26 = vpop.f32.mrb[64].mxu0  ;;  %v1110_v27 = vpop.f32.mrb[66].mxu1 }
 0x1af   :  { %v1252_v28 = vsel %vm1210_vm14, %v1189_v15, %v1231_v23  ;;  %vm1211_vm15 = vcmp.ge.f32.partialorder %v1190_v59, 0.0  ;;  %v1232_v39 = vmul.f32 0.2, %v1190_v59  ;;  %v935_v63 = vadd.f32 %v879_v26, %v2450_v6  ;;  %v1903_v30 = vpop.f32.mrb[65].mxu0  ;;  %v1954_v31 = vpop.f32.mrb[67].mxu1 }
 0x1b0   :  { %v882_v35 = vpop.f32.mrb[66].mxu0  ;;  %v1399_v41 = vmul.f32 %v1329_v34, %v1252_v28  ;;  %v1349_v23 = vpop.permute.xlu0 %1348 }
 0x1b1   :  { %v1253_v36 = vsel %vm1211_vm15, %v1190_v59, %v1232_v39  ;;  %v1163_v20 = vadd.f32 %v1107_v22, %v935_v63  ;;  %v936_v37 = vadd.f32 %v882_v35, %v2452_v10  ;;  %v1904_v38 = vpop.f32.mrb[67].mxu0  ;;  %v1354_v25 = vpop.permute.xlu1 %1353 }
 0x1b2   :  { %v1400_v42 = vmul.f32 %v1334_v43, %v1253_v36 }
 0x1b3   :  { %v1191_v24 = vadd.f32 %v2473_v18, %v1163_v20  ;;  %v1164_v44 = vadd.f32 %v1110_v27, %v936_v37 }
 0x1b4   :  { %v1683_v46 = vpack.c.bf16 %v1400_v42, %v1399_v41  ;;  %v1115_v47 = vpop.f32.mrb[68].mxu1 }
 0x1b5   :  { %vm1212_vm0 = vcmp.ge.f32.partialorder %v1191_v24, 0.0  ;;  %v1233_v48 = vmul.f32 0.2, %v1191_v24  ;;  %v1192_v6 = vadd.f32 %v2473_v18, %v1164_v44  ;;  %v1957_v50 = vpop.f32.mrb[69].mxu1 }
 0x1b6   :  { %1713 = vst [vmem:[#allocation10 + $0x20] sm:$0xff] %v1683_v46   ;;  %v887_v51 = vpop.f32.mrb[68].mxu0  ;;  %v1118_v54 = vpop.f32.mrb[70].mxu1 }
 0x1b7   :  { %v1254_v55 = vsel %vm1212_vm0, %v1191_v24, %v1233_v48  ;;  %vm1213_vm1 = vcmp.ge.f32.partialorder %v1192_v6, 0.0  ;;  %v1234_v56 = vmul.f32 0.2, %v1192_v6  ;;  %v937_v10 = vadd.f32 %v887_v51, %v2454_v16  ;;  %v1907_v49 = vpop.f32.mrb[69].mxu0  ;;  %v1958_v58 = vpop.f32.mrb[71].mxu1 }
 0x1b8   :  { %v890_v61 = vpop.f32.mrb[70].mxu0  ;;  %v1401_v4 = vmul.f32 %v1339_v60, %v1254_v55  ;;  %v1359_v46 = vpop.permute.xlu0 %1358 }
 0x1b9   :  { %v1255_v29 = vsel %vm1213_vm1, %v1192_v6, %v1234_v56  ;;  %v1165_v1 = vadd.f32 %v1115_v47, %v937_v10  ;;  %v938_v53 = vadd.f32 %v890_v61, %v2456_v21  ;;  %v1908_v3 = vpop.f32.mrb[71].mxu0  ;;  %v1364_v48 = vpop.permute.xlu1 %1363 }
 0x1ba   :  { %v1402_v5 = vmul.f32 %v1344_v62, %v1255_v29 }
 0x1bb   :  { %v1193_v7 = vadd.f32 %v2473_v18, %v1165_v1  ;;  %v1166_v33 = vadd.f32 %v1118_v54, %v938_v53 }
 0x1bc   :  { %v1688_v8 = vpack.c.bf16 %v1402_v5, %v1401_v4  ;;  %v1123_v9 = vpop.f32.mrb[72].mxu1 }
 0x1bd   :  { %vm1214_vm2 = vcmp.ge.f32.partialorder %v1193_v7, 0.0  ;;  %v1235_v11 = vmul.f32 0.2, %v1193_v7  ;;  %v1194_v16 = vadd.f32 %v2473_v18, %v1166_v33  ;;  %v1961_v12 = vpop.f32.mrb[73].mxu1 }
 0x1be   :  { %1714 = vst [vmem:[#allocation10 + $0x28] sm:$0xff] %v1688_v8   ;;  %v895_v13 = vpop.f32.mrb[72].mxu0  ;;  %v1126_v14 = vpop.f32.mrb[74].mxu1 }
 0x1bf   :  { %v1256_v15 = vsel %vm1214_vm2, %v1193_v7, %v1235_v11  ;;  %vm1215_vm3 = vcmp.ge.f32.partialorder %v1194_v16, 0.0  ;;  %v1236_v17 = vmul.f32 0.2, %v1194_v16  ;;  %v939_v21 = vadd.f32 %v895_v13, %v2458_v0  ;;  %v1911_v19 = vpop.f32.mrb[73].mxu0  ;;  %v1962_v22 = vpop.f32.mrb[75].mxu1 }
 0x1c0   :  { %v898_v59 = vpop.f32.mrb[74].mxu0  ;;  %v1403_v63 = vmul.f32 %v1349_v23, %v1256_v15  ;;  %v1369_v7 = vpop.permute.xlu0 %1368 }
 0x1c1   :  { %v1257_v26 = vsel %vm1215_vm3, %v1194_v16, %v1236_v17  ;;  %v1167_v27 = vadd.f32 %v1123_v9, %v939_v21  ;;  %v940_v28 = vadd.f32 %v898_v59, %v2460_v32  ;;  %v1912_v39 = vpop.f32.mrb[75].mxu0  ;;  %v1374_v8 = vpop.permute.xlu1 %1373 }
 0x1c2   :  { %v1404_v30 = vmul.f32 %v1354_v25, %v1257_v26 }
 0x1c3   :  { %v1195_v31 = vadd.f32 %v2473_v18, %v1167_v27  ;;  %v1168_v34 = vadd.f32 %v1126_v14, %v940_v28 }
 0x1c4   :  { %v1693_v35 = vpack.c.bf16 %v1404_v30, %v1403_v63  ;;  %v1131_v43 = vpop.f32.mrb[76].mxu1  ;;  %v1379_v63 = vpop.permute.xlu0 %1378 }
 0x1c5   :  { %vm1216_vm4 = vcmp.ge.f32.partialorder %v1195_v31, 0.0  ;;  %v1237_v36 = vmul.f32 0.2, %v1195_v31  ;;  %v1196_v0 = vadd.f32 %v2473_v18, %v1168_v34  ;;  %v1965_v20 = vpop.f32.mrb[77].mxu1 }
 0x1c6   :  { %1715 = vst [vmem:[#allocation10 + $0x30] sm:$0xff] %v1693_v35   ;;  %v903_v37 = vpop.f32.mrb[76].mxu0  ;;  %v1134_v38 = vpop.f32.mrb[78].mxu1 }
 0x1c7   :  { %v1258_v41 = vsel %vm1216_vm4, %v1195_v31, %v1237_v36  ;;  %vm1217_vm5 = vcmp.ge.f32.partialorder %v1196_v0, 0.0  ;;  %v1238_v42 = vmul.f32 0.2, %v1196_v0  ;;  %v941_v32 = vadd.f32 %v903_v37, %v2462_v40  ;;  %v1915_v24 = vpop.f32.mrb[77].mxu0  ;;  %v1966_v44 = vpop.f32.mrb[79].mxu1 }
 0x1c8   :  { %v906_v47 = vpop.f32.mrb[78].mxu0  ;;  %v1405_v55 = vmul.f32 %v1359_v46, %v1258_v41  ;;  %v1384_v31 = vpop.permute.xlu1 %1383 }
 0x1c9   :  { %v1259_v6 = vsel %vm1217_vm5, %v1196_v0, %v1238_v42  ;;  %v1169_v50 = vadd.f32 %v1131_v43, %v941_v32  ;;  %v942_v51 = vadd.f32 %v906_v47, %v2464_v45  ;;  %v1916_v54 = vpop.f32.mrb[79].mxu0  ;;  %v1389_v41 = vpop.permute.xlu0 %1388 }
 0x1ca   :  { %v1406_v56 = vmul.f32 %v1364_v48, %v1259_v6 }
 0x1cb   :  { %v1197_v10 = vadd.f32 %v2473_v18, %v1169_v50  ;;  %v1170_v49 = vadd.f32 %v1134_v38, %v942_v51 }
 0x1cc   :  { %v1698_v58 = vpack.c.bf16 %v1406_v56, %v1405_v55  ;;  %v1139_v60 = vpop.f32.mrb[80].mxu1 }
 0x1cd   :  { %vm1218_vm6 = vcmp.ge.f32.partialorder %v1197_v10, 0.0  ;;  %v1239_v61 = vmul.f32 0.2, %v1197_v10  ;;  %v1198_v40 = vadd.f32 %v2473_v18, %v1170_v49  ;;  %v1969_v62 = vpop.f32.mrb[81].mxu1 }
 0x1ce   :  { %1716 = vst [vmem:[#allocation10 + $0x38] sm:$0xff] %v1698_v58   ;;  %v911_v29 = vpop.f32.mrb[80].mxu0  ;;  %v1142_v1 = vpop.f32.mrb[82].mxu1 }
 0x1cf   :  { %v1260_v53 = vsel %vm1218_vm6, %v1197_v10, %v1239_v61  ;;  %vm1219_vm7 = vcmp.ge.f32.partialorder %v1198_v40, 0.0  ;;  %v1240_v3 = vmul.f32 0.2, %v1198_v40  ;;  %v943_v45 = vadd.f32 %v911_v29, %v2466_v52  ;;  %v1919_v4 = vpop.f32.mrb[81].mxu0  ;;  %v1970_v5 = vpop.f32.mrb[83].mxu1 }
 0x1d0   :  { %v914_v33 = vpop.f32.mrb[82].mxu0  ;;  %v1407_v13 = vmul.f32 %v1369_v7, %v1260_v53 }
 0x1d1   :  { %v1261_v9 = vsel %vm1219_vm7, %v1198_v40, %v1240_v3  ;;  %v1171_v11 = vadd.f32 %v1139_v60, %v943_v45  ;;  %v944_v16 = vadd.f32 %v914_v33, %v2468_v57  ;;  %v1920_v12 = vpop.f32.mrb[83].mxu0 }
 0x1d2   :  { %v1408_v14 = vmul.f32 %v1374_v8, %v1261_v9 }
 0x1d3   :  { %v1199_v15 = vadd.f32 %v2473_v18, %v1171_v11  ;;  %v1172_v17 = vadd.f32 %v1142_v1, %v944_v16 }
 0x1d4   :  { %v1703_v21 = vpack.c.bf16 %v1408_v14, %v1407_v13  ;;  %v1147_v19 = vpop.f32.mrb[84].mxu1 }
 0x1d5   :  { %vm1220_vm8 = vcmp.ge.f32.partialorder %v1199_v15, 0.0  ;;  %v1241_v22 = vmul.f32 0.2, %v1199_v15  ;;  %v1200_v52 = vadd.f32 %v2473_v18, %v1172_v17  ;;  %v1973_v23 = vpop.f32.mrb[85].mxu1 }
 0x1d6   :  { %1717 = vst [vmem:[#allocation10 + $0x40] sm:$0xff] %v1703_v21   ;;  %v919_v59 = vpop.f32.mrb[84].mxu0  ;;  %v1150_v25 = vpop.f32.mrb[86].mxu1 }
 0x1d7   :  { %v1262_v26 = vsel %vm1220_vm8, %v1199_v15, %v1241_v22  ;;  %vm1221_vm9 = vcmp.ge.f32.partialorder %v1200_v52, 0.0  ;;  %v1242_v27 = vmul.f32 0.2, %v1200_v52  ;;  %v945_v57 = vadd.f32 %v919_v59, %v2470_v2  ;;  %v1923_v28 = vpop.f32.mrb[85].mxu0  ;;  %v1974_v39 = vpop.f32.mrb[87].mxu1 }
 0x1d8   :  { %v922_v30 = vpop.f32.mrb[86].mxu0  ;;  %v1409_v36 = vmul.f32 %v1379_v63, %v1262_v26 }
 0x1d9   :  { %v1263_v34 = vsel %vm1221_vm9, %v1200_v52, %v1242_v27  ;;  %v1173_v35 = vadd.f32 %v1147_v19, %v945_v57  ;;  %v1924_v43 = vpop.f32.mrb[87].mxu0 }
 0x1da   :  { %v1410_v0 = vmul.f32 %v1384_v31, %v1263_v34 }
 0x1db   :  { %v1201_v20 = vadd.f32 %v2473_v18, %v1173_v35 }
 0x1dc   :  { %v1708_v37 = vpack.c.bf16 %v1410_v0, %v1409_v36 }
 0x1dd   :  { %vm1222_vm10 = vcmp.ge.f32.partialorder %v1201_v20, 0.0  ;;  %v1243_v38 = vmul.f32 0.2, %v1201_v20 }
 0x1de   :  { %1718 = vst [vmem:[#allocation10 + $0x48] sm:$0xff] %v1708_v37  }
 0x1df   :  { %v1264_v42 = vsel %vm1222_vm10, %v1201_v20, %v1243_v38 }
 0x1e0   :  { %v1411_v2 = vmul.f32 %v1389_v41, %v1264_v42 }
 0x1e2   :  { %v1659_v32 = vpack.c.bf16 %v1411_v2, %v1411_v2 }
 0x1e4   :  { %1517 = vst [vmem:[#allocation10 + $0x50] sm:$0x1] %v1659_v32 }
 0x1e5   :  { %2124 = shalt.err (!%p2121_p8)
}
 0x1e6   :  { %s2125_s19 = scalar_lea.hbm %s2535_s4, 1344 }
 0x1e7   :  { %p2126_p9 = scmp.ne.s32.totalorder %s2535_s4, %s2125_s19  ;;  %p2129_p10 = scmp.lt.u32.totalorder %s2125_s19, %s2535_s4 }
 0x1e9   :  { %p2131_p11 = pnand %p2129_p10, %p2126_p9 }
 0x1eb   :  { %2134 = shalt.err (!%p2131_p11)
}
 0x1ec   :  { %1529 = dma.vmem_to_hbm [thread:$0]  %s1524_s14, 1344, %s2535_s4, [#allocation4], %s2145_s27, %s2145_s27, %s2146_s28  }
 0x1ed   :  { %2141 = dma.done.wait [#allocation4], 1344  }
 0x1ee   :  { %2142 = vsyncadd [#allocation4], 4294965952 }
 0x1ef   :  { %1533 = vsyncpa [#allocation3], 1 }
 0x1f0   :  { %1534 = vsyncpa [#allocation6], 1 }
 0x1f1   :  { %1535 = vsyncpa [#allocation9], 1 }
 0x1f2   :  { %1536 = vsyncpa [#allocation4], 1 }

// kernel: discriminator_forward.5
= control target key start
LH: loop header
LB: loop body
LE: loop exit
PB: predicated region body
PF: predicated region fallthrough
CT: control target
= control target key end

     0   :  { %10 = vsyncpa [#allocation3], 0  ;;  %s1604_s0 = inlined_call_operand.hbm [shape: bf16[56,128], index: 0, kind: input, shape index: {}]   ;;  %s1605_s1 = inlined_call_operand.hbm [shape: bf16[512,128], index: 1, kind: input, shape index: {}]   ;;  %s1606_s2 = inlined_call_operand.hbm [shape: f32[1,128], index: 2, kind: input, shape index: {}]   ;;  %s1607_s3 = inlined_call_operand.hbm [shape: f32[1,128], index: 3, kind: input, shape index: {}]   ;;  %s1608_s4 = inlined_call_operand.hbm [shape: f32[50,1], index: 4, kind: input, shape index: {}]   ;;  %s1609_s5 = inlined_call_operand.hbm [shape: bf16[50,128], index: 5, kind: output, shape index: {}]  }
   0x1   :  { %11 = vsyncpa [#allocation6], 0 }
   0x2   :  { %12 = vsyncpa [#allocation9], 0 }
   0x3   :  { %13 = vsyncpa [#allocation4], 0  ;;  %s1385_s18 = smov [#allocation5]   ;;  %s1386_s20 = smov [#allocation8]  }
   0x4   :  { %s31_s19 = sshll.u32 %s1385_s18, 4  ;;  %s54_s21 = sshll.u32 %s1386_s20, 4  ;;  %s32_s19 = int_to_ptr.vmem [resolvable:$true] %s31_s19  ;;  %s1426_s21 = int_to_ptr.vmem [resolvable:$true] %s54_s21 }
   0x5   :  { %s1245_s24 = scalar_lea.hbm %s1605_s1, 4096 }
   0x6   :  { %p1246_p0 = scmp.ne.s32.totalorder %s1605_s1, %s1245_s24  ;;  %p1249_p1 = scmp.lt.u32.totalorder %s1245_s24, %s1605_s1 }
   0x8   :  { %p1251_p2 = pnand %p1249_p1, %p1246_p0 }
   0xa   :  { %1254 = shalt.err (!%p1251_p2)
}
   0xb   :  { %s1255_s29 = scalar_lea.vmem %s32_s19, 4096  ;;  %p1260_p4 = scmp.lt.s32.totalorder %s32_s19, %s32_s19 }
   0xc   :  { %p1256_p3 = scmp.ne.s32.totalorder %s32_s19, %s1255_s29  ;;  %p1261_p5 = scmp.lt.s32.totalorder %s1255_s29, %s1255_s29 }
   0xe   :  { %p1262_p6 = por %p1261_p5, %p1260_p4 }
  0x10   :  { %p1263_p7 = pnand %p1262_p6, %p1256_p3 }
  0x12   :  { %1266 = shalt.err (!%p1263_p7)
}
  0x13   :  { %s1387_s30 = smov 64   ;;  %s1388_s6 = smov 4  }
  0x14   :  { %37 = dma.hbm_to_vmem [thread:$0]  %s1605_s1, 4096, %s32_s19, [#allocation6], %s1387_s30, %s1387_s30, %s1388_s6  }
  0x15   :  { %s1267_s11 = scalar_lea.hbm %s1607_s3, 16 }
  0x16   :  { %p1268_p8 = scmp.ne.s32.totalorder %s1607_s3, %s1267_s11  ;;  %p1271_p9 = scmp.lt.u32.totalorder %s1267_s11, %s1607_s3 }
  0x18   :  { %p1273_p10 = pnand %p1271_p9, %p1268_p8 }
  0x1a   :  { %1276 = shalt.err (!%p1273_p10)
}
  0x1b   :  { %s1277_s16 = scalar_lea.vmem %s1426_s21, 16  ;;  %s1281_s1 = scalar_lea.vmem %s1426_s21, 32 }
  0x1c   :  { %p1278_p11 = scmp.ne.s32.totalorder %s1426_s21, %s1277_s16  ;;  %p1282_p12 = scmp.lt.s32.totalorder %s1426_s21, %s1426_s21 }
  0x1d   :  { %p1283_p13 = scmp.lt.s32.totalorder %s1281_s1, %s1277_s16 }
  0x1f   :  { %p1284_p0 = por %p1283_p13, %p1282_p12 }
  0x21   :  { %p1285_p1 = pnand %p1284_p0, %p1278_p11 }
  0x23   :  { %1288 = shalt.err (!%p1285_p1)
}
  0x24   :  { %57 = dma.hbm_to_vmem [thread:$0]  %s1607_s3, 16, %s1426_s21, [#allocation9]  }
  0x25   :  { %s1389_s19 = smov [#allocation2]   ;;  %s1390_s22 = smov [#allocation7]  }
  0x26   :  { %s19_s20 = sshll.u32 %s1389_s19, 4  ;;  %s44_s23 = sshll.u32 %s1390_s22, 4  ;;  %s20_s20 = int_to_ptr.vmem [resolvable:$true] %s19_s20  ;;  %s45_s23 = int_to_ptr.vmem [resolvable:$true] %s44_s23 }
  0x27   :  { %s1289_s26 = scalar_lea.hbm %s1604_s0, 448 }
  0x28   :  { %p1290_p2 = scmp.ne.s32.totalorder %s1604_s0, %s1289_s26  ;;  %p1293_p3 = scmp.lt.u32.totalorder %s1289_s26, %s1604_s0 }
  0x2a   :  { %p1295_p4 = pnand %p1293_p3, %p1290_p2 }
  0x2c   :  { %1298 = shalt.err (!%p1295_p4)
}
  0x2d   :  { %s1299_s3 = scalar_lea.vmem %s20_s20, 448  ;;  %p1304_p6 = scmp.lt.s32.totalorder %s20_s20, %s20_s20 }
  0x2e   :  { %p1300_p5 = scmp.ne.s32.totalorder %s20_s20, %s1299_s3  ;;  %p1305_p7 = scmp.lt.s32.totalorder %s1299_s3, %s1299_s3 }
  0x30   :  { %p1306_p8 = por %p1305_p7, %p1304_p6 }
  0x32   :  { %p1307_p9 = pnand %p1306_p8, %p1300_p5 }
  0x34   :  { %1310 = shalt.err (!%p1307_p9)
}
  0x35   :  { %25 = dma.hbm_to_vmem [thread:$0]  %s1604_s0, 448, %s20_s20, [#allocation3], %s1387_s30, %s1387_s30, %s1388_s6  }
  0x36   :  { %s1311_s11 = scalar_lea.hbm %s1606_s2, 16 }
  0x37   :  { %p1312_p10 = scmp.ne.s32.totalorder %s1606_s2, %s1311_s11  ;;  %p1315_p11 = scmp.lt.u32.totalorder %s1311_s11, %s1606_s2 }
  0x39   :  { %p1317_p12 = pnand %p1315_p11, %p1312_p10 }
  0x3b   :  { %1320 = shalt.err (!%p1317_p12)
}
  0x3c   :  { %s1321_s16 = scalar_lea.vmem %s45_s23, 16  ;;  %s1325_s1 = scalar_lea.vmem %s45_s23, 32 }
  0x3d   :  { %p1322_p13 = scmp.ne.s32.totalorder %s45_s23, %s1321_s16  ;;  %p1326_p0 = scmp.lt.s32.totalorder %s45_s23, %s45_s23 }
  0x3e   :  { %p1327_p1 = scmp.lt.s32.totalorder %s1325_s1, %s1321_s16 }
  0x40   :  { %p1328_p2 = por %p1327_p1, %p1326_p0 }
  0x42   :  { %p1329_p3 = pnand %p1328_p2, %p1322_p13 }
  0x44   :  { %1332 = shalt.err (!%p1329_p3)
}
  0x45   :  { %47 = dma.hbm_to_vmem [thread:$0]  %s1606_s2, 16, %s45_s23, [#allocation6]  }
  0x46   :  { %s1391_s18 = smov [#allocation10]   ;;  %s1333_s24 = scalar_lea.hbm %s1608_s4, 896 }
  0x47   :  { %s63_s19 = sshll.u32 %s1391_s18, 4  ;;  %p1334_p4 = scmp.ne.s32.totalorder %s1608_s4, %s1333_s24  ;;  %s64_s19 = int_to_ptr.vmem [resolvable:$true] %s63_s19 }
  0x48   :  { %p1337_p5 = scmp.lt.u32.totalorder %s1333_s24, %s1608_s4 }
  0x4a   :  { %p1339_p6 = pnand %p1337_p5, %p1334_p4 }
  0x4c   :  { %1342 = shalt.err (!%p1339_p6)
}
  0x4d   :  { %s1343_s29 = scalar_lea.vmem %s64_s19, 896  ;;  %p1348_p8 = scmp.lt.s32.totalorder %s64_s19, %s64_s19 }
  0x4e   :  { %p1344_p7 = scmp.ne.s32.totalorder %s64_s19, %s1343_s29  ;;  %p1349_p9 = scmp.lt.s32.totalorder %s1343_s29, %s1343_s29 }
  0x50   :  { %p1350_p10 = por %p1349_p9, %p1348_p8 }
  0x52   :  { %p1351_p11 = pnand %p1350_p10, %p1344_p7 }
  0x54   :  { %1354 = shalt.err (!%p1351_p11)
}
  0x55   :  { %s1392_s2 = smov 128   ;;  %s1393_s23 = smov 8  }
  0x56   :  { %69 = dma.hbm_to_vmem [thread:$0]  %s1608_s4, 896, %s64_s19, [#allocation9], %s1392_s2, %s1392_s2, %s1393_s23  }
  0x57   :  { %1377 = dma.done.wait [#allocation3], 448  }
  0x58   :  { %1378 = vsyncadd [#allocation3], 4294966848 }
  0x59   :  { %1379 = dma.done.wait [#allocation6], 4112  }
  0x5a   :  { %1380 = vsyncadd [#allocation6], 4294963184 }
  0x5b   :  { %1381 = dma.done.wait [#allocation9], 912  }
  0x5c   :  { %1382 = vsyncadd [#allocation9], 4294966384  ;;  %v1394_v0 = vmov 0   ;;  %v1203_v1 = vld [vmem:[#allocation5 + $0x40] sm:$0xff]   ;;  %v1205_v3 = vld [vmem:[#allocation5 + $0x48] sm:$0xff]   ;;  %vm604_vm2 = vcmask 1044480  }
  0x5d   :  { %1201 = vset.pattern.permute.xlu0 %v1394_v0  ;;  %1202 = vset.pattern.permute.xlu1 %v1394_v0  ;;  %v1204_v2 = vld [vmem:[#allocation5 + $0x80] sm:$0xff]   ;;  %v1206_v4 = vld [vmem:[#allocation5 + $0x88] sm:$0xff]   ;;  %v1207_v5 = vld [vmem:[#allocation5 + $0x50] sm:$0xff]   ;;  %vm144_vm0 = vsmask.f32 7424  ;;  %vm791_vm3 = vcmask 1041408  }
  0x5e   :  { %1071 = vmatprep.subr.bf16.mxu1 %v1203_v1  ;;  %1119 = vmatprep.subr.bf16.mxu0 %v1204_v2  ;;  %v1208_v6 = vld [vmem:[#allocation5 + $0x90] sm:$0xff]   ;;  %v1209_v7 = vld [vmem:[#allocation5 + $0x58] sm:$0xff]   ;;  %v1211_v9 = vld [vmem:[#allocation5 + $0x60] sm:$0xff]   ;;  %vm435_vm1 = vsmask.f32 5376  ;;  %s1395_s4 = smov [#allocation11]  }
  0x5f   :  { %1072 = vmatpush3.bf16.msra.mxu1 %v1203_v1  ;;  %1120 = vmatpush3.bf16.msra.mxu0 %v1204_v2  ;;  %v1210_v8 = vld [vmem:[#allocation5 + $0x98] sm:$0xff]   ;;  %v1212_v10 = vld [vmem:[#allocation5 + $0xa0] sm:$0xff]   ;;  %v1213_v11 = vld [vmem:[#allocation5 + $0x68] sm:$0xff]   ;;  %s936_s21 = sshll.u32 %s1395_s4, 4  ;;  %s937_s21 = int_to_ptr.vmem [resolvable:$true] %s936_s21 }
  0x60   :  { %1073 = vmatprep.subr.bf16.mxu1 %v1205_v3  ;;  %1121 = vmatprep.subr.bf16.mxu0 %v1206_v4  ;;  %v1214_v12 = vld [vmem:[#allocation5 + $0xa8] sm:$0xff]   ;;  %v86_v13 = vld [vmem:[#allocation2] sm:$0xf]  ;;  %v1215_v17 = vld [vmem:[#allocation5 + $0x70] sm:$0xff]   ;;  %s1355_s8 = scalar_lea.vmem %s937_s21, 448  ;;  %p1360_p13 = scmp.lt.s32.totalorder %s937_s21, %s937_s21 }
  0x61   :  { %v1500_v14 = vld [vmem:[#allocation2 + $0x4] sm:$0xf]  ;;  %v1505_v16 = vld [vmem:[#allocation2 + $0x8] sm:$0xff]   ;;  %v411_v18 = vld [vmem:[#allocation2] sm:$0xc]  ;;  %p1356_p12 = scmp.ne.s32.totalorder %s937_s21, %s1355_s8  ;;  %p1361_p0 = scmp.lt.s32.totalorder %s1355_s8, %s1355_s8 }
  0x62   :  { %v1503_v15 = vcombine.low %v86_v13, %v1500_v14  ;;  %v153_v21 = vshll.u32 %v1505_v16, 16  ;;  %v157_v22 = vshrl.u32 %v1505_v16, 16  ;;  %v1216_v23 = vld [vmem:[#allocation5 + $0xb0] sm:$0xff]   ;;  %v971_v24 = vcombine.low %v411_v18, %v1500_v14  ;;  %v1217_v34 = vld [vmem:[#allocation5 + $0x78] sm:$0xff]   ;;  %v1221_v46 = vld [vmem:[#allocation5] sm:$0xff]  }
  0x63   :  { %1074 = vmatpush3.bf16.msra.mxu1 %v1205_v3  ;;  %1122 = vmatpush3.bf16.msra.mxu0 %v1206_v4  ;;  %v1512_v31 = vld [vmem:[#allocation2 + $0x10] sm:$0xff]   ;;  %v1223_v49 = vld [vmem:[#allocation5 + $0xc0] sm:$0xff]   ;;  %v1225_v52 = vld [vmem:[#allocation5 + $0x8] sm:$0xff]   ;;  %p1362_p1 = por %p1361_p0, %p1360_p13 }
  0x64   :  { %1075 = vmatprep.subr.bf16.mxu1 %v1207_v5  ;;  %1123 = vmatprep.subr.bf16.mxu0 %v1208_v6  ;;  %v146_v19 = vshrl.u32 %v1503_v15, 16  ;;  %v148_v20 = vshll.u32 %v1503_v15, 16  ;;  %v155_v26 = vrot.slane %v153_v21, 1  ;;  %v444_v27 = vrot.slane %v157_v22, 2  ;;  %v1218_v35 = vld [vmem:[#allocation5 + $0xb8] sm:$0xff]   ;;  %v1226_v53 = vld [vmem:[#allocation5 + $0xc8] sm:$0xff]  }
  0x65   :  { %v445_v28 = vrot.slane %v153_v21, 3  ;;  %v437_v29 = vshrl.u32 %v971_v24, 16  ;;  %v440_v30 = vshll.u32 %v971_v24, 16  ;;  %v161_v38 = vshll.u32 %v1512_v31, 16  ;;  %v1520_v55 = vld [vmem:[#allocation2 + $0x18] ss:$0 sps:$4 sm:$0xff]   ;;  %p1363_p2 = pnand %p1362_p1, %p1356_p12 }
  0x66   :  { %v150_v25 = vrot.slane %v148_v20, 1  ;;  %v165_v39 = vshrl.u32 %v1512_v31, 16  ;;  %v159_v44 = vor.u32 %v157_v22, %v155_v26  ;;  %v1235_v54 = vld [vmem:[#allocation2 + $0x18] ss:$0 sps:$4 sm:$0x33]   ;;  %v1227_v59 = vld [vmem:[#allocation5 + $0x10] sm:$0xff]  }
  0x67   :  { %1076 = vmatpush3.bf16.msra.mxu1 %v1207_v5  ;;  %1124 = vmatpush3.bf16.msra.mxu0 %v1208_v6  ;;  %v446_v33 = vor.u32 %v445_v28, %v444_v27  ;;  %v439_v36 = vrot.slane %v437_v29, 2  ;;  %v442_v37 = vrot.slane %v440_v30, 3  ;;  %v449_v43 = vrot.slane %v161_v38, 3  ;;  %v1228_v62 = vld [vmem:[#allocation5 + $0xd0] sm:$0xff]   ;;  %v584_v4 = vld [vmem:[#allocation2] sm:$0x8] }
  0x68   :  { %1077 = vmatprep.subr.bf16.mxu1 %v1209_v7  ;;  %1125 = vmatprep.subr.bf16.mxu0 %v1210_v8  ;;  %v151_v32 = vor.u32 %v150_v25, %v146_v19  ;;  %v448_v42 = vrot.slane %v165_v39, 2  ;;  %v163_v45 = vrot.slane %v161_v38, 1  ;;  %v169_v57 = vshll.u32 %v1235_v54, 16  ;;  %v735_v5 = vld [vmem:[#allocation10] sm:$0xff]  ;;  %v1229_v6 = vld [vmem:[#allocation5 + $0x18] sm:$0xff]   ;;  %v736_v18 = vld [vmem:[#allocation10 + $0x8] sm:$0xff] }
  0x69   :  { %v443_v41 = vor.u32 %v442_v37, %v439_v36  ;;  %v173_v58 = vshrl.u32 %v1235_v54, 16  ;;  %v453_v60 = vshrl.u32 %v1520_v55, 16  ;;  %v456_v61 = vshll.u32 %v1520_v55, 16  ;;  %746 = vperm.xlu0 %1201, %v735_v5   ;;  %v1231_v13 = vld [vmem:[#allocation5 + $0x20] sm:$0xff]   ;;  %v737_v19 = vld [vmem:[#allocation10 + $0x10] sm:$0xff]  ;;  %v1233_v20 = vld [vmem:[#allocation5 + $0x28] sm:$0xff]  }
  0x6a   :  { %v156_v40 = vsel %vm144_vm0, %v151_v32, %v155_v26  ;;  %v450_v48 = vor.u32 %v449_v43, %v448_v42  ;;  %v164_v50 = vsel %vm144_vm0, %v159_v44, %v163_v45  ;;  %v167_v56 = vor.u32 %v165_v39, %v163_v45  ;;  %v739_v21 = vld [vmem:[#allocation10 + $0x20] sm:$0xff]  ;;  %756 = vperm.xlu1 %1202, %v737_v19   ;;  %v1237_v24 = vld [vmem:[#allocation5 + $0x30] sm:$0xff]   ;;  %v1239_v27 = vld [vmem:[#allocation5 + $0x38] sm:$0xff]  }
  0x6b   :  { %1078 = vmatpush3.bf16.msra.mxu1 %v1209_v7  ;;  %1126 = vmatpush3.bf16.msra.mxu0 %v1210_v8  ;;  %v447_v47 = vsel %vm435_vm1, %v443_v41, %v446_v33  ;;  %v171_v63 = vrot.slane %v169_v57, 1  ;;  %v455_v0 = vrot.slane %v453_v60, 2  ;;  %v458_v1 = vrot.slane %v456_v61, 3  ;;  %v1234_v22 = vld [vmem:[#allocation5 + $0xe8] sm:$0xff]   ;;  %v741_v25 = vld [vmem:[#allocation10 + $0x30] sm:$0x3] }
  0x6c   :  { %1079 = vmatprep.subr.bf16.mxu1 %v1211_v9  ;;  %1127 = vmatprep.subr.bf16.mxu0 %v1212_v10  ;;  %v451_v51 = vsel %vm435_vm1, %v446_v33, %v450_v48  ;;  %v981_v8 = vcombine.low %v584_v4, %v1500_v14  ;;  %v1232_v14 = vld [vmem:[#allocation5 + $0xe0] sm:$0xff]   ;;  %v740_v26 = vld [vmem:[#allocation10 + $0x28] sm:$0xff]  ;;  %v1240_v28 = vld [vmem:[#allocation5 + $0xf8] sm:$0xff]   ;;  %v608_v29 = vrot.slane %v1512_v31, 3  ;;  %v610_v30 = vrot.slane %v1520_v55, 3 }
  0x6d   :  { %1087 = vmatprep.mubr.bf16.mxu1 %v156_v40  ;;  %1135 = vmatprep.mubr.bf16.mxu0 %v447_v47  ;;  %v172_v2 = vsel %vm144_vm0, %v167_v56, %v171_v63  ;;  %v175_v3 = vor.u32 %v173_v58, %v171_v63  ;;  %v459_v7 = vor.u32 %v458_v1, %v455_v0 }
  0x6e   :  { %751 = vperm.xlu0 %1201, %v736_v18   ;;  %v611_v33 = vsel %vm604_vm2, %v608_v29, %v610_v30 }
  0x6f   :  { %1080 = vmatpush3.bf16.msra.mxu1 %v1211_v9  ;;  %1128 = vmatpush3.bf16.msra.mxu0 %v1212_v10  ;;  %v606_v9 = vrot.slane %v1505_v16, 3  ;;  %v1230_v10 = vld [vmem:[#allocation5 + $0xd8] sm:$0xff]  }
  0x70   :  { %1081 = vmatprep.subr.bf16.mxu1 %v1213_v11  ;;  %1129 = vmatprep.subr.bf16.mxu0 %v1214_v12 }
  0x71   :  { %v609_v32 = vsel %vm604_vm2, %v606_v9, %v608_v29 }
  0x72   :  { %766 = vperm.xlu0 %1201, %v739_v21  }
  0x73   :  { %1082 = vmatpush3.bf16.msra.mxu1 %v1213_v11  ;;  %1130 = vmatpush3.bf16.msra.mxu0 %v1214_v12  ;;  %v460_v11 = vsel %vm435_vm1, %v450_v48, %v459_v7  ;;  %v605_v12 = vrot.slane %v981_v8, 3 }
  0x74   :  { %1083 = vmatprep.subr.bf16.mxu1 %v1215_v17  ;;  %1131 = vmatprep.subr.bf16.mxu0 %v1216_v23 }
  0x76   :  { %776 = vperm.xlu0 %1201, %v741_v25  }
  0x77   :  { %1084 = vmatpush3.bf16.msra.mxu1 %v1215_v17  ;;  %1132 = vmatpush3.bf16.msra.mxu0 %v1216_v23  ;;  %v607_v17 = vsel %vm604_vm2, %v605_v12, %v606_v9  ;;  %v738_v23 = vld [vmem:[#allocation10 + $0x18] sm:$0xff] }
  0x78   :  { %1085 = vmatprep.subr.bf16.mxu1 %v1217_v34  ;;  %1133 = vmatprep.subr.bf16.mxu0 %v1218_v35 }
  0x79   :  { %761 = vperm.xlu1 %1202, %v738_v23  }
  0x7b   :  { %1086 = vmatpush3.bf16.msra.mxu1 %v1217_v34  ;;  %1134 = vmatpush3.bf16.msra.mxu0 %v1218_v35  ;;  %v1242_v34 = vld [vmem:[#allocation2 + $0x18] ss:$0 sps:$4 sm:$0x11]  }
  0x7c   :  { %1095 = vmatprep.subr.bf16.mxu1 %v1221_v46  ;;  %1143 = vmatprep.subr.bf16.mxu0 %v1223_v49 }
  0x7d   :  { %771 = vperm.xlu1 %1202, %v740_v26  }
  0x7e   :  { %1088 = vmatmul.mubr.bf16.vlgmr.msra.gmra.mrb[0].mxu1 %v164_v50  ;;  %1136 = vmatmul.mubr.bf16.vlgmr.msra.gmra.mrb[0].mxu0 %v451_v51 }
  0x7f   :  { %1096 = vmatpush3.bf16.msra.mxu1 %v1221_v46  ;;  %1144 = vmatpush3.bf16.msra.mxu0 %v1223_v49 }
  0x80   :  { %1097 = vmatprep.subr.bf16.mxu1 %v1225_v52  ;;  %1145 = vmatprep.subr.bf16.mxu0 %v1226_v53 }
  0x81   :  { %1091 = vmatprep.mubr.bf16.mxu1 %v172_v2  ;;  %1139 = vmatprep.mubr.bf16.mxu0 %v460_v11 }
  0x83   :  { %1098 = vmatpush3.bf16.msra.mxu1 %v1225_v52  ;;  %1146 = vmatpush3.bf16.msra.mxu0 %v1226_v53 }
  0x84   :  { %1099 = vmatprep.subr.bf16.mxu1 %v1227_v59  ;;  %1147 = vmatprep.subr.bf16.mxu0 %v1228_v62 }
  0x86   :  { %1092 = vmatmul.mubr.bf16.gmra.mrb[4].mxu1 %v175_v3  ;;  %1140 = vmatmul.mubr.bf16.gmra.mrb[4].mxu0 %v459_v7 }
  0x87   :  { %1100 = vmatpush3.bf16.msra.mxu1 %v1227_v59  ;;  %1148 = vmatpush3.bf16.msra.mxu0 %v1228_v62 }
  0x88   :  { %1101 = vmatprep.subr.bf16.mxu1 %v1229_v6  ;;  %1149 = vmatprep.subr.bf16.mxu0 %v1230_v10 }
  0x89   :  { %1111 = vmatprep.mubr.bf16.mxu1 %v1503_v15  ;;  %1159 = vmatprep.mubr.bf16.mxu0 %v607_v17  ;;  %v1238_v15 = vld [vmem:[#allocation5 + $0xf0] sm:$0xff]  }
  0x8b   :  { %1102 = vmatpush3.bf16.msra.mxu1 %v1229_v6  ;;  %1150 = vmatpush3.bf16.msra.mxu0 %v1230_v10 }
  0x8c   :  { %1103 = vmatprep.subr.bf16.mxu1 %v1231_v13  ;;  %1151 = vmatprep.subr.bf16.mxu0 %v1232_v14 }
  0x8f   :  { %1104 = vmatpush3.bf16.msra.mxu1 %v1231_v13  ;;  %1152 = vmatpush3.bf16.msra.mxu0 %v1232_v14 }
  0x90   :  { %1105 = vmatprep.subr.bf16.mxu1 %v1233_v20  ;;  %1153 = vmatprep.subr.bf16.mxu0 %v1234_v22 }
  0x93   :  { %1106 = vmatpush3.bf16.msra.mxu1 %v1233_v20  ;;  %1154 = vmatpush3.bf16.msra.mxu0 %v1234_v22 }
  0x94   :  { %1107 = vmatprep.subr.bf16.mxu1 %v1237_v24  ;;  %1155 = vmatprep.subr.bf16.mxu0 %v1238_v15 }
  0x97   :  { %1108 = vmatpush3.bf16.msra.mxu1 %v1237_v24  ;;  %1156 = vmatpush3.bf16.msra.mxu0 %v1238_v15 }
  0x98   :  { %1109 = vmatprep.subr.bf16.mxu1 %v1239_v27  ;;  %1157 = vmatprep.subr.bf16.mxu0 %v1240_v28 }
  0x9b   :  { %1110 = vmatpush3.bf16.msra.mxu1 %v1239_v27  ;;  %1158 = vmatpush3.bf16.msra.mxu0 %v1240_v28 }
  0x9e   :  { %1112 = vmatmul.mubr.bf16.vlgmr.msra.gmra.mrb[0].mxu1 %v1505_v16  ;;  %1160 = vmatmul.mubr.bf16.vlgmr.msra.gmra.mrb[0].mxu0 %v609_v32 }
  0x9f   :  { %1115 = vmatprep.mubr.bf16.mxu1 %v1512_v31  ;;  %1163 = vmatprep.mubr.bf16.mxu0 %v611_v33 }
  0xa6   :  { %1116 = vmatmul.mubr.bf16.gmra.mrb[4].mxu1 %v1242_v34  ;;  %1164 = vmatmul.mubr.bf16.gmra.mrb[4].mxu0 %v610_v30 }
  0xe8   :  { %v1536_v35 = vpop.permute.xlu0 %746 }
  0xe9   :  { %v1540_v37 = vpop.permute.xlu1 %756 }
  0xed   :  { %v1538_v36 = vpop.permute.xlu0 %751 }
  0xf1   :  { %v1542_v38 = vpop.permute.xlu0 %766 }
  0xf5   :  { %v1560_v53 = vpop.permute.xlu0 %776 }
  0xf8   :  { %v1556_v51 = vpop.permute.xlu1 %761 }
  0xfc   :  { %v1573_v13 = vpop.permute.xlu1 %771 }
 0x171   :  { %v1113_v39 = vpop.f32.mrb[0].mxu1  ;;  %v1161_v40 = vpop.f32.mrb[0].mxu0 }
 0x172   :  { %v381_v41 = vpop.f32.mrb[1].mxu1  ;;  %v1544_v42 = vadd.f32 %v1161_v40, %v1113_v39  ;;  %v698_v16 = vpop.f32.mrb[1].mxu0 }
 0x173   :  { %v1114_v43 = vpop.f32.mrb[2].mxu1  ;;  %v1546_v31 = vadd.f32 %v698_v16, %v381_v41  ;;  %v1162_v44 = vpop.f32.mrb[2].mxu0 }
 0x174   :  { %v384_v45 = vpop.f32.mrb[3].mxu1  ;;  %v1548_v46 = vadd.f32 %v1162_v44, %v1114_v43  ;;  %v701_v47 = vpop.f32.mrb[3].mxu0  ;;  %v781_v50 = vmul.f32 %v1544_v42, %v1540_v37 }
 0x175   :  { %v779_v48 = vmul.f32 %v1546_v31, %v1536_v35  ;;  %v1552_v49 = vadd.f32 %v701_v47, %v384_v45 }
 0x176   :  { %v782_v54 = vmul.f32 %v1548_v46, %v1556_v51  ;;  %v803_v0 = vmul.f32 %v1544_v42, %v781_v50 }
 0x177   :  { %v780_v52 = vmul.f32 %v1552_v49, %v1538_v36  ;;  %v801_v56 = vmul.f32 %v1546_v31, %v779_v48 }
 0x178   :  { %v804_v6 = vmul.f32 %v1548_v46, %v782_v54 }
 0x179   :  { %v1117_v55 = vpop.f32.mrb[4].mxu1  ;;  %v786_v57 = vadd.f32 %v780_v52, %v779_v48  ;;  %v802_v58 = vmul.f32 %v1552_v49, %v780_v52  ;;  %v1165_v59 = vpop.f32.mrb[4].mxu0 }
 0x17a   :  { %v397_v60 = vpop.f32.mrb[5].mxu1  ;;  %v1566_v61 = vadd.f32 %v1165_v59, %v1117_v55  ;;  %v714_v62 = vpop.f32.mrb[5].mxu0 }
 0x17b   :  { %v1118_v63 = vpop.f32.mrb[6].mxu1  ;;  %v787_v1 = vadd.f32 %v786_v57, %v781_v50  ;;  %v808_v2 = vadd.f32 %v802_v58, %v801_v56  ;;  %v1172_v3 = vadd.f32 %v714_v62, %v397_v60  ;;  %v1166_v4 = vpop.f32.mrb[6].mxu0 }
 0x17c   :  { %v400_v5 = vpop.f32.mrb[7].mxu1  ;;  %v785_v7 = vmul.f32 %v1566_v61, %v1560_v53  ;;  %v717_v8 = vpop.f32.mrb[7].mxu0 }
 0x17d   :  { %v809_v9 = vadd.f32 %v808_v2, %v803_v0  ;;  %v783_v10 = vmul.f32 %v1172_v3, %v1542_v38  ;;  %v788_v11 = vadd.f32 %v787_v1, %v782_v54  ;;  %v1173_v12 = vadd.f32 %v717_v8, %v400_v5  ;;  %v990_v0 = vld [vmem:[#allocation7] ss:$0 sm:$0xff] }
 0x17e   :  { %v807_v20 = vmul.f32 %v1566_v61, %v785_v7  ;;  %v792_v24 = vsel %vm791_vm3, %v785_v7, 0.0 }
 0x17f   :  { %v789_v17 = vadd.f32 %v788_v11, %v783_v10  ;;  %v805_v18 = vmul.f32 %v1172_v3, %v783_v10  ;;  %v810_v14 = vadd.f32 %v809_v9, %v804_v6  ;;  %v784_v19 = vmul.f32 %v1173_v12, %v1573_v13 }
 0x180   :  { %v813_v26 = vsel %vm791_vm3, %v807_v20, 0.0 }
 0x181   :  { %v811_v21 = vadd.f32 %v810_v14, %v805_v18  ;;  %v790_v22 = vadd.f32 %v789_v17, %v784_v19  ;;  %v806_v23 = vmul.f32 %v1173_v12, %v784_v19 }
 0x183   :  { %v793_v25 = vadd.f32 %v792_v24, %v790_v22  ;;  %v812_v15 = vadd.f32 %v811_v21, %v806_v23 }
 0x185   :  { %v794_v27 = vrot.slane %v793_v25, 4  ;;  %v814_v28 = vadd.f32 %v813_v26, %v812_v15 }
 0x187   :  { %v795_v29 = vadd.f32 %v794_v27, %v793_v25  ;;  %v815_v30 = vrot.slane %v814_v28, 4 }
 0x189   :  { %v796_v32 = vrot.slane %v795_v29, 2  ;;  %v816_v33 = vadd.f32 %v815_v30, %v814_v28 }
 0x18b   :  { %v797_v34 = vadd.f32 %v796_v32, %v795_v29  ;;  %v817_v39 = vrot.slane %v816_v33, 2 }
 0x18d   :  { %v798_v40 = vrot.slane %v797_v34, 1  ;;  %v818_v41 = vadd.f32 %v817_v39, %v816_v33 }
 0x18f   :  { %v799_v16 = vadd.f32 %v798_v40, %v797_v34  ;;  %v819_v43 = vrot.slane %v818_v41, 1 }
 0x191   :  { %v800_v44 = vmul.f32 0.03125, %v799_v16  ;;  %v820_v45 = vadd.f32 %v819_v43, %v818_v41 }
 0x193   :  { %v821_v47 = vmul.f32 0.03125, %v820_v45  ;;  %v822_v48 = vmul.f32 %v800_v44, %v800_v44  ;;  %v830_v50 = vsub.f32 %v1173_v12, %v800_v44  ;;  %v825_v52 = vsub.f32 %v1546_v31, %v800_v44  ;;  %v991_v31 = vld [vmem:[#allocation8] ss:$0 sm:$0xff] }
 0x194   :  { %v826_v54 = vsub.f32 %v1552_v49, %v800_v44  ;;  %v827_v55 = vsub.f32 %v1544_v42, %v800_v44  ;;  %v828_v56 = vsub.f32 %v1548_v46, %v800_v44  ;;  %v829_v57 = vsub.f32 %v1172_v3, %v800_v44 }
 0x195   :  { %v823_v58 = vsub.f32 %v821_v47, %v822_v48  ;;  %v831_v59 = vsub.f32 %v1566_v61, %v800_v44 }
 0x197   :  { %v824_v60 = vmax.f32 %v823_v58, 0.0 }
 0x199   :  { %v832_v62 = vadd.f32 1e-05, %v824_v60 }
 0x19b   :  { %1243 = vrsqrt.f32 %v832_v62 }
 0x1a5   :  { %v1244_v63 = vpop.eup %1243 }
 0x1a6   :  { %v839_v1 = vmul.f32 %v1244_v63, %v830_v50  ;;  %v834_v2 = vmul.f32 %v1244_v63, %v825_v52  ;;  %v835_v4 = vmul.f32 %v1244_v63, %v826_v54  ;;  %v836_v5 = vmul.f32 %v1244_v63, %v827_v55 }
 0x1a7   :  { %v837_v6 = vmul.f32 %v1244_v63, %v828_v56  ;;  %v838_v49 = vmul.f32 %v1244_v63, %v829_v57  ;;  %v840_v7 = vmul.f32 %v1244_v63, %v831_v59 }
 0x1a8   :  { %v852_v42 = vmul.f32 %v990_v0, %v839_v1  ;;  %v847_v8 = vmul.f32 %v990_v0, %v834_v2  ;;  %v848_v46 = vmul.f32 %v990_v0, %v835_v4  ;;  %v849_v3 = vmul.f32 %v990_v0, %v836_v5 }
 0x1a9   :  { %v850_v9 = vmul.f32 %v990_v0, %v837_v6  ;;  %v851_v10 = vmul.f32 %v990_v0, %v838_v49  ;;  %v853_v61 = vmul.f32 %v990_v0, %v840_v7 }
 0x1aa   :  { %v865_v11 = vadd.f32 %v991_v31, %v852_v42  ;;  %v860_v12 = vadd.f32 %v991_v31, %v847_v8  ;;  %v861_v17 = vadd.f32 %v991_v31, %v848_v46  ;;  %v862_v18 = vadd.f32 %v991_v31, %v849_v3 }
 0x1ab   :  { %v863_v14 = vadd.f32 %v991_v31, %v850_v9  ;;  %v864_v19 = vadd.f32 %v991_v31, %v851_v10  ;;  %v866_v20 = vadd.f32 %v991_v31, %v853_v61 }
 0x1ac   :  { %vm872_vm4 = vcmp.ge.f32.partialorder %v865_v11, 0.0  ;;  %v879_v21 = vmul.f32 0.2, %v865_v11  ;;  %vm867_vm5 = vcmp.ge.f32.partialorder %v860_v12, 0.0  ;;  %vm868_vm6 = vcmp.ge.f32.partialorder %v861_v17, 0.0 }
 0x1ad   :  { %vm869_vm7 = vcmp.ge.f32.partialorder %v862_v18, 0.0  ;;  %vm870_vm8 = vcmp.ge.f32.partialorder %v863_v14, 0.0  ;;  %vm871_vm9 = vcmp.ge.f32.partialorder %v864_v19, 0.0  ;;  %vm873_vm10 = vcmp.ge.f32.partialorder %v866_v20, 0.0 }
 0x1ae   :  { %v874_v22 = vmul.f32 0.2, %v860_v12  ;;  %v875_v23 = vmul.f32 0.2, %v861_v17  ;;  %v876_v24 = vmul.f32 0.2, %v862_v18  ;;  %v886_v25 = vsel %vm872_vm4, %v865_v11, %v879_v21 }
 0x1af   :  { %v877_v15 = vmul.f32 0.2, %v863_v14  ;;  %v878_v26 = vmul.f32 0.2, %v864_v19  ;;  %v880_v27 = vmul.f32 0.2, %v866_v20  ;;  %v893_v32 = vmul.f32 %v886_v25, %v1573_v13 }
 0x1b0   :  { %v881_v28 = vsel %vm867_vm5, %v860_v12, %v874_v22  ;;  %v882_v29 = vsel %vm868_vm6, %v861_v17, %v875_v23  ;;  %v883_v30 = vsel %vm869_vm7, %v862_v18, %v876_v24 }
 0x1b1   :  { %v884_v33 = vsel %vm870_vm8, %v863_v14, %v877_v15  ;;  %v885_v34 = vsel %vm871_vm9, %v864_v19, %v878_v26  ;;  %v887_v39 = vsel %vm873_vm10, %v866_v20, %v880_v27  ;;  %v888_v40 = vmul.f32 %v881_v28, %v1536_v35 }
 0x1b2   :  { %v889_v41 = vmul.f32 %v882_v29, %v1538_v36  ;;  %v890_v16 = vmul.f32 %v883_v30, %v1540_v37  ;;  %v891_v43 = vmul.f32 %v884_v33, %v1556_v51  ;;  %v892_v44 = vmul.f32 %v885_v34, %v1542_v38 }
 0x1b3   :  { %v894_v45 = vmul.f32 %v887_v39, %v1560_v53 }
 0x1b4   :  { %v1009_v47 = vpack.c.bf16 %v889_v41, %v888_v40  ;;  %v1014_v48 = vpack.c.bf16 %v891_v43, %v890_v16  ;;  %v1019_v13 = vpack.c.bf16 %v893_v32, %v892_v44 }
 0x1b5   :  { %v1005_v50 = vpack.c.bf16 %v894_v45, %v894_v45 }
 0x1b6   :  { %1010 = vst [vmem:[#allocation11] sm:$0xff] %v1009_v47   ;;  %1021 = vst [vmem:[#allocation11 + $0x8] sm:$0xff] %v1014_v48  }
 0x1b7   :  { %1022 = vst [vmem:[#allocation11 + $0x10] sm:$0xff] %v1019_v13   ;;  %930 = vst [vmem:[#allocation11 + $0x18] sm:$0x1] %v1005_v50 }
 0x1b8   :  { %1366 = shalt.err (!%p1363_p2)
}
 0x1b9   :  { %s1367_s11 = scalar_lea.hbm %s1609_s5, 448 }
 0x1ba   :  { %p1368_p3 = scmp.ne.s32.totalorder %s1609_s5, %s1367_s11  ;;  %p1371_p4 = scmp.lt.u32.totalorder %s1367_s11, %s1609_s5 }
 0x1bc   :  { %p1373_p5 = pnand %p1371_p4, %p1368_p3 }
 0x1be   :  { %1376 = shalt.err (!%p1373_p5)
}
 0x1bf   :  { %942 = dma.vmem_to_hbm [thread:$0]  %s937_s21, 448, %s1609_s5, [#allocation4], %s1387_s30, %s1387_s30, %s1388_s6  }
 0x1c0   :  { %1383 = dma.done.wait [#allocation4], 448  }
 0x1c1   :  { %1384 = vsyncadd [#allocation4], 4294966848 }
 0x1c2   :  { %946 = vsyncpa [#allocation3], 1 }
 0x1c3   :  { %947 = vsyncpa [#allocation6], 1 }
 0x1c4   :  { %948 = vsyncpa [#allocation9], 1 }
 0x1c5   :  { %949 = vsyncpa [#allocation4], 1 }

// kernel: discriminator_forward.6
= control target key start
LH: loop header
LB: loop body
LE: loop exit
PB: predicated region body
PF: predicated region fallthrough
CT: control target
= control target key end

     0   :  { %10 = vsyncpa [#allocation3], 0  ;;  %s1627_s0 = inlined_call_operand.hbm [shape: bf16[22,256], index: 0, kind: input, shape index: {}]   ;;  %s1628_s1 = inlined_call_operand.hbm [shape: bf16[1024,128], index: 1, kind: input, shape index: {}]   ;;  %s1629_s2 = inlined_call_operand.hbm [shape: f32[1,128], index: 2, kind: input, shape index: {}]   ;;  %s1630_s3 = inlined_call_operand.hbm [shape: f32[1,128], index: 3, kind: input, shape index: {}]   ;;  %s1631_s4 = inlined_call_operand.hbm [shape: f32[18,1], index: 4, kind: input, shape index: {}]   ;;  %s1632_s5 = inlined_call_operand.hbm [shape: bf16[18,128], index: 5, kind: output, shape index: {}]  }
   0x1   :  { %11 = vsyncpa [#allocation6], 0 }
   0x2   :  { %12 = vsyncpa [#allocation9], 0 }
   0x3   :  { %13 = vsyncpa [#allocation4], 0  ;;  %s1480_s18 = smov [#allocation5]   ;;  %s1340_s22 = scalar_lea.hbm %s1628_s1, 8192 }
   0x4   :  { %s31_s19 = sshll.u32 %s1480_s18, 4  ;;  %p1341_p0 = scmp.ne.s32.totalorder %s1628_s1, %s1340_s22  ;;  %s32_s19 = int_to_ptr.vmem [resolvable:$true] %s31_s19 }
   0x5   :  { %p1344_p1 = scmp.lt.u32.totalorder %s1340_s22, %s1628_s1 }
   0x7   :  { %p1346_p2 = pnand %p1344_p1, %p1341_p0 }
   0x9   :  { %1349 = shalt.err (!%p1346_p2)
}
   0xa   :  { %s1350_s27 = scalar_lea.vmem %s32_s19, 8192  ;;  %p1355_p4 = scmp.lt.s32.totalorder %s32_s19, %s32_s19 }
   0xb   :  { %p1351_p3 = scmp.ne.s32.totalorder %s32_s19, %s1350_s27  ;;  %p1356_p5 = scmp.lt.s32.totalorder %s1350_s27, %s1350_s27 }
   0xd   :  { %p1357_p6 = por %p1356_p5, %p1355_p4 }
   0xf   :  { %p1358_p7 = pnand %p1357_p6, %p1351_p3 }
  0x11   :  { %1361 = shalt.err (!%p1358_p7)
}
  0x12   :  { %s1481_s28 = smov 64   ;;  %s1482_s29 = smov 4  }
  0x13   :  { %37 = dma.hbm_to_vmem [thread:$0]  %s1628_s1, 8192, %s32_s19, [#allocation6], %s1481_s28, %s1481_s28, %s1482_s29  }
  0x14   :  { %s1483_s7 = smov [#allocation8]   ;;  %s1484_s9 = smov [#allocation2]  }
  0x15   :  { %s54_s8 = sshll.u32 %s1483_s7, 4  ;;  %s19_s10 = sshll.u32 %s1484_s9, 4  ;;  %s55_s8 = int_to_ptr.vmem [resolvable:$true] %s54_s8  ;;  %s20_s10 = int_to_ptr.vmem [resolvable:$true] %s19_s10 }
  0x16   :  { %s1362_s13 = scalar_lea.hbm %s1630_s3, 16 }
  0x17   :  { %p1363_p8 = scmp.ne.s32.totalorder %s1630_s3, %s1362_s13  ;;  %p1366_p9 = scmp.lt.u32.totalorder %s1362_s13, %s1630_s3 }
  0x19   :  { %p1368_p10 = pnand %p1366_p9, %p1363_p8 }
  0x1b   :  { %1371 = shalt.err (!%p1368_p10)
}
  0x1c   :  { %s1372_s1 = scalar_lea.vmem %s55_s8, 16  ;;  %s1376_s18 = scalar_lea.vmem %s55_s8, 32 }
  0x1d   :  { %p1373_p11 = scmp.ne.s32.totalorder %s55_s8, %s1372_s1  ;;  %p1377_p12 = scmp.lt.s32.totalorder %s55_s8, %s55_s8 }
  0x1e   :  { %p1378_p13 = scmp.lt.s32.totalorder %s1376_s18, %s1372_s1 }
  0x20   :  { %p1379_p0 = por %p1378_p13, %p1377_p12 }
  0x22   :  { %p1380_p1 = pnand %p1379_p0, %p1373_p11 }
  0x24   :  { %1383 = shalt.err (!%p1380_p1)
}
  0x25   :  { %57 = dma.hbm_to_vmem [thread:$0]  %s1630_s3, 16, %s55_s8, [#allocation9]  }
  0x26   :  { %s1384_s23 = scalar_lea.hbm %s1627_s0, 384 }
  0x27   :  { %p1385_p2 = scmp.ne.s32.totalorder %s1627_s0, %s1384_s23  ;;  %p1388_p3 = scmp.lt.u32.totalorder %s1384_s23, %s1627_s0 }
  0x29   :  { %p1390_p4 = pnand %p1388_p3, %p1385_p2 }
  0x2b   :  { %1393 = shalt.err (!%p1390_p4)
}
  0x2c   :  { %s1394_s30 = scalar_lea.vmem %s20_s10, 384  ;;  %p1399_p6 = scmp.lt.s32.totalorder %s20_s10, %s20_s10 }
  0x2d   :  { %p1395_p5 = scmp.ne.s32.totalorder %s20_s10, %s1394_s30  ;;  %p1400_p7 = scmp.lt.s32.totalorder %s1394_s30, %s1394_s30 }
  0x2f   :  { %p1401_p8 = por %p1400_p7, %p1399_p6 }
  0x31   :  { %p1402_p9 = pnand %p1401_p8, %p1395_p5 }
  0x33   :  { %1405 = shalt.err (!%p1402_p9)
}
  0x34   :  { %s1485_s3 = smov 128   ;;  %s1486_s6 = smov 8  }
  0x35   :  { %25 = dma.hbm_to_vmem [thread:$0]  %s1627_s0, 384, %s20_s10, [#allocation3], %s1485_s3, %s1485_s3, %s1486_s6  }
  0x36   :  { %s1487_s9 = smov [#allocation7]   ;;  %s1488_s12 = smov [#allocation10]  }
  0x37   :  { %s44_s11 = sshll.u32 %s1487_s9, 4  ;;  %s63_s13 = sshll.u32 %s1488_s12, 4  ;;  %s45_s11 = int_to_ptr.vmem [resolvable:$true] %s44_s11  ;;  %s64_s13 = int_to_ptr.vmem [resolvable:$true] %s63_s13 }
  0x38   :  { %s1406_s16 = scalar_lea.hbm %s1629_s2, 16 }
  0x39   :  { %p1407_p10 = scmp.ne.s32.totalorder %s1629_s2, %s1406_s16  ;;  %p1410_p11 = scmp.lt.u32.totalorder %s1406_s16, %s1629_s2 }
  0x3b   :  { %p1412_p12 = pnand %p1410_p11, %p1407_p10 }
  0x3d   :  { %1415 = shalt.err (!%p1412_p12)
}
  0x3e   :  { %s1416_s0 = scalar_lea.vmem %s45_s11, 16  ;;  %s1420_s10 = scalar_lea.vmem %s45_s11, 32 }
  0x3f   :  { %p1417_p13 = scmp.ne.s32.totalorder %s45_s11, %s1416_s0  ;;  %p1421_p0 = scmp.lt.s32.totalorder %s45_s11, %s45_s11 }
  0x40   :  { %p1422_p1 = scmp.lt.s32.totalorder %s1420_s10, %s1416_s0 }
  0x42   :  { %p1423_p2 = por %p1422_p1, %p1421_p0 }
  0x44   :  { %p1424_p3 = pnand %p1423_p2, %p1417_p13 }
  0x46   :  { %1427 = shalt.err (!%p1424_p3)
}
  0x47   :  { %47 = dma.hbm_to_vmem [thread:$0]  %s1629_s2, 16, %s45_s11, [#allocation6]  }
  0x48   :  { %s1428_s24 = scalar_lea.hbm %s1631_s4, 384 }
  0x49   :  { %p1429_p4 = scmp.ne.s32.totalorder %s1631_s4, %s1428_s24  ;;  %p1432_p5 = scmp.lt.u32.totalorder %s1428_s24, %s1631_s4 }
  0x4b   :  { %p1434_p6 = pnand %p1432_p5, %p1429_p4 }
  0x4d   :  { %1437 = shalt.err (!%p1434_p6)
}
  0x4e   :  { %s1438_s7 = scalar_lea.vmem %s64_s13, 384  ;;  %p1443_p8 = scmp.lt.s32.totalorder %s64_s13, %s64_s13 }
  0x4f   :  { %p1439_p7 = scmp.ne.s32.totalorder %s64_s13, %s1438_s7  ;;  %p1444_p9 = scmp.lt.s32.totalorder %s1438_s7, %s1438_s7 }
  0x51   :  { %p1445_p10 = por %p1444_p9, %p1443_p8 }
  0x53   :  { %p1446_p11 = pnand %p1445_p10, %p1439_p7 }
  0x55   :  { %1449 = shalt.err (!%p1446_p11)
}
  0x56   :  { %69 = dma.hbm_to_vmem [thread:$0]  %s1631_s4, 384, %s64_s13, [#allocation9], %s1485_s3, %s1485_s3, %s1486_s6  }
  0x57   :  { %1472 = dma.done.wait [#allocation3], 384  }
  0x58   :  { %1473 = vsyncadd [#allocation3], 4294966912 }
  0x59   :  { %1474 = dma.done.wait [#allocation6], 8208  }
  0x5a   :  { %1475 = vsyncadd [#allocation6], 4294959088 }
  0x5b   :  { %1476 = dma.done.wait [#allocation9], 400  }
  0x5c   :  { %1477 = vsyncadd [#allocation9], 4294966896  ;;  %v1489_v0 = vmov 0   ;;  %v1262_v1 = vld [vmem:[#allocation5 + $0xc0] sm:$0xff]   ;;  %v1266_v5 = vld [vmem:[#allocation5 + $0xc8] sm:$0xff]   ;;  %vm767_vm2 = vcmask 1045504  }
  0x5d   :  { %1260 = vset.pattern.permute.xlu0 %v1489_v0  ;;  %1261 = vset.pattern.permute.xlu1 %v1489_v0  ;;  %v1263_v2 = vld [vmem:[#allocation5 + $0x40] sm:$0xff]   ;;  %v1267_v6 = vld [vmem:[#allocation5 + $0x48] sm:$0xff]   ;;  %v1270_v9 = vld [vmem:[#allocation5 + $0xd0] sm:$0xff]   ;;  %vm167_vm0 = vsmask.f32 7424  ;;  %vm949_vm3 = vcmask 1041408  }
  0x5e   :  { %1137 = vmatprep.subr.bf16.mxu0 %v1262_v1  ;;  %v1264_v3 = vld [vmem:[#allocation5 + $0x80] sm:$0xff]   ;;  %1165 = vmatprep.subr.bf16.mxu1 %v1263_v2  ;;  %v1268_v7 = vld [vmem:[#allocation5 + $0x88] sm:$0xff]   ;;  %v1271_v10 = vld [vmem:[#allocation5 + $0x50] sm:$0xff]   ;;  %vm543_vm1 = vsmask.f32 6400  ;;  %s1490_s4 = smov [#allocation11]  }
  0x5f   :  { %v1265_v4 = vld [vmem:[#allocation5] sm:$0xff]   ;;  %1138 = vmatpush3.bf16.msra.mxu0 %v1264_v3  ;;  %v1269_v8 = vld [vmem:[#allocation5 + $0x8] sm:$0xff]   ;;  %v1272_v11 = vld [vmem:[#allocation5 + $0x90] sm:$0xff]   ;;  %s1034_s3 = sshll.u32 %s1490_s4, 4  ;;  %s1035_s3 = int_to_ptr.vmem [resolvable:$true] %s1034_s3 }
  0x60   :  { %1166 = vmatpush3.bf16.msra.mxu1 %v1265_v4  ;;  %1139 = vmatprep.subr.bf16.mxu0 %v1266_v5  ;;  %v1273_v12 = vld [vmem:[#allocation5 + $0x10] sm:$0xff]   ;;  %v1274_v13 = vld [vmem:[#allocation5 + $0xd8] sm:$0xff]   ;;  %v1278_v17 = vld [vmem:[#allocation5 + $0xe0] sm:$0xff]   ;;  %s1450_s6 = scalar_lea.vmem %s1035_s3, 192  ;;  %p1455_p13 = scmp.lt.s32.totalorder %s1035_s3, %s1035_s3 }
  0x61   :  { %1167 = vmatprep.subr.bf16.mxu1 %v1267_v6  ;;  %v1275_v14 = vld [vmem:[#allocation5 + $0x58] sm:$0xff]   ;;  %v1279_v18 = vld [vmem:[#allocation5 + $0x60] sm:$0xff]   ;;  %v1282_v21 = vld [vmem:[#allocation5 + $0xe8] sm:$0xff]   ;;  %p1451_p12 = scmp.ne.s32.totalorder %s1035_s3, %s1450_s6  ;;  %p1456_p0 = scmp.lt.s32.totalorder %s1450_s6, %s1450_s6 }
  0x62   :  { %v1276_v15 = vld [vmem:[#allocation5 + $0x98] sm:$0xff]   ;;  %v1280_v19 = vld [vmem:[#allocation5 + $0xa0] sm:$0xff]   ;;  %v1283_v22 = vld [vmem:[#allocation5 + $0x68] sm:$0xff]  }
  0x63   :  { %1140 = vmatpush3.bf16.msra.mxu0 %v1268_v7  ;;  %v1277_v16 = vld [vmem:[#allocation5 + $0x18] sm:$0xff]   ;;  %v1281_v20 = vld [vmem:[#allocation5 + $0x20] sm:$0xff]   ;;  %v1284_v23 = vld [vmem:[#allocation5 + $0xa8] sm:$0xff]   ;;  %p1457_p1 = por %p1456_p0, %p1455_p13 }
  0x64   :  { %1168 = vmatpush3.bf16.msra.mxu1 %v1269_v8  ;;  %1141 = vmatprep.subr.bf16.mxu0 %v1270_v9  ;;  %v1285_v24 = vld [vmem:[#allocation5 + $0x28] sm:$0xff]   ;;  %v1286_v25 = vld [vmem:[#allocation5 + $0xf0] sm:$0xff]   ;;  %v1290_v29 = vld [vmem:[#allocation5 + $0xf8] sm:$0xff]  }
  0x65   :  { %1169 = vmatprep.subr.bf16.mxu1 %v1271_v10  ;;  %v1287_v26 = vld [vmem:[#allocation5 + $0x70] sm:$0xff]   ;;  %v1291_v30 = vld [vmem:[#allocation5 + $0x78] sm:$0xff]   ;;  %v86_v33 = vld [vmem:[#allocation2] sm:$0xff]  ;;  %p1458_p2 = pnand %p1457_p1, %p1451_p12 }
  0x66   :  { %v1288_v27 = vld [vmem:[#allocation5 + $0xb0] sm:$0xff]   ;;  %v1292_v31 = vld [vmem:[#allocation5 + $0xb8] sm:$0xff]   ;;  %v1298_v40 = vld [vmem:[#allocation5 + $0x140] sm:$0xff]  }
  0x67   :  { %1142 = vmatpush3.bf16.msra.mxu0 %v1272_v11  ;;  %v1289_v28 = vld [vmem:[#allocation5 + $0x30] sm:$0xff]   ;;  %v1293_v32 = vld [vmem:[#allocation5 + $0x38] sm:$0xff]   ;;  %v1299_v41 = vld [vmem:[#allocation5 + $0x1c0] sm:$0xff]  }
  0x68   :  { %1170 = vmatpush3.bf16.msra.mxu1 %v1273_v12  ;;  %1143 = vmatprep.subr.bf16.mxu0 %v1274_v13  ;;  %v1590_v34 = vld [vmem:[#allocation2 + $0x8] sm:$0xff]  ;;  %v121_v35 = vld [vmem:[#allocation2 + $0x10] sm:$0x33]  ;;  %v1301_v48 = vld [vmem:[#allocation5 + $0x180] sm:$0xff]  }
  0x69   :  { %1171 = vmatprep.subr.bf16.mxu1 %v1275_v14  ;;  %v1049_v36 = vcombine.high %v86_v33, %v1590_v34  ;;  %v1051_v37 = vcombine.high %v121_v35, %v121_v35  ;;  %v1048_v38 = vcombine.low %v86_v33, %v1590_v34  ;;  %v1050_v39 = vcombine.low %v121_v35, %v121_v35  ;;  %v1300_v54 = vld [vmem:[#allocation5 + $0x100] sm:$0xff]   ;;  %v1303_v57 = vld [vmem:[#allocation5 + $0x1c8] sm:$0xff]   ;;  %v1307_v1 = vld [vmem:[#allocation5 + $0x1d0] sm:$0xff]  }
  0x6a   :  { %v1302_v59 = vld [vmem:[#allocation5 + $0x148] sm:$0xff]   ;;  %v1306_v2 = vld [vmem:[#allocation5 + $0x150] sm:$0xff]   ;;  %v1311_v6 = vld [vmem:[#allocation5 + $0x1d8] sm:$0xff]  }
  0x6b   :  { %1144 = vmatpush3.bf16.msra.mxu0 %v1276_v15  ;;  %v181_v42 = vshrl.u32 %v1049_v36, 16  ;;  %v183_v43 = vshll.u32 %v1049_v36, 16  ;;  %v188_v44 = vshll.u32 %v1051_v37, 16  ;;  %483 = vmatprep.mubr.bf16.mxu1 %v1049_v36  ;;  %v169_v45 = vshrl.u32 %v1048_v38, 16  ;;  %v1305_v62 = vld [vmem:[#allocation5 + $0x188] sm:$0xff]   ;;  %v1309_v3 = vld [vmem:[#allocation5 + $0x190] sm:$0xff]  }
  0x6c   :  { %1172 = vmatpush3.bf16.msra.mxu1 %v1277_v16  ;;  %1145 = vmatprep.subr.bf16.mxu0 %v1278_v17  ;;  %v171_v46 = vshll.u32 %v1048_v38, 16  ;;  %v176_v47 = vshll.u32 %v1050_v39, 16  ;;  %v195_v55 = vshrl.u32 %v1051_v37, 16  ;;  %v1304_v63 = vld [vmem:[#allocation5 + $0x108] sm:$0xff]   ;;  %v192_v0 = vshrl.u32 %v1050_v39, 16  ;;  %v1308_v4 = vld [vmem:[#allocation5 + $0x110] sm:$0xff]  }
  0x6d   :  { %1173 = vmatprep.subr.bf16.mxu1 %v1279_v18  ;;  %v185_v49 = vrot.slane %v183_v43, 1  ;;  %v190_v50 = vrot.slane %v188_v44, 1  ;;  %v1310_v7 = vld [vmem:[#allocation5 + $0x158] sm:$0xff]   ;;  %v1315_v10 = vld [vmem:[#allocation5 + $0x1e0] sm:$0xff]   ;;  %v1319_v14 = vld [vmem:[#allocation5 + $0x1e8] sm:$0xff]  }
  0x6e   :  { %v173_v51 = vrot.slane %v171_v46, 1  ;;  %v178_v52 = vrot.slane %v176_v47, 1  ;;  %v1313_v8 = vld [vmem:[#allocation5 + $0x198] sm:$0xff]   ;;  %v1314_v11 = vld [vmem:[#allocation5 + $0x160] sm:$0xff]   ;;  %v1318_v15 = vld [vmem:[#allocation5 + $0x168] sm:$0xff]  }
  0x6f   :  { %1146 = vmatpush3.bf16.msra.mxu0 %v1280_v19  ;;  %v186_v53 = vor.u32 %v185_v49, %v181_v42  ;;  %v197_v60 = vor.u32 %v195_v55, %v190_v50  ;;  %v1312_v9 = vld [vmem:[#allocation5 + $0x118] sm:$0xff]   ;;  %v1317_v12 = vld [vmem:[#allocation5 + $0x1a0] sm:$0xff]   ;;  %v1321_v16 = vld [vmem:[#allocation5 + $0x1a8] sm:$0xff]  }
  0x70   :  { %1174 = vmatpush3.bf16.msra.mxu1 %v1281_v20  ;;  %1147 = vmatprep.subr.bf16.mxu0 %v1282_v21  ;;  %v174_v56 = vor.u32 %v173_v51, %v169_v45  ;;  %v194_v5 = vor.u32 %v192_v0, %v178_v52  ;;  %v1316_v13 = vld [vmem:[#allocation5 + $0x120] sm:$0xff]   ;;  %v88_v17 = vld [vmem:[#allocation2 + $0x10] sm:$0x11]  ;;  %v1320_v18 = vld [vmem:[#allocation5 + $0x128] sm:$0xff]  }
  0x71   :  { %1175 = vmatprep.subr.bf16.mxu1 %v1283_v22  ;;  %v191_v58 = vsel %vm167_vm0, %v186_v53, %v190_v50  ;;  %v1069_v19 = vcombine.high %v88_v17, %v88_v17  ;;  %v1068_v20 = vcombine.low %v88_v17, %v88_v17  ;;  %v1325_v21 = vld [vmem:[#allocation5 + $0x1f0] sm:$0xff]   ;;  %v925_v33 = vld [vmem:[#allocation10] sm:$0xff]  ;;  %v1330_v35 = vld [vmem:[#allocation5 + $0x138] sm:$0xff]  }
  0x72   :  { %330 = vmatprep.mubr.bf16.mxu0 %v191_v58  ;;  %v179_v61 = vsel %vm167_vm0, %v174_v56, %v178_v52  ;;  %v1324_v22 = vld [vmem:[#allocation5 + $0x170] sm:$0xff]   ;;  %932 = vperm.xlu0 %1260, %v925_v33  }
  0x73   :  { %1148 = vmatpush3.bf16.msra.mxu0 %v1284_v23  ;;  %v1327_v23 = vld [vmem:[#allocation5 + $0x1b0] sm:$0xff]  }
  0x74   :  { %1176 = vmatpush3.bf16.msra.mxu1 %v1285_v24  ;;  %1149 = vmatprep.subr.bf16.mxu0 %v1286_v25  ;;  %v1326_v24 = vld [vmem:[#allocation5 + $0x130] sm:$0xff]   ;;  %v1329_v25 = vld [vmem:[#allocation5 + $0x1f8] sm:$0xff]  }
  0x75   :  { %1177 = vmatprep.subr.bf16.mxu1 %v1287_v26  ;;  %v1328_v26 = vld [vmem:[#allocation5 + $0x178] sm:$0xff]   ;;  %v927_v39 = vld [vmem:[#allocation10 + $0x10] sm:$0x3] }
  0x76   :  { %942 = vperm.xlu1 %1261, %v927_v39  }
  0x77   :  { %1150 = vmatpush3.bf16.msra.mxu0 %v1288_v27  ;;  %v1331_v27 = vld [vmem:[#allocation5 + $0x1b8] sm:$0xff]  }
  0x78   :  { %1178 = vmatpush3.bf16.msra.mxu1 %v1289_v28  ;;  %1151 = vmatprep.subr.bf16.mxu0 %v1290_v29  ;;  %v499_v28 = vld [vmem:[#allocation2] sm:$0xee]  ;;  %v500_v29 = vld [vmem:[#allocation2 + $0x10] sm:$0x77] }
  0x79   :  { %1179 = vmatprep.subr.bf16.mxu1 %v1291_v30  ;;  %v1086_v30 = vcombine.low %v499_v28, %v1590_v34  ;;  %v1088_v36 = vcombine.low %v500_v29, %v500_v29  ;;  %v1089_v37 = vcombine.high %v500_v29, %v500_v29 }
  0x7b   :  { %1152 = vmatpush3.bf16.msra.mxu0 %v1292_v31  ;;  %v1087_v31 = vcombine.high %v499_v28, %v1590_v34  ;;  %v545_v43 = vshrl.u32 %v1086_v30, 16  ;;  %v570_v44 = vshrl.u32 %v1089_v37, 16  ;;  %v573_v45 = vshll.u32 %v1089_v37, 16 }
  0x7c   :  { %1180 = vmatpush3.bf16.msra.mxu1 %v1293_v32  ;;  %1193 = vmatprep.subr.bf16.mxu0 %v1298_v40  ;;  %v729_v32 = vld [vmem:[#allocation2] sm:$0xcc]  ;;  %v772_v47 = vrot.slane %v1089_v37, 2  ;;  %v548_v55 = vshll.u32 %v1086_v30, 16  ;;  %v553_v56 = vshrl.u32 %v1088_v36, 16  ;;  %v556_v58 = vshll.u32 %v1088_v36, 16 }
  0x7d   :  { %1221 = vmatprep.subr.bf16.mxu1 %v1299_v41  ;;  %v562_v40 = vshrl.u32 %v1087_v31, 16  ;;  %v565_v41 = vshll.u32 %v1087_v31, 16  ;;  %v1107_v42 = vcombine.high %v729_v32, %v1590_v34  ;;  %v547_v52 = vrot.slane %v545_v43, 1 }
  0x7e   :  { %331 = vmatmul.mubr.bf16.vlgmr.msra.gmra.mrb[0].mxu0 %v179_v61  ;;  %v572_v53 = vrot.slane %v570_v44, 1  ;;  %v550_v61 = vrot.slane %v548_v55, 2 }
  0x7f   :  { %484 = vmatmul.mubr.bf16.vlgmr.msra.gmra.mrb[0].mxu1 %v1048_v38  ;;  %1194 = vmatpush3.bf16.msra.mxu0 %v1300_v54  ;;  %v1106_v38 = vcombine.low %v729_v32, %v1590_v34  ;;  %v564_v49 = vrot.slane %v562_v40, 1  ;;  %v567_v50 = vrot.slane %v565_v41, 2  ;;  %v771_v51 = vrot.slane %v1107_v42, 2 }
  0x80   :  { %1222 = vmatpush3.bf16.msra.mxu1 %v1301_v48  ;;  %1195 = vmatprep.subr.bf16.mxu0 %v1302_v59  ;;  %v926_v48 = vld [vmem:[#allocation10 + $0x8] sm:$0xff]  ;;  %v575_v54 = vrot.slane %v573_v45, 2  ;;  %v769_v59 = vrot.slane %v1088_v36, 2 }
  0x81   :  { %1223 = vmatprep.subr.bf16.mxu1 %v1303_v57  ;;  %338 = vmatprep.mubr.bf16.mxu0 %v197_v60  ;;  %v768_v46 = vrot.slane %v1106_v38, 2  ;;  %v568_v57 = vor.u32 %v567_v50, %v564_v49  ;;  %v773_v34 = vsel %vm767_vm2, %v771_v51, %v772_v47 }
  0x82   :  { %491 = vmatprep.mubr.bf16.mxu1 %v1069_v19  ;;  %937 = vperm.xlu0 %1260, %v926_v48   ;;  %v576_v60 = vor.u32 %v575_v54, %v572_v53 }
  0x83   :  { %1196 = vmatpush3.bf16.msra.mxu0 %v1304_v63  ;;  %v558_v63 = vrot.slane %v556_v58, 2  ;;  %v770_v0 = vsel %vm767_vm2, %v768_v46, %v769_v59 }
  0x84   :  { %1224 = vmatpush3.bf16.msra.mxu1 %v1305_v62  ;;  %1197 = vmatprep.subr.bf16.mxu0 %v1306_v2  ;;  %v555_v62 = vrot.slane %v553_v56, 1  ;;  %v551_v2 = vor.u32 %v550_v61, %v547_v52 }
  0x85   :  { %1225 = vmatprep.subr.bf16.mxu1 %v1307_v1  ;;  %v577_v1 = vsel %vm543_vm1, %v568_v57, %v576_v60 }
  0x86   :  { %339 = vmatmul.mubr.bf16.gmra.mrb[4].mxu0 %v194_v5 }
  0x87   :  { %1198 = vmatpush3.bf16.msra.mxu0 %v1308_v4  ;;  %492 = vmatmul.mubr.bf16.gmra.mrb[4].mxu1 %v1068_v20 }
  0x88   :  { %1226 = vmatpush3.bf16.msra.mxu1 %v1309_v3  ;;  %1199 = vmatprep.subr.bf16.mxu0 %v1310_v7  ;;  %v559_v3 = vor.u32 %v558_v63, %v555_v62 }
  0x89   :  { %1227 = vmatprep.subr.bf16.mxu1 %v1311_v6  ;;  %906 = vmatprep.mubr.bf16.mxu1 %v773_v34 }
  0x8a   :  { %710 = vmatprep.mubr.bf16.mxu0 %v577_v1  ;;  %v560_v4 = vsel %vm543_vm1, %v551_v2, %v559_v3 }
  0x8b   :  { %1200 = vmatpush3.bf16.msra.mxu0 %v1312_v9 }
  0x8c   :  { %1228 = vmatpush3.bf16.msra.mxu1 %v1313_v8  ;;  %1201 = vmatprep.subr.bf16.mxu0 %v1314_v11 }
  0x8d   :  { %1229 = vmatprep.subr.bf16.mxu1 %v1315_v10 }
  0x8f   :  { %1202 = vmatpush3.bf16.msra.mxu0 %v1316_v13 }
  0x90   :  { %1230 = vmatpush3.bf16.msra.mxu1 %v1317_v12  ;;  %1203 = vmatprep.subr.bf16.mxu0 %v1318_v15 }
  0x91   :  { %1231 = vmatprep.subr.bf16.mxu1 %v1319_v14 }
  0x93   :  { %1204 = vmatpush3.bf16.msra.mxu0 %v1320_v18 }
  0x94   :  { %1232 = vmatpush3.bf16.msra.mxu1 %v1321_v16  ;;  %1205 = vmatprep.subr.bf16.mxu0 %v1324_v22 }
  0x95   :  { %1233 = vmatprep.subr.bf16.mxu1 %v1325_v21 }
  0x97   :  { %1206 = vmatpush3.bf16.msra.mxu0 %v1326_v24 }
  0x98   :  { %1234 = vmatpush3.bf16.msra.mxu1 %v1327_v23  ;;  %1207 = vmatprep.subr.bf16.mxu0 %v1328_v26 }
  0x99   :  { %1235 = vmatprep.subr.bf16.mxu1 %v1329_v25 }
  0x9b   :  { %1208 = vmatpush3.bf16.msra.mxu0 %v1330_v35 }
  0x9c   :  { %1236 = vmatpush3.bf16.msra.mxu1 %v1331_v27 }
  0x9e   :  { %711 = vmatmul.mubr.bf16.vlgmr.msra.gmra.mrb[8].mxu0 %v560_v4 }
  0x9f   :  { %907 = vmatmul.mubr.bf16.vlgmr.msra.gmra.mrb[8].mxu1 %v770_v0  ;;  %718 = vmatprep.mubr.bf16.mxu0 %v576_v60 }
  0xa0   :  { %914 = vmatprep.mubr.bf16.mxu1 %v772_v47 }
  0xa6   :  { %719 = vmatmul.mubr.bf16.gmra.mrb[12].mxu0 %v559_v3 }
  0xa7   :  { %915 = vmatmul.mubr.bf16.gmra.mrb[12].mxu1 %v769_v59 }
  0xf1   :  { %v1604_v39 = vpop.permute.xlu0 %932 }
  0xf5   :  { %v943_v0 = vpop.permute.xlu1 %942 }
 0x101   :  { %v1606_v51 = vpop.permute.xlu0 %937 }
 0x151   :  { %v1153_v11 = vpop.f32.mrb[0].mxu0 }
 0x152   :  { %v1181_v5 = vpop.f32.mrb[0].mxu1  ;;  %v1154_v12 = vpop.f32.mrb[1].mxu0 }
 0x153   :  { %v1182_v6 = vpop.f32.mrb[1].mxu1  ;;  %v1155_v13 = vadd.f32 %v1154_v12, %v1153_v11  ;;  %v1156_v14 = vpop.f32.mrb[2].mxu0 }
 0x154   :  { %v1183_v7 = vadd.f32 %v1182_v6, %v1181_v5  ;;  %v1184_v8 = vpop.f32.mrb[2].mxu1  ;;  %v1157_v15 = vpop.f32.mrb[3].mxu0 }
 0x155   :  { %v1185_v9 = vpop.f32.mrb[3].mxu1  ;;  %v1158_v17 = vadd.f32 %v1157_v15, %v1156_v14 }
 0x156   :  { %v1186_v10 = vadd.f32 %v1185_v9, %v1184_v8  ;;  %v486_v16 = vadd.f32 %v1183_v7, %v1155_v13 }
 0x158   :  { %v489_v18 = vadd.f32 %v1186_v10, %v1158_v17 }
 0x159   :  { %v1159_v19 = vpop.f32.mrb[4].mxu0 }
 0x15a   :  { %v1160_v20 = vpop.f32.mrb[5].mxu0  ;;  %v1187_v24 = vpop.f32.mrb[4].mxu1 }
 0x15b   :  { %v1161_v21 = vadd.f32 %v1160_v20, %v1159_v19  ;;  %v1162_v22 = vpop.f32.mrb[6].mxu0  ;;  %v1188_v25 = vpop.f32.mrb[5].mxu1 }
 0x15c   :  { %v1163_v23 = vpop.f32.mrb[7].mxu0  ;;  %v1189_v26 = vadd.f32 %v1188_v25, %v1187_v24  ;;  %v1190_v27 = vpop.f32.mrb[6].mxu1 }
 0x15d   :  { %v1191_v28 = vpop.f32.mrb[7].mxu1 }
 0x15e   :  { %v494_v29 = vadd.f32 %v1189_v26, %v1161_v21 }
 0x171   :  { %v1209_v36 = vpop.f32.mrb[8].mxu0 }
 0x172   :  { %v1237_v30 = vpop.f32.mrb[8].mxu1  ;;  %v1210_v38 = vpop.f32.mrb[9].mxu0 }
 0x173   :  { %v1238_v31 = vpop.f32.mrb[9].mxu1  ;;  %v1211_v40 = vadd.f32 %v1210_v38, %v1209_v36  ;;  %v1212_v41 = vpop.f32.mrb[10].mxu0  ;;  %v1125_v36 = vld [vmem:[#allocation8] ss:$0 sm:$0xff] }
 0x174   :  { %v1239_v32 = vadd.f32 %v1238_v31, %v1237_v30  ;;  %v1240_v33 = vpop.f32.mrb[10].mxu1  ;;  %v1213_v42 = vpop.f32.mrb[11].mxu0  ;;  %v1124_v31 = vld [vmem:[#allocation7] ss:$0 sm:$0xff] }
 0x175   :  { %v1241_v35 = vpop.f32.mrb[11].mxu1  ;;  %v726_v43 = vadd.f32 %v1211_v40, %v486_v16  ;;  %v1214_v44 = vadd.f32 %v1213_v42, %v1212_v41 }
 0x176   :  { %v1242_v37 = vadd.f32 %v1241_v35, %v1240_v33 }
 0x177   :  { %v922_v47 = vadd.f32 %v1239_v32, %v726_v43  ;;  %v727_v48 = vadd.f32 %v1214_v44, %v489_v18 }
 0x179   :  { %v923_v53 = vadd.f32 %v1242_v37, %v727_v48  ;;  %v945_v54 = vmul.f32 %v1604_v39, %v922_v47  ;;  %v1215_v55 = vpop.f32.mrb[12].mxu0 }
 0x17a   :  { %v1243_v45 = vpop.f32.mrb[12].mxu1  ;;  %v1216_v56 = vpop.f32.mrb[13].mxu0 }
 0x17b   :  { %v1244_v46 = vpop.f32.mrb[13].mxu1  ;;  %v946_v57 = vmul.f32 %v1606_v51, %v923_v53  ;;  %v1217_v34 = vadd.f32 %v1216_v56, %v1215_v55  ;;  %v1218_v58 = vpop.f32.mrb[14].mxu0  ;;  %v959_v60 = vmul.f32 %v945_v54, %v922_v47 }
 0x17c   :  { %v1245_v49 = vadd.f32 %v1244_v46, %v1243_v45  ;;  %v1246_v50 = vpop.f32.mrb[14].mxu1  ;;  %v1219_v59 = vpop.f32.mrb[15].mxu0 }
 0x17d   :  { %v1247_v52 = vpop.f32.mrb[15].mxu1  ;;  %v948_v61 = vadd.f32 %v946_v57, %v945_v54  ;;  %v960_v62 = vmul.f32 %v946_v57, %v923_v53  ;;  %v728_v63 = vadd.f32 %v1217_v34, %v494_v29 }
 0x17f   :  { %v962_v1 = vadd.f32 %v960_v62, %v959_v60  ;;  %v924_v2 = vadd.f32 %v1245_v49, %v728_v63 }
 0x181   :  { %v947_v3 = vmul.f32 %v943_v0, %v924_v2 }
 0x183   :  { %v950_v4 = vsel %vm949_vm3, %v947_v3, 0.0  ;;  %v961_v5 = vmul.f32 %v947_v3, %v924_v2 }
 0x184   :  { %v951_v6 = vadd.f32 %v950_v4, %v948_v61 }
 0x185   :  { %v963_v7 = vsel %vm949_vm3, %v961_v5, 0.0 }
 0x186   :  { %v952_v8 = vrot.slane %v951_v6, 4  ;;  %v964_v9 = vadd.f32 %v963_v7, %v962_v1 }
 0x188   :  { %v953_v10 = vadd.f32 %v952_v8, %v951_v6  ;;  %v965_v11 = vrot.slane %v964_v9, 4 }
 0x18a   :  { %v954_v12 = vrot.slane %v953_v10, 2  ;;  %v966_v13 = vadd.f32 %v965_v11, %v964_v9 }
 0x18c   :  { %v955_v14 = vadd.f32 %v954_v12, %v953_v10  ;;  %v967_v15 = vrot.slane %v966_v13, 2 }
 0x18e   :  { %v956_v16 = vrot.slane %v955_v14, 1  ;;  %v968_v17 = vadd.f32 %v967_v15, %v966_v13 }
 0x190   :  { %v957_v18 = vadd.f32 %v956_v16, %v955_v14  ;;  %v969_v19 = vrot.slane %v968_v17, 1 }
 0x192   :  { %v958_v20 = vmul.f32 0.125, %v957_v18  ;;  %v970_v21 = vadd.f32 %v969_v19, %v968_v17 }
 0x194   :  { %v971_v22 = vmul.f32 0.125, %v970_v21  ;;  %v972_v23 = vmul.f32 %v958_v20, %v958_v20  ;;  %v975_v24 = vsub.f32 %v922_v47, %v958_v20  ;;  %v976_v25 = vsub.f32 %v923_v53, %v958_v20 }
 0x195   :  { %v977_v26 = vsub.f32 %v924_v2, %v958_v20 }
 0x196   :  { %v973_v27 = vsub.f32 %v971_v22, %v972_v23 }
 0x198   :  { %v974_v28 = vmax.f32 %v973_v27, 0.0 }
 0x19a   :  { %v978_v29 = vadd.f32 1e-05, %v974_v28 }
 0x19c   :  { %1338 = vrsqrt.f32 %v978_v29 }
 0x1a6   :  { %v1339_v30 = vpop.eup %1338 }
 0x1a7   :  { %v980_v32 = vmul.f32 %v1339_v30, %v975_v24  ;;  %v981_v33 = vmul.f32 %v1339_v30, %v976_v25  ;;  %v982_v35 = vmul.f32 %v1339_v30, %v977_v26 }
 0x1a9   :  { %v989_v37 = vmul.f32 %v1124_v31, %v980_v32  ;;  %v990_v38 = vmul.f32 %v1124_v31, %v981_v33  ;;  %v991_v40 = vmul.f32 %v1124_v31, %v982_v35 }
 0x1ab   :  { %v998_v41 = vadd.f32 %v1125_v36, %v989_v37  ;;  %v999_v42 = vadd.f32 %v1125_v36, %v990_v38  ;;  %v1000_v43 = vadd.f32 %v1125_v36, %v991_v40 }
 0x1ad   :  { %vm1003_vm4 = vcmp.ge.f32.partialorder %v1000_v43, 0.0  ;;  %v1006_v44 = vmul.f32 0.2, %v1000_v43  ;;  %vm1001_vm5 = vcmp.ge.f32.partialorder %v998_v41, 0.0  ;;  %vm1002_vm6 = vcmp.ge.f32.partialorder %v999_v42, 0.0 }
 0x1ae   :  { %v1004_v45 = vmul.f32 0.2, %v998_v41  ;;  %v1005_v46 = vmul.f32 0.2, %v999_v42 }
 0x1af   :  { %v1009_v47 = vsel %vm1003_vm4, %v1000_v43, %v1006_v44 }
 0x1b0   :  { %v1012_v48 = vmul.f32 %v1009_v47, %v943_v0  ;;  %v1007_v49 = vsel %vm1001_vm5, %v998_v41, %v1004_v45  ;;  %v1008_v50 = vsel %vm1002_vm6, %v999_v42, %v1005_v46 }
 0x1b1   :  { %v1010_v52 = vmul.f32 %v1007_v49, %v1604_v39  ;;  %v1011_v53 = vmul.f32 %v1008_v50, %v1606_v51 }
 0x1b2   :  { %v1131_v54 = vpack.c.bf16 %v1012_v48, %v1012_v48 }
 0x1b3   :  { %v1135_v55 = vpack.c.bf16 %v1011_v53, %v1010_v52 }
 0x1b4   :  { %1028 = vst [vmem:[#allocation11 + $0x8] sm:$0x1] %v1131_v54 }
 0x1b5   :  { %1136 = vst [vmem:[#allocation11] sm:$0xff] %v1135_v55  }
 0x1b6   :  { %1461 = shalt.err (!%p1458_p2)
}
 0x1b7   :  { %s1462_s12 = scalar_lea.hbm %s1632_s5, 192 }
 0x1b8   :  { %p1463_p3 = scmp.ne.s32.totalorder %s1632_s5, %s1462_s12  ;;  %p1466_p4 = scmp.lt.u32.totalorder %s1462_s12, %s1632_s5 }
 0x1ba   :  { %p1468_p5 = pnand %p1466_p4, %p1463_p3 }
 0x1bc   :  { %1471 = shalt.err (!%p1468_p5)
}
 0x1bd   :  { %1040 = dma.vmem_to_hbm [thread:$0]  %s1035_s3, 192, %s1632_s5, [#allocation4], %s1481_s28, %s1481_s28, %s1482_s29  }
 0x1be   :  { %1478 = dma.done.wait [#allocation4], 192  }
 0x1bf   :  { %1479 = vsyncadd [#allocation4], 4294967104 }
 0x1c0   :  { %1044 = vsyncpa [#allocation3], 1 }
 0x1c1   :  { %1045 = vsyncpa [#allocation6], 1 }
 0x1c2   :  { %1046 = vsyncpa [#allocation9], 1 }
 0x1c3   :  { %1047 = vsyncpa [#allocation4], 1 }

// kernel: discriminator_forward.7
= control target key start
LH: loop header
LB: loop body
LE: loop exit
PB: predicated region body
PF: predicated region fallthrough
CT: control target
= control target key end

     0   :  { %12 = vsyncpa [#allocation4], 0  ;;  %s13750_s0 = inlined_call_operand.hbm [shape: bf16[108,128], index: 0, kind: input, shape index: {}]   ;;  %s13751_s1 = inlined_call_operand.hbm [shape: bf16[2048,256], index: 1, kind: input, shape index: {}]   ;;  %s13752_s2 = inlined_call_operand.hbm [shape: f32[1,256], index: 2, kind: input, shape index: {}]   ;;  %s13753_s3 = inlined_call_operand.hbm [shape: f32[1,256], index: 3, kind: input, shape index: {}]   ;;  %s13754_s4 = inlined_call_operand.hbm [shape: f32[84,1], index: 4, kind: input, shape index: {}]   ;;  %s13755_s5 = inlined_call_operand.hbm [shape: bf16[4096,128], index: 5, kind: input, shape index: {}]   ;;  %s13756_s6 = inlined_call_operand.hbm [shape: f32[1,128], index: 6, kind: input, shape index: {}]   ;;  %s13757_s7 = inlined_call_operand.hbm [shape: f32[84,128], index: 7, kind: output, shape index: {}]  }
   0x1   :  { %13 = vsyncpa [#allocation7], 0 }
   0x2   :  { %14 = vsyncpa [#allocation10], 0 }
   0x3   :  { %15 = vsyncpa [#allocation13], 0 }
   0x4   :  { %16 = vsyncpa [#allocation5], 0  ;;  %s11569_s24 = smov [#allocation6]   ;;  %s11383_s28 = scalar_lea.hbm %s13751_s1, 32768 }
   0x5   :  { %s34_s25 = sshll.u32 %s11569_s24, 4  ;;  %p11384_p0 = scmp.ne.s32.totalorder %s13751_s1, %s11383_s28  ;;  %s35_s25 = int_to_ptr.vmem [resolvable:$true] %s34_s25 }
   0x6   :  { %p11387_p1 = scmp.lt.u32.totalorder %s11383_s28, %s13751_s1 }
   0x8   :  { %p11389_p2 = pnand %p11387_p1, %p11384_p0 }
   0xa   :  { %11392 = shalt.err (!%p11389_p2)
}
   0xb   :  { %s11393_s10 = scalar_lea.vmem %s35_s25, 32768  ;;  %p11398_p4 = scmp.lt.s32.totalorder %s35_s25, %s35_s25 }
   0xc   :  { %p11394_p3 = scmp.ne.s32.totalorder %s35_s25, %s11393_s10  ;;  %p11399_p5 = scmp.lt.s32.totalorder %s11393_s10, %s11393_s10 }
   0xe   :  { %p11400_p6 = por %p11399_p5, %p11398_p4 }
  0x10   :  { %p11401_p7 = pnand %p11400_p6, %p11394_p3 }
  0x12   :  { %11404 = shalt.err (!%p11401_p7)
}
  0x13   :  { %s11570_s11 = smov 128   ;;  %s11571_s12 = smov 8  }
  0x14   :  { %40 = dma.hbm_to_vmem [thread:$0]  %s13751_s1, 32768, %s35_s25, [#allocation7], %s11570_s11, %s11570_s11, %s11571_s12  }
  0x15   :  { %s11572_s15 = smov [#allocation9]   ;;  %s11405_s19 = scalar_lea.hbm %s13753_s3, 32 }
  0x16   :  { %s57_s16 = sshll.u32 %s11572_s15, 4  ;;  %p11406_p8 = scmp.ne.s32.totalorder %s13753_s3, %s11405_s19  ;;  %s58_s16 = int_to_ptr.vmem [resolvable:$true] %s57_s16 }
  0x17   :  { %p11409_p9 = scmp.lt.u32.totalorder %s11405_s19, %s13753_s3 }
  0x19   :  { %p11411_p10 = pnand %p11409_p9, %p11406_p8 }
  0x1b   :  { %11414 = shalt.err (!%p11411_p10)
}
  0x1c   :  { %s11415_s24 = scalar_lea.vmem %s58_s16, 32  ;;  %p11420_p12 = scmp.lt.s32.totalorder %s58_s16, %s58_s16 }
  0x1d   :  { %p11416_p11 = scmp.ne.s32.totalorder %s58_s16, %s11415_s24  ;;  %p11421_p13 = scmp.lt.s32.totalorder %s11415_s24, %s11415_s24 }
  0x1f   :  { %p11422_p0 = por %p11421_p13, %p11420_p12 }
  0x21   :  { %p11423_p1 = pnand %p11422_p0, %p11416_p11 }
  0x23   :  { %11426 = shalt.err (!%p11423_p1)
}
  0x24   :  { %60 = dma.hbm_to_vmem [thread:$0]  %s13753_s3, 32, %s58_s16, [#allocation10]  }
  0x25   :  { %s11573_s26 = smov [#allocation12]   ;;  %s11574_s28 = smov [#allocation3]  }
  0x26   :  { %s78_s27 = sshll.u32 %s11573_s26, 4  ;;  %s22_s29 = sshll.u32 %s11574_s28, 4  ;;  %s79_s27 = int_to_ptr.vmem [resolvable:$true] %s78_s27  ;;  %s11649_s29 = int_to_ptr.vmem [resolvable:$true] %s22_s29 }
  0x27   :  { %s11427_s9 = scalar_lea.hbm %s13755_s5, 32768 }
  0x28   :  { %p11428_p2 = scmp.ne.s32.totalorder %s13755_s5, %s11427_s9  ;;  %p11431_p3 = scmp.lt.u32.totalorder %s11427_s9, %s13755_s5 }
  0x2a   :  { %p11433_p4 = pnand %p11431_p3, %p11428_p2 }
  0x2c   :  { %11436 = shalt.err (!%p11433_p4)
}
  0x2d   :  { %s11437_s3 = scalar_lea.vmem %s79_s27, 32768  ;;  %p11442_p6 = scmp.lt.s32.totalorder %s79_s27, %s79_s27 }
  0x2e   :  { %p11438_p5 = scmp.ne.s32.totalorder %s79_s27, %s11437_s3  ;;  %p11443_p7 = scmp.lt.s32.totalorder %s11437_s3, %s11437_s3 }
  0x30   :  { %p11444_p8 = por %p11443_p7, %p11442_p6 }
  0x32   :  { %p11445_p9 = pnand %p11444_p8, %p11438_p5 }
  0x34   :  { %11448 = shalt.err (!%p11445_p9)
}
  0x35   :  { %s11575_s16 = smov 64   ;;  %s11576_s17 = smov 4  }
  0x36   :  { %84 = dma.hbm_to_vmem [thread:$0]  %s13755_s5, 32768, %s79_s27, [#allocation13], %s11575_s16, %s11575_s16, %s11576_s17  }
  0x37   :  { %s11449_s22 = scalar_lea.hbm %s13750_s0, 896 }
  0x38   :  { %p11450_p10 = scmp.ne.s32.totalorder %s13750_s0, %s11449_s22  ;;  %p11453_p11 = scmp.lt.u32.totalorder %s11449_s22, %s13750_s0 }
  0x3a   :  { %p11455_p12 = pnand %p11453_p11, %p11450_p10 }
  0x3c   :  { %11458 = shalt.err (!%p11455_p12)
}
  0x3d   :  { %s11459_s26 = scalar_lea.vmem %s11649_s29, 896  ;;  %p11464_p0 = scmp.lt.s32.totalorder %s11649_s29, %s11649_s29 }
  0x3e   :  { %p11460_p13 = scmp.ne.s32.totalorder %s11649_s29, %s11459_s26  ;;  %p11465_p1 = scmp.lt.s32.totalorder %s11459_s26, %s11459_s26 }
  0x40   :  { %p11466_p2 = por %p11465_p1, %p11464_p0 }
  0x42   :  { %p11467_p3 = pnand %p11466_p2, %p11460_p13 }
  0x44   :  { %11470 = shalt.err (!%p11467_p3)
}
  0x45   :  { %28 = dma.hbm_to_vmem [thread:$0]  %s13750_s0, 896, %s11649_s29, [#allocation4], %s11575_s16, %s11575_s16, %s11576_s17  }
  0x46   :  { %s11577_s28 = smov [#allocation8]   ;;  %s11578_s8 = smov [#allocation11]  }
  0x47   :  { %s47_s30 = sshll.u32 %s11577_s28, 4  ;;  %s66_s9 = sshll.u32 %s11578_s8, 4  ;;  %s48_s30 = int_to_ptr.vmem [resolvable:$true] %s47_s30  ;;  %s11680_s9 = int_to_ptr.vmem [resolvable:$true] %s66_s9 }
  0x48   :  { %s11471_s14 = scalar_lea.hbm %s13752_s2, 32 }
  0x49   :  { %p11472_p4 = scmp.ne.s32.totalorder %s13752_s2, %s11471_s14  ;;  %p11475_p5 = scmp.lt.u32.totalorder %s11471_s14, %s13752_s2 }
  0x4b   :  { %p11477_p6 = pnand %p11475_p5, %p11472_p4 }
  0x4d   :  { %11480 = shalt.err (!%p11477_p6)
}
  0x4e   :  { %s11481_s0 = scalar_lea.vmem %s48_s30, 32  ;;  %p11486_p8 = scmp.lt.s32.totalorder %s48_s30, %s48_s30 }
  0x4f   :  { %p11482_p7 = scmp.ne.s32.totalorder %s48_s30, %s11481_s0  ;;  %p11487_p9 = scmp.lt.s32.totalorder %s11481_s0, %s11481_s0 }
  0x51   :  { %p11488_p10 = por %p11487_p9, %p11486_p8 }
  0x53   :  { %p11489_p11 = pnand %p11488_p10, %p11482_p7 }
  0x55   :  { %11492 = shalt.err (!%p11489_p11)
}
  0x56   :  { %50 = dma.hbm_to_vmem [thread:$0]  %s13752_s2, 32, %s48_s30, [#allocation7]  }
  0x57   :  { %s11493_s21 = scalar_lea.hbm %s13754_s4, 1408 }
  0x58   :  { %p11494_p12 = scmp.ne.s32.totalorder %s13754_s4, %s11493_s21  ;;  %p11497_p13 = scmp.lt.u32.totalorder %s11493_s21, %s13754_s4 }
  0x5a   :  { %p11499_p0 = pnand %p11497_p13, %p11494_p12 }
  0x5c   :  { %11502 = shalt.err (!%p11499_p0)
}
  0x5d   :  { %s11503_s25 = scalar_lea.vmem %s11680_s9, 1408  ;;  %p11508_p2 = scmp.lt.s32.totalorder %s11680_s9, %s11680_s9 }
  0x5e   :  { %p11504_p1 = scmp.ne.s32.totalorder %s11680_s9, %s11503_s25  ;;  %p11509_p3 = scmp.lt.s32.totalorder %s11503_s25, %s11503_s25 }
  0x60   :  { %p11510_p4 = por %p11509_p3, %p11508_p2 }
  0x62   :  { %p11511_p5 = pnand %p11510_p4, %p11504_p1 }
  0x64   :  { %11514 = shalt.err (!%p11511_p5)
}
  0x65   :  { %72 = dma.hbm_to_vmem [thread:$0]  %s13754_s4, 1408, %s11680_s9, [#allocation10], %s11570_s11, %s11570_s11, %s11571_s12  }
  0x66   :  { %s11579_s5 = smov [#allocation14]   ;;  %s11515_s8 = scalar_lea.hbm %s13756_s6, 16 }
  0x67   :  { %s91_s27 = sshll.u32 %s11579_s5, 4  ;;  %p11516_p6 = scmp.ne.s32.totalorder %s13756_s6, %s11515_s8  ;;  %s92_s27 = int_to_ptr.vmem [resolvable:$true] %s91_s27 }
  0x68   :  { %p11519_p7 = scmp.lt.u32.totalorder %s11515_s8, %s13756_s6 }
  0x6a   :  { %p11521_p8 = pnand %p11519_p7, %p11516_p6 }
  0x6c   :  { %11524 = shalt.err (!%p11521_p8)
}
  0x6d   :  { %s11525_s3 = scalar_lea.vmem %s92_s27, 16  ;;  %s11529_s4 = scalar_lea.vmem %s92_s27, 32 }
  0x6e   :  { %p11526_p9 = scmp.ne.s32.totalorder %s92_s27, %s11525_s3  ;;  %p11530_p10 = scmp.lt.s32.totalorder %s92_s27, %s92_s27 }
  0x6f   :  { %p11531_p11 = scmp.lt.s32.totalorder %s11529_s4, %s11525_s3 }
  0x71   :  { %p11532_p12 = por %p11531_p11, %p11530_p10 }
  0x73   :  { %p11533_p13 = pnand %p11532_p12, %p11526_p9 }
  0x75   :  { %11536 = shalt.err (!%p11533_p13)
}
  0x76   :  { %94 = dma.hbm_to_vmem [thread:$0]  %s13756_s6, 16, %s92_s27, [#allocation13]  }
  0x77   :  { %11559 = dma.done.wait [#allocation4], 896  }
  0x78   :  { %11560 = vsyncadd [#allocation4], 4294966400 }
  0x79   :  { %11561 = dma.done.wait [#allocation7], 32800  }
  0x7a   :  { %11562 = vsyncadd [#allocation7], 4294934496 }
  0x7b   :  { %11563 = dma.done.wait [#allocation10], 1440  }
  0x7c   :  { %11564 = vsyncadd [#allocation10], 4294965856 }
  0x7d   :  { %11565 = dma.done.wait [#allocation13], 32784  }
  0x7e   :  { %11566 = vsyncadd [#allocation13], 4294934512  ;;  %v10598_v0 = vld [vmem:[#allocation6 + $0x104] ss:$8 sps:$4 sm:$0xff]   ;;  %v10600_v1 = vld [vmem:[#allocation6 + $0x100] ss:$8 sps:$4 sm:$0xff]  }
  0x7f   :  { %503 = vmatprep.subr.bf16.mxu0 %v10598_v0  ;;  %v10601_v2 = vld [vmem:[#allocation6 + $0x114] ss:$8 sps:$4 sm:$0xff]   ;;  %v10603_v3 = vld [vmem:[#allocation6 + $0x110] ss:$8 sps:$4 sm:$0xff]   ;;  %v10604_v4 = vld [vmem:[#allocation6 + $0x124] ss:$8 sps:$4 sm:$0xff]  }
  0x80   :  { %504 = vmatpush1.bf16.msra.mxu0 %v10600_v1  ;;  %v10606_v5 = vld [vmem:[#allocation6 + $0x120] ss:$8 sps:$4 sm:$0xff]   ;;  %v10607_v6 = vld [vmem:[#allocation6 + $0x134] ss:$8 sps:$4 sm:$0xff]   ;;  %v10609_v7 = vld [vmem:[#allocation6 + $0x130] ss:$8 sps:$4 sm:$0xff]  }
  0x81   :  { %505 = vmatprep.subr.bf16.mxu0 %v10601_v2  ;;  %v10610_v8 = vld [vmem:[#allocation6 + $0x144] ss:$8 sps:$4 sm:$0xff]   ;;  %v10612_v9 = vld [vmem:[#allocation6 + $0x140] ss:$8 sps:$4 sm:$0xff]   ;;  %v10613_v10 = vld [vmem:[#allocation6 + $0x154] ss:$8 sps:$4 sm:$0xff]  }
  0x82   :  { %v10615_v11 = vld [vmem:[#allocation6 + $0x150] ss:$8 sps:$4 sm:$0xff]   ;;  %v10616_v12 = vld [vmem:[#allocation6 + $0x164] ss:$8 sps:$4 sm:$0xff]   ;;  %v10618_v13 = vld [vmem:[#allocation6 + $0x160] ss:$8 sps:$4 sm:$0xff]  }
  0x83   :  { %v118_v14 = vld [vmem:[#allocation3 + $0x4] sm:$0xf]  ;;  %v11726_v15 = vld [vmem:[#allocation3 + $0x8] sm:$0xff]   ;;  %v11728_v16 = vld [vmem:[#allocation3 + $0x10] sm:$0xff]   ;;  %vm166_vm0 = vsmask.f32 7424 }
  0x84   :  { %506 = vmatpush1.bf16.msra.mxu0 %v10603_v3  ;;  %v252_v17 = vld [vmem:[#allocation3] sm:$0xe]  ;;  %v10619_v18 = vld [vmem:[#allocation6 + $0x174] ss:$8 sps:$4 sm:$0xff]   ;;  %v175_v20 = vshll.u32 %v11726_v15, 16  ;;  %v179_v21 = vshrl.u32 %v11726_v15, 16 }
  0x85   :  { %507 = vmatprep.subr.bf16.mxu0 %v10604_v4  ;;  %v11730_v19 = vcombine.low %v252_v17, %v118_v14  ;;  %v183_v22 = vshll.u32 %v11728_v16, 16  ;;  %v10621_v25 = vld [vmem:[#allocation6 + $0x170] ss:$8 sps:$4 sm:$0xff]   ;;  %v10622_v28 = vld [vmem:[#allocation6 + $0x184] ss:$8 sps:$4 sm:$0xff]   ;;  %vm308_vm1 = vcmask 1046528  }
  0x86   :  { %v11737_v26 = vrot.slane %v175_v20, 1  ;;  %v10624_v32 = vld [vmem:[#allocation6 + $0x180] ss:$8 sps:$4 sm:$0xff]   ;;  %v10625_v34 = vld [vmem:[#allocation6 + $0x194] ss:$8 sps:$4 sm:$0xff]   ;;  %v187_v48 = vshrl.u32 %v11728_v16, 16 }
  0x87   :  { %v261_v23 = vshrl.u32 %v11730_v19, 16  ;;  %v263_v24 = vshll.u32 %v11730_v19, 16  ;;  %v185_v27 = vrot.slane %v183_v22, 1  ;;  %v10627_v38 = vld [vmem:[#allocation6 + $0x190] ss:$8 sps:$4 sm:$0xff]   ;;  %v11747_v45 = vld [vmem:[#allocation3 + $0x18] sm:$0xff]  }
  0x88   :  { %508 = vmatpush1.bf16.msra.mxu0 %v10606_v5  ;;  %v181_v30 = vor.u32 %v179_v21, %v11737_v26  ;;  %v10628_v40 = vld [vmem:[#allocation6 + $0x1a4] ss:$8 sps:$4 sm:$0xff]   ;;  %v10630_v41 = vld [vmem:[#allocation6 + $0x1a0] ss:$8 sps:$4 sm:$0xff]   ;;  %v10631_v42 = vld [vmem:[#allocation6 + $0x1b4] ss:$8 sps:$4 sm:$0xff]  }
  0x89   :  { %509 = vmatprep.subr.bf16.mxu0 %v10607_v6  ;;  %v265_v29 = vrot.slane %v263_v24, 1  ;;  %v10633_v43 = vld [vmem:[#allocation6 + $0x1b0] ss:$8 sps:$4 sm:$0xff]   ;;  %v10634_v44 = vld [vmem:[#allocation6 + $0x1c4] ss:$8 sps:$4 sm:$0xff]   ;;  %v191_v49 = vshll.u32 %v11747_v45, 16  ;;  %v189_v54 = vor.u32 %v187_v48, %v185_v27 }
  0x8a   :  { %v11741_v33 = vsel %vm166_vm0, %v181_v30, %v185_v27  ;;  %v10636_v46 = vld [vmem:[#allocation6 + $0x1c0] ss:$8 sps:$4 sm:$0xff]   ;;  %v10637_v47 = vld [vmem:[#allocation6 + $0x1d4] ss:$8 sps:$4 sm:$0xff]   ;;  %v10639_v51 = vld [vmem:[#allocation6 + $0x1d0] ss:$8 sps:$4 sm:$0xff]  }
  0x8b   :  { %v266_v31 = vor.u32 %v265_v29, %v261_v23  ;;  %v313_v36 = vrot.slane %v11741_v33, 1  ;;  %v117_v50 = vld [vmem:[#allocation3] sm:$0xf]  ;;  %v10640_v53 = vld [vmem:[#allocation6 + $0x1e4] ss:$8 sps:$4 sm:$0xff]   ;;  %v193_v55 = vrot.slane %v191_v49, 1 }
  0x8c   :  { %510 = vmatpush1.bf16.msra.mxu0 %v10609_v7  ;;  %v11751_v52 = vcombine.low %v117_v50, %v118_v14  ;;  %v11753_v56 = vld [vmem:[#allocation3 + $0x20] sm:$0xff]   ;;  %v10643_v61 = vld [vmem:[#allocation6 + $0x1f4] ss:$8 sps:$4 sm:$0xff]   ;;  %v195_v63 = vshrl.u32 %v11747_v45, 16  ;;  %v10645_v2 = vld [vmem:[#allocation6 + $0x1f0] ss:$8 sps:$4 sm:$0xff]  }
  0x8d   :  { %511 = vmatprep.subr.bf16.mxu0 %v10610_v8  ;;  %v267_v35 = vsel %vm166_vm0, %v266_v31, %v11737_v26  ;;  %v10642_v59 = vld [vmem:[#allocation6 + $0x1e0] ss:$8 sps:$4 sm:$0xff]   ;;  %v11758_v62 = vsel %vm166_vm0, %v189_v54, %v193_v55  ;;  %v199_v0 = vshll.u32 %v11753_v56, 16  ;;  %v309_v3 = vrot.slane %v11730_v19, 1  ;;  %v10651_v6 = vld [vmem:[#allocation6 + $0x4] ss:$8 sps:$4 sm:$0xff]  }
  0x8e   :  { %v312_v37 = vrot.slane %v267_v35, 1  ;;  %v168_v57 = vshrl.u32 %v11751_v52, 16  ;;  %v170_v58 = vshll.u32 %v11751_v52, 16  ;;  %v310_v4 = vrot.slane %v11726_v15, 1  ;;  %v10652_v20 = vld [vmem:[#allocation6 + $0x10] ss:$8 sps:$4 sm:$0xff]  }
  0x8f   :  { %v317_v7 = vrot.slane %v11758_v62, 1  ;;  %v197_v8 = vor.u32 %v195_v63, %v193_v55  ;;  %v315_v21 = vrot.slane %v11728_v16, 1  ;;  %v10657_v22 = vld [vmem:[#allocation6 + $0x24] ss:$8 sps:$4 sm:$0xff]   ;;  %v10658_v31 = vld [vmem:[#allocation6 + $0x30] ss:$8 sps:$4 sm:$0xff]  }
  0x90   :  { %512 = vmatpush1.bf16.msra.mxu0 %v10612_v9  ;;  %v314_v39 = vsel %vm308_vm1, %v312_v37, %v313_v36  ;;  %v172_v60 = vrot.slane %v170_v58, 1  ;;  %v201_v9 = vrot.slane %v199_v0, 1  ;;  %v10661_v37 = vld [vmem:[#allocation6 + $0x40] ss:$8 sps:$4 sm:$0xff]   ;;  %v10673_v50 = vld [vmem:[#allocation6 + $0x74] ss:$8 sps:$4 sm:$0xff]  }
  0x91   :  { %513 = vmatprep.subr.bf16.mxu0 %v10613_v10  ;;  %535 = vmatprep.mubr.bf16.mxu0 %v314_v39  ;;  %v10681_v10 = vld [vmem:[#allocation3 + $0x28] ss:$0 sps:$4 sm:$0xff]   ;;  %v318_v14 = vsel %vm308_vm1, %v313_v36, %v317_v7  ;;  %v316_v27 = vsel %vm308_vm1, %v310_v4, %v315_v21  ;;  %v10666_v39 = vld [vmem:[#allocation6 + $0x54] ss:$8 sps:$4 sm:$0xff]   ;;  %v10677_v54 = vld [vmem:[#allocation6 + $0x84] ss:$8 sps:$4 sm:$0xff]  }
  0x92   :  { %v173_v1 = vor.u32 %v172_v60, %v168_v57  ;;  %v11772_v17 = vsel %vm166_vm0, %v197_v8, %v201_v9  ;;  %v269_v19 = vshll.u32 %v10681_v10, 16  ;;  %v273_v36 = vshrl.u32 %v10681_v10, 16  ;;  %v11788_v49 = vld [vmem:[#allocation3 + $0x28] ss:$0 sps:$4 sm:$0x77]   ;;  %s11581_s6 = smov [#allocation15]  }
  0x93   :  { %v321_v23 = vrot.slane %v11772_v17, 1  ;;  %v327_v55 = vrot.slane %v11788_v49, 1  ;;  %v10675_v57 = vld [vmem:[#allocation6 + $0x80] ss:$8 sps:$4 sm:$0xff]   ;;  %v10680_v58 = vld [vmem:[#allocation6 + $0x94] ss:$8 sps:$4 sm:$0xff]  }
  0x94   :  { %514 = vmatpush1.bf16.msra.mxu0 %v10615_v11  ;;  %v11766_v5 = vsel %vm166_vm0, %v173_v1, %v11737_v26  ;;  %v10649_v11 = vld [vmem:[#allocation6] ss:$8 sps:$4 sm:$0xff]   ;;  %v10678_v60 = vld [vmem:[#allocation6 + $0x90] ss:$8 sps:$4 sm:$0xff]   ;;  %v10687_v0 = vld [vmem:[#allocation6 + $0xb4] ss:$8 sps:$4 sm:$0xff]  }
  0x95   :  { %515 = vmatprep.subr.bf16.mxu0 %v10616_v12  ;;  %v311_v12 = vsel %vm308_vm1, %v309_v3, %v310_v4  ;;  %v10655_v26 = vld [vmem:[#allocation6 + $0x20] ss:$8 sps:$4 sm:$0xff]   ;;  %v322_v29 = vsel %vm308_vm1, %v317_v7, %v321_v23  ;;  %v10685_v1 = vld [vmem:[#allocation6 + $0xb0] ss:$8 sps:$4 sm:$0xff]   ;;  %v11794_v4 = vld [vmem:[#allocation3 + $0xc] sm:$0xf] }
  0x96   :  { %v10682_v63 = vld [vmem:[#allocation6 + $0xa0] ss:$8 sps:$4 sm:$0xff]   ;;  %v11796_v7 = vld [vmem:[#allocation3 + $0x10] sm:$0xf]  ;;  %v11798_v8 = vld [vmem:[#allocation3 + $0x8] sm:$0xf] }
  0x97   :  { %v10688_v3 = vld [vmem:[#allocation6 + $0xc0] ss:$8 sps:$4 sm:$0xff]   ;;  %vm893_vm2 = vsmask.f32 3328  ;;  %vm979_vm3 = vsmask.f32 4352 }
  0x98   :  { %516 = vmatpush1.bf16.msra.mxu0 %v10618_v13  ;;  %v10654_v13 = vld [vmem:[#allocation6 + $0x14] ss:$8 sps:$4 sm:$0xff]   ;;  %v11802_v10 = vld [vmem:[#allocation3 + $0x18] sm:$0xf]  ;;  %vm1898_vm4 = vcmask 1044480   ;;  %vm3632_vm6 = vcmask 1043456  }
  0x99   :  { %517 = vmatprep.subr.bf16.mxu0 %v10619_v18  ;;  %v203_v18 = vshrl.u32 %v11753_v56, 16  ;;  %vm2705_vm5 = vsmask.f32 5376  ;;  %s8864_s19 = sshll.u32 %s11581_s6, 4  ;;  %s8865_s19 = int_to_ptr.vmem [resolvable:$true] %s8864_s19 }
  0x9a   :  { %s11537_s0 = scalar_lea.vmem %s8865_s19, 1408  ;;  %p11542_p1 = scmp.lt.s32.totalorder %s8865_s19, %s8865_s19 }
  0x9b   :  { %v11777_v24 = vor.u32 %v203_v18, %v201_v9  ;;  %v11800_v9 = vld [vmem:[#allocation3 + $0x14] sm:$0xf]  ;;  %v11809_v18 = vld [vmem:[#allocation3 + $0x4] sm:$0xf]  ;;  %p11538_p0 = scmp.ne.s32.totalorder %s8865_s19, %s11537_s0  ;;  %p11543_p2 = scmp.lt.s32.totalorder %s11537_s0, %s11537_s0 }
  0x9c   :  { %518 = vmatpush1.bf16.msra.mxu0 %v10621_v25  ;;  %v271_v25 = vrot.slane %v269_v19, 1  ;;  %v11813_v19 = vcombine.low %v11800_v9, %v11802_v10 }
  0x9d   :  { %519 = vmatprep.subr.bf16.mxu0 %v10622_v28  ;;  %v10660_v28 = vld [vmem:[#allocation6 + $0x34] ss:$8 sps:$4 sm:$0xff]   ;;  %p11544_p3 = por %p11543_p2, %p11542_p1 }
  0x9e   :  { %v272_v30 = vsel %vm166_vm0, %v11777_v24, %v271_v25 }
  0x9f   :  { %v325_v35 = vrot.slane %v272_v30, 1  ;;  %p11545_p4 = pnand %p11544_p3, %p11538_p0 }
  0xa0   :  { %520 = vmatpush1.bf16.msra.mxu0 %v10624_v32  ;;  %v319_v32 = vrot.slane %v11747_v45, 1 }
  0xa1   :  { %521 = vmatprep.subr.bf16.mxu0 %v10625_v34  ;;  %v10663_v34 = vld [vmem:[#allocation6 + $0x44] ss:$8 sps:$4 sm:$0xff]  }
  0xa4   :  { %522 = vmatpush1.bf16.msra.mxu0 %v10627_v38  ;;  %v320_v38 = vsel %vm308_vm1, %v315_v21, %v319_v32 }
  0xa5   :  { %523 = vmatprep.subr.bf16.mxu0 %v10628_v40  ;;  %v326_v40 = vsel %vm308_vm1, %v321_v23, %v325_v35 }
  0xa8   :  { %524 = vmatpush1.bf16.msra.mxu0 %v10630_v41  ;;  %v275_v41 = vor.u32 %v273_v36, %v271_v25  ;;  %v10695_v25 = vld [vmem:[#allocation6 + $0xe0] ss:$8 sps:$4 sm:$0xff]   ;;  %v10698_v36 = vld [vmem:[#allocation6 + $0xf0] ss:$8 sps:$4 sm:$0xff]  }
  0xa9   :  { %525 = vmatprep.subr.bf16.mxu0 %v10631_v42  ;;  %v10664_v42 = vld [vmem:[#allocation6 + $0x50] ss:$8 sps:$4 sm:$0xff]  }
  0xac   :  { %526 = vmatpush1.bf16.msra.mxu0 %v10633_v43  ;;  %v323_v43 = vrot.slane %v11753_v56, 1 }
  0xad   :  { %527 = vmatprep.subr.bf16.mxu0 %v10634_v44  ;;  %v10670_v44 = vld [vmem:[#allocation6 + $0x64] ss:$8 sps:$4 sm:$0xff]  }
  0xae   :  { %v324_v48 = vsel %vm308_vm1, %v319_v32, %v323_v43 }
  0xb0   :  { %528 = vmatpush1.bf16.msra.mxu0 %v10636_v46  ;;  %v329_v46 = vrot.slane %v275_v41, 1 }
  0xb1   :  { %529 = vmatprep.subr.bf16.mxu0 %v10637_v47  ;;  %v10668_v47 = vld [vmem:[#allocation6 + $0x60] ss:$8 sps:$4 sm:$0xff]  }
  0xb4   :  { %530 = vmatpush1.bf16.msra.mxu0 %v10639_v51  ;;  %v330_v51 = vsel %vm308_vm1, %v325_v35, %v329_v46 }
  0xb5   :  { %531 = vmatprep.subr.bf16.mxu0 %v10640_v53  ;;  %v10671_v53 = vld [vmem:[#allocation6 + $0x70] ss:$8 sps:$4 sm:$0xff]  }
  0xb8   :  { %532 = vmatpush1.bf16.msra.mxu0 %v10642_v59  ;;  %v328_v59 = vsel %vm308_vm1, %v323_v43, %v327_v55 }
  0xb9   :  { %533 = vmatprep.subr.bf16.mxu0 %v10643_v61  ;;  %v10684_v61 = vld [vmem:[#allocation6 + $0xa4] ss:$8 sps:$4 sm:$0xff]  }
  0xbc   :  { %534 = vmatpush1.bf16.msra.mxu0 %v10645_v2  ;;  %v10690_v2 = vld [vmem:[#allocation6 + $0xc4] ss:$8 sps:$4 sm:$0xff]  }
  0xbd   :  { %754 = vmatprep.subr.bf16.mxu0 %v10651_v6  ;;  %v10694_v6 = vld [vmem:[#allocation6 + $0xd4] ss:$8 sps:$4 sm:$0xff]  }
  0xbf   :  { %536 = vmatmul.mubr.bf16.vlgmr.msra.gmra.mrb[0].mxu0 %v311_v12  ;;  %v1372_v12 = vld [vmem:[#allocation3 + $0x4] sm:$0xe] }
  0xc0   :  { %755 = vmatpush1.bf16.msra.mxu0 %v10649_v11  ;;  %545 = vmatprep.mubr.bf16.mxu0 %v318_v14  ;;  %v10692_v11 = vld [vmem:[#allocation6 + $0xd0] ss:$8 sps:$4 sm:$0xff]   ;;  %v10697_v14 = vld [vmem:[#allocation6 + $0xe4] ss:$8 sps:$4 sm:$0xff]  }
  0xc1   :  { %756 = vmatprep.subr.bf16.mxu0 %v10654_v13  ;;  %v8997_v13 = vcombine.low %v1372_v12, %v11798_v8 }
  0xc4   :  { %757 = vmatpush1.bf16.msra.mxu0 %v10652_v20  ;;  %v1382_v20 = vshll.u32 %v8997_v13, 16 }
  0xc5   :  { %758 = vmatprep.subr.bf16.mxu0 %v10657_v22  ;;  %v1380_v22 = vshrl.u32 %v8997_v13, 16  ;;  %v11848_v13 = vld [vmem:[#allocation3 + $0x24] sm:$0xf] }
  0xc6   :  { %v1384_v23 = vrot.slane %v1382_v20, 1 }
  0xc7   :  { %546 = vmatmul.mubr.bf16.gmra.mrb[4].mxu0 %v316_v27  ;;  %v8958_v27 = vcombine.low %v11809_v18, %v11798_v8 }
  0xc8   :  { %759 = vmatpush1.bf16.msra.mxu0 %v10655_v26  ;;  %555 = vmatprep.mubr.bf16.mxu0 %v322_v29  ;;  %v10700_v26 = vld [vmem:[#allocation6 + $0xf4] ss:$8 sps:$4 sm:$0xff]   ;;  %v915_v29 = vshll.u32 %v11813_v19, 16  ;;  %v1385_v30 = vor.u32 %v1384_v23, %v1380_v22 }
  0xc9   :  { %760 = vmatprep.subr.bf16.mxu0 %v10660_v28 }
  0xca   :  { %v1389_v35 = vrot.slane %v915_v29, 1 }
  0xcc   :  { %761 = vmatpush1.bf16.msra.mxu0 %v10658_v31 }
  0xcd   :  { %762 = vmatprep.subr.bf16.mxu0 %v10663_v34 }
  0xcf   :  { %556 = vmatmul.mubr.bf16.gmra.mrb[8].mxu0 %v320_v38 }
  0xd0   :  { %763 = vmatpush1.bf16.msra.mxu0 %v10661_v37  ;;  %565 = vmatprep.mubr.bf16.mxu0 %v326_v40  ;;  %v10704_v37 = vld [vmem:[#allocation6 + $0x204] ss:$8 sps:$4 sm:$0xff]  }
  0xd1   :  { %764 = vmatprep.subr.bf16.mxu0 %v10666_v39  ;;  %v898_v39 = vshll.u32 %v8958_v27, 16 }
  0xd4   :  { %765 = vmatpush1.bf16.msra.mxu0 %v10664_v42 }
  0xd5   :  { %766 = vmatprep.subr.bf16.mxu0 %v10670_v44  ;;  %v895_v44 = vshrl.u32 %v8958_v27, 16 }
  0xd7   :  { %566 = vmatmul.mubr.bf16.gmra.mrb[12].mxu0 %v324_v48  ;;  %v10707_v48 = vld [vmem:[#allocation6 + $0x214] ss:$8 sps:$4 sm:$0xff]  }
  0xd8   :  { %767 = vmatpush1.bf16.msra.mxu0 %v10668_v47  ;;  %575 = vmatprep.mubr.bf16.mxu0 %v330_v51  ;;  %v10702_v47 = vld [vmem:[#allocation6 + $0x200] ss:$8 sps:$4 sm:$0xff]  }
  0xd9   :  { %768 = vmatprep.subr.bf16.mxu0 %v10673_v50 }
  0xdc   :  { %769 = vmatpush1.bf16.msra.mxu0 %v10671_v53 }
  0xdd   :  { %770 = vmatprep.subr.bf16.mxu0 %v10677_v54 }
  0xdf   :  { %576 = vmatmul.mubr.bf16.gmra.mrb[16].mxu0 %v328_v59  ;;  %v10708_v59 = vld [vmem:[#allocation6 + $0x220] ss:$8 sps:$4 sm:$0xff]  }
  0xe0   :  { %771 = vmatpush1.bf16.msra.mxu0 %v10675_v57  ;;  %585 = vmatprep.mubr.bf16.mxu0 %v329_v46  ;;  %v1438_v46 = vrot.slane %v898_v39, 1  ;;  %v10705_v57 = vld [vmem:[#allocation6 + $0x210] ss:$8 sps:$4 sm:$0xff]  }
  0xe1   :  { %772 = vmatprep.subr.bf16.mxu0 %v10680_v58  ;;  %v10710_v58 = vld [vmem:[#allocation6 + $0x224] ss:$8 sps:$4 sm:$0xff]  }
  0xe2   :  { %v1439_v53 = vor.u32 %v1438_v46, %v895_v44 }
  0xe4   :  { %773 = vmatpush1.bf16.msra.mxu0 %v10678_v60  ;;  %v10713_v60 = vld [vmem:[#allocation6 + $0x234] ss:$8 sps:$4 sm:$0xff]  }
  0xe5   :  { %774 = vmatprep.subr.bf16.mxu0 %v10684_v61  ;;  %v11837_v61 = vld [vmem:[#allocation3 + $0x1c] sm:$0xf] }
  0xe7   :  { %586 = vmatmul.mubr.bf16.gmra.mrb[20].mxu0 %v327_v55 }
  0xe8   :  { %775 = vmatpush1.bf16.msra.mxu0 %v10682_v63  ;;  %786 = vmatprep.mubr.bf16.mxu0 %v11766_v5  ;;  %v11806_v5 = vcombine.low %v11794_v4, %v11796_v7  ;;  %v11839_v63 = vld [vmem:[#allocation3 + $0x20] sm:$0xf] }
  0xe9   :  { %776 = vmatprep.subr.bf16.mxu0 %v10687_v0  ;;  %v10716_v0 = vld [vmem:[#allocation6 + $0x244] ss:$8 sps:$4 sm:$0xff]  }
  0xea   :  { %v906_v21 = vshll.u32 %v11806_v5, 16  ;;  %v903_v28 = vshrl.u32 %v11806_v5, 16 }
  0xec   :  { %777 = vmatpush1.bf16.msra.mxu0 %v10685_v1  ;;  %v1386_v31 = vrot.slane %v906_v21, 1  ;;  %v10714_v1 = vld [vmem:[#allocation6 + $0x240] ss:$8 sps:$4 sm:$0xff]   ;;  %v905_v12 = vrot.slane %v903_v28, 4 }
  0xed   :  { %778 = vmatprep.subr.bf16.mxu0 %v10690_v2  ;;  %v10719_v2 = vld [vmem:[#allocation6 + $0x254] ss:$8 sps:$4 sm:$0xff]  }
  0xee   :  { %v1387_v32 = vsel %vm166_vm0, %v1385_v30, %v1386_v31  ;;  %v1388_v34 = vor.u32 %v1386_v31, %v903_v28  ;;  %v11834_v55 = vsel %vm166_vm0, %v1439_v53, %v1386_v31  ;;  %v10720_v30 = vld [vmem:[#allocation6 + $0x260] ss:$8 sps:$4 sm:$0xff]  }
  0xef   :  { %v1444_v38 = vshll.u32 %v1387_v32, 16  ;;  %v1442_v41 = vshrl.u32 %v1387_v32, 16 }
  0xf0   :  { %779 = vmatpush1.bf16.msra.mxu0 %v10688_v3  ;;  %v11826_v40 = vsel %vm166_vm0, %v1388_v34, %v1389_v35  ;;  %v207_v3 = vshll.u32 %v11788_v49, 16 }
  0xf1   :  { %780 = vmatprep.subr.bf16.mxu0 %v10694_v6  ;;  %v1446_v42 = vrot.slane %v1444_v38, 1  ;;  %v1449_v43 = vshll.u32 %v11826_v40, 16  ;;  %v897_v6 = vrot.slane %v895_v44, 4  ;;  %v1453_v31 = vshrl.u32 %v11826_v40, 16 }
  0xf2   :  { %v209_v27 = vrot.slane %v207_v3, 1  ;;  %v211_v44 = vshrl.u32 %v11788_v49, 16 }
  0xf3   :  { %v1447_v50 = vor.u32 %v1446_v42, %v1442_v41  ;;  %v1451_v51 = vrot.slane %v1449_v43, 1  ;;  %v10723_v41 = vld [vmem:[#allocation6 + $0x270] ss:$8 sps:$4 sm:$0xff]   ;;  %v10728_v43 = vld [vmem:[#allocation6 + $0x284] ss:$8 sps:$4 sm:$0xff]  }
  0xf4   :  { %781 = vmatpush1.bf16.msra.mxu0 %v10692_v11  ;;  %v900_v11 = vrot.slane %v898_v39, 5  ;;  %v210_v38 = vsel %vm166_vm0, %v11777_v24, %v209_v27 }
  0xf5   :  { %782 = vmatprep.subr.bf16.mxu0 %v10697_v14  ;;  %v11830_v54 = vsel %vm166_vm0, %v1447_v50, %v1451_v51  ;;  %v912_v14 = vshrl.u32 %v11813_v19, 16  ;;  %v10743_v19 = vld [vmem:[#allocation6 + $0x2d4] ss:$8 sps:$4 sm:$0xff]  }
  0xf7   :  { %v1391_v22 = vor.u32 %v1389_v35, %v912_v14 }
  0xf8   :  { %783 = vmatpush1.bf16.msra.mxu0 %v10695_v25  ;;  %v10717_v25 = vld [vmem:[#allocation6 + $0x250] ss:$8 sps:$4 sm:$0xff]  }
  0xf9   :  { %784 = vmatprep.subr.bf16.mxu0 %v10700_v26  ;;  %v10722_v26 = vld [vmem:[#allocation6 + $0x264] ss:$8 sps:$4 sm:$0xff]  }
  0xfc   :  { %785 = vmatpush1.bf16.msra.mxu0 %v10698_v36  ;;  %v1455_v36 = vor.u32 %v1453_v31, %v1451_v51 }
  0xfd   :  { %1258 = vmatprep.subr.bf16.mxu0 %v10704_v37 }
  0xff   :  { %787 = vmatmul.mubr.bf16.vlgmr.msra.gmra.mrb[0].mxu0 %v11751_v52  ;;  %v10711_v52 = vld [vmem:[#allocation6 + $0x230] ss:$8 sps:$4 sm:$0xff]  }
 0x100   :  { %1259 = vmatpush1.bf16.msra.mxu0 %v10702_v47  ;;  %796 = vmatprep.mubr.bf16.mxu0 %v11741_v33  ;;  %v11845_v33 = vcombine.low %v11837_v61, %v11839_v63 }
 0x101   :  { %1260 = vmatprep.subr.bf16.mxu0 %v10707_v48 }
 0x102   :  { %v924_v20 = vshll.u32 %v11845_v33, 16  ;;  %v921_v34 = vshrl.u32 %v11845_v33, 16 }
 0x104   :  { %1261 = vmatpush1.bf16.msra.mxu0 %v10705_v57  ;;  %v1392_v23 = vrot.slane %v924_v20, 1  ;;  %v10726_v57 = vld [vmem:[#allocation6 + $0x280] ss:$8 sps:$4 sm:$0xff]  }
 0x105   :  { %1262 = vmatprep.subr.bf16.mxu0 %v10710_v58  ;;  %v213_v58 = vor.u32 %v211_v44, %v209_v27  ;;  %v10737_v27 = vld [vmem:[#allocation6 + $0x2b4] ss:$8 sps:$4 sm:$0xff]   ;;  %v10741_v44 = vld [vmem:[#allocation6 + $0x2d0] ss:$8 sps:$4 sm:$0xff]  }
 0x106   :  { %v11869_v28 = vsel %vm166_vm0, %v1391_v22, %v1392_v23  ;;  %v1394_v46 = vor.u32 %v1392_v23, %v921_v34 }
 0x107   :  { %797 = vmatmul.mubr.bf16.gmra.mrb[4].mxu0 %v11726_v15  ;;  %v11850_v15 = vld [vmem:[#allocation3 + $0x28] sm:$0xf]  ;;  %v1457_v32 = vshll.u32 %v11869_v28, 16 }
 0x108   :  { %1263 = vmatpush1.bf16.msra.mxu0 %v10708_v59  ;;  %806 = vmatprep.mubr.bf16.mxu0 %v11758_v62  ;;  %v908_v62 = vrot.slane %v906_v21, 5  ;;  %v11864_v5 = vcombine.low %v11848_v13, %v11850_v15  ;;  %v901_v21 = vor.u32 %v900_v11, %v897_v6  ;;  %v10731_v59 = vld [vmem:[#allocation6 + $0x294] ss:$8 sps:$4 sm:$0xff]   ;;  %v10729_v11 = vld [vmem:[#allocation6 + $0x290] ss:$8 sps:$4 sm:$0xff]  }
 0x109   :  { %1264 = vmatprep.subr.bf16.mxu0 %v10713_v60  ;;  %v1459_v37 = vrot.slane %v1457_v32, 1  ;;  %v10735_v32 = vld [vmem:[#allocation6 + $0x2b0] ss:$8 sps:$4 sm:$0xff]  }
 0x10a   :  { %v933_v35 = vshll.u32 %v11864_v5, 16  ;;  %v998_v24 = vshrl.u32 %v901_v21, 16  ;;  %v1001_v48 = vshll.u32 %v901_v21, 16 }
 0x10b   :  { %v11880_v42 = vsel %vm166_vm0, %v1455_v36, %v1459_v37  ;;  %v10740_v36 = vld [vmem:[#allocation6 + $0x2c4] ss:$8 sps:$4 sm:$0xff]  }
 0x10c   :  { %1265 = vmatpush1.bf16.msra.mxu0 %v10711_v52  ;;  %v11888_v47 = vrot.slane %v933_v35, 1  ;;  %v1000_v60 = vrot.slane %v998_v24, 3  ;;  %v1003_v52 = vrot.slane %v1001_v48, 4 }
 0x10d   :  { %1266 = vmatprep.subr.bf16.mxu0 %v10716_v0 }
 0x10e   :  { %v11892_v53 = vsel %vm166_vm0, %v1394_v46, %v11888_v47  ;;  %v1004_v22 = vor.u32 %v1003_v52, %v1000_v60  ;;  %v10746_v46 = vld [vmem:[#allocation6 + $0x2e4] ss:$8 sps:$4 sm:$0xff]  }
 0x10f   :  { %807 = vmatmul.mubr.bf16.gmra.mrb[8].mxu0 %v11728_v16  ;;  %v11866_v16 = vor.u32 %v908_v62, %v905_v12  ;;  %v1465_v49 = vshll.u32 %v11892_v53, 16  ;;  %v10734_v12 = vld [vmem:[#allocation6 + $0x2a4] ss:$8 sps:$4 sm:$0xff]   ;;  %v10747_v62 = vld [vmem:[#allocation3 + $0x28] ss:$0 sps:$4 sm:$0x33]  }
 0x110   :  { %1267 = vmatpush1.bf16.msra.mxu0 %v10714_v1  ;;  %816 = vmatprep.mubr.bf16.mxu0 %v11772_v17  ;;  %v10725_v17 = vld [vmem:[#allocation6 + $0x274] ss:$8 sps:$4 sm:$0xff]  }
 0x111   :  { %1268 = vmatprep.subr.bf16.mxu0 %v10719_v2  ;;  %v910_v39 = vsel %vm893_vm2, %v901_v21, %v11866_v16  ;;  %v11896_v1 = vrot.slane %v1465_v49, 1  ;;  %v8953_v21 = vcombine.low %v11798_v8, %v11794_v4  ;;  %v10738_v8 = vld [vmem:[#allocation6 + $0x2c0] ss:$8 sps:$4 sm:$0xff]  }
 0x112   :  { %v1006_v50 = vshrl.u32 %v910_v39, 16  ;;  %v1009_v51 = vshll.u32 %v910_v39, 16  ;;  %v923_v39 = vrot.slane %v921_v34, 4  ;;  %v8954_v34 = vcombine.low %v11796_v7, %v11800_v9 }
 0x113   :  { %v935_v7 = vrot.slane %v933_v35, 5 }
 0x114   :  { %1269 = vmatpush1.bf16.msra.mxu0 %v10717_v25  ;;  %v1008_v2 = vrot.slane %v1006_v50, 3  ;;  %v1011_v3 = vrot.slane %v1009_v51, 4  ;;  %v845_v25 = vld [vmem:[#allocation3] sm:$0x8]  ;;  %v11921_v50 = vld [vmem:[#allocation3 + $0x2c] sm:$0x3] }
 0x115   :  { %1270 = vmatprep.subr.bf16.mxu0 %v10722_v26  ;;  %v10732_v26 = vld [vmem:[#allocation6 + $0x2a0] ss:$8 sps:$4 sm:$0xff]   ;;  %v1015_v9 = vshrl.u32 %v8954_v34, 16 }
 0x116   :  { %v11903_v23 = vor.u32 %v1011_v3, %v1008_v2  ;;  %v1018_v2 = vshll.u32 %v8954_v34, 16  ;;  %v10748_v3 = vld [vmem:[#allocation6 + $0x2f0] ss:$8 sps:$4 sm:$0xff]  }
 0x117   :  { %817 = vmatmul.mubr.bf16.gmra.mrb[12].mxu0 %v11747_v45  ;;  %v1461_v45 = vshrl.u32 %v11869_v28, 16 }
 0x118   :  { %1271 = vmatpush1.bf16.msra.mxu0 %v10720_v30  ;;  %826 = vmatprep.mubr.bf16.mxu0 %v210_v38  ;;  %v914_v30 = vrot.slane %v912_v14, 4  ;;  %v1013_v31 = vsel %vm979_vm3, %v1004_v22, %v11903_v23  ;;  %v992_v14 = vshll.u32 %v8953_v21, 16  ;;  %v10755_v22 = vld [vmem:[#allocation6 + $0x304] ss:$8 sps:$4 sm:$0xff]  }
 0x119   :  { %1272 = vmatprep.subr.bf16.mxu0 %v10725_v17  ;;  %v1463_v0 = vor.u32 %v1461_v45, %v1459_v37  ;;  %v8952_v17 = vcombine.low %v845_v25, %v11809_v18  ;;  %v989_v37 = vshrl.u32 %v8953_v21, 16  ;;  %v930_v18 = vshrl.u32 %v11864_v5, 16 }
 0x11a   :  { %v994_v49 = vrot.slane %v992_v14, 4 }
 0x11b   :  { %v11900_v6 = vsel %vm166_vm0, %v1463_v0, %v11896_v1  ;;  %v981_v38 = vshrl.u32 %v8952_v17, 16  ;;  %v991_v45 = vrot.slane %v989_v37, 3 }
 0x11c   :  { %1273 = vmatpush1.bf16.msra.mxu0 %v10723_v41  ;;  %v926_v41 = vrot.slane %v924_v20, 5 }
 0x11d   :  { %1274 = vmatprep.subr.bf16.mxu0 %v10728_v43  ;;  %v983_v33 = vrot.slane %v981_v38, 3 }
 0x11e   :  { %v927_v51 = vor.u32 %v926_v41, %v923_v39  ;;  %v10763_v39 = vld [vmem:[#allocation6 + $0x324] ss:$8 sps:$4 sm:$0xff]  }
 0x11f   :  { %827 = vmatmul.mubr.bf16.gmra.mrb[16].mxu0 %v11753_v56  ;;  %v917_v56 = vrot.slane %v915_v29, 5  ;;  %v984_v29 = vshll.u32 %v8952_v17, 16  ;;  %v10753_v17 = vld [vmem:[#allocation6 + $0x300] ss:$8 sps:$4 sm:$0xff]  }
 0x120   :  { %1275 = vmatpush1.bf16.msra.mxu0 %v10726_v57  ;;  %836 = vmatprep.mubr.bf16.mxu0 %v213_v58  ;;  %v10744_v57 = vld [vmem:[#allocation6 + $0x2e0] ss:$8 sps:$4 sm:$0xff]   ;;  %v10750_v58 = vld [vmem:[#allocation6 + $0x2f4] ss:$8 sps:$4 sm:$0xff]  }
 0x121   :  { %1276 = vmatprep.subr.bf16.mxu0 %v10731_v59  ;;  %v918_v4 = vor.u32 %v917_v56, %v914_v30  ;;  %v986_v20 = vrot.slane %v984_v29, 4  ;;  %v8963_v59 = vcombine.low %v11921_v50, %v11921_v50  ;;  %v10758_v29 = vld [vmem:[#allocation6 + $0x310] ss:$8 sps:$4 sm:$0xff]  }
 0x123   :  { %v919_v43 = vsel %vm893_vm2, %v11866_v16, %v918_v4  ;;  %v932_v16 = vrot.slane %v930_v18, 4  ;;  %v928_v0 = vsel %vm893_vm2, %v918_v4, %v927_v51  ;;  %v942_v21 = vshll.u32 %v8963_v59, 16 }
 0x124   :  { %1277 = vmatpush1.bf16.msra.mxu0 %v10729_v11  ;;  %v1024_v24 = vshrl.u32 %v919_v43, 16  ;;  %v1027_v48 = vshll.u32 %v919_v43, 16  ;;  %v987_v11 = vor.u32 %v986_v20, %v983_v33  ;;  %v1042_v25 = vshrl.u32 %v928_v0, 16  ;;  %v10761_v33 = vld [vmem:[#allocation6 + $0x320] ss:$8 sps:$4 sm:$0xff]  }
 0x125   :  { %1278 = vmatprep.subr.bf16.mxu0 %v10734_v12  ;;  %v995_v12 = vor.u32 %v994_v49, %v991_v45  ;;  %v936_v56 = vor.u32 %v935_v7, %v932_v16  ;;  %v8956_v49 = vcombine.low %v11839_v63, %v11848_v13  ;;  %v10764_v16 = vld [vmem:[#allocation6 + $0x330] ss:$8 sps:$4 sm:$0xff]   ;;  %v10772_v63 = vld [vmem:[#allocation6 + $0x354] ss:$8 sps:$4 sm:$0xff]  }
 0x126   :  { %v1026_v60 = vrot.slane %v1024_v24, 3  ;;  %v1029_v52 = vrot.slane %v1027_v48, 4 }
 0x127   :  { %837 = vmatmul.mubr.bf16.gmra.mrb[20].mxu0 %v10747_v62  ;;  %v8955_v62 = vcombine.low %v11802_v10, %v11837_v61  ;;  %v996_v35 = vsel %vm979_vm3, %v987_v11, %v995_v12  ;;  %v10760_v10 = vld [vmem:[#allocation6 + $0x314] ss:$8 sps:$4 sm:$0xff]   ;;  %v937_v38 = vsel %vm893_vm2, %v927_v51, %v936_v56 }
 0x128   :  { %1279 = vmatpush1.bf16.msra.mxu0 %v10732_v26  ;;  %1290 = vmatprep.mubr.bf16.mxu0 %v1013_v31  ;;  %v1045_v26 = vshll.u32 %v928_v0, 16  ;;  %v1030_v30 = vor.u32 %v1029_v52, %v1026_v60  ;;  %v1017_v31 = vrot.slane %v1015_v9, 3  ;;  %v1063_v24 = vshll.u32 %v937_v38, 16 }
 0x129   :  { %1280 = vmatprep.subr.bf16.mxu0 %v10737_v27  ;;  %v939_v27 = vshrl.u32 %v8963_v59, 16  ;;  %v1033_v4 = vshrl.u32 %v8955_v62, 16  ;;  %v10769_v59 = vld [vmem:[#allocation6 + $0x344] ss:$8 sps:$4 sm:$0xff]   ;;  %v1051_v52 = vshrl.u32 %v8956_v49, 16  ;;  %v1054_v0 = vshll.u32 %v8956_v49, 16 }
 0x12a   :  { %v1047_v37 = vrot.slane %v1045_v26, 4  ;;  %v1031_v61 = vsel %vm979_vm3, %v11903_v23, %v1030_v30  ;;  %v10766_v23 = vld [vmem:[#allocation6 + $0x334] ss:$8 sps:$4 sm:$0xff]   ;;  %v1065_v45 = vrot.slane %v1063_v24, 4  ;;  %v10814_v49 = vld [vmem:[#allocation6 + $0x404] ss:$8 sps:$4 sm:$0xff]  }
 0x12b   :  { %v941_v14 = vrot.slane %v939_v27, 4  ;;  %v1035_v43 = vrot.slane %v1033_v4, 3  ;;  %v1053_v11 = vrot.slane %v1051_v52, 3  ;;  %v10770_v27 = vld [vmem:[#allocation6 + $0x350] ss:$8 sps:$4 sm:$0xff]  }
 0x12c   :  { %1281 = vmatpush1.bf16.msra.mxu0 %v10735_v32  ;;  %v1020_v32 = vrot.slane %v1018_v2, 4  ;;  %v10778_v4 = vld [vmem:[#allocation6 + $0x370] ss:$8 sps:$4 sm:$0xff]   ;;  %v10804_v24 = vld [vmem:[#allocation6 + $0x3d4] ss:$8 sps:$4 sm:$0xff]  }
 0x12d   :  { %1282 = vmatprep.subr.bf16.mxu0 %v10740_v36  ;;  %v1044_v36 = vrot.slane %v1042_v25, 3  ;;  %v10815_v52 = vld [vmem:[#allocation6 + $0x410] ss:$8 sps:$4 sm:$0xff]  }
 0x12e   :  { %v1021_v41 = vor.u32 %v1020_v32, %v1017_v31 }
 0x12f   :  { %v1048_v48 = vor.u32 %v1047_v37, %v1044_v36  ;;  %v10780_v36 = vld [vmem:[#allocation6 + $0x374] ss:$8 sps:$4 sm:$0xff]  }
 0x130   :  { %1283 = vmatpush1.bf16.msra.mxu0 %v10738_v8  ;;  %v1036_v8 = vshll.u32 %v8955_v62, 16  ;;  %v1022_v51 = vsel %vm979_vm3, %v995_v12, %v1021_v41  ;;  %v1056_v12 = vrot.slane %v1054_v0, 4  ;;  %v8957_v62 = vcombine.low %v11850_v15, %v11921_v50  ;;  %v10820_v0 = vld [vmem:[#allocation6 + $0x424] ss:$8 sps:$4 sm:$0xff]  }
 0x131   :  { %1284 = vmatprep.subr.bf16.mxu0 %v10743_v19  ;;  %v944_v19 = vrot.slane %v942_v21, 5  ;;  %v10776_v21 = vld [vmem:[#allocation6 + $0x364] ss:$8 sps:$4 sm:$0xff]  }
 0x132   :  { %v1072_v31 = vshll.u32 %v8957_v62, 16 }
 0x133   :  { %v945_v34 = vor.u32 %v944_v19, %v941_v14  ;;  %v10788_v14 = vld [vmem:[#allocation6 + $0x394] ss:$8 sps:$4 sm:$0xff]   ;;  %v10786_v19 = vld [vmem:[#allocation6 + $0x390] ss:$8 sps:$4 sm:$0xff]  }
 0x134   :  { %1285 = vmatpush1.bf16.msra.mxu0 %v10741_v44  ;;  %v1038_v44 = vrot.slane %v1036_v8, 4  ;;  %v1074_v50 = vrot.slane %v1072_v31, 4  ;;  %v10784_v8 = vld [vmem:[#allocation6 + $0x384] ss:$8 sps:$4 sm:$0xff]  }
 0x135   :  { %1286 = vmatprep.subr.bf16.mxu0 %v10746_v46  ;;  %v1060_v46 = vshrl.u32 %v937_v38, 16  ;;  %v10832_v31 = vld [vmem:[#allocation6 + $0x464] ss:$8 sps:$4 sm:$0xff]  }
 0x136   :  { %v1039_v60 = vor.u32 %v1038_v44, %v1035_v43  ;;  %v10794_v43 = vld [vmem:[#allocation6 + $0x3b0] ss:$8 sps:$4 sm:$0xff]   ;;  %v10800_v44 = vld [vmem:[#allocation6 + $0x3c4] ss:$8 sps:$4 sm:$0xff]  }
 0x137   :  { %v1062_v20 = vrot.slane %v1060_v46, 3  ;;  %v10798_v46 = vld [vmem:[#allocation6 + $0x3c0] ss:$8 sps:$4 sm:$0xff]  }
 0x138   :  { %1287 = vmatpush1.bf16.msra.mxu0 %v10744_v57  ;;  %v1049_v57 = vsel %vm979_vm3, %v1030_v30, %v1048_v48  ;;  %v1040_v13 = vsel %vm979_vm3, %v1021_v41, %v1039_v60  ;;  %v1057_v30 = vor.u32 %v1056_v12, %v1053_v11  ;;  %v10796_v41 = vld [vmem:[#allocation6 + $0x3b4] ss:$8 sps:$4 sm:$0xff]   ;;  %v11966_v11 = vld [vmem:[#allocation3 + $0x8] sm:$0xf] }
 0x139   :  { %1288 = vmatprep.subr.bf16.mxu0 %v10750_v58  ;;  %v946_v58 = vsel %vm893_vm2, %v936_v56, %v945_v34  ;;  %v1066_v2 = vor.u32 %v1065_v45, %v1062_v20  ;;  %v1069_v56 = vshrl.u32 %v8957_v62, 16  ;;  %v10807_v34 = vld [vmem:[#allocation6 + $0x3e4] ss:$8 sps:$4 sm:$0xff]   ;;  %v10808_v45 = vld [vmem:[#allocation6 + $0x3f0] ss:$8 sps:$4 sm:$0xff]  }
 0x13a   :  { %v1078_v7 = vshrl.u32 %v946_v58, 16  ;;  %v1081_v9 = vshll.u32 %v946_v58, 16  ;;  %v10812_v58 = vld [vmem:[#allocation6 + $0x400] ss:$8 sps:$4 sm:$0xff]   ;;  %v11969_v12 = vld [vmem:[#allocation3 + $0xc] sm:$0xf] }
 0x13b   :  { %v1071_v15 = vrot.slane %v1069_v56, 3  ;;  %v11971_v62 = vld [vmem:[#allocation3 + $0x10] sm:$0xf] }
 0x13c   :  { %1289 = vmatpush1.bf16.msra.mxu0 %v10748_v3  ;;  %v10767_v3 = vld [vmem:[#allocation6 + $0x340] ss:$8 sps:$4 sm:$0xff]   ;;  %v1080_v25 = vrot.slane %v1078_v7, 3  ;;  %v1083_v26 = vrot.slane %v1081_v9, 4  ;;  %v1469_v9 = vshrl.u32 %v11892_v53, 16 }
 0x13d   :  { %1660 = vmatprep.subr.bf16.mxu0 %v10755_v22  ;;  %v1067_v22 = vsel %vm979_vm3, %v1048_v48, %v1066_v2  ;;  %v10802_v48 = vld [vmem:[#allocation6 + $0x3d0] ss:$8 sps:$4 sm:$0xff]  }
 0x13e   :  { %v1084_v32 = vor.u32 %v1083_v26, %v1080_v25  ;;  %v10824_v25 = vld [vmem:[#allocation6 + $0x440] ss:$8 sps:$4 sm:$0xff]   ;;  %v10829_v26 = vld [vmem:[#allocation6 + $0x454] ss:$8 sps:$4 sm:$0xff]   ;;  %v10827_v56 = vld [vmem:[#allocation6 + $0x450] ss:$8 sps:$4 sm:$0xff]  }
 0x13f   :  { %1291 = vmatmul.mubr.bf16.vlgmr.msra.gmra.mrb[0].mxu0 %v996_v35  ;;  %v10774_v35 = vld [vmem:[#allocation6 + $0x360] ss:$8 sps:$4 sm:$0xff]  }
 0x140   :  { %1661 = vmatpush1.bf16.msra.mxu0 %v10753_v17  ;;  %1300 = vmatprep.mubr.bf16.mxu0 %v1031_v61  ;;  %v1058_v17 = vsel %vm979_vm3, %v1039_v60, %v1057_v30  ;;  %v1085_v37 = vsel %vm979_vm3, %v1066_v2, %v1084_v32  ;;  %v10782_v61 = vld [vmem:[#allocation6 + $0x380] ss:$8 sps:$4 sm:$0xff]  }
 0x141   :  { %1662 = vmatprep.subr.bf16.mxu0 %v10760_v10  ;;  %v1075_v10 = vor.u32 %v1074_v50, %v1071_v15  ;;  %v10830_v50 = vld [vmem:[#allocation6 + $0x460] ss:$8 sps:$4 sm:$0xff]  }
 0x143   :  { %v1076_v38 = vsel %vm979_vm3, %v1057_v30, %v1075_v10 }
 0x144   :  { %1663 = vmatpush1.bf16.msra.mxu0 %v10758_v29  ;;  %v10792_v29 = vld [vmem:[#allocation6 + $0x3a4] ss:$8 sps:$4 sm:$0xff]  }
 0x145   :  { %1664 = vmatprep.subr.bf16.mxu0 %v10763_v39  ;;  %v10790_v39 = vld [vmem:[#allocation6 + $0x3a0] ss:$8 sps:$4 sm:$0xff]  }
 0x147   :  { %1301 = vmatmul.mubr.bf16.gmra.mrb[4].mxu0 %v1022_v51  ;;  %v10810_v51 = vld [vmem:[#allocation6 + $0x3f4] ss:$8 sps:$4 sm:$0xff]  }
 0x148   :  { %1665 = vmatpush1.bf16.msra.mxu0 %v10761_v33  ;;  %1310 = vmatprep.mubr.bf16.mxu0 %v1049_v57  ;;  %v10842_v33 = vld [vmem:[#allocation3 + $0x2c] ss:$0 sps:$4 sm:$0x77]  }
 0x149   :  { %1666 = vmatprep.subr.bf16.mxu0 %v10766_v23  ;;  %v10805_v23 = vld [vmem:[#allocation6 + $0x3e0] ss:$8 sps:$4 sm:$0xff]   ;;  %v1399_v20 = vshll.u32 %v10842_v33, 16 }
 0x14b   :  { %v1401_v57 = vrot.slane %v1399_v20, 1  ;;  %v10848_v20 = vld [vmem:[#allocation6 + $0x4b4] ss:$8 sps:$4 sm:$0xff]  }
 0x14c   :  { %1667 = vmatpush1.bf16.msra.mxu0 %v10764_v16  ;;  %v10817_v16 = vld [vmem:[#allocation6 + $0x414] ss:$8 sps:$4 sm:$0xff]  }
 0x14d   :  { %1668 = vmatprep.subr.bf16.mxu0 %v10769_v59  ;;  %v1403_v59 = vshrl.u32 %v10842_v33, 16 }
 0x14f   :  { %1311 = vmatmul.mubr.bf16.gmra.mrb[8].mxu0 %v1040_v13  ;;  %v11960_v5 = vor.u32 %v1403_v59, %v1401_v57  ;;  %v10826_v13 = vld [vmem:[#allocation6 + $0x444] ss:$8 sps:$4 sm:$0xff]   ;;  %v10849_v59 = vld [vmem:[#allocation6 + $0x4c0] ss:$8 sps:$4 sm:$0xff]  }
 0x150   :  { %1669 = vmatpush1.bf16.msra.mxu0 %v10767_v3  ;;  %1320 = vmatprep.mubr.bf16.mxu0 %v1067_v22  ;;  %v1471_v22 = vor.u32 %v1469_v9, %v11896_v1  ;;  %v10857_v9 = vld [vmem:[#allocation6 + $0x4e4] ss:$8 sps:$4 sm:$0xff]  }
 0x151   :  { %1670 = vmatprep.subr.bf16.mxu0 %v10772_v63  ;;  %v1481_v63 = vshll.u32 %v11960_v5, 16 }
 0x153   :  { %v1483_v1 = vrot.slane %v1481_v63, 1  ;;  %v10855_v63 = vld [vmem:[#allocation6 + $0x4e0] ss:$8 sps:$4 sm:$0xff]  }
 0x154   :  { %1671 = vmatpush1.bf16.msra.mxu0 %v10770_v27  ;;  %v11974_v27 = vld [vmem:[#allocation3 + $0x14] sm:$0xf] }
 0x155   :  { %1672 = vmatprep.subr.bf16.mxu0 %v10776_v21  ;;  %v11976_v21 = vld [vmem:[#allocation3 + $0x18] sm:$0xf] }
 0x157   :  { %1321 = vmatmul.mubr.bf16.gmra.mrb[12].mxu0 %v1058_v17 }
 0x158   :  { %1673 = vmatpush1.bf16.msra.mxu0 %v10774_v35  ;;  %1330 = vmatprep.mubr.bf16.mxu0 %v1085_v37  ;;  %v10835_v37 = vld [vmem:[#allocation6 + $0x474] ss:$8 sps:$4 sm:$0xff]  }
 0x159   :  { %1674 = vmatprep.subr.bf16.mxu0 %v10780_v36 }
 0x15c   :  { %1675 = vmatpush1.bf16.msra.mxu0 %v10778_v4 }
 0x15d   :  { %1676 = vmatprep.subr.bf16.mxu0 %v10784_v8 }
 0x15f   :  { %1331 = vmatmul.mubr.bf16.gmra.mrb[16].mxu0 %v1076_v38  ;;  %v10833_v38 = vld [vmem:[#allocation6 + $0x470] ss:$8 sps:$4 sm:$0xff]  }
 0x160   :  { %1677 = vmatpush1.bf16.msra.mxu0 %v10782_v61  ;;  %1340 = vmatprep.mubr.bf16.mxu0 %v1084_v32  ;;  %v11989_v32 = vcombine.low %v11974_v27, %v11976_v21 }
 0x161   :  { %1678 = vmatprep.subr.bf16.mxu0 %v10788_v14  ;;  %v10838_v14 = vld [vmem:[#allocation6 + $0x484] ss:$8 sps:$4 sm:$0xff]  }
 0x164   :  { %1679 = vmatpush1.bf16.msra.mxu0 %v10786_v19  ;;  %v1485_v19 = vshrl.u32 %v11960_v5, 16 }
 0x165   :  { %1680 = vmatprep.subr.bf16.mxu0 %v10792_v29 }
 0x167   :  { %1341 = vmatmul.mubr.bf16.gmra.mrb[20].mxu0 %v1075_v10  ;;  %v1835_v10 = vshll.u32 %v11989_v32, 16 }
 0x168   :  { %1681 = vmatpush1.bf16.msra.mxu0 %v10790_v39  ;;  %1692 = vmatprep.mubr.bf16.mxu0 %v11830_v54  ;;  %v1397_v54 = vor.u32 %v11888_v47, %v930_v18  ;;  %v10818_v47 = vld [vmem:[#allocation6 + $0x420] ss:$8 sps:$4 sm:$0xff]   ;;  %v10823_v18 = vld [vmem:[#allocation6 + $0x434] ss:$8 sps:$4 sm:$0xff]  }
 0x169   :  { %1682 = vmatprep.subr.bf16.mxu0 %v10796_v41  ;;  %v1837_v29 = vrot.slane %v1835_v10, 1  ;;  %v10867_v10 = vld [vmem:[#allocation6 + $0x510] ss:$8 sps:$4 sm:$0xff]  }
 0x16a   :  { %v11955_v60 = vsel %vm166_vm0, %v1397_v54, %v1401_v57  ;;  %v12008_v57 = vld [vmem:[#allocation3 + $0x20] sm:$0xf]  ;;  %v10846_v54 = vld [vmem:[#allocation6 + $0x4b0] ss:$8 sps:$4 sm:$0xff]  }
 0x16b   :  { %v1473_v7 = vshll.u32 %v11955_v60, 16  ;;  %v1477_v3 = vshrl.u32 %v11955_v60, 16 }
 0x16c   :  { %1683 = vmatpush1.bf16.msra.mxu0 %v10794_v43  ;;  %v10836_v43 = vld [vmem:[#allocation6 + $0x480] ss:$8 sps:$4 sm:$0xff]  }
 0x16d   :  { %1684 = vmatprep.subr.bf16.mxu0 %v10800_v44  ;;  %v1475_v2 = vrot.slane %v1473_v7, 1  ;;  %v10841_v44 = vld [vmem:[#allocation6 + $0x494] ss:$8 sps:$4 sm:$0xff]   ;;  %v1839_v7 = vshrl.u32 %v11989_v32, 16 }
 0x16f   :  { %v1476_v30 = vsel %vm166_vm0, %v1471_v22, %v1475_v2  ;;  %v1479_v15 = vor.u32 %v1477_v3, %v1475_v2  ;;  %v1841_v2 = vor.u32 %v1839_v7, %v1837_v29  ;;  %v12027_v22 = vld [vmem:[#allocation3 + $0x2c] sm:$0xf]  ;;  %v10883_v7 = vld [vmem:[#allocation6 + $0x560] ss:$8 sps:$4 sm:$0xff]  }
 0x170   :  { %1685 = vmatpush1.bf16.msra.mxu0 %v10798_v46  ;;  %v1487_v46 = vor.u32 %v1485_v19, %v1483_v1 }
 0x171   :  { %1686 = vmatprep.subr.bf16.mxu0 %v10804_v24  ;;  %v1484_v61 = vsel %vm166_vm0, %v1479_v15, %v1483_v1 }
 0x174   :  { %1687 = vmatpush1.bf16.msra.mxu0 %v10802_v48 }
 0x175   :  { %1688 = vmatprep.subr.bf16.mxu0 %v10807_v34  ;;  %v10845_v34 = vld [vmem:[#allocation6 + $0x4a4] ss:$8 sps:$4 sm:$0xff]  }
 0x178   :  { %1689 = vmatpush1.bf16.msra.mxu0 %v10805_v23 }
 0x179   :  { %1690 = vmatprep.subr.bf16.mxu0 %v10810_v51  ;;  %v10843_v51 = vld [vmem:[#allocation6 + $0x4a0] ss:$8 sps:$4 sm:$0xff]  }
 0x17c   :  { %1691 = vmatpush1.bf16.msra.mxu0 %v10808_v45 }
 0x17d   :  { %2093 = vmatprep.subr.bf16.mxu0 %v10814_v49  ;;  %v12006_v49 = vld [vmem:[#allocation3 + $0x1c] sm:$0xf] }
 0x17f   :  { %1693 = vmatmul.mubr.bf16.vlgmr.msra.gmra.mrb[0].mxu0 %v11834_v55  ;;  %v10821_v55 = vld [vmem:[#allocation6 + $0x430] ss:$8 sps:$4 sm:$0xff]  }
 0x180   :  { %2094 = vmatpush1.bf16.msra.mxu0 %v10812_v58  ;;  %1702 = vmatprep.mubr.bf16.mxu0 %v11880_v42  ;;  %v1773_v42 = vld [vmem:[#allocation3 + $0x4] sm:$0x8] }
 0x181   :  { %2095 = vmatprep.subr.bf16.mxu0 %v10817_v16  ;;  %v10851_v58 = vld [vmem:[#allocation6 + $0x4c4] ss:$8 sps:$4 sm:$0xff]   ;;  %v12013_v16 = vcombine.low %v12006_v49, %v12008_v57 }
 0x184   :  { %2096 = vmatpush1.bf16.msra.mxu0 %v10815_v52  ;;  %v12015_v52 = vld [vmem:[#allocation3 + $0x24] sm:$0xf] }
 0x185   :  { %2097 = vmatprep.subr.bf16.mxu0 %v10820_v0  ;;  %v12017_v0 = vld [vmem:[#allocation3 + $0x28] sm:$0xf] }
 0x187   :  { %1703 = vmatmul.mubr.bf16.gmra.mrb[4].mxu0 %v11826_v40  ;;  %v11979_v40 = vcombine.low %v1773_v42, %v11966_v11 }
 0x188   :  { %2098 = vmatpush1.bf16.msra.mxu0 %v10818_v47  ;;  %1712 = vmatprep.mubr.bf16.mxu0 %v11900_v6  ;;  %v11983_v6 = vcombine.low %v11969_v12, %v11971_v62  ;;  %v10852_v47 = vld [vmem:[#allocation6 + $0x4d0] ss:$8 sps:$4 sm:$0xff]  }
 0x189   :  { %2099 = vmatprep.subr.bf16.mxu0 %v10823_v18  ;;  %v1822_v35 = vshll.u32 %v11979_v40, 16  ;;  %v1820_v36 = vshrl.u32 %v11979_v40, 16  ;;  %v12023_v18 = vcombine.low %v12015_v52, %v12017_v0 }
 0x18a   :  { %v1827_v17 = vshll.u32 %v11983_v6, 16  ;;  %v1831_v8 = vshrl.u32 %v11983_v6, 16 }
 0x18b   :  { %v1824_v4 = vrot.slane %v1822_v35, 1  ;;  %v1851_v42 = vshll.u32 %v12023_v18, 16  ;;  %v10866_v35 = vld [vmem:[#allocation6 + $0x504] ss:$8 sps:$4 sm:$0xff]  }
 0x18c   :  { %2100 = vmatpush1.bf16.msra.mxu0 %v10821_v55  ;;  %v10860_v55 = vld [vmem:[#allocation6 + $0x4f4] ss:$8 sps:$4 sm:$0xff]  }
 0x18d   :  { %2101 = vmatprep.subr.bf16.mxu0 %v10826_v13  ;;  %v1825_v39 = vor.u32 %v1824_v4, %v1820_v36  ;;  %v1847_v13 = vshrl.u32 %v12013_v16, 16  ;;  %v10864_v36 = vld [vmem:[#allocation6 + $0x500] ss:$8 sps:$4 sm:$0xff]   ;;  %v10869_v4 = vld [vmem:[#allocation6 + $0x514] ss:$8 sps:$4 sm:$0xff]  }
 0x18f   :  { %1713 = vmatmul.mubr.bf16.gmra.mrb[8].mxu0 %v11869_v28  ;;  %v1829_v28 = vrot.slane %v1827_v17, 1 }
 0x190   :  { %2102 = vmatpush1.bf16.msra.mxu0 %v10824_v25  ;;  %1722 = vmatprep.mubr.bf16.mxu0 %v1476_v30  ;;  %v1785_v25 = vld [vmem:[#allocation3 + $0x30] sm:$0x3] }
 0x191   :  { %2103 = vmatprep.subr.bf16.mxu0 %v10829_v26  ;;  %v1833_v41 = vor.u32 %v1831_v8, %v1829_v28  ;;  %v1830_v24 = vsel %vm166_vm0, %v1825_v39, %v1829_v28  ;;  %v10858_v30 = vld [vmem:[#allocation6 + $0x4f0] ss:$8 sps:$4 sm:$0xff]   ;;  %v9036_v1 = vcombine.low %v12027_v22, %v1785_v25  ;;  %v10870_v39 = vld [vmem:[#allocation6 + $0x520] ss:$8 sps:$4 sm:$0xff]  }
 0x192   :  { %v1902_v33 = vrot.slane %v1830_v24, 3  ;;  %v10873_v24 = vld [vmem:[#allocation6 + $0x530] ss:$8 sps:$4 sm:$0xff]  }
 0x193   :  { %v12001_v48 = vsel %vm166_vm0, %v1833_v41, %v1837_v29  ;;  %v1859_v28 = vshll.u32 %v9036_v1, 16  ;;  %v10875_v41 = vld [vmem:[#allocation6 + $0x534] ss:$8 sps:$4 sm:$0xff]  }
 0x194   :  { %2104 = vmatpush1.bf16.msra.mxu0 %v10827_v56  ;;  %v1903_v23 = vrot.slane %v12001_v48, 3  ;;  %v1899_v56 = vrot.slane %v11979_v40, 3  ;;  %v10878_v48 = vld [vmem:[#allocation6 + $0x544] ss:$8 sps:$4 sm:$0xff]  }
 0x195   :  { %2105 = vmatprep.subr.bf16.mxu0 %v10832_v31  ;;  %v1900_v31 = vrot.slane %v11983_v6, 3  ;;  %v1855_v6 = vshrl.u32 %v12023_v18, 16  ;;  %v1861_v19 = vrot.slane %v1859_v28, 1  ;;  %v2582_v28 = vld [vmem:[#allocation3 + $0x10] sm:$0xf] }
 0x196   :  { %v1904_v45 = vsel %vm1898_vm4, %v1902_v33, %v1903_v23  ;;  %v10876_v33 = vld [vmem:[#allocation6 + $0x540] ss:$8 sps:$4 sm:$0xff]  }
 0x197   :  { %1723 = vmatmul.mubr.bf16.gmra.mrb[12].mxu0 %v11892_v53  ;;  %v10839_v53 = vld [vmem:[#allocation6 + $0x490] ss:$8 sps:$4 sm:$0xff]  }
 0x198   :  { %2106 = vmatpush1.bf16.msra.mxu0 %v10830_v50  ;;  %1732 = vmatprep.mubr.bf16.mxu0 %v1484_v61  ;;  %v1853_v50 = vrot.slane %v1851_v42, 1  ;;  %v10872_v61 = vld [vmem:[#allocation6 + $0x524] ss:$8 sps:$4 sm:$0xff]   ;;  %v12059_v42 = vcombine.low %v11976_v21, %v12006_v49  ;;  %v12069_v21 = vcombine.low %v12008_v57, %v12015_v52  ;;  %v12073_v49 = vcombine.low %v12017_v0, %v12027_v22  ;;  %v10897_v52 = vld [vmem:[#allocation6 + $0x5a0] ss:$8 sps:$4 sm:$0xff]  }
 0x199   :  { %2107 = vmatprep.subr.bf16.mxu0 %v10835_v37  ;;  %v1901_v37 = vsel %vm1898_vm4, %v1899_v56, %v1900_v31 }
 0x19a   :  { %v1857_v29 = vor.u32 %v1855_v6, %v1853_v50  ;;  %v2246_v57 = vshll.u32 %v12069_v21, 16 }
 0x19c   :  { %2108 = vmatpush1.bf16.msra.mxu0 %v10833_v38  ;;  %v1905_v38 = vrot.slane %v11989_v32, 3  ;;  %v1909_v32 = vrot.slane %v12013_v16, 3 }
 0x19d   :  { %2109 = vmatprep.subr.bf16.mxu0 %v10838_v14 }
 0x19f   :  { %1733 = vmatmul.mubr.bf16.gmra.mrb[16].mxu0 %v11955_v60  ;;  %v10854_v60 = vld [vmem:[#allocation6 + $0x4d4] ss:$8 sps:$4 sm:$0xff]  }
 0x1a0   :  { %2110 = vmatpush1.bf16.msra.mxu0 %v10836_v43  ;;  %1742 = vmatprep.mubr.bf16.mxu0 %v1487_v46  ;;  %v1906_v43 = vsel %vm1898_vm4, %v1900_v31, %v1905_v38  ;;  %v1862_v46 = vsel %vm166_vm0, %v1857_v29, %v1861_v19 }
 0x1a1   :  { %2111 = vmatprep.subr.bf16.mxu0 %v10841_v44 }
 0x1a4   :  { %2112 = vmatpush1.bf16.msra.mxu0 %v10839_v53  ;;  %v1915_v53 = vrot.slane %v1862_v46, 3  ;;  %v10903_v46 = vld [vmem:[#allocation6 + $0x5c0] ss:$8 sps:$4 sm:$0xff]  }
 0x1a5   :  { %2113 = vmatprep.subr.bf16.mxu0 %v10845_v34  ;;  %v1863_v34 = vshrl.u32 %v9036_v1, 16  ;;  %v10893_v1 = vld [vmem:[#allocation6 + $0x590] ss:$8 sps:$4 sm:$0xff]  }
 0x1a7   :  { %1743 = vmatmul.mubr.bf16.gmra.mrb[20].mxu0 %v11960_v5  ;;  %v1843_v5 = vshll.u32 %v12013_v16, 16  ;;  %v1784_v16 = vld [vmem:[#allocation3 + $0x30] sm:$0x1] }
 0x1a8   :  { %2114 = vmatpush1.bf16.msra.mxu0 %v10843_v51  ;;  %2125 = vmatprep.mubr.bf16.mxu0 %v1904_v45  ;;  %v1910_v51 = vsel %vm1898_vm4, %v1905_v38, %v1909_v32  ;;  %v1865_v45 = vor.u32 %v1863_v34, %v1861_v19  ;;  %v2242_v38 = vshrl.u32 %v12059_v42, 16  ;;  %v2250_v19 = vshrl.u32 %v12069_v21, 16 }
 0x1a9   :  { %2115 = vmatprep.subr.bf16.mxu0 %v10848_v20  ;;  %v1845_v3 = vrot.slane %v1843_v5, 1  ;;  %v10888_v5 = vld [vmem:[#allocation6 + $0x574] ss:$8 sps:$4 sm:$0xff]  }
 0x1ab   :  { %v1846_v26 = vsel %vm166_vm0, %v1841_v2, %v1845_v3  ;;  %v1849_v15 = vor.u32 %v1847_v13, %v1845_v3  ;;  %v12049_v2 = vcombine.low %v11966_v11, %v11969_v12  ;;  %v10892_v11 = vld [vmem:[#allocation6 + $0x584] ss:$8 sps:$4 sm:$0xff]   ;;  %v10890_v12 = vld [vmem:[#allocation6 + $0x580] ss:$8 sps:$4 sm:$0xff]  }
 0x1ac   :  { %2116 = vmatpush1.bf16.msra.mxu0 %v10846_v54  ;;  %v1907_v17 = vrot.slane %v1846_v26, 3  ;;  %v10879_v54 = vld [vmem:[#allocation6 + $0x550] ss:$8 sps:$4 sm:$0xff]   ;;  %v10895_v26 = vld [vmem:[#allocation6 + $0x594] ss:$8 sps:$4 sm:$0xff]  }
 0x1ad   :  { %2117 = vmatprep.subr.bf16.mxu0 %v10851_v58  ;;  %v1854_v40 = vsel %vm166_vm0, %v1849_v15, %v1853_v50  ;;  %v10885_v58 = vld [vmem:[#allocation6 + $0x564] ss:$8 sps:$4 sm:$0xff]   ;;  %v2225_v13 = vshll.u32 %v12049_v2, 16  ;;  %v2223_v25 = vshrl.u32 %v12049_v2, 16 }
 0x1ae   :  { %v1908_v8 = vsel %vm1898_vm4, %v1903_v23, %v1907_v17  ;;  %v1911_v14 = vrot.slane %v1854_v40, 3  ;;  %v10881_v23 = vld [vmem:[#allocation6 + $0x554] ss:$8 sps:$4 sm:$0xff]   ;;  %v2592_v40 = vld [vmem:[#allocation3 + $0x8] sm:$0x8] }
 0x1af   :  { %v2227_v56 = vrot.slane %v2225_v13, 1 }
 0x1b0   :  { %2118 = vmatpush1.bf16.msra.mxu0 %v10849_v59  ;;  %v1912_v44 = vsel %vm1898_vm4, %v1907_v17, %v1911_v14  ;;  %v1916_v20 = vsel %vm1898_vm4, %v1911_v14, %v1915_v53  ;;  %v1913_v59 = vrot.slane %v12023_v18, 3  ;;  %v10886_v18 = vld [vmem:[#allocation6 + $0x570] ss:$8 sps:$4 sm:$0xff]   ;;  %v12088_v14 = vrot.slane %v2246_v57, 1 }
 0x1b1   :  { %2119 = vmatprep.subr.bf16.mxu0 %v10854_v60  ;;  %v1919_v60 = vrot.slane %v1865_v45, 3  ;;  %v2228_v50 = vor.u32 %v2227_v56, %v2223_v25 }
 0x1b3   :  { %v1920_v3 = vsel %vm1898_vm4, %v1915_v53, %v1919_v60 }
 0x1b4   :  { %2120 = vmatpush1.bf16.msra.mxu0 %v10852_v47  ;;  %v1914_v47 = vsel %vm1898_vm4, %v1909_v32, %v1913_v59  ;;  %v10909_v32 = vld [vmem:[#allocation6 + $0x5d4] ss:$8 sps:$4 sm:$0xff]  }
 0x1b5   :  { %2121 = vmatprep.subr.bf16.mxu0 %v10857_v9  ;;  %v9035_v9 = vcombine.low %v12027_v22, %v1784_v16  ;;  %v10902_v22 = vld [vmem:[#allocation6 + $0x5b4] ss:$8 sps:$4 sm:$0xff]  }
 0x1b8   :  { %2122 = vmatpush1.bf16.msra.mxu0 %v10855_v63  ;;  %v1917_v63 = vrot.slane %v9035_v9, 3 }
 0x1b9   :  { %2123 = vmatprep.subr.bf16.mxu0 %v10860_v55  ;;  %v12054_v55 = vcombine.low %v11971_v62, %v11974_v27  ;;  %v2238_v62 = vshll.u32 %v12059_v42, 16  ;;  %v12065_v27 = vld [vmem:[#allocation3 + $0x30] ss:$0 sps:$4 sm:$0x77]  }
 0x1ba   :  { %v2262_v0 = vshll.u32 %v12065_v27, 16 }
 0x1bb   :  { %v2230_v31 = vshll.u32 %v12054_v55, 16  ;;  %v2234_v15 = vshrl.u32 %v12054_v55, 16 }
 0x1bc   :  { %2124 = vmatpush1.bf16.msra.mxu0 %v10858_v30  ;;  %v1918_v30 = vsel %vm1898_vm4, %v1913_v59, %v1917_v63 }
 0x1bd   :  { %2467 = vmatprep.subr.bf16.mxu0 %v10866_v35  ;;  %v10899_v35 = vld [vmem:[#allocation6 + $0x5a4] ss:$8 sps:$4 sm:$0xff]   ;;  %v12075_v17 = vrot.slane %v2230_v31, 1 }
 0x1be   :  { %v10920_v31 = vld [vmem:[#allocation6 + $0x604] ss:$8 sps:$4 sm:$0xff]  }
 0x1bf   :  { %2126 = vmatmul.mubr.bf16.vlgmr.msra.gmra.mrb[0].mxu0 %v1901_v37  ;;  %v2254_v37 = vshll.u32 %v12073_v49, 16  ;;  %v2233_v6 = vsel %vm166_vm0, %v2228_v50, %v12075_v17  ;;  %v2236_v50 = vor.u32 %v2234_v15, %v12075_v17  ;;  %v10923_v17 = vld [vmem:[#allocation6 + $0x614] ss:$8 sps:$4 sm:$0xff]  }
 0x1c0   :  { %2468 = vmatpush1.bf16.msra.mxu0 %v10864_v36  ;;  %2135 = vmatprep.mubr.bf16.mxu0 %v1908_v8  ;;  %v12078_v36 = vrot.slane %v2238_v62, 1  ;;  %v2583_v8 = vld [vmem:[#allocation3 + $0x14] sm:$0xf] }
 0x1c1   :  { %2469 = vmatprep.subr.bf16.mxu0 %v10869_v4  ;;  %v12083_v4 = vld [vmem:[#allocation3 + $0xc] sm:$0xf]  ;;  %v12091_v29 = vrot.slane %v2254_v37, 1 }
 0x1c2   :  { %v2589_v37 = vld [vmem:[#allocation3 + $0x2c] sm:$0xf] }
 0x1c4   :  { %2470 = vmatpush1.bf16.msra.mxu0 %v10867_v10  ;;  %v10900_v10 = vld [vmem:[#allocation6 + $0x5b0] ss:$8 sps:$4 sm:$0xff]  }
 0x1c5   :  { %2471 = vmatprep.subr.bf16.mxu0 %v10872_v61  ;;  %v10905_v61 = vld [vmem:[#allocation6 + $0x5c4] ss:$8 sps:$4 sm:$0xff]  }
 0x1c7   :  { %2136 = vmatmul.mubr.bf16.gmra.mrb[4].mxu0 %v1906_v43  ;;  %v12094_v43 = vcombine.low %v2592_v40, %v12083_v4 }
 0x1c8   :  { %2472 = vmatpush1.bf16.msra.mxu0 %v10870_v39  ;;  %2145 = vmatprep.mubr.bf16.mxu0 %v1912_v44  ;;  %v2584_v39 = vld [vmem:[#allocation3 + $0x18] sm:$0xf]  ;;  %v2585_v44 = vld [vmem:[#allocation3 + $0x1c] sm:$0xf] }
 0x1c9   :  { %2473 = vmatprep.subr.bf16.mxu0 %v10875_v41  ;;  %v9109_v41 = vcombine.low %v2582_v28, %v2583_v8  ;;  %v9110_v53 = vcombine.low %v2584_v39, %v2585_v44  ;;  %v2627_v34 = vshrl.u32 %v12094_v43, 16  ;;  %v9149_v45 = vcombine.low %v2583_v8, %v2584_v39 }
 0x1cb   :  { %v12105_v59 = vshll.u32 %v9110_v53, 16  ;;  %v12115_v39 = vshrl.u32 %v9109_v41, 16 }
 0x1cc   :  { %2474 = vmatpush1.bf16.msra.mxu0 %v10873_v24  ;;  %v2258_v24 = vshrl.u32 %v12073_v49, 16 }
 0x1cd   :  { %2475 = vmatprep.subr.bf16.mxu0 %v10878_v48  ;;  %v12097_v48 = vrot.slane %v2262_v0, 1  ;;  %v2644_v15 = vrot.slane %v12105_v59, 1 }
 0x1cf   :  { %2146 = vmatmul.mubr.bf16.gmra.mrb[8].mxu0 %v1910_v51  ;;  %v10907_v51 = vld [vmem:[#allocation6 + $0x5d0] ss:$8 sps:$4 sm:$0xff]  }
 0x1d0   :  { %2476 = vmatpush1.bf16.msra.mxu0 %v10876_v33  ;;  %2155 = vmatprep.mubr.bf16.mxu0 %v1916_v20  ;;  %v2629_v33 = vshll.u32 %v12094_v43, 16  ;;  %v9148_v20 = vcombine.low %v12083_v4, %v2582_v28 }
 0x1d1   :  { %2477 = vmatprep.subr.bf16.mxu0 %v10881_v23  ;;  %v12101_v23 = vshll.u32 %v9109_v41, 16  ;;  %v2241_v41 = vsel %vm166_vm0, %v2236_v50, %v12078_v36  ;;  %v3192_v50 = vrot.slane %v12105_v59, 4 }
 0x1d2   :  { %v3083_v16 = vshrl.u32 %v9148_v20, 16 }
 0x1d4   :  { %2478 = vmatpush1.bf16.msra.mxu0 %v10879_v54  ;;  %v10912_v54 = vld [vmem:[#allocation6 + $0x5e4] ss:$8 sps:$4 sm:$0xff]   ;;  %v3085_v9 = vrot.slane %v3083_v16, 4 }
 0x1d5   :  { %2479 = vmatprep.subr.bf16.mxu0 %v10885_v58  ;;  %v2636_v58 = vrot.slane %v12101_v23, 1 }
 0x1d7   :  { %2156 = vmatmul.mubr.bf16.gmra.mrb[12].mxu0 %v1914_v47  ;;  %v10910_v47 = vld [vmem:[#allocation6 + $0x5e0] ss:$8 sps:$4 sm:$0xff]  }
 0x1d8   :  { %2480 = vmatpush1.bf16.msra.mxu0 %v10883_v7  ;;  %2165 = vmatprep.mubr.bf16.mxu0 %v1920_v3  ;;  %v3091_v7 = vshrl.u32 %v9149_v45, 16 }
 0x1d9   :  { %2481 = vmatprep.subr.bf16.mxu0 %v10888_v5  ;;  %v3094_v5 = vshll.u32 %v9149_v45, 16 }
 0x1db   :  { %v3096_v13 = vrot.slane %v3094_v5, 5 }
 0x1dc   :  { %2482 = vmatpush1.bf16.msra.mxu0 %v10886_v18  ;;  %v10915_v18 = vld [vmem:[#allocation6 + $0x5f4] ss:$8 sps:$4 sm:$0xff]  }
 0x1dd   :  { %2483 = vmatprep.subr.bf16.mxu0 %v10892_v11  ;;  %v2586_v11 = vld [vmem:[#allocation3 + $0x20] sm:$0xf] }
 0x1de   :  { %v9150_v56 = vcombine.low %v2585_v44, %v2586_v11 }
 0x1df   :  { %2166 = vmatmul.mubr.bf16.gmra.mrb[16].mxu0 %v1918_v30  ;;  %v10913_v30 = vld [vmem:[#allocation6 + $0x5f0] ss:$8 sps:$4 sm:$0xff]  }
 0x1e0   :  { %2484 = vmatpush1.bf16.msra.mxu0 %v10890_v12  ;;  %2175 = vmatprep.mubr.bf16.mxu0 %v1919_v60  ;;  %v3086_v60 = vshll.u32 %v9148_v20, 16  ;;  %v2587_v12 = vld [vmem:[#allocation3 + $0x24] sm:$0xf]  ;;  %v3100_v40 = vshrl.u32 %v9150_v56, 16 }
 0x1e1   :  { %2485 = vmatprep.subr.bf16.mxu0 %v10895_v26  ;;  %v9111_v57 = vcombine.low %v2586_v11, %v2587_v12 }
 0x1e2   :  { %v3088_v3 = vrot.slane %v3086_v60, 5  ;;  %v3102_v20 = vrot.slane %v3100_v40, 4 }
 0x1e3   :  { %v12120_v45 = vshll.u32 %v9111_v57, 16 }
 0x1e4   :  { %2486 = vmatpush1.bf16.msra.mxu0 %v10893_v1  ;;  %v3089_v25 = vor.u32 %v3088_v3, %v3085_v9  ;;  %v2244_v3 = vor.u32 %v2242_v38, %v12078_v36  ;;  %v10929_v36 = vld [vmem:[#allocation6 + $0x634] ss:$8 sps:$4 sm:$0xff]   ;;  %v12139_v38 = vld [vmem:[#allocation3 + $0x30] sm:$0xf] }
 0x1e5   :  { %2487 = vmatprep.subr.bf16.mxu0 %v10899_v35 }
 0x1e6   :  { %v3175_v1 = vshrl.u32 %v3089_v25, 16  ;;  %v3178_v35 = vshll.u32 %v3089_v25, 16 }
 0x1e7   :  { %2176 = vmatmul.mubr.bf16.gmra.mrb[20].mxu0 %v1917_v63  ;;  %v3093_v63 = vrot.slane %v3091_v7, 4  ;;  %v10921_v7 = vld [vmem:[#allocation6 + $0x610] ss:$8 sps:$4 sm:$0xff]  }
 0x1e8   :  { %2488 = vmatpush1.bf16.msra.mxu0 %v10897_v52  ;;  %2499 = vmatprep.mubr.bf16.mxu0 %v2233_v6  ;;  %v2588_v52 = vld [vmem:[#allocation3 + $0x28] sm:$0xf]  ;;  %v3177_v28 = vrot.slane %v3175_v1, 3  ;;  %v3180_v8 = vrot.slane %v3178_v35, 4  ;;  %v3103_v6 = vshll.u32 %v9150_v56, 16 }
 0x1e9   :  { %2489 = vmatprep.subr.bf16.mxu0 %v10902_v22  ;;  %v3097_v26 = vor.u32 %v3096_v13, %v3093_v63  ;;  %v9151_v9 = vcombine.low %v2587_v12, %v2588_v52  ;;  %v10924_v56 = vld [vmem:[#allocation6 + $0x620] ss:$8 sps:$4 sm:$0xff]  }
 0x1ea   :  { %v3105_v60 = vrot.slane %v3103_v6, 5 }
 0x1eb   :  { %v3098_v62 = vsel %vm893_vm2, %v3089_v25, %v3097_v26  ;;  %v3109_v11 = vshrl.u32 %v9151_v9, 16 }
 0x1ec   :  { %2490 = vmatpush1.bf16.msra.mxu0 %v10900_v10  ;;  %v3183_v0 = vshrl.u32 %v3098_v62, 16  ;;  %v3186_v22 = vshll.u32 %v3098_v62, 16  ;;  %v10918_v10 = vld [vmem:[#allocation6 + $0x600] ss:$8 sps:$4 sm:$0xff]  }
 0x1ed   :  { %2491 = vmatprep.subr.bf16.mxu0 %v10905_v61  ;;  %v12113_v61 = vrot.slane %v2629_v33, 1  ;;  %v3111_v62 = vrot.slane %v3109_v11, 4  ;;  %v10933_v11 = vld [vmem:[#allocation6 + $0x650] ss:$8 sps:$4 sm:$0xff]  }
 0x1ee   :  { %v3185_v44 = vrot.slane %v3183_v0, 3 }
 0x1f0   :  { %2492 = vmatpush1.bf16.msra.mxu0 %v10903_v46  ;;  %v3188_v46 = vrot.slane %v3186_v22, 4  ;;  %v10927_v22 = vld [vmem:[#allocation6 + $0x630] ss:$8 sps:$4 sm:$0xff]  }
 0x1f1   :  { %2493 = vmatprep.subr.bf16.mxu0 %v10909_v32  ;;  %v12118_v32 = vshrl.u32 %v9110_v53, 16  ;;  %v10926_v53 = vld [vmem:[#allocation6 + $0x624] ss:$8 sps:$4 sm:$0xff]  }
 0x1f2   :  { %v3189_v16 = vor.u32 %v3188_v46, %v3185_v44 }
 0x1f4   :  { %2494 = vmatpush1.bf16.msra.mxu0 %v10907_v51  ;;  %v3181_v51 = vor.u32 %v3180_v8, %v3177_v28  ;;  %v9152_v28 = vcombine.low %v2589_v37, %v12139_v38  ;;  %v10932_v8 = vld [vmem:[#allocation6 + $0x644] ss:$8 sps:$4 sm:$0xff]  }
 0x1f5   :  { %2495 = vmatprep.subr.bf16.mxu0 %v10912_v54  ;;  %v9112_v54 = vcombine.low %v2588_v52, %v2589_v37  ;;  %v2252_v37 = vor.u32 %v2250_v19, %v12088_v14 }
 0x1f6   :  { %v12125_v5 = vsel %vm979_vm3, %v3181_v51, %v3189_v16  ;;  %v3118_v51 = vshrl.u32 %v9152_v28, 16 }
 0x1f7   :  { %v12133_v63 = vshll.u32 %v9112_v54, 16  ;;  %v12136_v25 = vshrl.u32 %v9112_v54, 16 }
 0x1f8   :  { %2496 = vmatpush1.bf16.msra.mxu0 %v10910_v47  ;;  %v3106_v47 = vor.u32 %v3105_v60, %v3102_v20  ;;  %v10930_v20 = vld [vmem:[#allocation6 + $0x640] ss:$8 sps:$4 sm:$0xff]  }
 0x1f9   :  { %2497 = vmatprep.subr.bf16.mxu0 %v10915_v18  ;;  %v12131_v18 = vshrl.u32 %v9111_v57, 16 }
 0x1fa   :  { %v3107_v13 = vsel %vm893_vm2, %v3097_v26, %v3106_v47  ;;  %v2249_v26 = vsel %vm166_vm0, %v2244_v3, %v12088_v14  ;;  %v2257_v14 = vsel %vm166_vm0, %v2252_v37, %v12091_v29 }
 0x1fb   :  { %v3196_v12 = vshrl.u32 %v3107_v13, 16  ;;  %v3204_v46 = vrot.slane %v12131_v18, 3 }
 0x1fc   :  { %2498 = vmatpush1.bf16.msra.mxu0 %v10913_v30  ;;  %v3199_v30 = vshll.u32 %v3107_v13, 16  ;;  %v3072_v13 = vld [vmem:[#allocation3 + $0x34] sm:$0x3] }
 0x1fd   :  { %2959 = vmatprep.subr.bf16.mxu0 %v10920_v31  ;;  %v3191_v31 = vrot.slane %v12118_v32, 3  ;;  %v3198_v1 = vrot.slane %v3196_v12, 3 }
 0x1fe   :  { %v3201_v35 = vrot.slane %v3199_v30, 4  ;;  %v9153_v30 = vcombine.low %v3072_v13, %v3072_v13 }
 0x1ff   :  { %2500 = vmatmul.mubr.bf16.vlgmr.msra.gmra.mrb[0].mxu0 %v12049_v2  ;;  %v3112_v2 = vshll.u32 %v9151_v9, 16  ;;  %v12155_v54 = vor.u32 %v3192_v50, %v3191_v31  ;;  %v2640_v50 = vor.u32 %v12115_v39, %v2636_v58 }
 0x200   :  { %2960 = vmatpush1.bf16.msra.mxu0 %v10918_v10  ;;  %2509 = vmatprep.mubr.bf16.mxu0 %v2241_v41  ;;  %v3202_v52 = vor.u32 %v3201_v35, %v3198_v1  ;;  %v3218_v1 = vrot.slane %v12133_v63, 4  ;;  %v2260_v35 = vor.u32 %v2258_v24, %v12091_v29  ;;  %v10942_v24 = vld [vmem:[#allocation6 + $0x674] ss:$8 sps:$4 sm:$0xff]  }
 0x201   :  { %2961 = vmatprep.subr.bf16.mxu0 %v10923_v17  ;;  %v3114_v57 = vrot.slane %v3112_v2, 5  ;;  %v3205_v17 = vrot.slane %v12120_v45, 4  ;;  %v10939_v2 = vld [vmem:[#allocation6 + $0x664] ss:$8 sps:$4 sm:$0xff]  }
 0x202   :  { %v12147_v40 = vsel %vm979_vm3, %v3189_v16, %v3202_v52 }
 0x203   :  { %v3115_v0 = vor.u32 %v3114_v57, %v3111_v62  ;;  %v3206_v41 = vor.u32 %v3205_v17, %v3204_v46  ;;  %v3130_v57 = vshll.u32 %v9153_v30, 16  ;;  %v2645_v17 = vsel %vm166_vm0, %v2640_v50, %v2644_v15 }
 0x204   :  { %2962 = vmatpush1.bf16.msra.mxu0 %v10921_v7  ;;  %v10935_v7 = vld [vmem:[#allocation6 + $0x654] ss:$8 sps:$4 sm:$0xff]  }
 0x205   :  { %2963 = vmatprep.subr.bf16.mxu0 %v10926_v53  ;;  %v3116_v6 = vsel %vm893_vm2, %v3106_v47, %v3115_v0  ;;  %v3120_v47 = vrot.slane %v3118_v51, 4  ;;  %v12159_v3 = vsel %vm979_vm3, %v12155_v54, %v3206_v41  ;;  %v9147_v51 = vcombine.low %v12139_v38, %v3072_v13 }
 0x206   :  { %v3209_v10 = vshrl.u32 %v3116_v6, 16  ;;  %v3212_v44 = vshll.u32 %v3116_v6, 16  ;;  %v10937_v6 = vld [vmem:[#allocation6 + $0x660] ss:$8 sps:$4 sm:$0xff]  }
 0x207   :  { %2510 = vmatmul.mubr.bf16.gmra.mrb[4].mxu0 %v12054_v55  ;;  %v3121_v55 = vshll.u32 %v9152_v28, 16 }
 0x208   :  { %2964 = vmatpush1.bf16.msra.mxu0 %v10924_v56  ;;  %2519 = vmatprep.mubr.bf16.mxu0 %v2249_v26  ;;  %v3211_v16 = vrot.slane %v3209_v10, 3  ;;  %v3214_v60 = vrot.slane %v3212_v44, 4  ;;  %v2632_v26 = vor.u32 %v12113_v61, %v2627_v34  ;;  %v2265_v44 = vsel %vm166_vm0, %v2260_v35, %v12097_v48 }
 0x209   :  { %2965 = vmatprep.subr.bf16.mxu0 %v10929_v36  ;;  %v3123_v9 = vrot.slane %v3121_v55, 5  ;;  %v3217_v36 = vrot.slane %v12136_v25, 3  ;;  %v2266_v55 = vshrl.u32 %v12065_v27, 16  ;;  %v10944_v27 = vld [vmem:[#allocation6 + $0x680] ss:$8 sps:$4 sm:$0xff]  }
 0x20a   :  { %v3215_v53 = vor.u32 %v3214_v60, %v3211_v16  ;;  %v2637_v61 = vsel %vm166_vm0, %v2632_v26, %v2636_v58  ;;  %v10940_v16 = vld [vmem:[#allocation6 + $0x670] ss:$8 sps:$4 sm:$0xff]   ;;  %v10953_v26 = vld [vmem:[#allocation6 + $0x6a4] ss:$8 sps:$4 sm:$0xff]  }
 0x20b   :  { %v3124_v19 = vor.u32 %v3123_v9, %v3120_v47  ;;  %v10946_v47 = vld [vmem:[#allocation6 + $0x684] ss:$8 sps:$4 sm:$0xff]   ;;  %v2719_v9 = vshrl.u32 %v2637_v61, 16 }
 0x20c   :  { %2966 = vmatpush1.bf16.msra.mxu0 %v10927_v22  ;;  %v12164_v12 = vsel %vm979_vm3, %v3202_v52, %v3215_v53  ;;  %v3219_v22 = vor.u32 %v3218_v1, %v3217_v36 }
 0x20d   :  { %2967 = vmatprep.subr.bf16.mxu0 %v10932_v8  ;;  %v3125_v56 = vsel %vm893_vm2, %v3115_v0, %v3124_v19  ;;  %v3132_v8 = vrot.slane %v3130_v57, 5  ;;  %v2721_v36 = vrot.slane %v2719_v9, 2  ;;  %v3537_v9 = vld [vmem:[#allocation11 + $0x20] sm:$0xff] }
 0x20e   :  { %v3222_v31 = vshrl.u32 %v3125_v56, 16  ;;  %v3225_v62 = vshll.u32 %v3125_v56, 16  ;;  %v12180_v29 = vsel %vm979_vm3, %v3206_v41, %v3219_v22  ;;  %v3231_v41 = vshrl.u32 %v9147_v51, 16 }
 0x20f   :  { %2520 = vmatmul.mubr.bf16.gmra.mrb[8].mxu0 %v12059_v42  ;;  %v3127_v42 = vshrl.u32 %v9153_v30, 16 }
 0x210   :  { %2968 = vmatpush1.bf16.msra.mxu0 %v10930_v20  ;;  %2529 = vmatprep.mubr.bf16.mxu0 %v2257_v14  ;;  %v3224_v52 = vrot.slane %v3222_v31, 3  ;;  %v3227_v0 = vrot.slane %v3225_v62, 4  ;;  %v2727_v14 = vshrl.u32 %v2645_v17, 16  ;;  %v10949_v62 = vld [vmem:[#allocation6 + $0x694] ss:$8 sps:$4 sm:$0xff]  }
 0x211   :  { %2969 = vmatprep.subr.bf16.mxu0 %v10935_v7  ;;  %v3129_v28 = vrot.slane %v3127_v42, 4  ;;  %v3234_v7 = vshll.u32 %v9147_v51, 16  ;;  %v2648_v51 = vor.u32 %v12118_v32, %v2644_v15  ;;  %v10961_v15 = vld [vmem:[#allocation6 + $0x6d0] ss:$8 sps:$4 sm:$0xff]  }
 0x212   :  { %v3228_v10 = vor.u32 %v3227_v0, %v3224_v52  ;;  %v2729_v35 = vrot.slane %v2727_v14, 2 }
 0x213   :  { %v3133_v46 = vor.u32 %v3132_v8, %v3129_v28  ;;  %v11337_v28 = vld [vmem:[#allocation3 + $0x30] sm:$0x3] }
 0x214   :  { %2970 = vmatpush1.bf16.msra.mxu0 %v10933_v11  ;;  %v12191_v37 = vsel %vm979_vm3, %v3215_v53, %v3228_v10  ;;  %v2722_v53 = vshll.u32 %v2637_v61, 16  ;;  %v2730_v11 = vshll.u32 %v2645_v17, 16  ;;  %v9074_v8 = vcombine.low %v11337_v28, %v11337_v28  ;;  %v10960_v61 = vld [vmem:[#allocation6 + $0x6c4] ss:$8 sps:$4 sm:$0xff]   ;;  %v2580_v17 = vld [vmem:[#allocation3 + $0x8] sm:$0xc] }
 0x215   :  { %2971 = vmatprep.subr.bf16.mxu0 %v10939_v2  ;;  %v3134_v20 = vsel %vm893_vm2, %v3124_v19, %v3133_v46  ;;  %v3236_v2 = vrot.slane %v3234_v7, 4  ;;  %v2268_v19 = vor.u32 %v2266_v55, %v12097_v48  ;;  %v10947_v48 = vld [vmem:[#allocation6 + $0x690] ss:$8 sps:$4 sm:$0xff]   ;;  %v2652_v55 = vrot.slane %v12120_v45, 1 }
 0x216   :  { %v3240_v60 = vshrl.u32 %v3134_v20, 16  ;;  %v3243_v58 = vshll.u32 %v3134_v20, 16  ;;  %v2724_v1 = vrot.slane %v2722_v53, 3  ;;  %v2732_v50 = vrot.slane %v2730_v11, 3  ;;  %v3535_v46 = vld [vmem:[#allocation11 + $0x10] sm:$0xff]  ;;  %v3534_v20 = vld [vmem:[#allocation11 + $0x8] sm:$0xff] }
 0x217   :  { %2530 = vmatmul.mubr.bf16.gmra.mrb[12].mxu0 %v12069_v21  ;;  %v3233_v21 = vrot.slane %v3231_v41, 3  ;;  %v10963_v41 = vld [vmem:[#allocation6 + $0x6d4] ss:$8 sps:$4 sm:$0xff]   ;;  %v2653_v7 = vsel %vm166_vm0, %v2648_v51, %v2652_v55  ;;  %v3538_v11 = vld [vmem:[#allocation11 + $0x28] sm:$0xff] }
 0x218   :  { %2972 = vmatpush1.bf16.msra.mxu0 %v10937_v6  ;;  %2539 = vmatprep.mubr.bf16.mxu0 %v2265_v44  ;;  %v3242_v13 = vrot.slane %v3240_v60, 3  ;;  %v3245_v30 = vrot.slane %v3243_v58, 4  ;;  %v2725_v52 = vor.u32 %v2724_v1, %v2721_v36  ;;  %v12211_v0 = vor.u32 %v2732_v50, %v2729_v35  ;;  %v10951_v6 = vld [vmem:[#allocation6 + $0x6a0] ss:$8 sps:$4 sm:$0xff]  }
 0x219   :  { %2973 = vmatprep.subr.bf16.mxu0 %v10942_v24  ;;  %v12200_v31 = vor.u32 %v3236_v2, %v3233_v21  ;;  %v10954_v24 = vld [vmem:[#allocation6 + $0x6b0] ss:$8 sps:$4 sm:$0xff]   ;;  %v11580_v44 = vmov 0   ;;  %v9108_v60 = vcombine.low %v2580_v17, %v12083_v4  ;;  %v3536_v58 = vld [vmem:[#allocation11 + $0x18] sm:$0xff]  ;;  %v2743_v21 = vshll.u32 %v2653_v7, 16 }
 0x21a   :  { %v12198_v56 = vor.u32 %v3245_v30, %v3242_v13  ;;  %3926 = vst [vmem:[#allocation2] sm:$0xff] %v11580_v44  ;;  %3927 = vst [vmem:[#allocation2 + $0x58] sm:$0xcc] %v11580_v44  ;;  %10596 = vset.pattern.permute.xlu0 %v11580_v44  ;;  %10597 = vset.pattern.permute.xlu1 %v11580_v44  ;;  %v10966_v13 = vld [vmem:[#allocation6 + $0x6e4] ss:$8 sps:$4 sm:$0xff]   ;;  %v2740_v30 = vshrl.u32 %v2653_v7, 16  ;;  %v2656_v4 = vor.u32 %v12131_v18, %v2652_v55 }
 0x21b   :  { %v12208_v57 = vsel %vm979_vm3, %v3219_v22, %v12200_v31  ;;  %v2734_v22 = vsel %vm2705_vm5, %v2725_v52, %v12211_v0  ;;  %3928 = vst [vmem:[#allocation2 + $0x60] sm:$0xff] %v11580_v44  ;;  %3929 = vst [vmem:[#allocation2 + $0x68] sm:$0x33] %v11580_v44  ;;  %3558 = vperm.xlu1 %10597, %v3535_v46   ;;  %v2707_v53 = vshrl.u32 %v9108_v60, 16  ;;  %v2710_v14 = vshll.u32 %v9108_v60, 16 }
 0x21c   :  { %2974 = vmatpush1.bf16.msra.mxu0 %v10940_v16  ;;  %v12204_v42 = vsel %vm979_vm3, %v3228_v10, %v12198_v56  ;;  %v10956_v10 = vld [vmem:[#allocation6 + $0x6b4] ss:$8 sps:$4 sm:$0xff]   ;;  %v10958_v16 = vld [vmem:[#allocation6 + $0x6c0] ss:$8 sps:$4 sm:$0xff]   ;;  %v2660_v2 = vrot.slane %v12133_v63, 1  ;;  %v2714_v35 = vrot.slane %v12115_v39, 2 }
 0x21d   :  { %2975 = vmatprep.subr.bf16.mxu0 %v10946_v47  ;;  %v2591_v47 = vld [vmem:[#allocation3 + $0x34] sm:$0x1]  ;;  %v2709_v36 = vrot.slane %v2707_v53, 2  ;;  %v2712_v1 = vrot.slane %v2710_v14, 3  ;;  %v2715_v50 = vrot.slane %v12101_v23, 3  ;;  %v2742_v52 = vrot.slane %v2740_v30, 2 }
 0x21e   :  { %v2745_v28 = vrot.slane %v2743_v21, 3  ;;  %v10976_v44 = vld [vmem:[#allocation6 + $0x704] ss:$8 sps:$4 sm:$0xff]   ;;  %v2664_v51 = vor.u32 %v12136_v25, %v2660_v2  ;;  %v10980_v7 = vld [vmem:[#allocation6 + $0x714] ss:$8 sps:$4 sm:$0xff]  }
 0x21f   :  { %2540 = vmatmul.mubr.bf16.gmra.mrb[16].mxu0 %v12073_v49  ;;  %v3533_v49 = vld [vmem:[#allocation11] sm:$0xff]  ;;  %3563 = vperm.xlu1 %10597, %v3536_v58   ;;  %v2735_v58 = vrot.slane %v12118_v32, 2  ;;  %v10978_v14 = vld [vmem:[#allocation6 + $0x710] ss:$8 sps:$4 sm:$0xff]  }
 0x220   :  { %2976 = vmatpush1.bf16.msra.mxu0 %v10944_v27  ;;  %2549 = vmatprep.mubr.bf16.mxu0 %v2268_v19  ;;  %v12224_v27 = vcombine.low %v12139_v38, %v2591_v47  ;;  %v10964_v19 = vld [vmem:[#allocation6 + $0x6e0] ss:$8 sps:$4 sm:$0xff]   ;;  %v2746_v46 = vor.u32 %v2745_v28, %v2742_v52  ;;  %v10989_v52 = vld [vmem:[#allocation6 + $0x744] ss:$8 sps:$4 sm:$0xff]  }
 0x221   :  { %2977 = vmatprep.subr.bf16.mxu0 %v10949_v62  ;;  %3548 = vperm.xlu0 %10596, %v3533_v49   ;;  %v3539_v62 = vld [vmem:[#allocation11 + $0x30] sm:$0xff]  ;;  %v2716_v49 = vor.u32 %v2715_v50, %v2714_v35 }
 0x222   :  { %v2666_v38 = vshll.u32 %v12224_v27, 16  ;;  %v2747_v47 = vsel %vm2705_vm5, %v12211_v0, %v2746_v46  ;;  %v2670_v21 = vshrl.u32 %v12224_v27, 16  ;;  %v11004_v27 = vld [vmem:[#allocation6 + $0x790] ss:$8 sps:$4 sm:$0xff]  }
 0x223   :  { %3573 = vperm.xlu1 %10597, %v3538_v11  }
 0x224   :  { %2978 = vmatpush1.bf16.msra.mxu0 %v10947_v48  ;;  %v3540_v48 = vld [vmem:[#allocation11 + $0x38] sm:$0xff]  ;;  %v2668_v55 = vrot.slane %v2666_v38, 1 }
 0x225   :  { %2979 = vmatprep.subr.bf16.mxu0 %v10953_v26  ;;  %3553 = vperm.xlu0 %10596, %v3534_v20   ;;  %v10970_v26 = vld [vmem:[#allocation6 + $0x6f4] ss:$8 sps:$4 sm:$0xff]  }
 0x226   :  { %v3543_v20 = vld [vmem:[#allocation11 + $0x50] sm:$0xf]  ;;  %v2669_v53 = vsel %vm166_vm0, %v2664_v51, %v2668_v55  ;;  %v2672_v50 = vor.u32 %v2670_v21, %v2668_v55  ;;  %v10996_v51 = vld [vmem:[#allocation6 + $0x764] ss:$8 sps:$4 sm:$0xff]  }
 0x227   :  { %2550 = vmatmul.mubr.bf16.gmra.mrb[20].mxu0 %v9074_v8  ;;  %v2661_v8 = vsel %vm166_vm0, %v2656_v4, %v2660_v2  ;;  %3583 = vperm.xlu1 %10597, %v3540_v48   ;;  %v2766_v30 = vshrl.u32 %v2669_v53, 16  ;;  %v10981_v4 = vld [vmem:[#allocation6 + $0x720] ss:$8 sps:$4 sm:$0xff]   ;;  %v2748_v2 = vrot.slane %v12131_v18, 2  ;;  %v10984_v48 = vld [vmem:[#allocation6 + $0x730] ss:$8 sps:$4 sm:$0xff]  }
 0x228   :  { %2980 = vmatpush1.bf16.msra.mxu0 %v10951_v6  ;;  %2991 = vmatprep.mubr.bf16.mxu0 %v2734_v22  ;;  %v3541_v6 = vld [vmem:[#allocation11 + $0x40] sm:$0xff]  ;;  %v2713_v22 = vor.u32 %v2712_v1, %v2709_v36  ;;  %v2756_v17 = vshll.u32 %v2661_v8, 16 }
 0x229   :  { %2981 = vmatprep.subr.bf16.mxu0 %v10956_v10  ;;  %3568 = vperm.xlu0 %10596, %v3537_v9   ;;  %v10968_v10 = vld [vmem:[#allocation6 + $0x6f0] ss:$8 sps:$4 sm:$0xff]   ;;  %v2768_v1 = vrot.slane %v2766_v30, 2  ;;  %v10987_v18 = vld [vmem:[#allocation6 + $0x740] ss:$8 sps:$4 sm:$0xff]  }
 0x22a   :  { %v2717_v60 = vsel %vm2705_vm5, %v2713_v22, %v2716_v49  ;;  %v2762_v22 = vrot.slane %v12133_v63, 3  ;;  %v2775_v63 = vrot.slane %v2666_v38, 3  ;;  %v11010_v38 = vld [vmem:[#allocation6 + $0x7a4] ss:$8 sps:$4 sm:$0xff]   ;;  %v11014_v30 = vld [vmem:[#allocation6 + $0x7c0] ss:$8 sps:$4 sm:$0xff]  }
 0x22c   :  { %2982 = vmatpush1.bf16.msra.mxu0 %v10954_v24  ;;  %v3542_v24 = vld [vmem:[#allocation11 + $0x48] sm:$0xff] }
 0x22d   :  { %2983 = vmatprep.subr.bf16.mxu0 %v10960_v61  ;;  %3578 = vperm.xlu0 %10596, %v3539_v62   ;;  %v2753_v61 = vshrl.u32 %v2661_v8, 16  ;;  %v10986_v62 = vld [vmem:[#allocation6 + $0x734] ss:$8 sps:$4 sm:$0xff]   ;;  %v2779_v8 = vshrl.u32 %v2672_v50, 16 }
 0x22e   :  { %3593 = vperm.xlu1 %10597, %v3542_v24  }
 0x22f   :  { %v2755_v9 = vrot.slane %v2753_v61, 2  ;;  %v10990_v61 = vld [vmem:[#allocation6 + $0x750] ss:$8 sps:$4 sm:$0xff]  }
 0x230   :  { %2984 = vmatpush1.bf16.msra.mxu0 %v10958_v16  ;;  %v10974_v16 = vld [vmem:[#allocation6 + $0x700] ss:$8 sps:$4 sm:$0xff]  }
 0x231   :  { %2985 = vmatprep.subr.bf16.mxu0 %v10963_v41  ;;  %3588 = vperm.xlu0 %10596, %v3541_v6   ;;  %v2736_v41 = vrot.slane %v12105_v59, 3  ;;  %v2769_v59 = vshll.u32 %v2669_v53, 16  ;;  %v2782_v6 = vshll.u32 %v2672_v50, 16  ;;  %v11006_v53 = vld [vmem:[#allocation6 + $0x794] ss:$8 sps:$4 sm:$0xff]  }
 0x233   :  { %v2737_v11 = vor.u32 %v2736_v41, %v2735_v58  ;;  %v2771_v35 = vrot.slane %v2769_v59, 3  ;;  %v10997_v41 = vld [vmem:[#allocation6 + $0x770] ss:$8 sps:$4 sm:$0xff]   ;;  %v11019_v59 = vld [vmem:[#allocation6 + $0x7d4] ss:$8 sps:$4 sm:$0xff]  }
 0x234   :  { %2986 = vmatpush1.bf16.msra.mxu0 %v10961_v15  ;;  %v2758_v15 = vrot.slane %v2756_v17, 3 }
 0x235   :  { %2987 = vmatprep.subr.bf16.mxu0 %v10966_v13  ;;  %3598 = vperm.xlu0 %10596, %v3543_v20   ;;  %v10983_v13 = vld [vmem:[#allocation6 + $0x724] ss:$8 sps:$4 sm:$0xff]   ;;  %v2738_v0 = vsel %vm2705_vm5, %v2716_v49, %v2737_v11  ;;  %v2772_v28 = vor.u32 %v2771_v35, %v2768_v1  ;;  %v10992_v49 = vld [vmem:[#allocation6 + $0x754] ss:$8 sps:$4 sm:$0xff]   ;;  %v10994_v20 = vld [vmem:[#allocation6 + $0x760] ss:$8 sps:$4 sm:$0xff]  }
 0x236   :  { %v2759_v32 = vor.u32 %v2758_v15, %v2755_v9  ;;  %v11001_v9 = vld [vmem:[#allocation6 + $0x780] ss:$8 sps:$4 sm:$0xff]   ;;  %v11023_v1 = vld [vmem:[#allocation6 + $0x7f0] ss:$8 sps:$4 sm:$0xff]  }
 0x238   :  { %2988 = vmatpush1.bf16.msra.mxu0 %v10964_v19  ;;  %v2749_v19 = vrot.slane %v12120_v45, 3  ;;  %v2760_v36 = vsel %vm2705_vm5, %v2746_v46, %v2759_v32  ;;  %v2773_v24 = vsel %vm2705_vm5, %v2759_v32, %v2772_v28  ;;  %v2784_v46 = vrot.slane %v2782_v6, 3  ;;  %v11016_v32 = vld [vmem:[#allocation6 + $0x7c4] ss:$8 sps:$4 sm:$0xff]   ;;  %v11050_v6 = vld [vmem:[#allocation12 + $0xa0] sm:$0xff]  }
 0x239   :  { %2989 = vmatprep.subr.bf16.mxu0 %v10970_v26 }
 0x23a   :  { %v2750_v26 = vor.u32 %v2749_v19, %v2748_v2  ;;  %v3167_v2 = vrot.slane %v2627_v34, 3  ;;  %v3168_v19 = vrot.slane %v2629_v33, 4  ;;  %v11033_v34 = vld [vmem:[#allocation12 + $0xc0] sm:$0xff]  }
 0x23b   :  { %v11035_v33 = vld [vmem:[#allocation12 + $0x5c0] sm:$0xff]   ;;  %9567 = vmatprep.subr.bf16.mxu1 %v11033_v34 }
 0x23c   :  { %2990 = vmatpush1.bf16.msra.mxu0 %v10968_v10  ;;  %v2751_v45 = vsel %vm2705_vm5, %v2737_v11, %v2750_v26  ;;  %v2761_v10 = vrot.slane %v12136_v25, 2  ;;  %v11013_v11 = vld [vmem:[#allocation6 + $0x7b4] ss:$8 sps:$4 sm:$0xff]   ;;  %v3169_v35 = vor.u32 %v3168_v19, %v3167_v2 }
 0x23d   :  { %3420 = vmatprep.subr.bf16.mxu0 %v10976_v44  ;;  %v2781_v44 = vrot.slane %v2779_v8, 2  ;;  %v11051_v8 = vld [vmem:[#allocation12 + $0x5e0] sm:$0xff]  }
 0x23e   :  { %v2763_v17 = vor.u32 %v2762_v22, %v2761_v10  ;;  %v11055_v10 = vld [vmem:[#allocation12 + $0x5e8] sm:$0xff]  }
 0x23f   :  { %2992 = vmatmul.mubr.bf16.vlgmr.msra.gmra.mrb[0].mxu0 %v2717_v60  ;;  %v2785_v55 = vor.u32 %v2784_v46, %v2781_v44  ;;  %v10999_v60 = vld [vmem:[#allocation6 + $0x774] ss:$8 sps:$4 sm:$0xff]   ;;  %v11054_v22 = vld [vmem:[#allocation12 + $0xa8] sm:$0xff]   ;;  %v11058_v44 = vld [vmem:[#allocation12 + $0xb0] sm:$0xff]  }
 0x240   :  { %3421 = vmatpush1.bf16.msra.mxu0 %v10974_v16  ;;  %3001 = vmatprep.mubr.bf16.mxu0 %v2747_v47  ;;  %v2764_v25 = vsel %vm2705_vm5, %v2750_v26, %v2763_v17  ;;  %v2774_v16 = vrot.slane %v2670_v21, 2  ;;  %v11003_v47 = vld [vmem:[#allocation6 + $0x784] ss:$8 sps:$4 sm:$0xff]   ;;  %v11017_v21 = vld [vmem:[#allocation6 + $0x7d0] ss:$8 sps:$4 sm:$0xff]  }
 0x241   :  { %3422 = vmatprep.subr.bf16.mxu0 %v10980_v7  ;;  %v2786_v58 = vsel %vm2705_vm5, %v2772_v28, %v2785_v55  ;;  %v11046_v26 = vld [vmem:[#allocation12 + $0x98] sm:$0xff]   ;;  %v11049_v28 = vld [vmem:[#allocation12 + $0xe0] sm:$0xff]   ;;  %v11059_v46 = vld [vmem:[#allocation12 + $0x5f0] sm:$0xff]  }
 0x242   :  { %v2776_v7 = vor.u32 %v2775_v63, %v2774_v16 }
 0x244   :  { %3423 = vmatpush1.bf16.msra.mxu0 %v10978_v14  ;;  %v2777_v15 = vsel %vm2705_vm5, %v2763_v17, %v2776_v7  ;;  %v11008_v14 = vld [vmem:[#allocation6 + $0x7a0] ss:$8 sps:$4 sm:$0xff]   ;;  %v11061_v17 = vld [vmem:[#allocation12 + $0xf8] sm:$0xff]  }
 0x245   :  { %3424 = vmatprep.subr.bf16.mxu0 %v10983_v13  ;;  %v11011_v13 = vld [vmem:[#allocation6 + $0x7b0] ss:$8 sps:$4 sm:$0xff]  }
 0x247   :  { %3002 = vmatmul.mubr.bf16.gmra.mrb[4].mxu0 %v2738_v0  ;;  %v11020_v0 = vld [vmem:[#allocation6 + $0x7e0] ss:$8 sps:$4 sm:$0xff]  }
 0x248   :  { %3425 = vmatpush1.bf16.msra.mxu0 %v10981_v4  ;;  %3011 = vmatprep.mubr.bf16.mxu0 %v2760_v36  ;;  %v11022_v4 = vld [vmem:[#allocation6 + $0x7e4] ss:$8 sps:$4 sm:$0xff]   ;;  %v11025_v36 = vld [vmem:[#allocation6 + $0x7f4] ss:$8 sps:$4 sm:$0xff]  }
 0x249   :  { %3426 = vmatprep.subr.bf16.mxu0 %v10986_v62  ;;  %v3171_v62 = vrot.slane %v12101_v23, 4  ;;  %v11034_v23 = vld [vmem:[#allocation12 + $0x80] sm:$0xff]  }
 0x24a   :  { %9568 = vmatpush3.bf16.msra.mxu1 %v11034_v23 }
 0x24c   :  { %3427 = vmatpush1.bf16.msra.mxu0 %v10984_v48 }
 0x24d   :  { %3428 = vmatprep.subr.bf16.mxu0 %v10989_v52  ;;  %v11048_v52 = vld [vmem:[#allocation12 + $0x598] sm:$0xff]  }
 0x24f   :  { %3012 = vmatmul.mubr.bf16.gmra.mrb[8].mxu0 %v2751_v45  ;;  %v11053_v45 = vld [vmem:[#allocation12 + $0xe8] sm:$0xff]  }
 0x250   :  { %3429 = vmatpush1.bf16.msra.mxu0 %v10987_v18  ;;  %3021 = vmatprep.mubr.bf16.mxu0 %v2773_v24  ;;  %v11052_v18 = vld [vmem:[#allocation12 + $0x5a0] sm:$0xff]   ;;  %v11057_v24 = vld [vmem:[#allocation12 + $0xf0] sm:$0xff]  }
 0x251   :  { %3430 = vmatprep.subr.bf16.mxu0 %v10992_v49  ;;  %v11056_v49 = vld [vmem:[#allocation12 + $0x5a8] sm:$0xff]  }
 0x254   :  { %3431 = vmatpush1.bf16.msra.mxu0 %v10990_v61  ;;  %v11060_v61 = vld [vmem:[#allocation12 + $0x5b0] sm:$0xff]  }
 0x255   :  { %3432 = vmatprep.subr.bf16.mxu0 %v10996_v51  ;;  %v11063_v51 = vld [vmem:[#allocation12 + $0x5f8] sm:$0xff]  }
 0x257   :  { %3022 = vmatmul.mubr.bf16.gmra.mrb[12].mxu0 %v2764_v25  ;;  %v11065_v25 = vld [vmem:[#allocation12 + $0x40] sm:$0xff]  }
 0x258   :  { %3433 = vmatpush1.bf16.msra.mxu0 %v10994_v20  ;;  %3031 = vmatprep.mubr.bf16.mxu0 %v2786_v58  ;;  %v11064_v20 = vld [vmem:[#allocation12 + $0x5b8] sm:$0xff]  }
 0x259   :  { %3434 = vmatprep.subr.bf16.mxu0 %v10999_v60 }
 0x25c   :  { %3435 = vmatpush1.bf16.msra.mxu0 %v10997_v41 }
 0x25d   :  { %3436 = vmatprep.subr.bf16.mxu0 %v11003_v47 }
 0x25f   :  { %3032 = vmatmul.mubr.bf16.gmra.mrb[16].mxu0 %v2777_v15 }
 0x260   :  { %3437 = vmatpush1.bf16.msra.mxu0 %v11001_v9  ;;  %3041 = vmatprep.mubr.bf16.mxu0 %v2785_v55  ;;  %v11062_v55 = vld [vmem:[#allocation12 + $0xb8] sm:$0xff]  }
 0x261   :  { %3438 = vmatprep.subr.bf16.mxu0 %v11006_v53 }
 0x264   :  { %3439 = vmatpush1.bf16.msra.mxu0 %v11004_v27 }
 0x265   :  { %3440 = vmatprep.subr.bf16.mxu0 %v11010_v38 }
 0x267   :  { %3042 = vmatmul.mubr.bf16.gmra.mrb[20].mxu0 %v2776_v7 }
 0x268   :  { %3441 = vmatpush1.bf16.msra.mxu0 %v11008_v14  ;;  %3452 = vmatprep.mubr.bf16.mxu0 %v12125_v5  ;;  %v3170_v5 = vrot.slane %v12115_v39, 3  ;;  %v11036_v39 = vld [vmem:[#allocation12 + $0x580] sm:$0xff]  }
 0x269   :  { %3442 = vmatprep.subr.bf16.mxu0 %v11013_v11 }
 0x26a   :  { %v3172_v50 = vor.u32 %v3171_v62, %v3170_v5 }
 0x26c   :  { %3443 = vmatpush1.bf16.msra.mxu0 %v11011_v13  ;;  %v3173_v48 = vsel %vm979_vm3, %v3169_v35, %v3172_v50  ;;  %v3194_v43 = vsel %vm979_vm3, %v3172_v50, %v12155_v54  ;;  %v11039_v54 = vld [vmem:[#allocation12 + $0x5c8] sm:$0xff]  }
 0x26d   :  { %3444 = vmatprep.subr.bf16.mxu0 %v11016_v32 }
 0x270   :  { %3445 = vmatpush1.bf16.msra.mxu0 %v11014_v30 }
 0x271   :  { %3446 = vmatprep.subr.bf16.mxu0 %v11019_v59 }
 0x274   :  { %3447 = vmatpush1.bf16.msra.mxu0 %v11017_v21 }
 0x275   :  { %3448 = vmatprep.subr.bf16.mxu0 %v11022_v4 }
 0x278   :  { %3449 = vmatpush1.bf16.msra.mxu0 %v11020_v0 }
 0x279   :  { %3450 = vmatprep.subr.bf16.mxu0 %v11025_v36 }
 0x27c   :  { %3451 = vmatpush1.bf16.msra.mxu0 %v11023_v1 }
 0x27d   :  { %10139 = vmatprep.subr.bf16.mxu0 %v11035_v33 }
 0x27f   :  { %3453 = vmatmul.mubr.bf16.vlgmr.msra.gmra.mrb[0].mxu0 %v3173_v48 }
 0x280   :  { %3462 = vmatprep.mubr.bf16.mxu0 %v12147_v40  ;;  %10140 = vmatpush3.bf16.msra.mxu0 %v11036_v39  ;;  %v11037_v40 = vld [vmem:[#allocation12 + $0xc8] sm:$0xff]  }
 0x281   :  { %9569 = vmatprep.subr.bf16.mxu1 %v11037_v40  ;;  %10141 = vmatprep.subr.bf16.mxu0 %v11039_v54 }
 0x287   :  { %3463 = vmatmul.mubr.bf16.gmra.mrb[4].mxu0 %v3194_v43 }
 0x288   :  { %3472 = vmatprep.mubr.bf16.mxu0 %v12164_v12  ;;  %v11040_v12 = vld [vmem:[#allocation12 + $0x588] sm:$0xff]  }
 0x289   :  { %10142 = vmatpush3.bf16.msra.mxu0 %v11040_v12  ;;  %v11071_v12 = vld [vmem:[#allocation12 + $0x6c0] sm:$0xff]  }
 0x28f   :  { %3473 = vmatmul.mubr.bf16.gmra.mrb[8].mxu0 %v12159_v3  ;;  %v11038_v3 = vld [vmem:[#allocation12 + $0x88] sm:$0xff]  }
 0x290   :  { %3482 = vmatprep.mubr.bf16.mxu0 %v12191_v37  ;;  %9570 = vmatpush3.bf16.msra.mxu1 %v11038_v3  ;;  %v11043_v37 = vld [vmem:[#allocation12 + $0x5d0] sm:$0xff]  }
 0x291   :  { %10143 = vmatprep.subr.bf16.mxu0 %v11043_v37 }
 0x297   :  { %3483 = vmatmul.mubr.bf16.gmra.mrb[12].mxu0 %v12180_v29  ;;  %v11041_v29 = vld [vmem:[#allocation12 + $0xd0] sm:$0xff]  }
 0x298   :  { %3492 = vmatprep.mubr.bf16.mxu0 %v12204_v42  ;;  %9571 = vmatprep.subr.bf16.mxu1 %v11041_v29  ;;  %v11045_v42 = vld [vmem:[#allocation12 + $0xd8] sm:$0xff]  }
 0x29a   :  { %v12286_v9 = vpop.permute.xlu1 %3558 }
 0x29e   :  { %v12300_v0 = vpop.permute.xlu1 %3563 }
 0x29f   :  { %3493 = vmatmul.mubr.bf16.gmra.mrb[16].mxu0 %v12208_v57  ;;  %v11047_v57 = vld [vmem:[#allocation12 + $0x5d8] sm:$0xff]  }
 0x2a0   :  { %3502 = vmatprep.mubr.bf16.mxu0 %v12198_v56  ;;  %v11042_v56 = vld [vmem:[#allocation12 + $0x90] sm:$0xff]   ;;  %v12272_v16 = vpop.permute.xlu0 %3548 }
 0x2a1   :  { %9572 = vmatpush3.bf16.msra.mxu1 %v11042_v56 }
 0x2a2   :  { %9573 = vmatprep.subr.bf16.mxu1 %v11045_v42 }
 0x2a4   :  { %v12276_v60 = vpop.permute.xlu0 %3553 }
 0x2a5   :  { %9574 = vmatpush3.bf16.msra.mxu1 %v11046_v26  ;;  %v12328_v26 = vpop.permute.xlu1 %3573 }
 0x2a6   :  { %9575 = vmatprep.subr.bf16.mxu1 %v11049_v28 }
 0x2a7   :  { %3503 = vmatmul.mubr.bf16.gmra.mrb[20].mxu0 %v12200_v31  ;;  %v11044_v31 = vld [vmem:[#allocation12 + $0x590] sm:$0xff]  }
 0x2a8   :  { %10144 = vmatpush3.bf16.msra.mxu0 %v11044_v31  ;;  %v12320_v37 = vpop.permute.xlu0 %3568 }
 0x2a9   :  { %10145 = vmatprep.subr.bf16.mxu0 %v11047_v57  ;;  %9576 = vmatpush3.bf16.msra.mxu1 %v11050_v6 }
 0x2aa   :  { %9577 = vmatprep.subr.bf16.mxu1 %v11053_v45 }
 0x2ac   :  { %10146 = vmatpush3.bf16.msra.mxu0 %v11048_v52 }
 0x2ad   :  { %10147 = vmatprep.subr.bf16.mxu0 %v11051_v8  ;;  %9578 = vmatpush3.bf16.msra.mxu1 %v11054_v22 }
 0x2ae   :  { %9579 = vmatprep.subr.bf16.mxu1 %v11057_v24 }
 0x2b0   :  { %10148 = vmatpush3.bf16.msra.mxu0 %v11052_v18 }
 0x2b1   :  { %10149 = vmatprep.subr.bf16.mxu0 %v11055_v10  ;;  %9580 = vmatpush3.bf16.msra.mxu1 %v11058_v44 }
 0x2b2   :  { %9581 = vmatprep.subr.bf16.mxu1 %v11061_v17 }
 0x2b4   :  { %10150 = vmatpush3.bf16.msra.mxu0 %v11056_v49 }
 0x2b5   :  { %10151 = vmatprep.subr.bf16.mxu0 %v11059_v46  ;;  %9582 = vmatpush3.bf16.msra.mxu1 %v11062_v55 }
 0x2b6   :  { %9619 = vmatprep.subr.bf16.mxu1 %v11065_v25 }
 0x2b8   :  { %10152 = vmatpush3.bf16.msra.mxu0 %v11060_v61 }
 0x2b9   :  { %10153 = vmatprep.subr.bf16.mxu0 %v11063_v51 }
 0x2bc   :  { %10154 = vmatpush3.bf16.msra.mxu0 %v11064_v20  ;;  %v12344_v20 = vpop.permute.xlu0 %3578 }
 0x2bd   :  { %10243 = vmatprep.subr.bf16.mxu0 %v11071_v12 }
 0x352   :  { %v12274_v63 = vpop.f32.mrb[0].mxu0 }
 0x353   :  { %v3601_v58 = vmul.f32 %v12272_v16, %v12274_v63  ;;  %v12280_v41 = vpop.f32.mrb[1].mxu0 }
 0x354   :  { %v3602_v7 = vmul.f32 %v12272_v16, %v12280_v41  ;;  %v12284_v47 = vpop.f32.mrb[2].mxu0 }
 0x355   :  { %v3603_v15 = vmul.f32 %v12276_v60, %v12284_v47  ;;  %v12290_v53 = vpop.f32.mrb[3].mxu0  ;;  %v3660_v38 = vmul.f32 %v3601_v58, %v12274_v63 }
 0x356   :  { %v3604_v27 = vmul.f32 %v12276_v60, %v12290_v53  ;;  %v3661_v13 = vmul.f32 %v3602_v7, %v12280_v41 }
 0x357   :  { %v3623_v14 = vadd.f32 %v3603_v15, %v3601_v58  ;;  %v3662_v11 = vmul.f32 %v3603_v15, %v12284_v47 }
 0x358   :  { %v3641_v32 = vadd.f32 %v3604_v27, %v3602_v7  ;;  %v3663_v30 = vmul.f32 %v3604_v27, %v12290_v53  ;;  %v12352_v27 = vpop.permute.xlu1 %3583 }
 0x359   :  { %v3682_v59 = vadd.f32 %v3662_v11, %v3660_v38 }
 0x35a   :  { %v3699_v21 = vadd.f32 %v3663_v30, %v3661_v13  ;;  %v12298_v4 = vpop.f32.mrb[4].mxu0 }
 0x35b   :  { %v3605_v2 = vmul.f32 %v12286_v9, %v12298_v4  ;;  %v12304_v19 = vpop.f32.mrb[5].mxu0 }
 0x35c   :  { %v3606_v5 = vmul.f32 %v12286_v9, %v12304_v19  ;;  %v12308_v62 = vpop.f32.mrb[6].mxu0 }
 0x35d   :  { %v3624_v36 = vadd.f32 %v3623_v14, %v3605_v2  ;;  %v3664_v1 = vmul.f32 %v3605_v2, %v12298_v4  ;;  %v3607_v35 = vmul.f32 %v12300_v0, %v12308_v62  ;;  %v12313_v50 = vpop.f32.mrb[7].mxu0 }
 0x35e   :  { %v3642_v48 = vadd.f32 %v3641_v32, %v3606_v5  ;;  %v3665_v43 = vmul.f32 %v3606_v5, %v12304_v19  ;;  %v3608_v34 = vmul.f32 %v12300_v0, %v12313_v50 }
 0x35f   :  { %v3683_v33 = vadd.f32 %v3682_v59, %v3664_v1  ;;  %v3625_v23 = vadd.f32 %v3624_v36, %v3607_v35  ;;  %v3666_v39 = vmul.f32 %v3607_v35, %v12308_v62 }
 0x360   :  { %v3700_v40 = vadd.f32 %v3699_v21, %v3665_v43  ;;  %v3643_v54 = vadd.f32 %v3642_v48, %v3608_v34  ;;  %v3667_v3 = vmul.f32 %v3608_v34, %v12313_v50 }
 0x361   :  { %v3684_v29 = vadd.f32 %v3683_v33, %v3666_v39  ;;  %v12368_v33 = vpop.permute.xlu0 %3588 }
 0x362   :  { %v3701_v56 = vadd.f32 %v3700_v40, %v3667_v3  ;;  %v12322_v31 = vpop.f32.mrb[8].mxu0  ;;  %v12376_v3 = vpop.permute.xlu1 %3593 }
 0x363   :  { %v3609_v42 = vmul.f32 %v12320_v37, %v12322_v31  ;;  %v12326_v57 = vpop.f32.mrb[9].mxu0 }
 0x364   :  { %v3610_v52 = vmul.f32 %v12320_v37, %v12326_v57  ;;  %v12332_v28 = vpop.f32.mrb[10].mxu0 }
 0x365   :  { %v3626_v8 = vadd.f32 %v3625_v23, %v3609_v42  ;;  %v3668_v6 = vmul.f32 %v3609_v42, %v12322_v31  ;;  %v3611_v18 = vmul.f32 %v12328_v26, %v12332_v28  ;;  %v12337_v45 = vpop.f32.mrb[11].mxu0 }
 0x366   :  { %v3644_v10 = vadd.f32 %v3643_v54, %v3610_v52  ;;  %v3669_v22 = vmul.f32 %v3610_v52, %v12326_v57  ;;  %v3612_v49 = vmul.f32 %v12328_v26, %v12337_v45 }
 0x367   :  { %v3685_v24 = vadd.f32 %v3684_v29, %v3668_v6  ;;  %v3627_v44 = vadd.f32 %v3626_v8, %v3611_v18  ;;  %v3670_v46 = vmul.f32 %v3611_v18, %v12332_v28 }
 0x368   :  { %v3702_v61 = vadd.f32 %v3701_v56, %v3669_v22  ;;  %v3645_v17 = vadd.f32 %v3644_v10, %v3612_v49  ;;  %v3671_v51 = vmul.f32 %v3612_v49, %v12337_v45 }
 0x369   :  { %v3686_v55 = vadd.f32 %v3685_v24, %v3670_v46 }
 0x36a   :  { %v3703_v25 = vadd.f32 %v3702_v61, %v3671_v51  ;;  %v12346_v58 = vpop.f32.mrb[12].mxu0  ;;  %v12392_v51 = vpop.permute.xlu0 %3598 }
 0x36b   :  { %v3613_v7 = vmul.f32 %v12344_v20, %v12346_v58  ;;  %v12350_v15 = vpop.f32.mrb[13].mxu0 }
 0x36c   :  { %v3614_v38 = vmul.f32 %v12344_v20, %v12350_v15  ;;  %v12356_v14 = vpop.f32.mrb[14].mxu0 }
 0x36d   :  { %v3628_v11 = vadd.f32 %v3627_v44, %v3613_v7  ;;  %v3672_v13 = vmul.f32 %v3613_v7, %v12346_v58  ;;  %v3615_v32 = vmul.f32 %v12352_v27, %v12356_v14  ;;  %v12361_v30 = vpop.f32.mrb[15].mxu0 }
 0x36e   :  { %v3646_v59 = vadd.f32 %v3645_v17, %v3614_v38  ;;  %v3673_v21 = vmul.f32 %v3614_v38, %v12350_v15  ;;  %v3616_v2 = vmul.f32 %v12352_v27, %v12361_v30 }
 0x36f   :  { %v3687_v5 = vadd.f32 %v3686_v55, %v3672_v13  ;;  %v3629_v36 = vadd.f32 %v3628_v11, %v3615_v32  ;;  %v3674_v1 = vmul.f32 %v3615_v32, %v12356_v14 }
 0x370   :  { %v3704_v35 = vadd.f32 %v3703_v25, %v3673_v21  ;;  %v3647_v48 = vadd.f32 %v3646_v59, %v3616_v2  ;;  %v3675_v43 = vmul.f32 %v3616_v2, %v12361_v30 }
 0x371   :  { %v3688_v34 = vadd.f32 %v3687_v5, %v3674_v1 }
 0x372   :  { %v3705_v23 = vadd.f32 %v3704_v35, %v3675_v43  ;;  %v12370_v39 = vpop.f32.mrb[16].mxu0 }
 0x373   :  { %v3617_v40 = vmul.f32 %v12368_v33, %v12370_v39  ;;  %v12374_v54 = vpop.f32.mrb[17].mxu0 }
 0x374   :  { %v3618_v12 = vmul.f32 %v12368_v33, %v12374_v54  ;;  %v12380_v29 = vpop.f32.mrb[18].mxu0 }
 0x375   :  { %v3630_v56 = vadd.f32 %v3629_v36, %v3617_v40  ;;  %v3676_v42 = vmul.f32 %v3617_v40, %v12370_v39  ;;  %v3619_v52 = vmul.f32 %v12376_v3, %v12380_v29  ;;  %v12385_v8 = vpop.f32.mrb[19].mxu0 }
 0x376   :  { %v3648_v6 = vadd.f32 %v3647_v48, %v3618_v12  ;;  %v3677_v18 = vmul.f32 %v3618_v12, %v12374_v54  ;;  %v3620_v10 = vmul.f32 %v12376_v3, %v12385_v8 }
 0x377   :  { %v3689_v22 = vadd.f32 %v3688_v34, %v3676_v42  ;;  %v3631_v49 = vadd.f32 %v3630_v56, %v3619_v52  ;;  %v3678_v24 = vmul.f32 %v3619_v52, %v12380_v29 }
 0x378   :  { %v3706_v44 = vadd.f32 %v3705_v23, %v3677_v18  ;;  %v3649_v46 = vadd.f32 %v3648_v6, %v3620_v10  ;;  %v3679_v61 = vmul.f32 %v3620_v10, %v12385_v8 }
 0x379   :  { %v3690_v17 = vadd.f32 %v3689_v22, %v3678_v24 }
 0x37a   :  { %v3707_v55 = vadd.f32 %v3706_v44, %v3679_v61  ;;  %v12394_v25 = vpop.f32.mrb[20].mxu0 }
 0x37b   :  { %v3621_v7 = vmul.f32 %v12392_v51, %v12394_v25  ;;  %v12398_v38 = vpop.f32.mrb[21].mxu0 }
 0x37c   :  { %v3622_v11 = vmul.f32 %v12392_v51, %v12398_v38  ;;  %v3508_v13 = vpop.f32.mrb[22].mxu0 }
 0x37d   :  { %v3633_v32 = vsel %vm3632_vm6, %v3621_v7, 0.0  ;;  %v3680_v59 = vmul.f32 %v3621_v7, %v12394_v25  ;;  %v3509_v21 = vpop.f32.mrb[23].mxu0 }
 0x37e   :  { %v3634_v2 = vadd.f32 %v3633_v32, %v3631_v49  ;;  %v3650_v5 = vsel %vm3632_vm6, %v3622_v11, 0.0  ;;  %v3681_v36 = vmul.f32 %v3622_v11, %v12398_v38 }
 0x37f   :  { %v3691_v1 = vsel %vm3632_vm6, %v3680_v59, 0.0  ;;  %v3651_v35 = vadd.f32 %v3650_v5, %v3649_v46  ;;  %v3773_v5 = vlaneseq }
 0x380   :  { %v3635_v48 = vrot.slane %v3634_v2, 4  ;;  %v3692_v43 = vadd.f32 %v3691_v1, %v3690_v17  ;;  %v3708_v34 = vsel %vm3632_vm6, %v3681_v36, 0.0 }
 0x381   :  { %v3652_v23 = vrot.slane %v3651_v35, 4  ;;  %v3709_v40 = vadd.f32 %v3708_v34, %v3707_v55 }
 0x382   :  { %v3636_v12 = vadd.f32 %v3635_v48, %v3634_v2  ;;  %v3693_v56 = vrot.slane %v3692_v43, 4 }
 0x383   :  { %v3653_v42 = vadd.f32 %v3652_v23, %v3651_v35  ;;  %v3710_v52 = vrot.slane %v3709_v40, 4 }
 0x384   :  { %v3637_v6 = vrot.slane %v3636_v12, 2  ;;  %v3694_v18 = vadd.f32 %v3693_v56, %v3692_v43 }
 0x385   :  { %v3654_v10 = vrot.slane %v3653_v42, 2  ;;  %v3711_v22 = vadd.f32 %v3710_v52, %v3709_v40 }
 0x386   :  { %v3638_v24 = vadd.f32 %v3637_v6, %v3636_v12  ;;  %v3695_v49 = vrot.slane %v3694_v18, 2 }
 0x387   :  { %v3655_v44 = vadd.f32 %v3654_v10, %v3653_v42  ;;  %v3712_v61 = vrot.slane %v3711_v22, 2 }
 0x388   :  { %v3639_v7 = vrot.slane %v3638_v24, 1  ;;  %v3696_v11 = vadd.f32 %v3695_v49, %v3694_v18 }
 0x389   :  { %v3656_v46 = vrot.slane %v3655_v44, 1  ;;  %v3713_v13 = vadd.f32 %v3712_v61, %v3711_v22 }
 0x38a   :  { %v3640_v17 = vadd.f32 %v3639_v7, %v3638_v24  ;;  %v3697_v32 = vrot.slane %v3696_v11, 1 }
 0x38b   :  { %v3657_v59 = vadd.f32 %v3656_v46, %v3655_v44  ;;  %v3714_v55 = vrot.slane %v3713_v13, 1 }
 0x38c   :  { %v12404_v21 = vmul.f32 0.055555556, %v3640_v17  ;;  %v3698_v2 = vadd.f32 %v3697_v32, %v3696_v11 }
 0x38d   :  { %v12406_v36 = vmul.f32 0.055555556, %v3657_v59  ;;  %v3715_v1 = vadd.f32 %v3714_v55, %v3713_v13  ;;  %v3774_v59 = vshrl.u32 %v3773_v5, 7 }
 0x38e   :  { %v3716_v35 = vmul.f32 0.055555556, %v3698_v2  ;;  %v3718_v48 = vmul.f32 %v12404_v21, %v12404_v21  ;;  %v3744_v43 = vsub.f32 %v12394_v25, %v12404_v21  ;;  %v3724_v34 = vsub.f32 %v12274_v63, %v12404_v21  ;;  %v3544_v2 = vld [vmem:[#allocation8] sm:$0x3] }
 0x38f   :  { %v3717_v23 = vmul.f32 0.055555556, %v3715_v1  ;;  %v3719_v40 = vmul.f32 %v12406_v36, %v12406_v36  ;;  %v3745_v12 = vsub.f32 %v12398_v38, %v12406_v36  ;;  %v3725_v56 = vsub.f32 %v12280_v41, %v12406_v36 }
 0x390   :  { %v3720_v42 = vsub.f32 %v3716_v35, %v3718_v48  ;;  %v3726_v52 = vsub.f32 %v12284_v47, %v12404_v21  ;;  %v3727_v25 = vsub.f32 %v12290_v53, %v12406_v36  ;;  %v3728_v63 = vsub.f32 %v12298_v4, %v12404_v21  ;;  %v3545_v35 = vld [vmem:[#allocation9] sm:$0x3] }
 0x391   :  { %v3721_v6 = vsub.f32 %v3717_v23, %v3719_v40  ;;  %v3729_v18 = vsub.f32 %v12304_v19, %v12406_v36  ;;  %v3730_v38 = vsub.f32 %v12308_v62, %v12404_v21  ;;  %v3731_v41 = vsub.f32 %v12313_v50, %v12406_v36 }
 0x392   :  { %v3722_v10 = vmax.f32 %v3720_v42, 0.0  ;;  %v3732_v47 = vsub.f32 %v12322_v31, %v12404_v21  ;;  %v3733_v53 = vsub.f32 %v12326_v57, %v12406_v36  ;;  %v3734_v4 = vsub.f32 %v12332_v28, %v12404_v21  ;;  %v12539_v57 = vld [vmem:[#allocation2] sm:$0xff] }
 0x393   :  { %v3723_v22 = vmax.f32 %v3721_v6, 0.0  ;;  %v3735_v19 = vsub.f32 %v12337_v45, %v12406_v36  ;;  %v3736_v24 = vsub.f32 %v12346_v58, %v12404_v21  ;;  %v3737_v49 = vsub.f32 %v12350_v15, %v12406_v36  ;;  %v11066_v58 = vld [vmem:[#allocation12] sm:$0xff]  }
 0x394   :  { %v3746_v44 = vadd.f32 1e-05, %v3722_v10  ;;  %v3775_v55 = vsub.s32 0, %v3774_v59  ;;  %v3779_v1 = vsub.s32 1, %v3774_v59 }
 0x395   :  { %v3747_v46 = vadd.f32 1e-05, %v3723_v22 }
 0x396   :  { %11333 = vrsqrt.f32 %v3746_v44  ;;  %v12456_v48 = vrot.slane %v3544_v2, %v3775_v55  ;;  %v12460_v40 = vrot.slane %v3545_v35, %v3775_v55  ;;  %v12462_v42 = vrot.slane %v3544_v2, %v3779_v1 }
 0x397   :  { %11335 = vrsqrt.f32 %v3747_v46  ;;  %v12464_v6 = vrot.slane %v3545_v35, %v3779_v1 }
 0x3a0   :  { %v12458_v23 = vpop.eup %11333 }
 0x3a1   :  { %v12466_v10 = vpop.eup %11335  ;;  %v3770_v22 = vmul.f32 %v12458_v23, %v3744_v43  ;;  %v3750_v5 = vmul.f32 %v12458_v23, %v3724_v34  ;;  %v3752_v44 = vmul.f32 %v12458_v23, %v3726_v52  ;;  %v3754_v46 = vmul.f32 %v12458_v23, %v3728_v63 }
 0x3a2   :  { %v3771_v59 = vmul.f32 %v12466_v10, %v3745_v12  ;;  %v3751_v32 = vmul.f32 %v12466_v10, %v3725_v56  ;;  %v3753_v55 = vmul.f32 %v12466_v10, %v3727_v25  ;;  %v3755_v2 = vmul.f32 %v12466_v10, %v3729_v18 }
 0x3a3   :  { %v3803_v1 = vmul.f32 %v12456_v48, %v3770_v22  ;;  %v3783_v35 = vmul.f32 %v12456_v48, %v3750_v5  ;;  %v3785_v43 = vmul.f32 %v12456_v48, %v3752_v44  ;;  %v3787_v34 = vmul.f32 %v12456_v48, %v3754_v46 }
 0x3a4   :  { %v3804_v52 = vmul.f32 %v12462_v42, %v3771_v59  ;;  %v3784_v63 = vmul.f32 %v12462_v42, %v3751_v32  ;;  %v3786_v12 = vmul.f32 %v12462_v42, %v3753_v55  ;;  %v3788_v56 = vmul.f32 %v12462_v42, %v3755_v2 }
 0x3a5   :  { %v3836_v25 = vadd.f32 %v12460_v40, %v3803_v1  ;;  %v3816_v18 = vadd.f32 %v12460_v40, %v3783_v35  ;;  %v3818_v22 = vadd.f32 %v12460_v40, %v3785_v43  ;;  %v3820_v5 = vadd.f32 %v12460_v40, %v3787_v34 }
 0x3a6   :  { %v3837_v44 = vadd.f32 %v12464_v6, %v3804_v52  ;;  %v3817_v46 = vadd.f32 %v12464_v6, %v3784_v63  ;;  %v3819_v59 = vadd.f32 %v12464_v6, %v3786_v12  ;;  %v3821_v32 = vadd.f32 %v12464_v6, %v3788_v56 }
 0x3a7   :  { %vm3858_vm7 = vcmp.ge.f32.partialorder %v3836_v25, 0.0  ;;  %v3880_v55 = vmul.f32 0.2, %v3836_v25  ;;  %vm3838_vm8 = vcmp.ge.f32.partialorder %v3816_v18, 0.0  ;;  %vm3840_vm9 = vcmp.ge.f32.partialorder %v3818_v22, 0.0 }
 0x3a8   :  { %vm3859_vm10 = vcmp.ge.f32.partialorder %v3837_v44, 0.0  ;;  %v3881_v2 = vmul.f32 0.2, %v3837_v44  ;;  %vm3839_vm11 = vcmp.ge.f32.partialorder %v3817_v46, 0.0  ;;  %vm3841_vm12 = vcmp.ge.f32.partialorder %v3819_v59, 0.0 }
 0x3a9   :  { %v3902_v1 = vsel %vm3858_vm7, %v3836_v25, %v3880_v55  ;;  %vm3842_vm13 = vcmp.ge.f32.partialorder %v3820_v5, 0.0  ;;  %vm3843_vm14 = vcmp.ge.f32.partialorder %v3821_v32, 0.0  ;;  %v3860_v35 = vmul.f32 0.2, %v3816_v18 }
 0x3aa   :  { %v3924_v43 = vmul.f32 %v3902_v1, %v12392_v51  ;;  %v3903_v34 = vsel %vm3859_vm10, %v3837_v44, %v3881_v2  ;;  %v3861_v52 = vmul.f32 0.2, %v3817_v46  ;;  %v3862_v63 = vmul.f32 0.2, %v3818_v22 }
 0x3ab   :  { %v3925_v12 = vmul.f32 %v3903_v34, %v12392_v51  ;;  %v3863_v56 = vmul.f32 0.2, %v3819_v59  ;;  %v3864_v17 = vmul.f32 0.2, %v3820_v5  ;;  %v3865_v13 = vmul.f32 0.2, %v3821_v32 }
 0x3ac   :  { %v3882_v11 = vsel %vm3838_vm8, %v3816_v18, %v3860_v35  ;;  %v3883_v7 = vsel %vm3839_vm11, %v3817_v46, %v3861_v52  ;;  %v3884_v61 = vsel %vm3840_vm9, %v3818_v22, %v3862_v63  ;;  %v3756_v25 = vmul.f32 %v12458_v23, %v3730_v38 }
 0x3ad   :  { %v9566_v55 = vpack.c.bf16 %v3925_v12, %v3924_v43  ;;  %v3885_v44 = vsel %vm3841_vm12, %v3819_v59, %v3863_v56  ;;  %v3886_v2 = vsel %vm3842_vm13, %v3820_v5, %v3864_v17  ;;  %v3887_v51 = vsel %vm3843_vm14, %v3821_v32, %v3865_v13 }
 0x3ae   :  { %v3904_v1 = vmul.f32 %v3882_v11, %v12272_v16  ;;  %v3905_v34 = vmul.f32 %v3883_v7, %v12272_v16  ;;  %v3906_v18 = vmul.f32 %v3884_v61, %v12276_v60  ;;  %v3907_v22 = vmul.f32 %v3885_v44, %v12276_v60 }
 0x3af   :  { %4008 = vst [vmem:[#allocation2 + $0x58] sm:$0x33] %v9566_v55  ;;  %v12508_v62 = vmul.f32 %v3886_v2, %v12286_v9  ;;  %v12511_v38 = vmul.f32 %v3887_v51, %v12286_v9  ;;  %v3757_v13 = vmul.f32 %v12466_v10, %v3731_v41  ;;  %v3758_v16 = vmul.f32 %v12458_v23, %v3732_v47 }
 0x3b0   :  { %v12521_v61 = vpack.c.bf16 %v3905_v34, %v3904_v1  ;;  %v9557_v60 = vpack.c.bf16 %v3907_v22, %v3906_v18  ;;  %v3759_v7 = vmul.f32 %v12466_v10, %v3733_v53  ;;  %v3789_v9 = vmul.f32 %v12456_v48, %v3756_v25 }
 0x3b1   :  { %v12530_v50 = vpack.c.bf16 %v12511_v38, %v12508_v62  ;;  %v3790_v41 = vmul.f32 %v12462_v42, %v3757_v13  ;;  %v3791_v31 = vmul.f32 %v12456_v48, %v3758_v16  ;;  %v3760_v47 = vmul.f32 %v12458_v23, %v3734_v4 }
 0x3b2   :  { %3998 = vst [vmem:[#allocation2 + $0x8] sm:$0xff] %v12521_v61  ;;  %3999 = vst [vmem:[#allocation2 + $0x10] sm:$0xff] %v9557_v60  ;;  %v12543_v53 = vcombine.high %v12539_v57, %v12521_v61  ;;  %v3792_v11 = vmul.f32 %v12462_v42, %v3759_v7  ;;  %v3822_v17 = vadd.f32 %v12460_v40, %v3789_v9 }
 0x3b3   :  { %v12549_v5 = vcombine.low %v12539_v57, %v12521_v61  ;;  %4000 = vst [vmem:[#allocation2 + $0x18] sm:$0xff] %v12530_v50  ;;  %v12553_v28 = vpack.c.bf16 %v12511_v38, %v3907_v22  ;;  %v3823_v4 = vadd.f32 %v12464_v6, %v3790_v41  ;;  %v3824_v46 = vadd.f32 %v12460_v40, %v3791_v31 }
 0x3b4   :  { %v12558_v59 = vpack.c.bf16 %v12508_v62, %v3906_v18  ;;  %v4143_v32 = vshrl.u32 %v12543_v53, 16  ;;  %v4145_v35 = vshll.u32 %v12543_v53, 16  ;;  %v3825_v43 = vadd.f32 %v12464_v6, %v3792_v11 }
 0x3b5   :  { %vm3844_vm15 = vcmp.ge.f32.partialorder %v3822_v17, 0.0  ;;  %v13758_v52 = vshll.u32 %v12553_v28, 16  ;;  %vm3845_vm2 = vcmp.ge.f32.partialorder %v3823_v4, 0.0  ;;  %vm3846_vm6 = vcmp.ge.f32.partialorder %v3824_v46, 0.0 }
 0x3b6   :  { %v3866_v63 = vmul.f32 0.2, %v3822_v17  ;;  %v4147_v12 = vrot.slane %v4145_v35, 1  ;;  %vm3847_vm7 = vcmp.ge.f32.partialorder %v3825_v43, 0.0  ;;  %v3867_v56 = vmul.f32 0.2, %v3823_v4 }
 0x3b7   :  { %v3868_v25 = vmul.f32 0.2, %v3824_v46  ;;  %v4152_v55 = vrot.slane %v13758_v52, 1  ;;  %v3869_v44 = vmul.f32 0.2, %v3825_v43  ;;  %v13759_v51 = vshrl.u32 %v12553_v28, 16 }
 0x3b8   :  { %v3888_v2 = vsel %vm3844_vm15, %v3822_v17, %v3866_v63  ;;  %v4148_v1 = vor.u32 %v4147_v12, %v4143_v32  ;;  %v3889_v34 = vsel %vm3845_vm2, %v3823_v4, %v3867_v56  ;;  %v4133_v31 = vshll.u32 %v12549_v5, 16  ;;  %v11086_v52 = vld [vmem:[#allocation12 + $0x28] sm:$0xff]  }
 0x3b9   :  { %v3890_v18 = vsel %vm3846_vm6, %v3824_v46, %v3868_v25  ;;  %v12568_v22 = vmul.f32 %v3888_v2, %v12300_v0  ;;  %v3891_v13 = vsel %vm3847_vm7, %v3825_v43, %v3869_v44  ;;  %v12571_v16 = vmul.f32 %v3889_v34, %v12300_v0 }
 0x3ba   :  { %v12574_v60 = vmul.f32 %v3890_v18, %v12320_v37  ;;  %v4153_v7 = vsel %vm166_vm0, %v4148_v1, %v4152_v55  ;;  %v12578_v9 = vmul.f32 %v3891_v13, %v12320_v37  ;;  %v7353_v41 = vor.u32 %v13759_v51, %v4152_v55  ;;  %v11067_v55 = vld [vmem:[#allocation12 + $0x48] sm:$0xff]  }
 0x3bb   :  { %4364 = vmatprep.mubr.bf16.mxu1 %v4153_v7  ;;  %v9559_v11 = vpack.c.bf16 %v12571_v16, %v12568_v22  ;;  %v4131_v0 = vshrl.u32 %v12549_v5, 16  ;;  %v13761_v17 = vshll.u32 %v12558_v59, 16  ;;  %v4135_v46 = vrot.slane %v4133_v31, 1  ;;  %v11068_v7 = vld [vmem:[#allocation12 + $0x8] sm:$0xff]  }
 0x3bc   :  { %v9560_v4 = vpack.c.bf16 %v12578_v9, %v12574_v60  ;;  %v3761_v37 = vmul.f32 %v12466_v10, %v3735_v19  ;;  %v3762_v32 = vmul.f32 %v12458_v23, %v3736_v24  ;;  %v13760_v43 = vshrl.u32 %v12558_v59, 16 }
 0x3bd   :  { %4001 = vst [vmem:[#allocation2 + $0x20] sm:$0xff] %v9559_v11  ;;  %v4140_v35 = vrot.slane %v13761_v17, 1  ;;  %v3763_v63 = vmul.f32 %v12466_v10, %v3737_v49  ;;  %v12606_v45 = vpack.c.bf16 %v12578_v9, %v12571_v16  ;;  %v4136_v19 = vor.u32 %v4135_v46, %v4131_v0 }
 0x3be   :  { %4002 = vst [vmem:[#allocation2 + $0x28] sm:$0xff] %v9560_v4  ;;  %v12610_v24 = vpack.c.bf16 %v12574_v60, %v12568_v22  ;;  %v3793_v12 = vmul.f32 %v12456_v48, %v3760_v47  ;;  %v3794_v15 = vmul.f32 %v12462_v42, %v3761_v37  ;;  %v3795_v49 = vmul.f32 %v12456_v48, %v3762_v32  ;;  %v11069_v4 = vld [vmem:[#allocation12 + $0x50] sm:$0xff]   ;;  %v11073_v37 = vld [vmem:[#allocation12 + $0x680] sm:$0xff]  }
 0x3bf   :  { %v7341_v56 = vor.u32 %v13760_v43, %v4140_v35  ;;  %v3796_v25 = vmul.f32 %v12462_v42, %v3763_v63  ;;  %v12619_v44 = vshll.u32 %v12606_v45, 16  ;;  %v4141_v2 = vsel %vm166_vm0, %v4136_v19, %v4140_v35  ;;  %v11075_v19 = vld [vmem:[#allocation12 + $0x6c8] sm:$0xff]  }
 0x3c0   :  { %v12623_v1 = vshll.u32 %v12610_v24, 16  ;;  %v3826_v47 = vadd.f32 %v12460_v40, %v3793_v12  ;;  %4365 = vmatmul.mubr.bf16.vlgmr.msra.gmra.mrb[0].mxu1 %v4141_v2  ;;  %v3827_v34 = vadd.f32 %v12464_v6, %v3794_v15  ;;  %v3828_v18 = vadd.f32 %v12460_v40, %v3795_v49 }
 0x3c1   :  { %v3829_v13 = vadd.f32 %v12464_v6, %v3796_v25  ;;  %v7357_v31 = vrot.slane %v12619_v44, 1  ;;  %9620 = vmatpush3.bf16.msra.mxu1 %v11066_v58  ;;  %vm4902_vm7 = vsmask.f32 6400 }
 0x3c2   :  { %v7345_v11 = vrot.slane %v12623_v1, 1  ;;  %vm3848_vm8 = vcmp.ge.f32.partialorder %v3826_v47, 0.0  ;;  %v3870_v0 = vmul.f32 0.2, %v3826_v47  ;;  %vm3849_vm9 = vcmp.ge.f32.partialorder %v3827_v34, 0.0  ;;  %9621 = vmatprep.subr.bf16.mxu1 %v11067_v55 }
 0x3c3   :  { %vm3850_vm10 = vcmp.ge.f32.partialorder %v3828_v18, 0.0  ;;  %vm3851_vm11 = vcmp.ge.f32.partialorder %v3829_v13, 0.0  ;;  %v3871_v46 = vmul.f32 0.2, %v3827_v34  ;;  %v7358_v32 = vsel %vm166_vm0, %v7353_v41, %v7357_v31  ;;  %v11070_v41 = vld [vmem:[#allocation12 + $0x10] sm:$0xff]  }
 0x3c4   :  { %v7346_v35 = vsel %vm166_vm0, %v7341_v56, %v7345_v11  ;;  %v3872_v63 = vmul.f32 0.2, %v3828_v18  ;;  %7569 = vmatprep.mubr.bf16.mxu0 %v7358_v32  ;;  %4372 = vmatprep.mubr.bf16.mxu1 %v7358_v32  ;;  %v3873_v58 = vmul.f32 0.2, %v3829_v13  ;;  %v3892_v12 = vsel %vm3848_vm8, %v3826_v47, %v3870_v0 }
 0x3c5   :  { %v3893_v15 = vsel %vm3849_vm9, %v3827_v34, %v3871_v46  ;;  %7570 = vmatmul.mubr.bf16.vlgmr.msra.gmra.mrb[24].mxu0 %v7346_v35  ;;  %v12635_v25 = vmul.f32 %v3892_v12, %v12328_v26  ;;  %9622 = vmatpush3.bf16.msra.mxu1 %v11068_v7  ;;  %v12645_v32 = vshrl.u32 %v12606_v45, 16  ;;  %v13782_v47 = vsub.f32 %v12356_v14, %v12404_v21  ;;  %v11076_v7 = vld [vmem:[#allocation12 + $0x688] sm:$0xff]   ;;  %v11074_v12 = vld [vmem:[#allocation12 + $0x18] sm:$0xff]  }
 0x3c6   :  { %v3894_v49 = vsel %vm3850_vm10, %v3828_v18, %v3872_v63  ;;  %v12638_v55 = vmul.f32 %v3893_v15, %v12328_v26  ;;  %v3895_v56 = vsel %vm3851_vm11, %v3829_v13, %v3873_v58  ;;  %9623 = vmatprep.subr.bf16.mxu1 %v11069_v4  ;;  %v11072_v18 = vld [vmem:[#allocation12 + $0x58] sm:$0xff]   ;;  %10244 = vmatpush3.bf16.msra.mxu0 %v11073_v37  ;;  %v11079_v58 = vld [vmem:[#allocation12 + $0x6d0] sm:$0xff]   ;;  %v12677_v15 = vshrl.u32 %v12610_v24, 16 }
 0x3c7   :  { %v12642_v2 = vmul.f32 %v3894_v49, %v12344_v20  ;;  %v3764_v34 = vmul.f32 %v12458_v23, %v13782_v47  ;;  %v12652_v26 = vmul.f32 %v3895_v56, %v12344_v20  ;;  %10245 = vmatprep.subr.bf16.mxu0 %v11075_v19  ;;  %v7369_v0 = vor.u32 %v12645_v32, %v7357_v31  ;;  %v11077_v47 = vld [vmem:[#allocation12 + $0x60] sm:$0xff]  }
 0x3c8   :  { %v9561_v13 = vpack.c.bf16 %v12638_v55, %v12635_v25  ;;  %v13783_v46 = vsub.f32 %v12361_v30, %v12406_v36  ;;  %v13784_v4 = vsub.f32 %v12370_v39, %v12404_v21  ;;  %v13785_v20 = vsub.f32 %v12374_v54, %v12406_v36  ;;  %4373 = vmatmul.mubr.bf16.gmra.mrb[4].mxu1 %v7346_v35 }
 0x3c9   :  { %v9562_v19 = vpack.c.bf16 %v12652_v26, %v12642_v2  ;;  %v3797_v31 = vmul.f32 %v12456_v48, %v3764_v34  ;;  %9624 = vmatpush3.bf16.msra.mxu1 %v11070_v41  ;;  %v13786_v30 = vsub.f32 %v12380_v29, %v12404_v21  ;;  %v12684_v41 = vpack.c.bf16 %v12652_v26, %v12638_v55  ;;  %v11082_v34 = vld [vmem:[#allocation12 + $0x690] sm:$0xff]  }
 0x3ca   :  { %v3765_v14 = vmul.f32 %v12466_v10, %v13783_v46  ;;  %v3766_v37 = vmul.f32 %v12458_v23, %v13784_v4  ;;  %v3767_v63 = vmul.f32 %v12466_v10, %v13785_v20  ;;  %4003 = vst [vmem:[#allocation2 + $0x30] sm:$0xff] %v9561_v13  ;;  %9625 = vmatprep.subr.bf16.mxu1 %v11072_v18  ;;  %v11083_v4 = vld [vmem:[#allocation12 + $0x6d8] sm:$0xff]  }
 0x3cb   :  { %v3768_v39 = vmul.f32 %v12458_v23, %v13786_v30  ;;  %4004 = vst [vmem:[#allocation2 + $0x38] sm:$0xff] %v9562_v19  ;;  %v12688_v29 = vpack.c.bf16 %v12642_v2, %v12635_v25  ;;  %v3830_v21 = vadd.f32 %v12460_v40, %v3797_v31  ;;  %v13787_v23 = vsub.f32 %v12385_v8, %v12406_v36  ;;  %v11078_v36 = vld [vmem:[#allocation12 + $0x20] sm:$0xff]  }
 0x3cc   :  { %v3798_v54 = vmul.f32 %v12462_v42, %v3765_v14  ;;  %v3799_v49 = vmul.f32 %v12456_v48, %v3766_v37  ;;  %v3800_v56 = vmul.f32 %v12462_v42, %v3767_v63  ;;  %10246 = vmatpush3.bf16.msra.mxu0 %v11076_v7  ;;  %v7361_v18 = vor.u32 %v12677_v15, %v7345_v11 }
 0x3cd   :  { %v3769_v35 = vmul.f32 %v12466_v10, %v13787_v23  ;;  %10247 = vmatprep.subr.bf16.mxu0 %v11079_v58  ;;  %v12700_v37 = vshll.u32 %v12684_v41, 16  ;;  %v12703_v20 = vshll.u32 %v12688_v29, 16  ;;  %vm3852_vm12 = vcmp.ge.f32.partialorder %v3830_v21, 0.0  ;;  %9626 = vmatpush3.bf16.msra.mxu1 %v11074_v12  ;;  %v11085_v12 = vld [vmem:[#allocation12 + $0x698] sm:$0xff]  }
 0x3ce   :  { %v3831_v13 = vadd.f32 %v12464_v6, %v3798_v54  ;;  %v3832_v46 = vadd.f32 %v12460_v40, %v3799_v49  ;;  %v3833_v14 = vadd.f32 %v12464_v6, %v3800_v56  ;;  %v3874_v8 = vmul.f32 0.2, %v3830_v21  ;;  %9627 = vmatprep.subr.bf16.mxu1 %v11077_v47  ;;  %v11084_v54 = vld [vmem:[#allocation12 + $0x68] sm:$0xff]  }
 0x3cf   :  { %v7373_v11 = vrot.slane %v12700_v37, 1  ;;  %v7365_v7 = vrot.slane %v12703_v20, 1  ;;  %v3801_v30 = vmul.f32 %v12456_v48, %v3768_v39 }
 0x3d0   :  { %vm3853_vm13 = vcmp.ge.f32.partialorder %v3831_v13, 0.0  ;;  %vm3854_vm14 = vcmp.ge.f32.partialorder %v3832_v46, 0.0  ;;  %vm3855_vm15 = vcmp.ge.f32.partialorder %v3833_v14, 0.0  ;;  %v3875_v10 = vmul.f32 0.2, %v3831_v13  ;;  %10248 = vmatpush3.bf16.msra.mxu0 %v11082_v34  ;;  %v11089_v34 = vld [vmem:[#allocation12 + $0x6e0] sm:$0xff]  }
 0x3d1   :  { %v3876_v63 = vmul.f32 0.2, %v3832_v46  ;;  %v3877_v58 = vmul.f32 0.2, %v3833_v14  ;;  %v3896_v19 = vsel %vm3852_vm12, %v3830_v21, %v3874_v8  ;;  %10249 = vmatprep.subr.bf16.mxu0 %v11083_v4  ;;  %v7374_v49 = vsel %vm166_vm0, %v7369_v0, %v7373_v11  ;;  %9628 = vmatpush3.bf16.msra.mxu1 %v11078_v36  ;;  %v11091_v21 = vld [vmem:[#allocation12 + $0x70] sm:$0xff]  }
 0x3d2   :  { %v3897_v31 = vsel %vm3853_vm13, %v3831_v13, %v3875_v10  ;;  %v7366_v56 = vsel %vm166_vm0, %v7361_v18, %v7365_v7  ;;  %7577 = vmatprep.mubr.bf16.mxu0 %v7374_v49  ;;  %4380 = vmatprep.mubr.bf16.mxu1 %v7374_v49  ;;  %v12715_v48 = vmul.f32 %v3896_v19, %v12352_v27  ;;  %v7731_v18 = vrot.slane %v12677_v15, 2  ;;  %v11092_v10 = vld [vmem:[#allocation12 + $0x30] sm:$0xff]   ;;  %v11096_v19 = vld [vmem:[#allocation12 + $0x78] sm:$0xff]  }
 0x3d3   :  { %v3898_v47 = vsel %vm3854_vm14, %v3832_v46, %v3876_v63  ;;  %v3899_v23 = vsel %vm3855_vm15, %v3833_v14, %v3877_v58  ;;  %v12718_v39 = vmul.f32 %v3897_v31, %v12352_v27  ;;  %7578 = vmatmul.mubr.bf16.gmra.mrb[28].mxu0 %v7366_v56  ;;  %4381 = vmatmul.mubr.bf16.gmra.mrb[8].mxu1 %v7366_v56  ;;  %v7734_v46 = vrot.slane %v12623_v1, 3  ;;  %v11090_v27 = vld [vmem:[#allocation12 + $0x6a0] sm:$0xff]   ;;  %v11093_v63 = vld [vmem:[#allocation12 + $0x6e8] sm:$0xff]  }
 0x3d4   :  { %13788 = vst [vmem:[#allocation21_spill] sm:$0xff] %v12715_v48  ;;  %v3920_v0 = vmul.f32 %v3898_v47, %v12368_v33  ;;  %v3921_v13 = vmul.f32 %v3899_v23, %v12368_v33  ;;  %v3802_v4 = vmul.f32 %v12462_v42, %v3769_v35  ;;  %v3834_v8 = vadd.f32 %v12460_v40, %v3801_v30  ;;  %v7297_v35 = vld [vmem:[#allocation2 + $0x60] sm:$0x77] }
 0x3d5   :  { %v9563_v14 = vpack.c.bf16 %v12718_v39, %v12715_v48  ;;  %9629 = vmatprep.subr.bf16.mxu1 %v11084_v54  ;;  %10250 = vmatpush3.bf16.msra.mxu0 %v11085_v12  ;;  %v12729_v31 = vor.u32 %v7734_v46, %v7731_v18  ;;  %v12735_v42 = vshrl.u32 %v12684_v41, 16  ;;  %v12741_v30 = vshrl.u32 %v12688_v29, 16  ;;  %v11094_v12 = vld [vmem:[#allocation12 + $0x6a8] sm:$0xff]  }
 0x3d6   :  { %v9564_v36 = vpack.c.bf16 %v3921_v13, %v3920_v0  ;;  %9630 = vmatpush3.bf16.msra.mxu1 %v11086_v52  ;;  %10251 = vmatprep.subr.bf16.mxu0 %v11089_v34  ;;  %v3835_v33 = vadd.f32 %v12464_v6, %v3802_v4  ;;  %vm3856_vm2 = vcmp.ge.f32.partialorder %v3834_v8, 0.0  ;;  %v3878_v58 = vmul.f32 0.2, %v3834_v8  ;;  %v11095_v34 = vld [vmem:[#allocation12 + $0x6f0] sm:$0xff]  }
 0x3d7   :  { %4005 = vst [vmem:[#allocation2 + $0x40] sm:$0xff] %v9563_v14  ;;  %9631 = vmatprep.subr.bf16.mxu1 %v11091_v21  ;;  %13789 = vst [vmem:[#allocation22_spill] sm:$0xff] %v12729_v31  ;;  %v12732_v40 = vpack.c.bf16 %v3921_v13, %v12718_v39  ;;  %v12738_v52 = vpack.c.bf16 %v3920_v0, %v12715_v48  ;;  %v7385_v49 = vor.u32 %v12735_v42, %v7373_v11  ;;  %v6408_v4 = vld [vmem:[#allocation2 + $0x58] sm:$0xff] }
 0x3d8   :  { %4006 = vst [vmem:[#allocation2 + $0x48] sm:$0xff] %v9564_v36  ;;  %vm3857_vm6 = vcmp.ge.f32.partialorder %v3835_v33, 0.0  ;;  %v3879_v6 = vmul.f32 0.2, %v3835_v33  ;;  %v3900_v54 = vsel %vm3856_vm2, %v3834_v8, %v3878_v58  ;;  %v7377_v0 = vor.u32 %v12741_v30, %v7365_v7  ;;  %v11097_v8 = vld [vmem:[#allocation12 + $0x6b0] sm:$0xff]  }
 0x3d9   :  { %10252 = vmatpush3.bf16.msra.mxu0 %v11090_v27  ;;  %v12745_v56 = vshll.u32 %v12732_v40, 16  ;;  %v12748_v47 = vshll.u32 %v12738_v52, 16  ;;  %v3922_v23 = vmul.f32 %v3900_v54, %v12376_v3  ;;  %v12754_v18 = vcombine.high %v7297_v35, %v7297_v35  ;;  %v11098_v27 = vld [vmem:[#allocation12 + $0x38] sm:$0xff]  }
 0x3da   :  { %9632 = vmatpush3.bf16.msra.mxu1 %v11092_v10  ;;  %10253 = vmatprep.subr.bf16.mxu0 %v11093_v63  ;;  %v3901_v21 = vsel %vm3857_vm6, %v3835_v33, %v3879_v6  ;;  %v8330_v46 = vrot.slane %v12677_v15, 3  ;;  %v8331_v36 = vrot.slane %v12623_v1, 4  ;;  %v11099_v63 = vld [vmem:[#allocation12 + $0x6f8] sm:$0xff]   ;;  %v11101_v33 = vld [vmem:[#allocation12 + $0x140] sm:$0xff]  }
 0x3db   :  { %13790 = vst [vmem:[#allocation23_spill] sm:$0xff] %v12745_v56  ;;  %9633 = vmatprep.subr.bf16.mxu1 %v11096_v19  ;;  %v7389_v11 = vrot.slane %v12745_v56, 1  ;;  %v3923_v13 = vmul.f32 %v3901_v21, %v12376_v3  ;;  %v7381_v14 = vrot.slane %v12748_v47, 1  ;;  %v7419_v3 = vshll.u32 %v12754_v18, 16 }
 0x3dc   :  { %v12768_v54 = vor.u32 %v8331_v36, %v8330_v46  ;;  %v12780_v21 = vshrl.u32 %v12738_v52, 16  ;;  %v9445_v46 = vcombine.low %v7297_v35, %v7297_v35 }
 0x3dd   :  { %10254 = vmatpush3.bf16.msra.mxu0 %v11094_v12  ;;  %v7390_v7 = vsel %vm166_vm0, %v7385_v49, %v7389_v11  ;;  %v9565_v10 = vpack.c.bf16 %v3923_v13, %v3922_v23  ;;  %v7382_v58 = vsel %vm166_vm0, %v7377_v0, %v7381_v14  ;;  %v11100_v12 = vld [vmem:[#allocation12 + $0x6b8] sm:$0xff]   ;;  %v12771_v49 = vshrl.u32 %v12732_v40, 16  ;;  %v11107_v0 = vld [vmem:[#allocation12 + $0x7c0] sm:$0xff]  }
 0x3de   :  { %10255 = vmatprep.subr.bf16.mxu0 %v11095_v34  ;;  %7585 = vmatprep.mubr.bf16.mxu0 %v7390_v7  ;;  %13791 = vst [vmem:[#allocation24_spill] sm:$0xff] %v12768_v54  ;;  %v7421_v13 = vrot.slane %v7419_v3, 1 }
 0x3df   :  { %4388 = vmatprep.mubr.bf16.mxu1 %v7390_v7  ;;  %7586 = vmatmul.mubr.bf16.gmra.mrb[32].mxu0 %v7382_v58  ;;  %4007 = vst [vmem:[#allocation2 + $0x50] sm:$0xff] %v9565_v10  ;;  %v12764_v19 = vcombine.high %v9565_v10, %v6408_v4  ;;  %v12766_v6 = vcombine.low %v9565_v10, %v6408_v4 }
 0x3e0   :  { %4389 = vmatmul.mubr.bf16.gmra.mrb[12].mxu1 %v7382_v58  ;;  %v7401_v4 = vor.u32 %v12771_v49, %v7389_v11  ;;  %v7393_v7 = vor.u32 %v12780_v21, %v7381_v14  ;;  %v7411_v11 = vshll.u32 %v9445_v46, 16 }
 0x3e1   :  { %10256 = vmatpush3.bf16.msra.mxu0 %v11097_v8  ;;  %9634 = vmatpush3.bf16.msra.mxu1 %v11098_v27  ;;  %v12774_v23 = vshll.u32 %v12764_v19, 16  ;;  %v12777_v34 = vshll.u32 %v12766_v6, 16  ;;  %v12786_v36 = vshrl.u32 %v12764_v19, 16  ;;  %v12798_v14 = vshrl.u32 %v12766_v6, 16 }
 0x3e2   :  { %10257 = vmatprep.subr.bf16.mxu0 %v11099_v63  ;;  %9671 = vmatprep.subr.bf16.mxu1 %v11101_v33 }
 0x3e3   :  { %13792 = vst [vmem:[#allocation25_spill] sm:$0xff] %v12774_v23  ;;  %13793 = vst [vmem:[#allocation26_spill] sm:$0xff] %v12777_v34  ;;  %v7405_v8 = vrot.slane %v12774_v23, 1  ;;  %v7397_v27 = vrot.slane %v12777_v34, 1 }
 0x3e4   :  { %13794 = vst [vmem:[#allocation27_spill] sm:$0xff] %v12786_v36  ;;  %13796 = vst [vmem:[#allocation29_spill] sm:$0xff] %v12798_v14 }
 0x3e5   :  { %10258 = vmatpush3.bf16.msra.mxu0 %v11100_v12  ;;  %v7406_v10 = vsel %vm166_vm0, %v7401_v4, %v7405_v8  ;;  %v7417_v63 = vor.u32 %v12786_v36, %v7405_v8  ;;  %v7398_v35 = vsel %vm166_vm0, %v7393_v7, %v7397_v27  ;;  %v7426_v12 = vshrl.u32 %v12754_v18, 16  ;;  %v4605_v36 = vld [vmem:[#allocation2] sm:$0xee] }
 0x3e6   :  { %10347 = vmatprep.subr.bf16.mxu0 %v11107_v0  ;;  %7593 = vmatprep.mubr.bf16.mxu0 %v7406_v10  ;;  %v4052_v33 = vld [vmem:[#allocation2 + $0x50] sm:$0x77]  ;;  %v8025_v10 = vld [vmem:[#allocation2 + $0x10] sm:$0x88]  ;;  %v7409_v43 = vor.u32 %v12798_v14, %v7397_v27  ;;  %v7423_v18 = vshrl.u32 %v9445_v46, 16  ;;  %v12812_v27 = vcombine.high %v4605_v36, %v12521_v61  ;;  %v4931_v14 = vrot.slane %v12645_v32, 1 }
 0x3e7   :  { %7594 = vmatmul.mubr.bf16.gmra.mrb[36].mxu0 %v7398_v35  ;;  %v12792_v58 = vcombine.high %v4052_v33, %v4052_v33  ;;  %v7422_v3 = vsel %vm166_vm0, %v7417_v63, %v7421_v13  ;;  %v12795_v51 = vcombine.low %v4052_v33, %v4052_v33  ;;  %v7413_v35 = vrot.slane %v7411_v11, 1 }
 0x3e8   :  { %7601 = vmatprep.mubr.bf16.mxu0 %v7422_v3  ;;  %v7428_v33 = vor.u32 %v7426_v12, %v7421_v13  ;;  %v12806_v3 = vcombine.high %v8025_v10, %v12530_v50  ;;  %v12815_v13 = vcombine.low %v8025_v10, %v12530_v50  ;;  %v4919_v12 = vshll.u32 %v12812_v27, 16 }
 0x3e9   :  { %13795 = vst [vmem:[#allocation28_spill] sm:$0xff] %v12795_v51  ;;  %v4214_v0 = vshll.u32 %v12792_v58, 16  ;;  %v4206_v8 = vshll.u32 %v12795_v51, 16  ;;  %v4221_v63 = vshrl.u32 %v12792_v58, 16  ;;  %v7414_v34 = vsel %vm166_vm0, %v7409_v43, %v7413_v35 }
 0x3ea   :  { %13797 = vst [vmem:[#allocation30_spill] sm:$0xff] %v12806_v3  ;;  %v8066_v11 = vrot.slane %v12806_v3, 3  ;;  %v13798_v43 = vshll.u32 %v12558_v59, 16  ;;  %v4218_v46 = vshrl.u32 %v12795_v51, 16  ;;  %v8063_v10 = vrot.slane %v12815_v13, 3 }
 0x3eb   :  { %v4216_v17 = vrot.slane %v4214_v0, 1  ;;  %v4208_v23 = vrot.slane %v4206_v8, 1  ;;  %v4927_v51 = vrot.slane %v12677_v15, 1 }
 0x3ed   :  { %v4217_v54 = vsel %vm166_vm0, %v7401_v4, %v4216_v17  ;;  %v4209_v31 = vsel %vm166_vm0, %v7393_v7, %v4208_v23  ;;  %v4223_v48 = vor.u32 %v4221_v63, %v4216_v17  ;;  %v7425_v4 = vor.u32 %v7423_v18, %v7413_v35 }
 0x3ee   :  { %4396 = vmatprep.mubr.bf16.mxu1 %v4217_v54  ;;  %v12819_v54 = vcombine.low %v4605_v36, %v12521_v61  ;;  %v4912_v17 = vrot.slane %v13798_v43, 2  ;;  %v4916_v7 = vshrl.u32 %v12812_v27, 16  ;;  %v13800_v61 = vshrl.u32 %v12553_v28, 16 }
 0x3ef   :  { %4397 = vmatmul.mubr.bf16.gmra.mrb[16].mxu1 %v4209_v31  ;;  %7602 = vmatmul.mubr.bf16.gmra.mrb[40].mxu0 %v7414_v34  ;;  %v13799_v31 = vshrl.u32 %v12558_v59, 16  ;;  %v4220_v0 = vor.u32 %v4218_v46, %v4208_v23  ;;  %v13801_v35 = vshll.u32 %v12553_v28, 16  ;;  %v4921_v18 = vrot.slane %v4919_v12, 2 }
 0x3f0   :  { %4404 = vmatprep.mubr.bf16.mxu1 %v4223_v48  ;;  %7609 = vmatprep.mubr.bf16.mxu0 %v7428_v33  ;;  %v8067_v48 = vrot.slane %v12606_v45, 3  ;;  %v4923_v36 = vrot.slane %v13800_v61, 1  ;;  %v4918_v33 = vrot.slane %v4916_v7, 1  ;;  %v4904_v43 = vshrl.u32 %v12819_v54, 16 }
 0x3f1   :  { %v4911_v34 = vrot.slane %v13799_v31, 1  ;;  %v4924_v63 = vrot.slane %v13801_v35, 2  ;;  %v4907_v31 = vshll.u32 %v12819_v54, 16  ;;  %v4932_v61 = vrot.slane %v12619_v44, 2 }
 0x3f2   :  { %v8068_v8 = vsel %vm1898_vm4, %v8066_v11, %v8067_v48  ;;  %v4922_v23 = vor.u32 %v4921_v18, %v4918_v33  ;;  %v4906_v11 = vrot.slane %v4904_v43, 1  ;;  %v4928_v12 = vrot.slane %v12623_v1, 2  ;;  %v11102_v43 = vld [vmem:[#allocation12 + $0x100] sm:$0xff]  }
 0x3f3   :  { %v4925_v50 = vor.u32 %v4924_v63, %v4923_v36  ;;  %v4913_v3 = vor.u32 %v4912_v17, %v4911_v34  ;;  %v4909_v46 = vrot.slane %v4907_v31, 2  ;;  %v4933_v7 = vor.u32 %v4932_v61, %v4931_v14 }
 0x3f4   :  { %v4939_v36 = vrot.slane %v12735_v42, 1  ;;  %v4940_v17 = vrot.slane %v12700_v37, 2  ;;  %v4936_v35 = vrot.slane %v12703_v20, 2  ;;  %v4947_v14 = vrot.slane %v12771_v49, 1 }
 0x3f5   :  { %v12846_v34 = vsel %vm4902_vm7, %v4922_v23, %v4925_v50  ;;  %v12851_v15 = vsel %vm4902_vm7, %v4925_v50, %v4933_v7  ;;  %v4948_v33 = vrot.slane %v12745_v56, 2  ;;  %v4943_v18 = vrot.slane %v12780_v21, 1  ;;  %v11103_v23 = vld [vmem:[#allocation12 + $0x148] sm:$0xff]  }
 0x3f6   :  { %v8071_v31 = vrot.slane %v12684_v41, 3 }
 0x3f7   :  { %4405 = vmatmul.mubr.bf16.gmra.mrb[20].mxu1 %v4220_v0  ;;  %7610 = vmatmul.mubr.bf16.gmra.mrb[44].mxu0 %v7425_v4  ;;  %v4910_v0 = vor.u32 %v4909_v46, %v4906_v11  ;;  %v4935_v4 = vrot.slane %v12741_v30, 1  ;;  %v12870_v46 = vor.u32 %v4948_v33, %v4947_v14  ;;  %v11112_v14 = vld [vmem:[#allocation12 + $0x788] sm:$0xff]   ;;  %v11106_v33 = vld [vmem:[#allocation12 + $0x110] sm:$0xff]  }
 0x3f8   :  { %4557 = vmatprep.mubr.bf16.mxu1 %v12543_v53  ;;  %8225 = vmatprep.mubr.bf16.mxu0 %v8068_v8  ;;  %v4929_v53 = vor.u32 %v4928_v12, %v4927_v51  ;;  %v4941_v8 = vor.u32 %v4940_v17, %v4939_v36  ;;  %v4944_v51 = vrot.slane %v12748_v47, 2  ;;  %v13802_v12 = vrot.slane %v12610_v24, 3  ;;  %v11109_v17 = vld [vmem:[#allocation12 + $0x780] sm:$0xff]  }
 0x3f9   :  { %v12855_v1 = vsel %vm4902_vm7, %v4910_v0, %v4913_v3  ;;  %v4937_v63 = vor.u32 %v4936_v35, %v4935_v4  ;;  %v8072_v4 = vsel %vm1898_vm4, %v8067_v48, %v8071_v31  ;;  %v11104_v35 = vld [vmem:[#allocation12 + $0x108] sm:$0xff]  }
 0x3fa   :  { %v12861_v61 = vsel %vm4902_vm7, %v4913_v3, %v4929_v53  ;;  %v12864_v50 = vsel %vm4902_vm7, %v4933_v7, %v4941_v8  ;;  %v8065_v36 = vsel %vm1898_vm4, %v8063_v10, %v13802_v12  ;;  %v12875_v0 = vor.u32 %v4944_v51, %v4943_v18  ;;  %v11111_v3 = vld [vmem:[#allocation12 + $0x7c8] sm:$0xff]   ;;  %v11115_v18 = vld [vmem:[#allocation12 + $0x7d0] sm:$0xff]  }
 0x3fb   :  { %v12868_v11 = vsel %vm4902_vm7, %v4929_v53, %v4937_v63  ;;  %v12880_v7 = vsel %vm4902_vm7, %v4941_v8, %v12870_v46  ;;  %v11105_v53 = vld [vmem:[#allocation12 + $0x150] sm:$0xff]   ;;  %v8075_v8 = vrot.slane %v12732_v40, 3  ;;  %v13803_v48 = vmov %v13802_v12  ;;  %v11117_v12 = vld [vmem:[#allocation12 + $0x7d8] sm:$0xff]  }
 0x3fc   :  { %v12886_v10 = vsel %vm4902_vm7, %v4937_v63, %v12875_v0  ;;  %v11108_v63 = vld [vmem:[#allocation12 + $0x158] sm:$0xff]   ;;  %v11116_v51 = vld [vmem:[#allocation12 + $0x790] sm:$0xff]  }
 0x3ff   :  { %4558 = vmatmul.mubr.bf16.vlgmr.msra.gmra.mrb[24].mxu1 %v12549_v5  ;;  %8226 = vmatmul.mubr.bf16.vlgmr.msra.gmra.mrb[48].mxu0 %v8065_v36  ;;  %v8069_v5 = vrot.slane %v12688_v29, 3  ;;  %v11110_v36 = vld [vmem:[#allocation12 + $0x118] sm:$0xff]  }
 0x400   :  { %9672 = vmatpush3.bf16.msra.mxu1 %v11102_v43  ;;  %4565 = vmatprep.mubr.bf16.mxu1 %v12553_v28 }
 0x401   :  { %8233 = vmatprep.mubr.bf16.mxu0 %v8072_v4  ;;  %9673 = vmatprep.subr.bf16.mxu1 %v11103_v23  ;;  %v8070_v43 = vsel %vm1898_vm4, %v13803_v48, %v8069_v5  ;;  %v8076_v23 = vsel %vm1898_vm4, %v8071_v31, %v8075_v8  ;;  %v11119_v4 = vld [vmem:[#allocation12 + $0x798] sm:$0xff]   ;;  %v11121_v31 = vld [vmem:[#allocation12 + $0x7e0] sm:$0xff]  }
 0x402   :  { %10348 = vmatpush3.bf16.msra.mxu0 %v11109_v17  ;;  %v8073_v17 = vrot.slane %v12738_v52, 3 }
 0x403   :  { %10349 = vmatprep.subr.bf16.mxu0 %v11111_v3  ;;  %v11113_v3 = vld [vmem:[#allocation12 + $0x160] sm:$0xff]  }
 0x404   :  { %9674 = vmatpush3.bf16.msra.mxu1 %v11104_v35  ;;  %v8079_v35 = vrot.slane %v12764_v19, 3  ;;  %v8074_v48 = vsel %vm1898_vm4, %v8069_v5, %v8073_v17  ;;  %v8077_v5 = vrot.slane %v12766_v6, 3 }
 0x405   :  { %9675 = vmatprep.subr.bf16.mxu1 %v11105_v53  ;;  %v7639_v53 = vld [vmem:[#allocation2 + $0x68] sm:$0x11] }
 0x406   :  { %10350 = vmatpush3.bf16.msra.mxu0 %v11112_v14  ;;  %v11114_v14 = vld [vmem:[#allocation12 + $0x120] sm:$0xff]   ;;  %v8078_v56 = vsel %vm1898_vm4, %v8073_v17, %v8077_v5 }
 0x407   :  { %4566 = vmatmul.mubr.bf16.gmra.mrb[28].mxu1 %v12558_v59  ;;  %8234 = vmatmul.mubr.bf16.gmra.mrb[52].mxu0 %v8070_v43  ;;  %v11118_v43 = vld [vmem:[#allocation12 + $0x168] sm:$0xff]  }
 0x408   :  { %4573 = vmatprep.mubr.bf16.mxu1 %v12606_v45  ;;  %8241 = vmatprep.mubr.bf16.mxu0 %v8076_v23  ;;  %v11120_v23 = vld [vmem:[#allocation12 + $0x128] sm:$0xff]  }
 0x409   :  { %9676 = vmatpush3.bf16.msra.mxu1 %v11106_v33  ;;  %10351 = vmatprep.subr.bf16.mxu0 %v11115_v18  ;;  %v11123_v33 = vld [vmem:[#allocation12 + $0x7a0] sm:$0xff]   ;;  %v8080_v18 = vsel %vm1898_vm4, %v8075_v8, %v8079_v35  ;;  %v11125_v8 = vld [vmem:[#allocation12 + $0x130] sm:$0xff]  }
 0x40a   :  { %9677 = vmatprep.subr.bf16.mxu1 %v11108_v63  ;;  %10352 = vmatpush3.bf16.msra.mxu0 %v11116_v51  ;;  %v12902_v63 = vcombine.high %v12539_v57, %v7639_v53  ;;  %v11126_v51 = vld [vmem:[#allocation12 + $0x7e8] sm:$0xff]  }
 0x40b   :  { %10353 = vmatprep.subr.bf16.mxu0 %v11117_v12  ;;  %v11124_v12 = vld [vmem:[#allocation12 + $0x170] sm:$0xff]  }
 0x40c   :  { %13804 = vst [vmem:[#allocation31_spill] sm:$0xff] %v12902_v63 }
 0x40d   :  { %9678 = vmatpush3.bf16.msra.mxu1 %v11110_v36  ;;  %v11127_v36 = vld [vmem:[#allocation12 + $0x7a8] sm:$0xff]  }
 0x40e   :  { %9679 = vmatprep.subr.bf16.mxu1 %v11113_v3  ;;  %10354 = vmatpush3.bf16.msra.mxu0 %v11119_v4  ;;  %v8083_v3 = vrot.slane %v12902_v63, 3  ;;  %v11129_v4 = vld [vmem:[#allocation12 + $0x7f0] sm:$0xff]   ;;  %v11241_v63 = vld [vmem:[#allocation12 + $0x3f8] sm:$0xff]  }
 0x40f   :  { %4574 = vmatmul.mubr.bf16.gmra.mrb[32].mxu1 %v12610_v24  ;;  %8242 = vmatmul.mubr.bf16.gmra.mrb[56].mxu0 %v8074_v48  ;;  %v11130_v48 = vld [vmem:[#allocation12 + $0x178] sm:$0xff]  }
 0x410   :  { %4581 = vmatprep.mubr.bf16.mxu1 %v12684_v41  ;;  %8249 = vmatprep.mubr.bf16.mxu0 %v8080_v18  ;;  %v12909_v18 = vcombine.low %v12539_v57, %v7639_v53  ;;  %v11132_v57 = vld [vmem:[#allocation12 + $0x138] sm:$0xff]  }
 0x411   :  { %9680 = vmatpush3.bf16.msra.mxu1 %v11114_v14  ;;  %10355 = vmatprep.subr.bf16.mxu0 %v11121_v31  ;;  %v11131_v14 = vld [vmem:[#allocation12 + $0x7b0] sm:$0xff]  }
 0x412   :  { %9681 = vmatprep.subr.bf16.mxu1 %v11118_v43  ;;  %10356 = vmatpush3.bf16.msra.mxu0 %v11123_v33  ;;  %v12911_v31 = vld [vmem:[#allocation2 + $0x50] sm:$0xff]  ;;  %v12913_v43 = vld [vmem:[#allocation2 + $0x48] sm:$0xff]  ;;  %v8084_v33 = vsel %vm1898_vm4, %v8079_v35, %v8083_v3  ;;  %v8081_v53 = vrot.slane %v12909_v18, 3 }
 0x413   :  { %10357 = vmatprep.subr.bf16.mxu0 %v11126_v51  ;;  %v11133_v51 = vld [vmem:[#allocation12 + $0x7f8] sm:$0xff]   ;;  %v12920_v17 = vcombine.low %v12913_v43, %v12911_v31 }
 0x414   :  { %v8082_v35 = vsel %vm1898_vm4, %v8077_v5, %v8081_v53 }
 0x415   :  { %9682 = vmatpush3.bf16.msra.mxu1 %v11120_v23  ;;  %v11134_v23 = vld [vmem:[#allocation12 + $0x7b8] sm:$0xff]  }
 0x416   :  { %9683 = vmatprep.subr.bf16.mxu1 %v11124_v12  ;;  %10358 = vmatpush3.bf16.msra.mxu0 %v11127_v36  ;;  %v11135_v12 = vld [vmem:[#allocation12 + $0x1c0] sm:$0xff]  }
 0x417   :  { %4582 = vmatmul.mubr.bf16.gmra.mrb[36].mxu1 %v12688_v29  ;;  %8250 = vmatmul.mubr.bf16.gmra.mrb[60].mxu0 %v8078_v56  ;;  %v4019_v56 = vld [vmem:[#allocation2 + $0x50] sm:$0x33] }
 0x418   :  { %4589 = vmatprep.mubr.bf16.mxu1 %v12732_v40  ;;  %8257 = vmatprep.mubr.bf16.mxu0 %v8084_v33  ;;  %v9226_v36 = vcombine.high %v4019_v56, %v4019_v56  ;;  %v4643_v33 = vrot.slane %v12819_v54, 1  ;;  %v11138_v54 = vld [vmem:[#allocation12 + $0x188] sm:$0xff]  }
 0x419   :  { %9684 = vmatpush3.bf16.msra.mxu1 %v11125_v8  ;;  %10359 = vmatprep.subr.bf16.mxu0 %v11129_v4  ;;  %v4646_v8 = vrot.slane %v12812_v27, 1  ;;  %v4647_v4 = vrot.slane %v12553_v28, 1  ;;  %v11378_v27 = vpack.c.bf16 %v12568_v22, %v12508_v62  ;;  %v4655_v62 = vrot.slane %v12684_v41, 1 }
 0x41a   :  { %9685 = vmatprep.subr.bf16.mxu1 %v11130_v48  ;;  %10360 = vmatpush3.bf16.msra.mxu0 %v11131_v14  ;;  %v9225_v48 = vcombine.low %v4019_v56, %v4019_v56  ;;  %v11377_v14 = vpack.c.bf16 %v12571_v16, %v12511_v38  ;;  %v11379_v16 = vpack.c.bf16 %v12638_v55, %v12578_v9  ;;  %v4649_v56 = vrot.slane %v12610_v24, 1  ;;  %v11141_v55 = vld [vmem:[#allocation12 + $0x1d8] sm:$0xff]  }
 0x41b   :  { %10361 = vmatprep.subr.bf16.mxu0 %v11133_v51  ;;  %v4648_v5 = vsel %vm308_vm1, %v4646_v8, %v4647_v4  ;;  %v4644_v51 = vrot.slane %v12558_v59, 1  ;;  %v11380_v22 = vpack.c.bf16 %v12635_v25, %v12574_v60  ;;  %v11381_v9 = vpack.c.bf16 %v12718_v39, %v12652_v26  ;;  %v11143_v60 = vld [vmem:[#allocation12 + $0x1e0] sm:$0xff]  }
 0x41c   :  { %v4659_v25 = vrot.slane %v12732_v40, 1  ;;  %v11144_v26 = vld [vmem:[#allocation12 + $0x1a0] sm:$0xff]  }
 0x41d   :  { %9686 = vmatpush3.bf16.msra.mxu1 %v11132_v57  ;;  %v11136_v57 = vld [vmem:[#allocation12 + $0x180] sm:$0xff]  }
 0x41e   :  { %10362 = vmatpush3.bf16.msra.mxu0 %v11134_v23  ;;  %9723 = vmatprep.subr.bf16.mxu1 %v11135_v12  ;;  %v11137_v23 = vld [vmem:[#allocation12 + $0x1c8] sm:$0xff]   ;;  %v4645_v12 = vsel %vm308_vm1, %v4643_v33, %v4644_v51 }
 0x41f   :  { %4590 = vmatmul.mubr.bf16.gmra.mrb[40].mxu1 %v12738_v52  ;;  %8258 = vmatmul.mubr.bf16.gmra.mrb[64].mxu0 %v8082_v35  ;;  %v11140_v35 = vld [vmem:[#allocation12 + $0x190] sm:$0xff]   ;;  %v11145_v33 = vld [vmem:[#allocation12 + $0x1e8] sm:$0xff]  }
 0x420   :  { %4597 = vmatprep.mubr.bf16.mxu1 %v9226_v36  ;;  %8265 = vmatprep.mubr.bf16.mxu0 %v8083_v3  ;;  %v4651_v3 = vrot.slane %v12606_v45, 1  ;;  %v4650_v36 = vsel %vm308_vm1, %v4644_v51, %v4649_v56  ;;  %v4660_v51 = vsel %vm308_vm1, %v4655_v62, %v4659_v25 }
 0x422   :  { %v4652_v38 = vsel %vm308_vm1, %v4647_v4, %v4651_v3  ;;  %v4656_v8 = vsel %vm308_vm1, %v4651_v3, %v4655_v62  ;;  %v11142_v4 = vld [vmem:[#allocation12 + $0x198] sm:$0xff]   ;;  %v11146_v3 = vld [vmem:[#allocation12 + $0x1a8] sm:$0xff]   ;;  %v7760_v62 = vrot.slane %v12703_v20, 3 }
 0x427   :  { %4598 = vmatmul.mubr.bf16.gmra.mrb[44].mxu1 %v9225_v48  ;;  %8266 = vmatmul.mubr.bf16.gmra.mrb[68].mxu0 %v8081_v53  ;;  %v11139_v53 = vld [vmem:[#allocation12 + $0x1d0] sm:$0xff]   ;;  %v4653_v48 = vrot.slane %v12688_v29, 1 }
 0x428   :  { %4805 = vmatprep.mubr.bf16.mxu1 %v4648_v5  ;;  %8771 = vmatprep.mubr.bf16.mxu0 %v11377_v14  ;;  %v13805_v14 = vld [vmem:[#allocation21_spill] sm:$0xff] }
 0x429   :  { %v11382_v5 = vpack.c.bf16 %v13805_v14, %v12642_v2  ;;  %v4654_v39 = vsel %vm308_vm1, %v4649_v56, %v4653_v48  ;;  %v11148_v2 = vld [vmem:[#allocation12 + $0x1b0] sm:$0xff]   ;;  %v7757_v56 = vrot.slane %v12741_v30, 2  ;;  %v13808_v14 = vld [vmem:[#allocation26_spill] sm:$0xff] }
 0x42f   :  { %4806 = vmatmul.mubr.bf16.vlgmr.msra.gmra.mrb[48].mxu1 %v4645_v12  ;;  %8772 = vmatmul.mubr.bf16.vlgmr.msra.gmra.mrb[72].mxu0 %v11378_v27  ;;  %v11147_v27 = vld [vmem:[#allocation12 + $0x1f0] sm:$0xff]  }
 0x430   :  { %9724 = vmatpush3.bf16.msra.mxu1 %v11136_v57  ;;  %4813 = vmatprep.mubr.bf16.mxu1 %v4652_v38  ;;  %v4657_v57 = vrot.slane %v12738_v52, 1  ;;  %v11149_v38 = vld [vmem:[#allocation12 + $0x1f8] sm:$0xff]  }
 0x431   :  { %8779 = vmatprep.mubr.bf16.mxu0 %v11379_v16  ;;  %9725 = vmatprep.subr.bf16.mxu1 %v11137_v23  ;;  %v4663_v23 = vrot.slane %v12792_v58, 1  ;;  %v7809_v58 = vshrl.u32 %v12909_v18, 16 }
 0x432   :  { %v4658_v12 = vsel %vm308_vm1, %v4653_v48, %v4657_v57 }
 0x433   :  { %v4664_v16 = vsel %vm308_vm1, %v4659_v25, %v4663_v23 }
 0x434   :  { %9726 = vmatpush3.bf16.msra.mxu1 %v11138_v54  ;;  %v8323_v54 = vshrl.u32 %v12815_v13, 16 }
 0x435   :  { %9727 = vmatprep.subr.bf16.mxu1 %v11139_v53  ;;  %v8326_v53 = vshll.u32 %v12815_v13, 16 }
 0x436   :  { %v8325_v48 = vrot.slane %v8323_v54, 3  ;;  %v8346_v54 = vrot.slane %v12741_v30, 3  ;;  %v8363_v30 = vrot.slane %v13808_v14, 4 }
 0x437   :  { %4814 = vmatmul.mubr.bf16.gmra.mrb[52].mxu1 %v4650_v36  ;;  %8780 = vmatmul.mubr.bf16.gmra.mrb[76].mxu0 %v11380_v22  ;;  %v11150_v22 = vld [vmem:[#allocation12 + $0x1b8] sm:$0xff]   ;;  %v7778_v36 = vrot.slane %v12748_v47, 3  ;;  %v8328_v13 = vrot.slane %v8326_v53, 4  ;;  %v8347_v53 = vrot.slane %v12703_v20, 4 }
 0x438   :  { %4821 = vmatprep.mubr.bf16.mxu1 %v4656_v8  ;;  %8787 = vmatprep.mubr.bf16.mxu0 %v11381_v9  ;;  %v7812_v9 = vshll.u32 %v12909_v18, 16  ;;  %v13809_v18 = vld [vmem:[#allocation22_spill] sm:$0xff] }
 0x439   :  { %9728 = vmatpush3.bf16.msra.mxu1 %v11140_v35  ;;  %v7775_v35 = vrot.slane %v12780_v21, 2  ;;  %v8348_v20 = vor.u32 %v8347_v53, %v8346_v54  ;;  %v5168_v53 = vld [vmem:[#allocation2] sm:$0x88] }
 0x43a   :  { %9729 = vmatprep.subr.bf16.mxu1 %v11141_v55  ;;  %v13806_v55 = vld [vmem:[#allocation28_spill] sm:$0xff] }
 0x43b   :  { %v4661_v8 = vrot.slane %v13806_v55, 1  ;;  %v11152_v55 = vld [vmem:[#allocation12 + $0x200] sm:$0xff]  }
 0x43d   :  { %9730 = vmatpush3.bf16.msra.mxu1 %v11142_v4  ;;  %v11151_v4 = vld [vmem:[#allocation12 + $0x240] sm:$0xff]  }
 0x43e   :  { %9731 = vmatprep.subr.bf16.mxu1 %v11143_v60  ;;  %v13807_v60 = vld [vmem:[#allocation29_spill] sm:$0xff] }
 0x43f   :  { %4822 = vmatmul.mubr.bf16.gmra.mrb[56].mxu1 %v4654_v39  ;;  %8788 = vmatmul.mubr.bf16.gmra.mrb[80].mxu0 %v11382_v5  ;;  %v7793_v25 = vrot.slane %v13807_v60, 2  ;;  %v7796_v5 = vrot.slane %v13808_v14, 3  ;;  %v7811_v39 = vrot.slane %v7809_v58, 2  ;;  %v13815_v58 = vld [vmem:[#allocation24_spill] sm:$0xff] }
 0x440   :  { %4829 = vmatprep.mubr.bf16.mxu1 %v4660_v51  ;;  %v4662_v51 = vsel %vm308_vm1, %v4657_v57, %v4661_v8  ;;  %v11158_v14 = vld [vmem:[#allocation12 + $0x218] sm:$0xff]  }
 0x441   :  { %9732 = vmatpush3.bf16.msra.mxu1 %v11144_v26  ;;  %v7761_v26 = vor.u32 %v7760_v62, %v7757_v56  ;;  %v8354_v56 = vrot.slane %v12780_v21, 3  ;;  %v8355_v62 = vrot.slane %v12748_v47, 4  ;;  %v12998_v47 = vsel %vm979_vm3, %v13815_v58, %v8348_v20 }
 0x442   :  { %9733 = vmatprep.subr.bf16.mxu1 %v11145_v33  ;;  %v7814_v33 = vrot.slane %v7812_v9, 3  ;;  %13817 = vst [vmem:[#allocation32_spill] sm:$0xff] %v12998_v47 }
 0x445   :  { %9734 = vmatpush3.bf16.msra.mxu1 %v11146_v3  ;;  %v7779_v3 = vor.u32 %v7778_v36, %v7775_v35  ;;  %v8362_v35 = vrot.slane %v13807_v60, 3  ;;  %v8356_v36 = vor.u32 %v8355_v62, %v8354_v56  ;;  %v11157_v60 = vld [vmem:[#allocation12 + $0x258] sm:$0xff]   ;;  %v13019_v56 = vld [vmem:[#allocation2 + $0x8] sm:$0xff]  ;;  %v11166_v62 = vld [vmem:[#allocation12 + $0x230] sm:$0xff]  }
 0x446   :  { %9735 = vmatprep.subr.bf16.mxu1 %v11147_v27  ;;  %v12971_v27 = vsel %vm2705_vm5, %v13809_v18, %v7761_v26 }
 0x447   :  { %4830 = vmatmul.mubr.bf16.gmra.mrb[60].mxu1 %v4658_v12  ;;  %13810 = vst [vmem:[#allocation21_spill] sm:$0xff] %v12971_v27  ;;  %v8329_v12 = vor.u32 %v8328_v13, %v8325_v48  ;;  %v13001_v21 = vsel %vm979_vm3, %v8348_v20, %v8356_v36  ;;  %v13003_v9 = vor.u32 %v8363_v30, %v8362_v35  ;;  %v11153_v48 = vld [vmem:[#allocation12 + $0x248] sm:$0xff]   ;;  %v11156_v13 = vld [vmem:[#allocation12 + $0x210] sm:$0xff]  }
 0x448   :  { %4837 = vmatprep.mubr.bf16.mxu1 %v4664_v16  ;;  %v12976_v16 = vor.u32 %v7814_v33, %v7811_v39  ;;  %13818 = vst [vmem:[#allocation33_spill] sm:$0xff] %v13001_v21  ;;  %v11162_v39 = vld [vmem:[#allocation12 + $0x268] sm:$0xff]   ;;  %v9261_v33 = vcombine.low %v12911_v31, %v12911_v31  ;;  %v13023_v35 = vld [vmem:[#allocation2 + $0x18] sm:$0xff]  ;;  %v9280_v20 = vcombine.high %v5168_v53, %v13019_v56 }
 0x449   :  { %9736 = vmatpush3.bf16.msra.mxu1 %v11148_v2  ;;  %v12974_v2 = vsel %vm2705_vm5, %v7761_v26, %v7779_v3  ;;  %13819 = vst [vmem:[#allocation34_spill] sm:$0xff] %v13003_v9  ;;  %v11160_v26 = vld [vmem:[#allocation12 + $0x220] sm:$0xff]  }
 0x44a   :  { %9737 = vmatprep.subr.bf16.mxu1 %v11149_v38  ;;  %13811 = vst [vmem:[#allocation28_spill] sm:$0xff] %v12974_v2  ;;  %v7797_v38 = vor.u32 %v7796_v5, %v7793_v25  ;;  %13812 = vst [vmem:[#allocation29_spill] sm:$0xff] %v12976_v16  ;;  %v9262_v25 = vcombine.high %v12911_v31, %v12911_v31  ;;  %v11236_v2 = vld [vmem:[#allocation12 + $0x3e8] sm:$0xff]  }
 0x44c   :  { %v12981_v57 = vsel %vm2705_vm5, %v7779_v3, %v7797_v38  ;;  %v4961_v5 = vshrl.u32 %v9262_v25, 16  ;;  %v11165_v3 = vld [vmem:[#allocation12 + $0x270] sm:$0xff]  }
 0x44d   :  { %9738 = vmatpush3.bf16.msra.mxu1 %v11150_v22  ;;  %13813 = vst [vmem:[#allocation26_spill] sm:$0xff] %v12981_v57  ;;  %v12991_v22 = vsel %vm979_vm3, %v8329_v12, %v13815_v58  ;;  %v4952_v12 = vshrl.u32 %v9261_v33, 16  ;;  %v13021_v58 = vld [vmem:[#allocation2 + $0x10] sm:$0xff] }
 0x44e   :  { %9775 = vmatprep.subr.bf16.mxu1 %v11151_v4  ;;  %13816 = vst [vmem:[#allocation24_spill] sm:$0xff] %v12991_v22  ;;  %v13007_v4 = vsel %vm979_vm3, %v8356_v36, %v13003_v9 }
 0x44f   :  { %4838 = vmatmul.mubr.bf16.gmra.mrb[64].mxu1 %v4662_v51  ;;  %13820 = vst [vmem:[#allocation35_spill] sm:$0xff] %v13007_v4  ;;  %v4954_v30 = vrot.slane %v4952_v12, 1 }
 0x450   :  { %4845 = vmatprep.mubr.bf16.mxu1 %v4663_v23  ;;  %v12987_v23 = vsel %vm2705_vm5, %v7797_v38, %v12976_v16  ;;  %v4955_v38 = vshll.u32 %v9261_v33, 16 }
 0x451   :  { %13814 = vst [vmem:[#allocation22_spill] sm:$0xff] %v12987_v23 }
 0x457   :  { %4846 = vmatmul.mubr.bf16.gmra.mrb[68].mxu1 %v4661_v8  ;;  %v11155_v8 = vld [vmem:[#allocation12 + $0x250] sm:$0xff]  }
 0x458   :  { %5109 = vmatprep.mubr.bf16.mxu1 %v12846_v34  ;;  %v11154_v34 = vld [vmem:[#allocation12 + $0x208] sm:$0xff]  }
 0x45f   :  { %5110 = vmatmul.mubr.bf16.vlgmr.msra.gmra.mrb[72].mxu1 %v12855_v1  ;;  %v11159_v1 = vld [vmem:[#allocation12 + $0x260] sm:$0xff]  }
 0x460   :  { %9776 = vmatpush3.bf16.msra.mxu1 %v11152_v55  ;;  %5117 = vmatprep.mubr.bf16.mxu1 %v12851_v15  ;;  %v4964_v15 = vshll.u32 %v9262_v25, 16  ;;  %v9282_v55 = vcombine.high %v13021_v58, %v13023_v35 }
 0x461   :  { %9777 = vmatprep.subr.bf16.mxu1 %v11153_v48  ;;  %v11171_v48 = vld [vmem:[#allocation12 + $0x238] sm:$0xff]  }
 0x462   :  { %v4966_v51 = vrot.slane %v4964_v15, 2  ;;  %v5286_v25 = vshrl.u32 %v9282_v55, 16 }
 0x464   :  { %9778 = vmatpush3.bf16.msra.mxu1 %v11154_v34  ;;  %v11172_v34 = vld [vmem:[#allocation12 + $0x2c0] sm:$0xff]   ;;  %v5288_v33 = vrot.slane %v5286_v25, 3 }
 0x465   :  { %9779 = vmatprep.subr.bf16.mxu1 %v11155_v8 }
 0x467   :  { %5118 = vmatmul.mubr.bf16.gmra.mrb[76].mxu1 %v12861_v61  ;;  %v4963_v61 = vrot.slane %v4961_v5, 1 }
 0x468   :  { %5125 = vmatprep.mubr.bf16.mxu1 %v12864_v50  ;;  %9780 = vmatpush3.bf16.msra.mxu1 %v11156_v13  ;;  %v11163_v50 = vld [vmem:[#allocation12 + $0x228] sm:$0xff]   ;;  %v5278_v13 = vshrl.u32 %v9280_v20, 16 }
 0x469   :  { %9781 = vmatprep.subr.bf16.mxu1 %v11157_v60  ;;  %v4967_v54 = vor.u32 %v4966_v51, %v4963_v61  ;;  %v5281_v60 = vshll.u32 %v9280_v20, 16 }
 0x46a   :  { %v5280_v15 = vrot.slane %v5278_v13, 3 }
 0x46b   :  { %v4968_v36 = vsel %vm4902_vm7, %v12870_v46, %v4967_v54  ;;  %v9279_v46 = vcombine.low %v5168_v53, %v13019_v56 }
 0x46c   :  { %9782 = vmatpush3.bf16.msra.mxu1 %v11158_v14  ;;  %v5289_v14 = vshll.u32 %v9282_v55, 16 }
 0x46d   :  { %9783 = vmatprep.subr.bf16.mxu1 %v11159_v1  ;;  %v13031_v1 = vld [vmem:[#allocation2 + $0x20] sm:$0xff] }
 0x46e   :  { %v5291_v61 = vrot.slane %v5289_v14, 4 }
 0x46f   :  { %5126 = vmatmul.mubr.bf16.gmra.mrb[80].mxu1 %v12868_v11  ;;  %v11167_v11 = vld [vmem:[#allocation12 + $0x278] sm:$0xff]  }
 0x470   :  { %5133 = vmatprep.mubr.bf16.mxu1 %v12880_v7  ;;  %9784 = vmatpush3.bf16.msra.mxu1 %v11160_v26  ;;  %v4957_v7 = vrot.slane %v4955_v38, 2  ;;  %v9281_v26 = vcombine.low %v13021_v58, %v13023_v35 }
 0x471   :  { %9785 = vmatprep.subr.bf16.mxu1 %v11162_v39  ;;  %v5283_v39 = vrot.slane %v5281_v60, 4 }
 0x472   :  { %v4958_v8 = vor.u32 %v4957_v7, %v4954_v30  ;;  %v5269_v12 = vshrl.u32 %v9281_v26, 16  ;;  %v5272_v38 = vshll.u32 %v9281_v26, 16  ;;  %v13042_v30 = vld [vmem:[#allocation2 + $0x30] sm:$0xff]  ;;  %v13044_v7 = vld [vmem:[#allocation2 + $0x38] sm:$0xff] }
 0x473   :  { %v5284_v53 = vor.u32 %v5283_v39, %v5280_v15  ;;  %v9286_v25 = vcombine.high %v13042_v30, %v13044_v7 }
 0x474   :  { %9786 = vmatpush3.bf16.msra.mxu1 %v11163_v50  ;;  %v4959_v5 = vsel %vm4902_vm7, %v12875_v0, %v4958_v8  ;;  %v5261_v50 = vshrl.u32 %v9279_v46, 16  ;;  %v5271_v55 = vrot.slane %v5269_v12, 3 }
 0x475   :  { %9787 = vmatprep.subr.bf16.mxu1 %v11165_v3  ;;  %v5264_v3 = vshll.u32 %v9279_v46, 16  ;;  %v5322_v39 = vshrl.u32 %v9286_v25, 16 }
 0x476   :  { %v5263_v20 = vrot.slane %v5261_v50, 3  ;;  %v11176_v50 = vld [vmem:[#allocation12 + $0x2c8] sm:$0xff]  }
 0x477   :  { %5134 = vmatmul.mubr.bf16.gmra.mrb[84].mxu1 %v12886_v10  ;;  %v13033_v10 = vld [vmem:[#allocation2 + $0x28] sm:$0xff] }
 0x478   :  { %5141 = vmatprep.mubr.bf16.mxu1 %v4968_v36  ;;  %9788 = vmatpush3.bf16.msra.mxu1 %v11166_v62  ;;  %v9284_v51 = vcombine.high %v13031_v1, %v13033_v10  ;;  %v5292_v62 = vor.u32 %v5291_v61, %v5288_v33  ;;  %v5266_v36 = vrot.slane %v5264_v3, 4  ;;  %v5325_v33 = vshll.u32 %v9286_v25, 16  ;;  %v11174_v61 = vld [vmem:[#allocation12 + $0x280] sm:$0xff]  }
 0x479   :  { %9789 = vmatprep.subr.bf16.mxu1 %v11167_v11 }
 0x47a   :  { %v5304_v11 = vshrl.u32 %v9284_v51, 16  ;;  %v5307_v0 = vshll.u32 %v9284_v51, 16  ;;  %v5267_v14 = vor.u32 %v5266_v36, %v5263_v20  ;;  %v13051_v51 = vld [vmem:[#allocation2 + $0x40] sm:$0xff]  ;;  %v11177_v36 = vld [vmem:[#allocation12 + $0x288] sm:$0xff]  }
 0x47b   :  { %v9288_v20 = vcombine.high %v13051_v51, %v12913_v43 }
 0x47c   :  { %9790 = vmatpush3.bf16.msra.mxu1 %v11171_v48  ;;  %v5274_v48 = vrot.slane %v5272_v38, 4  ;;  %v5306_v13 = vrot.slane %v5304_v11, 3  ;;  %v5309_v60 = vrot.slane %v5307_v0, 4  ;;  %v5324_v11 = vrot.slane %v5322_v39, 3 }
 0x47d   :  { %9827 = vmatprep.subr.bf16.mxu1 %v11172_v34  ;;  %v9283_v34 = vcombine.low %v13031_v1, %v13033_v10  ;;  %v5327_v0 = vrot.slane %v5325_v33, 4  ;;  %v5343_v25 = vshll.u32 %v9288_v20, 16  ;;  %v11184_v33 = vld [vmem:[#allocation12 + $0x2d8] sm:$0xff]  }
 0x47e   :  { %v5275_v46 = vor.u32 %v5274_v48, %v5271_v55  ;;  %v5310_v26 = vor.u32 %v5309_v60, %v5306_v13  ;;  %v11180_v55 = vld [vmem:[#allocation12 + $0x2d0] sm:$0xff]   ;;  %v5340_v60 = vshrl.u32 %v9288_v20, 16 }
 0x47f   :  { %5142 = vmatmul.mubr.bf16.gmra.mrb[88].mxu1 %v4959_v5  ;;  %v5295_v5 = vshrl.u32 %v9283_v34, 16  ;;  %v5298_v15 = vshll.u32 %v9283_v34, 16  ;;  %v5328_v13 = vor.u32 %v5327_v0, %v5324_v11  ;;  %v5345_v20 = vrot.slane %v5343_v25, 4 }
 0x480   :  { %5149 = vmatprep.mubr.bf16.mxu1 %v4967_v54  ;;  %v5293_v54 = vsel %vm979_vm3, %v5284_v53, %v5292_v62  ;;  %v5276_v3 = vsel %vm979_vm3, %v5267_v14, %v5275_v46  ;;  %v5311_v53 = vsel %vm979_vm3, %v5292_v62, %v5310_v26  ;;  %v11181_v62 = vld [vmem:[#allocation12 + $0x290] sm:$0xff]   ;;  %v5342_v0 = vrot.slane %v5340_v60, 3 }
 0x481   :  { %v5297_v12 = vrot.slane %v5295_v5, 3  ;;  %v5300_v38 = vrot.slane %v5298_v15, 4  ;;  %v13059_v5 = vld [vmem:[#allocation2 + $0x58] sm:$0x33]  ;;  %v5329_v11 = vsel %vm979_vm3, %v5310_v26, %v5328_v13 }
 0x483   :  { %v5301_v34 = vor.u32 %v5300_v38, %v5297_v12  ;;  %v9290_v38 = vcombine.high %v12911_v31, %v13059_v5 }
 0x485   :  { %v5358_v26 = vshrl.u32 %v9290_v38, 16  ;;  %v5361_v60 = vshll.u32 %v9290_v38, 16 }
 0x487   :  { %5150 = vmatmul.mubr.bf16.gmra.mrb[92].mxu1 %v4958_v8  ;;  %v9285_v8 = vcombine.low %v13042_v30, %v13044_v7  ;;  %v5363_v38 = vrot.slane %v5361_v60, 4 }
 0x488   :  { %5506 = vmatprep.mubr.bf16.mxu1 %v5293_v54 }
 0x489   :  { %v5313_v48 = vshrl.u32 %v9285_v8, 16  ;;  %v5316_v54 = vshll.u32 %v9285_v8, 16  ;;  %v9287_v8 = vcombine.low %v13051_v51, %v12913_v43 }
 0x48b   :  { %v5315_v39 = vrot.slane %v5313_v48, 3  ;;  %v5331_v4 = vshrl.u32 %v9287_v8, 16  ;;  %v5334_v21 = vshll.u32 %v9287_v8, 16 }
 0x48f   :  { %5507 = vmatmul.mubr.bf16.vlgmr.msra.gmra.mrb[96].mxu1 %v5276_v3 }
 0x490   :  { %9828 = vmatpush3.bf16.msra.mxu1 %v11174_v61  ;;  %5514 = vmatprep.mubr.bf16.mxu1 %v5311_v53  ;;  %v5318_v53 = vrot.slane %v5316_v54, 4  ;;  %v11186_v54 = vld [vmem:[#allocation12 + $0x2e0] sm:$0xff]  }
 0x491   :  { %9829 = vmatprep.subr.bf16.mxu1 %v11176_v50  ;;  %v5302_v50 = vsel %vm979_vm3, %v5275_v46, %v5301_v34 }
 0x493   :  { %v9583_v14 = vpop.f32.mrb[0].mxu1 }
 0x494   :  { %9830 = vmatpush3.bf16.msra.mxu1 %v11177_v36  ;;  %v9584_v15 = vpop.f32.mrb[1].mxu1 }
 0x495   :  { %9831 = vmatprep.subr.bf16.mxu1 %v11180_v55  ;;  %v13061_v61 = vadd.f32 %v9584_v15, %v9583_v14  ;;  %v9586_v3 = vpop.f32.mrb[2].mxu1  ;;  %v11185_v55 = vld [vmem:[#allocation12 + $0x298] sm:$0xff]   ;;  %v5319_v14 = vor.u32 %v5318_v53, %v5315_v39  ;;  %v5336_v39 = vrot.slane %v5334_v21, 4  ;;  %v11193_v21 = vld [vmem:[#allocation12 + $0x2f0] sm:$0xff]  }
 0x496   :  { %v9587_v12 = vpop.f32.mrb[3].mxu1 }
 0x497   :  { %5515 = vmatmul.mubr.bf16.gmra.mrb[100].mxu1 %v5302_v50  ;;  %v13069_v36 = vadd.f32 %v9587_v12, %v9586_v3  ;;  %v5346_v50 = vor.u32 %v5345_v20, %v5342_v0  ;;  %v11188_v3 = vld [vmem:[#allocation12 + $0x2a0] sm:$0xff]   ;;  %v11190_v12 = vld [vmem:[#allocation12 + $0x2e8] sm:$0xff]   ;;  %v5360_v0 = vrot.slane %v5358_v26, 3 }
 0x498   :  { %5522 = vmatprep.mubr.bf16.mxu1 %v5329_v11  ;;  %9832 = vmatpush3.bf16.msra.mxu1 %v11181_v62  ;;  %v10155_v48 = vpop.f32.mrb[24].mxu0  ;;  %v5333_v11 = vrot.slane %v5331_v4, 3 }
 0x499   :  { %9833 = vmatprep.subr.bf16.mxu1 %v11184_v33  ;;  %v10156_v46 = vpop.f32.mrb[25].mxu0  ;;  %v5320_v33 = vsel %vm979_vm3, %v5301_v34, %v5319_v14  ;;  %v5347_v8 = vsel %vm979_vm3, %v5328_v13, %v5346_v50  ;;  %v11195_v13 = vld [vmem:[#allocation12 + $0x2f8] sm:$0xff]  }
 0x49a   :  { %v13071_v15 = vadd.f32 %v10156_v46, %v10155_v48  ;;  %v10158_v9 = vpop.f32.mrb[26].mxu0  ;;  %v9289_v48 = vcombine.low %v12911_v31, %v13059_v5  ;;  %v5337_v4 = vor.u32 %v5336_v39, %v5333_v11 }
 0x49b   :  { %v10159_v47 = vpop.f32.mrb[27].mxu0  ;;  %v9589_v62 = vpop.f32.mrb[4].mxu1 }
 0x49c   :  { %13821 = vst [vmem:[#allocation36_spill] sm:$0xff] %v13071_v15  ;;  %9834 = vmatpush3.bf16.msra.mxu1 %v11185_v55  ;;  %v13073_v25 = vadd.f32 %v10159_v47, %v10158_v9  ;;  %v9590_v53 = vpop.f32.mrb[5].mxu1  ;;  %v11191_v55 = vld [vmem:[#allocation12 + $0x2a8] sm:$0xff]   ;;  %v5349_v46 = vshrl.u32 %v9289_v48, 16  ;;  %v5338_v26 = vsel %vm979_vm3, %v5319_v14, %v5337_v4  ;;  %v13157_v15 = vcombine.low %v13044_v7, %v13051_v51 }
 0x49d   :  { %9835 = vmatprep.subr.bf16.mxu1 %v11186_v54  ;;  %v13079_v20 = vadd.f32 %v9590_v53, %v9589_v62  ;;  %v9592_v47 = vpop.f32.mrb[6].mxu1  ;;  %v5352_v54 = vshll.u32 %v9289_v48, 16 }
 0x49e   :  { %13822 = vst [vmem:[#allocation37_spill] sm:$0xff] %v13073_v25  ;;  %v9593_v9 = vpop.f32.mrb[7].mxu1  ;;  %v5364_v25 = vor.u32 %v5363_v38, %v5360_v0  ;;  %v5351_v62 = vrot.slane %v5349_v46, 3  ;;  %v11197_v38 = vld [vmem:[#allocation12 + $0x2b8] sm:$0xff]  }
 0x49f   :  { %5523 = vmatmul.mubr.bf16.gmra.mrb[104].mxu1 %v5320_v33  ;;  %v13081_v34 = vadd.f32 %v9593_v9, %v9592_v47  ;;  %v11194_v33 = vld [vmem:[#allocation12 + $0x2b0] sm:$0xff]   ;;  %v5354_v53 = vrot.slane %v5352_v54, 4 }
 0x4a0   :  { %5530 = vmatprep.mubr.bf16.mxu1 %v5347_v8  ;;  %9836 = vmatpush3.bf16.msra.mxu1 %v11188_v3 }
 0x4a1   :  { %9837 = vmatprep.subr.bf16.mxu1 %v11190_v12  ;;  %v5365_v12 = vsel %vm979_vm3, %v5346_v50, %v5364_v25  ;;  %v5355_v46 = vor.u32 %v5354_v53, %v5351_v62 }
 0x4a3   :  { %v5356_v50 = vsel %vm979_vm3, %v5337_v4, %v5355_v46 }
 0x4a4   :  { %9838 = vmatpush3.bf16.msra.mxu1 %v11191_v55  ;;  %v11198_v55 = vld [vmem:[#allocation12 + $0x340] sm:$0xff]  }
 0x4a5   :  { %9839 = vmatprep.subr.bf16.mxu1 %v11193_v21 }
 0x4a6   :  { %v10161_v60 = vpop.f32.mrb[28].mxu0  ;;  %v9595_v3 = vpop.f32.mrb[8].mxu1 }
 0x4a7   :  { %5531 = vmatmul.mubr.bf16.gmra.mrb[108].mxu1 %v5338_v26  ;;  %v10162_v8 = vpop.f32.mrb[29].mxu0  ;;  %v9596_v47 = vpop.f32.mrb[9].mxu1 }
 0x4a8   :  { %5538 = vmatprep.mubr.bf16.mxu1 %v5365_v12  ;;  %v13085_v11 = vadd.f32 %v10162_v8, %v10161_v60  ;;  %v10164_v39 = vpop.f32.mrb[30].mxu0  ;;  %v13087_v48 = vadd.f32 %v9596_v47, %v9595_v3  ;;  %9840 = vmatpush3.bf16.msra.mxu1 %v11194_v33  ;;  %v9598_v0 = vpop.f32.mrb[10].mxu1 }
 0x4a9   :  { %v10165_v9 = vpop.f32.mrb[31].mxu0  ;;  %v9599_v14 = vpop.f32.mrb[11].mxu1  ;;  %9841 = vmatprep.subr.bf16.mxu1 %v11195_v13 }
 0x4aa   :  { %13823 = vst [vmem:[#allocation38_spill] sm:$0xff] %v13085_v11  ;;  %v13089_v21 = vadd.f32 %v10165_v9, %v10164_v39  ;;  %v13091_v54 = vadd.f32 %v9599_v14, %v9598_v0  ;;  %v13102_v0 = vcombine.high %v13019_v56, %v13021_v58  ;;  %v13149_v11 = vcombine.high %v13044_v7, %v13051_v51  ;;  %v11224_v7 = vld [vmem:[#allocation12 + $0x338] sm:$0xff]   ;;  %v11225_v51 = vld [vmem:[#allocation12 + $0x3c0] sm:$0xff]  }
 0x4ac   :  { %13824 = vst [vmem:[#allocation39_spill] sm:$0xff] %v13089_v21  ;;  %9842 = vmatpush3.bf16.msra.mxu1 %v11197_v38 }
 0x4ad   :  { %9879 = vmatprep.subr.bf16.mxu1 %v11198_v55  ;;  %v11200_v55 = vld [vmem:[#allocation12 + $0x300] sm:$0xff]  }
 0x4af   :  { %5539 = vmatmul.mubr.bf16.gmra.mrb[112].mxu1 %v5356_v50 }
 0x4b0   :  { %5546 = vmatprep.mubr.bf16.mxu1 %v5364_v25 }
 0x4b2   :  { %v10167_v26 = vpop.f32.mrb[32].mxu0 }
 0x4b3   :  { %v9601_v60 = vpop.f32.mrb[12].mxu1  ;;  %v10168_v33 = vpop.f32.mrb[33].mxu0 }
 0x4b4   :  { %v9602_v3 = vpop.f32.mrb[13].mxu1  ;;  %v13094_v12 = vadd.f32 %v10168_v33, %v10167_v26  ;;  %v10170_v8 = vpop.f32.mrb[34].mxu0  ;;  %v13111_v26 = vcombine.low %v13019_v56, %v13021_v58 }
 0x4b5   :  { %v13096_v13 = vadd.f32 %v9602_v3, %v9601_v60  ;;  %v9604_v47 = vpop.f32.mrb[14].mxu1  ;;  %v10171_v39 = vpop.f32.mrb[35].mxu0  ;;  %v11202_v60 = vld [vmem:[#allocation12 + $0x348] sm:$0xff]   ;;  %v13117_v3 = vcombine.high %v13023_v35, %v13031_v1 }
 0x4b6   :  { %13825 = vst [vmem:[#allocation40_spill] sm:$0xff] %v13094_v12  ;;  %v9605_v62 = vpop.f32.mrb[15].mxu1  ;;  %v13098_v53 = vadd.f32 %v10171_v39, %v10170_v8  ;;  %v11206_v8 = vld [vmem:[#allocation12 + $0x350] sm:$0xff]  }
 0x4b7   :  { %v13104_v4 = vadd.f32 %v9605_v62, %v9604_v47  ;;  %5547 = vmatmul.mubr.bf16.gmra.mrb[116].mxu1 %v5355_v46  ;;  %v11203_v46 = vld [vmem:[#allocation12 + $0x308] sm:$0xff]  }
 0x4b8   :  { %13826 = vst [vmem:[#allocation41_spill] sm:$0xff] %v13098_v53  ;;  %5749 = vmatprep.mubr.bf16.mxu1 %v13102_v0 }
 0x4ba   :  { %v10173_v25 = vpop.f32.mrb[36].mxu0 }
 0x4bb   :  { %v10174_v38 = vpop.f32.mrb[37].mxu0 }
 0x4bc   :  { %v13107_v9 = vadd.f32 %v10174_v38, %v10173_v25  ;;  %v10176_v14 = vpop.f32.mrb[38].mxu0 }
 0x4bd   :  { %v10177_v50 = vpop.f32.mrb[39].mxu0 }
 0x4be   :  { %13827 = vst [vmem:[#allocation42_spill] sm:$0xff] %v13107_v9  ;;  %v13113_v33 = vadd.f32 %v10177_v50, %v10176_v14 }
 0x4bf   :  { %5750 = vmatmul.mubr.bf16.vlgmr.msra.gmra.mrb[120].mxu1 %v13111_v26 }
 0x4c0   :  { %13828 = vst [vmem:[#allocation43_spill] sm:$0xff] %v13113_v33  ;;  %9880 = vmatpush3.bf16.msra.mxu1 %v11200_v55  ;;  %5757 = vmatprep.mubr.bf16.mxu1 %v13117_v3  ;;  %v11207_v33 = vld [vmem:[#allocation12 + $0x310] sm:$0xff]   ;;  %v13127_v55 = vcombine.low %v13023_v35, %v13031_v1 }
 0x4c1   :  { %9881 = vmatprep.subr.bf16.mxu1 %v11202_v60  ;;  %v11210_v60 = vld [vmem:[#allocation12 + $0x358] sm:$0xff]  }
 0x4c2   :  { %v9607_v47 = vpop.f32.mrb[16].mxu1  ;;  %v10179_v39 = vpop.f32.mrb[40].mxu0 }
 0x4c3   :  { %v9608_v62 = vpop.f32.mrb[17].mxu1  ;;  %v10180_v56 = vpop.f32.mrb[41].mxu0 }
 0x4c4   :  { %v13121_v25 = vadd.f32 %v9608_v62, %v9607_v47  ;;  %v13123_v38 = vadd.f32 %v10180_v56, %v10179_v39  ;;  %v9610_v14 = vpop.f32.mrb[18].mxu1  ;;  %v10182_v50 = vpop.f32.mrb[42].mxu0  ;;  %9882 = vmatpush3.bf16.msra.mxu1 %v11203_v46  ;;  %v13135_v47 = vcombine.high %v13033_v10, %v13042_v30  ;;  %v11211_v46 = vld [vmem:[#allocation12 + $0x318] sm:$0xff]   ;;  %v11212_v39 = vld [vmem:[#allocation12 + $0x360] sm:$0xff]  }
 0x4c5   :  { %v9611_v9 = vpop.f32.mrb[19].mxu1  ;;  %v10183_v53 = vpop.f32.mrb[43].mxu0  ;;  %9883 = vmatprep.subr.bf16.mxu1 %v11206_v8 }
 0x4c6   :  { %13829 = vst [vmem:[#allocation44_spill] sm:$0xff] %v13123_v38  ;;  %v13129_v12 = vadd.f32 %v9611_v9, %v9610_v14  ;;  %v13131_v21 = vadd.f32 %v10183_v53, %v10182_v50  ;;  %v11214_v50 = vld [vmem:[#allocation12 + $0x320] sm:$0xff]   ;;  %v13145_v38 = vcombine.low %v13033_v10, %v13042_v30 }
 0x4c7   :  { %5758 = vmatmul.mubr.bf16.gmra.mrb[124].mxu1 %v13127_v55 }
 0x4c8   :  { %13830 = vst [vmem:[#allocation45_spill] sm:$0xff] %v13131_v21  ;;  %5765 = vmatprep.mubr.bf16.mxu1 %v13135_v47  ;;  %9884 = vmatpush3.bf16.msra.mxu1 %v11207_v33 }
 0x4c9   :  { %9885 = vmatprep.subr.bf16.mxu1 %v11210_v60  ;;  %v11216_v60 = vld [vmem:[#allocation12 + $0x368] sm:$0xff]  }
 0x4ca   :  { %v9613_v35 = vpop.f32.mrb[20].mxu1  ;;  %v10185_v1 = vpop.f32.mrb[44].mxu0 }
 0x4cb   :  { %v9614_v8 = vpop.f32.mrb[21].mxu1  ;;  %v10186_v62 = vpop.f32.mrb[45].mxu0 }
 0x4cc   :  { %v13139_v9 = vadd.f32 %v9614_v8, %v9613_v35  ;;  %v9616_v53 = vpop.f32.mrb[22].mxu1  ;;  %v13141_v56 = vadd.f32 %v10186_v62, %v10185_v1  ;;  %v10188_v14 = vpop.f32.mrb[46].mxu0  ;;  %9886 = vmatpush3.bf16.msra.mxu1 %v11211_v46  ;;  %v11217_v35 = vld [vmem:[#allocation12 + $0x328] sm:$0xff]   ;;  %v11220_v46 = vld [vmem:[#allocation12 + $0x370] sm:$0xff]  }
 0x4cd   :  { %v9617_v21 = vpop.f32.mrb[23].mxu1  ;;  %v10189_v33 = vpop.f32.mrb[47].mxu0  ;;  %9887 = vmatprep.subr.bf16.mxu1 %v11212_v39  ;;  %v11221_v14 = vld [vmem:[#allocation12 + $0x330] sm:$0xff]  }
 0x4ce   :  { %13831 = vst [vmem:[#allocation46_spill] sm:$0xff] %v13141_v56 }
 0x4cf   :  { %5766 = vmatmul.mubr.bf16.gmra.mrb[128].mxu1 %v13145_v38 }
 0x4d0   :  { %5773 = vmatprep.mubr.bf16.mxu1 %v13149_v11  ;;  %9888 = vmatpush3.bf16.msra.mxu1 %v11214_v50  ;;  %v11223_v50 = vld [vmem:[#allocation12 + $0x378] sm:$0xff]  }
 0x4d1   :  { %9889 = vmatprep.subr.bf16.mxu1 %v11216_v60 }
 0x4d2   :  { %v9635_v21 = vpop.f32.mrb[24].mxu1  ;;  %v10259_v1 = vpop.f32.mrb[48].mxu0 }
 0x4d3   :  { %v9636_v8 = vpop.f32.mrb[25].mxu1  ;;  %v10260_v10 = vpop.f32.mrb[49].mxu0 }
 0x4d4   :  { %v9637_v30 = vadd.f32 %v9636_v8, %v9635_v21  ;;  %v13153_v62 = vadd.f32 %v10260_v10, %v10259_v1  ;;  %v9638_v39 = vpop.f32.mrb[26].mxu1  ;;  %v10262_v53 = vpop.f32.mrb[50].mxu0  ;;  %9890 = vmatpush3.bf16.msra.mxu1 %v11217_v35  ;;  %v13166_v21 = vcombine.high %v12913_v43, %v12911_v31 }
 0x4d5   :  { %v9639_v33 = vpop.f32.mrb[27].mxu1  ;;  %v10263_v56 = vpop.f32.mrb[51].mxu0  ;;  %9891 = vmatprep.subr.bf16.mxu1 %v11220_v46 }
 0x4d6   :  { %13832 = vst [vmem:[#allocation47_spill] sm:$0xff] %v13153_v62  ;;  %v13160_v60 = vadd.f32 %v9637_v30, %v13061_v61  ;;  %v9640_v22 = vadd.f32 %v9639_v33, %v9638_v39  ;;  %v13162_v16 = vadd.f32 %v10263_v56, %v10262_v53  ;;  %v5861_v56 = vshll.u32 %v13102_v0, 16 }
 0x4d7   :  { %5774 = vmatmul.mubr.bf16.gmra.mrb[132].mxu1 %v13157_v15  ;;  %v9318_v33 = vcombine.high %v13059_v5, %v13059_v5 }
 0x4d8   :  { %13833 = vst [vmem:[#allocation48_spill] sm:$0xff] %v13162_v16  ;;  %v13170_v35 = vadd.f32 %v9640_v22, %v13069_v36  ;;  %5781 = vmatprep.mubr.bf16.mxu1 %v13166_v21  ;;  %9892 = vmatpush3.bf16.msra.mxu1 %v11221_v14 }
 0x4d9   :  { %9893 = vmatprep.subr.bf16.mxu1 %v11223_v50  ;;  %v5863_v50 = vrot.slane %v5861_v56, 1 }
 0x4da   :  { %v9641_v61 = vpop.f32.mrb[28].mxu1  ;;  %v10265_v46 = vpop.f32.mrb[52].mxu0 }
 0x4db   :  { %v9642_v1 = vpop.f32.mrb[29].mxu1  ;;  %v10266_v8 = vpop.f32.mrb[53].mxu0 }
 0x4dc   :  { %v9643_v10 = vadd.f32 %v9642_v1, %v9641_v61  ;;  %v13174_v31 = vadd.f32 %v10266_v8, %v10265_v46  ;;  %v9644_v43 = vpop.f32.mrb[30].mxu1  ;;  %v10268_v30 = vpop.f32.mrb[54].mxu0  ;;  %9894 = vmatpush3.bf16.msra.mxu1 %v11224_v7  ;;  %v5859_v7 = vshrl.u32 %v13102_v0, 16  ;;  %v5849_v1 = vshll.u32 %v13111_v26, 16 }
 0x4dd   :  { %v9645_v22 = vpop.f32.mrb[31].mxu1  ;;  %v10269_v36 = vpop.f32.mrb[55].mxu0  ;;  %9931 = vmatprep.subr.bf16.mxu1 %v11225_v51  ;;  %v5866_v51 = vshll.u32 %v13117_v3, 16 }
 0x4de   :  { %13834 = vst [vmem:[#allocation49_spill] sm:$0xff] %v13174_v31  ;;  %v13177_v39 = vadd.f32 %v9643_v10, %v13079_v20  ;;  %v9646_v53 = vadd.f32 %v9645_v22, %v9644_v43  ;;  %v13179_v14 = vadd.f32 %v10269_v36, %v10268_v30  ;;  %v5864_v43 = vor.u32 %v5863_v50, %v5859_v7 }
 0x4df   :  { %5782 = vmatmul.mubr.bf16.gmra.mrb[136].mxu1 %v12920_v17  ;;  %v5868_v0 = vrot.slane %v5866_v51, 1  ;;  %v5851_v62 = vrot.slane %v5849_v1, 1 }
 0x4e0   :  { %13835 = vst [vmem:[#allocation50_spill] sm:$0xff] %v13179_v14  ;;  %v13185_v61 = vadd.f32 %v9646_v53, %v13081_v34  ;;  %5789 = vmatprep.mubr.bf16.mxu1 %v9318_v33  ;;  %v9317_v53 = vcombine.low %v13059_v5, %v13059_v5  ;;  %v5878_v5 = vshrl.u32 %v13117_v3, 16 }
 0x4e1   :  { %v5869_v50 = vsel %vm166_vm0, %v5864_v43, %v5868_v0 }
 0x4e2   :  { %v9647_v46 = vpop.f32.mrb[32].mxu1  ;;  %v10271_v20 = vpop.f32.mrb[56].mxu0 }
 0x4e3   :  { %v9648_v8 = vpop.f32.mrb[33].mxu1  ;;  %v10272_v10 = vpop.f32.mrb[57].mxu0 }
 0x4e4   :  { %v9649_v30 = vadd.f32 %v9648_v8, %v9647_v46  ;;  %v13190_v22 = vadd.f32 %v10272_v10, %v10271_v20  ;;  %v9650_v36 = vpop.f32.mrb[34].mxu1  ;;  %v10274_v56 = vpop.f32.mrb[58].mxu0  ;;  %v5847_v46 = vshrl.u32 %v13111_v26, 16  ;;  %v5854_v20 = vshll.u32 %v13127_v55, 16 }
 0x4e5   :  { %v9651_v14 = vpop.f32.mrb[35].mxu1  ;;  %v10275_v34 = vpop.f32.mrb[59].mxu0 }
 0x4e6   :  { %13836 = vst [vmem:[#allocation51_spill] sm:$0xff] %v13190_v22  ;;  %v13195_v33 = vadd.f32 %v9649_v30, %v13087_v48  ;;  %v9652_v31 = vadd.f32 %v9651_v14, %v9650_v36  ;;  %v13197_v16 = vadd.f32 %v10275_v34, %v10274_v56  ;;  %v5882_v48 = vshll.u32 %v13135_v47, 16  ;;  %v11226_v34 = vld [vmem:[#allocation12 + $0x380] sm:$0xff]  }
 0x4e7   :  { %5790 = vmatmul.mubr.bf16.gmra.mrb[140].mxu1 %v9317_v53  ;;  %v5852_v8 = vor.u32 %v5851_v62, %v5847_v46  ;;  %v5880_v30 = vor.u32 %v5878_v5, %v5868_v0  ;;  %v5856_v56 = vrot.slane %v5854_v20, 1  ;;  %v11228_v20 = vld [vmem:[#allocation12 + $0x388] sm:$0xff]   ;;  %v5870_v5 = vshrl.u32 %v13127_v55, 16 }
 0x4e8   :  { %13837 = vst [vmem:[#allocation52_spill] sm:$0xff] %v13197_v16  ;;  %v13201_v7 = vadd.f32 %v9652_v31, %v13091_v54  ;;  %6080 = vmatprep.mubr.bf16.mxu1 %v5869_v50  ;;  %v5884_v50 = vrot.slane %v5882_v48, 1  ;;  %v11227_v16 = vld [vmem:[#allocation12 + $0x3c8] sm:$0xff]   ;;  %v5874_v48 = vshll.u32 %v13145_v38, 16 }
 0x4e9   :  { %v5857_v62 = vsel %vm166_vm0, %v5852_v8, %v5856_v56 }
 0x4ea   :  { %v9653_v51 = vpop.f32.mrb[36].mxu1  ;;  %v10277_v14 = vpop.f32.mrb[60].mxu0  ;;  %v5885_v0 = vsel %vm166_vm0, %v5880_v30, %v5884_v50 }
 0x4eb   :  { %v9654_v10 = vpop.f32.mrb[37].mxu1  ;;  %v10278_v1 = vpop.f32.mrb[61].mxu0 }
 0x4ec   :  { %v9655_v36 = vadd.f32 %v9654_v10, %v9653_v51  ;;  %v13207_v43 = vadd.f32 %v10278_v1, %v10277_v14  ;;  %v9656_v54 = vpop.f32.mrb[38].mxu1  ;;  %v10280_v31 = vpop.f32.mrb[62].mxu0  ;;  %v5898_v51 = vshll.u32 %v13149_v11, 16  ;;  %v11229_v14 = vld [vmem:[#allocation12 + $0x3d0] sm:$0xff]   ;;  %v5872_v1 = vor.u32 %v5870_v5, %v5856_v56 }
 0x4ed   :  { %v9657_v26 = vpop.f32.mrb[39].mxu1  ;;  %v10281_v53 = vpop.f32.mrb[63].mxu0 }
 0x4ee   :  { %13838 = vst [vmem:[#allocation53_spill] sm:$0xff] %v13207_v43  ;;  %v13210_v22 = vadd.f32 %v9655_v36, %v13096_v13  ;;  %v9658_v23 = vadd.f32 %v9657_v26, %v9656_v54  ;;  %v13212_v57 = vadd.f32 %v10281_v53, %v10280_v31  ;;  %v5894_v13 = vshrl.u32 %v13135_v47, 16  ;;  %v11230_v53 = vld [vmem:[#allocation12 + $0x390] sm:$0xff]  }
 0x4ef   :  { %6081 = vmatmul.mubr.bf16.vlgmr.msra.gmra.mrb[144].mxu1 %v5857_v62  ;;  %v5876_v26 = vrot.slane %v5874_v48, 1  ;;  %v5886_v48 = vshrl.u32 %v13145_v38, 16 }
 0x4f0   :  { %13839 = vst [vmem:[#allocation54_spill] sm:$0xff] %v13212_v57  ;;  %v13217_v46 = vadd.f32 %v9658_v23, %v13104_v4  ;;  %9932 = vmatpush3.bf16.msra.mxu1 %v11226_v34  ;;  %6088 = vmatprep.mubr.bf16.mxu1 %v5885_v0  ;;  %v5896_v23 = vor.u32 %v5894_v13, %v5884_v50  ;;  %v5900_v0 = vrot.slane %v5898_v51, 1  ;;  %v11231_v57 = vld [vmem:[#allocation12 + $0x3d8] sm:$0xff]   ;;  %v5890_v51 = vshll.u32 %v13157_v15, 16 }
 0x4f1   :  { %9933 = vmatprep.subr.bf16.mxu1 %v11227_v16  ;;  %v5877_v50 = vsel %vm166_vm0, %v5872_v1, %v5876_v26 }
 0x4f2   :  { %v9659_v8 = vpop.f32.mrb[40].mxu1  ;;  %v10283_v10 = vpop.f32.mrb[64].mxu0  ;;  %v5901_v13 = vsel %vm166_vm0, %v5896_v23, %v5900_v0  ;;  %v5808_v23 = vld [vmem:[#allocation2 + $0x58] sm:$0x77] }
 0x4f3   :  { %v9660_v30 = vpop.f32.mrb[41].mxu1  ;;  %v10284_v36 = vpop.f32.mrb[65].mxu0 }
 0x4f4   :  { %v9661_v4 = vadd.f32 %v9660_v30, %v9659_v8  ;;  %v13223_v54 = vadd.f32 %v10284_v36, %v10283_v10  ;;  %v9662_v31 = vpop.f32.mrb[42].mxu1  ;;  %v10286_v34 = vpop.f32.mrb[66].mxu0  ;;  %9934 = vmatpush3.bf16.msra.mxu1 %v11228_v20  ;;  %v5914_v8 = vshll.u32 %v13166_v21, 16  ;;  %v11233_v10 = vld [vmem:[#allocation12 + $0x3e0] sm:$0xff]   ;;  %v5888_v36 = vor.u32 %v5886_v48, %v5876_v26 }
 0x4f5   :  { %v9663_v16 = vpop.f32.mrb[43].mxu1  ;;  %v10287_v62 = vpop.f32.mrb[67].mxu0  ;;  %9935 = vmatprep.subr.bf16.mxu1 %v11229_v14  ;;  %v11232_v14 = vld [vmem:[#allocation12 + $0x398] sm:$0xff]  }
 0x4f6   :  { %13840 = vst [vmem:[#allocation55_spill] sm:$0xff] %v13223_v54  ;;  %v13226_v43 = vadd.f32 %v9661_v4, %v13121_v25  ;;  %v9664_v56 = vadd.f32 %v9663_v16, %v9662_v31  ;;  %v13228_v5 = vadd.f32 %v10287_v62, %v10286_v34  ;;  %v5910_v25 = vshrl.u32 %v13149_v11, 16 }
 0x4f7   :  { %6089 = vmatmul.mubr.bf16.gmra.mrb[148].mxu1 %v5877_v50  ;;  %v5892_v16 = vrot.slane %v5890_v51, 1  ;;  %v11234_v50 = vld [vmem:[#allocation12 + $0x3a0] sm:$0xff]   ;;  %v5902_v51 = vshrl.u32 %v13157_v15, 16 }
 0x4f8   :  { %13841 = vst [vmem:[#allocation56_spill] sm:$0xff] %v13228_v5  ;;  %v13233_v20 = vadd.f32 %v9664_v56, %v13129_v12  ;;  %6096 = vmatprep.mubr.bf16.mxu1 %v5901_v13  ;;  %9936 = vmatpush3.bf16.msra.mxu1 %v11230_v53  ;;  %v5912_v31 = vor.u32 %v5910_v25, %v5900_v0  ;;  %v5916_v5 = vrot.slane %v5914_v8, 1  ;;  %v11237_v25 = vld [vmem:[#allocation12 + $0x3a8] sm:$0xff]  }
 0x4f9   :  { %9937 = vmatprep.subr.bf16.mxu1 %v11231_v57  ;;  %v13241_v57 = vcombine.high %v5808_v23, %v5808_v23  ;;  %v5893_v26 = vsel %vm166_vm0, %v5888_v36, %v5892_v16 }
 0x4fa   :  { %v9665_v1 = vpop.f32.mrb[44].mxu1  ;;  %v10289_v30 = vpop.f32.mrb[68].mxu0  ;;  %v5917_v0 = vsel %vm166_vm0, %v5912_v31, %v5916_v5 }
 0x4fb   :  { %v9666_v4 = vpop.f32.mrb[45].mxu1  ;;  %v10290_v12 = vpop.f32.mrb[69].mxu0  ;;  %v5930_v8 = vshll.u32 %v13241_v57, 16 }
 0x4fc   :  { %v9667_v34 = vadd.f32 %v9666_v4, %v9665_v1  ;;  %v9668_v53 = vpop.f32.mrb[46].mxu1  ;;  %v13239_v62 = vadd.f32 %v10290_v12, %v10289_v30  ;;  %v10292_v56 = vpop.f32.mrb[70].mxu0  ;;  %9938 = vmatpush3.bf16.msra.mxu1 %v11232_v14  ;;  %v5906_v14 = vshll.u32 %v12920_v17, 16 }
 0x4fd   :  { %v9669_v13 = vpop.f32.mrb[47].mxu1  ;;  %v10293_v54 = vpop.f32.mrb[71].mxu0  ;;  %9939 = vmatprep.subr.bf16.mxu1 %v11233_v10  ;;  %v11239_v10 = vld [vmem:[#allocation12 + $0x3f0] sm:$0xff]  }
 0x4fe   :  { %13842 = vst [vmem:[#allocation57_spill] sm:$0xff] %v13239_v62  ;;  %v13245_v48 = vadd.f32 %v9667_v34, %v13139_v9  ;;  %v5926_v54 = vshrl.u32 %v13166_v21, 16  ;;  %v5904_v9 = vor.u32 %v5902_v51, %v5892_v16  ;;  %v5908_v13 = vrot.slane %v5906_v14, 1 }
 0x4ff   :  { %6097 = vmatmul.mubr.bf16.gmra.mrb[152].mxu1 %v5893_v26  ;;  %v11240_v26 = vld [vmem:[#allocation12 + $0x3b0] sm:$0xff]  }
 0x500   :  { %6104 = vmatprep.mubr.bf16.mxu1 %v5917_v0  ;;  %9940 = vmatpush3.bf16.msra.mxu1 %v11234_v50  ;;  %v5928_v12 = vor.u32 %v5926_v54, %v5916_v5  ;;  %v13254_v50 = vcombine.low %v5808_v23, %v5808_v23  ;;  %v5909_v5 = vsel %vm166_vm0, %v5904_v9, %v5908_v13  ;;  %v5918_v23 = vshrl.u32 %v12920_v17, 16  ;;  %v11244_v54 = vld [vmem:[#allocation12 + $0x3b8] sm:$0xff]  }
 0x501   :  { %9941 = vmatprep.subr.bf16.mxu1 %v11236_v2  ;;  %v5932_v2 = vrot.slane %v5930_v8, 1 }
 0x502   :  { %v9687_v1 = vpop.f32.mrb[48].mxu1  ;;  %v10363_v30 = vpop.f32.mrb[72].mxu0 }
 0x503   :  { %v9688_v36 = vpop.f32.mrb[49].mxu1  ;;  %v10364_v4 = vpop.f32.mrb[73].mxu0  ;;  %v5933_v14 = vsel %vm166_vm0, %v5928_v12, %v5932_v2 }
 0x504   :  { %v9689_v31 = vadd.f32 %v9688_v36, %v9687_v1  ;;  %v13252_v34 = vadd.f32 %v10364_v4, %v10363_v30  ;;  %v9690_v53 = vpop.f32.mrb[50].mxu1  ;;  %v10366_v56 = vpop.f32.mrb[74].mxu0  ;;  %9942 = vmatpush3.bf16.msra.mxu1 %v11237_v25  ;;  %v5922_v25 = vshll.u32 %v13254_v50, 16  ;;  %v5920_v30 = vor.u32 %v5918_v23, %v5908_v13 }
 0x505   :  { %v9691_v0 = vpop.f32.mrb[51].mxu1  ;;  %v10367_v62 = vpop.f32.mrb[75].mxu0  ;;  %9943 = vmatprep.subr.bf16.mxu1 %v11239_v10  ;;  %v5937_v36 = vshrl.u32 %v13241_v57, 16 }
 0x506   :  { %v9692_v27 = vadd.f32 %v9691_v0, %v9690_v53  ;;  %v13256_v16 = vadd.f32 %v10367_v62, %v10366_v56  ;;  %v13260_v51 = vadd.f32 %v9689_v31, %v13160_v60  ;;  %v11245_v62 = vld [vmem:[#allocation12 + $0x440] sm:$0xff]   ;;  %v5924_v56 = vrot.slane %v5922_v25, 1 }
 0x507   :  { %6105 = vmatmul.mubr.bf16.gmra.mrb[156].mxu1 %v5909_v5 }
 0x508   :  { %6112 = vmatprep.mubr.bf16.mxu1 %v5933_v14  ;;  %9944 = vmatpush3.bf16.msra.mxu1 %v11240_v26  ;;  %v13266_v8 = vadd.f32 %v9692_v27, %v13170_v35  ;;  %v6139_v26 = vld [vmem:[#allocation2 + $0x8] sm:$0xee]  ;;  %v5939_v35 = vor.u32 %v5937_v36, %v5932_v2  ;;  %v5925_v13 = vsel %vm166_vm0, %v5920_v30, %v5924_v56 }
 0x509   :  { %9945 = vmatprep.subr.bf16.mxu1 %v11241_v63  ;;  %v9354_v23 = vcombine.high %v6139_v26, %v13021_v58 }
 0x50a   :  { %v9693_v10 = vpop.f32.mrb[52].mxu1  ;;  %v10369_v1 = vpop.f32.mrb[76].mxu0 }
 0x50b   :  { %v9694_v60 = vpop.f32.mrb[53].mxu1  ;;  %v10370_v9 = vpop.f32.mrb[77].mxu0 }
 0x50c   :  { %v9695_v4 = vadd.f32 %v9694_v60, %v9693_v10  ;;  %v13269_v12 = vadd.f32 %v10370_v9, %v10369_v1  ;;  %v9696_v31 = vpop.f32.mrb[54].mxu1  ;;  %v10372_v53 = vpop.f32.mrb[78].mxu0  ;;  %9946 = vmatpush3.bf16.msra.mxu1 %v11244_v54  ;;  %v6180_v60 = vrot.slane %v9354_v23, 1  ;;  %v6181_v9 = vrot.slane %v13117_v3, 1 }
 0x50d   :  { %v9697_v0 = vpop.f32.mrb[55].mxu1  ;;  %v10373_v27 = vpop.f32.mrb[79].mxu0  ;;  %9983 = vmatprep.subr.bf16.mxu1 %v11245_v62  ;;  %v5934_v62 = vshrl.u32 %v13254_v50, 16 }
 0x50e   :  { %v9698_v63 = vadd.f32 %v9697_v0, %v9696_v31  ;;  %v13271_v5 = vadd.f32 %v10373_v27, %v10372_v53  ;;  %v13275_v14 = vadd.f32 %v9695_v4, %v13177_v39 }
 0x50f   :  { %6113 = vmatmul.mubr.bf16.gmra.mrb[160].mxu1 %v5925_v13  ;;  %v5936_v0 = vor.u32 %v5934_v62, %v5924_v56  ;;  %v6182_v13 = vsel %vm308_vm1, %v6180_v60, %v6181_v9 }
 0x510   :  { %6120 = vmatprep.mubr.bf16.mxu1 %v5939_v35  ;;  %v13279_v25 = vadd.f32 %v9698_v63, %v13185_v61  ;;  %v9353_v35 = vcombine.low %v6139_v26, %v13021_v58  ;;  %v11246_v58 = vld [vmem:[#allocation12 + $0x400] sm:$0xff]  }
 0x512   :  { %v9699_v54 = vpop.f32.mrb[56].mxu1  ;;  %v10375_v10 = vpop.f32.mrb[80].mxu0  ;;  %v6177_v23 = vrot.slane %v9353_v35, 1 }
 0x513   :  { %v9700_v1 = vpop.f32.mrb[57].mxu1  ;;  %v10376_v2 = vpop.f32.mrb[81].mxu0 }
 0x514   :  { %v9701_v30 = vadd.f32 %v9700_v1, %v9699_v54  ;;  %v13283_v36 = vadd.f32 %v10376_v2, %v10375_v10  ;;  %v9702_v39 = vpop.f32.mrb[58].mxu1  ;;  %v10378_v4 = vpop.f32.mrb[82].mxu0  ;;  %v6178_v10 = vrot.slane %v13127_v55, 1  ;;  %v6185_v1 = vrot.slane %v13135_v47, 1  ;;  %v11248_v55 = vld [vmem:[#allocation12 + $0x408] sm:$0xff]   ;;  %v11249_v47 = vld [vmem:[#allocation12 + $0x450] sm:$0xff]  }
 0x515   :  { %v9703_v31 = vpop.f32.mrb[59].mxu1  ;;  %v10379_v53 = vpop.f32.mrb[83].mxu0 }
 0x516   :  { %v9704_v27 = vadd.f32 %v9703_v31, %v9702_v39  ;;  %v13285_v61 = vadd.f32 %v10379_v53, %v10378_v4  ;;  %v13289_v63 = vadd.f32 %v9701_v30, %v13195_v33  ;;  %v11247_v33 = vld [vmem:[#allocation12 + $0x448] sm:$0xff]   ;;  %v6179_v39 = vsel %vm308_vm1, %v6177_v23, %v6178_v10 }
 0x517   :  { %6121 = vmatmul.mubr.bf16.gmra.mrb[164].mxu1 %v5936_v0  ;;  %v6183_v53 = vrot.slane %v13145_v38, 1  ;;  %v11252_v38 = vld [vmem:[#allocation12 + $0x418] sm:$0xff]  }
 0x518   :  { %13843 = vst [vmem:[#allocation58_spill] sm:$0xff] %v13285_v61  ;;  %6339 = vmatprep.mubr.bf16.mxu1 %v6182_v13  ;;  %v13293_v3 = vadd.f32 %v9704_v27, %v13201_v7  ;;  %v6186_v7 = vsel %vm308_vm1, %v6181_v9, %v6185_v1  ;;  %v6189_v27 = vrot.slane %v13149_v11, 1  ;;  %v11250_v13 = vld [vmem:[#allocation12 + $0x410] sm:$0xff]   ;;  %v11251_v9 = vld [vmem:[#allocation12 + $0x458] sm:$0xff]  }
 0x51a   :  { %v9705_v54 = vpop.f32.mrb[60].mxu1 }
 0x51b   :  { %v9706_v56 = vpop.f32.mrb[61].mxu1 }
 0x51c   :  { %v9707_v2 = vadd.f32 %v9706_v56, %v9705_v54  ;;  %v9708_v62 = vpop.f32.mrb[62].mxu1  ;;  %v6184_v56 = vsel %vm308_vm1, %v6178_v10, %v6183_v53  ;;  %v6193_v10 = vrot.slane %v13166_v21, 1  ;;  %v11257_v21 = vld [vmem:[#allocation12 + $0x470] sm:$0xff]  }
 0x51d   :  { %v9709_v26 = vpop.f32.mrb[63].mxu1 }
 0x51e   :  { %v9710_v30 = vadd.f32 %v9709_v26, %v9708_v62  ;;  %v13299_v60 = vadd.f32 %v9707_v2, %v13210_v22  ;;  %v6190_v2 = vsel %vm308_vm1, %v6185_v1, %v6189_v27  ;;  %v11253_v62 = vld [vmem:[#allocation12 + $0x460] sm:$0xff]   ;;  %v6187_v26 = vrot.slane %v13157_v15, 1  ;;  %v11255_v1 = vld [vmem:[#allocation12 + $0x468] sm:$0xff]  }
 0x51f   :  { %6340 = vmatmul.mubr.bf16.vlgmr.msra.gmra.mrb[168].mxu1 %v6179_v39  ;;  %v11254_v39 = vld [vmem:[#allocation12 + $0x420] sm:$0xff]   ;;  %v11256_v15 = vld [vmem:[#allocation12 + $0x428] sm:$0xff]  }
 0x520   :  { %9984 = vmatpush3.bf16.msra.mxu1 %v11246_v58  ;;  %6347 = vmatprep.mubr.bf16.mxu1 %v6186_v7  ;;  %v13303_v4 = vadd.f32 %v9710_v30, %v13217_v46 }
 0x521   :  { %9985 = vmatprep.subr.bf16.mxu1 %v11247_v33 }
 0x522   :  { %v9711_v31 = vpop.f32.mrb[64].mxu1 }
 0x523   :  { %v9712_v0 = vpop.f32.mrb[65].mxu1 }
 0x524   :  { %v9713_v35 = vadd.f32 %v9712_v0, %v9711_v31  ;;  %v9714_v22 = vpop.f32.mrb[66].mxu1  ;;  %9986 = vmatpush3.bf16.msra.mxu1 %v11248_v55  ;;  %v6191_v0 = vrot.slane %v12920_v17, 1 }
 0x525   :  { %v9715_v23 = vpop.f32.mrb[67].mxu1  ;;  %9987 = vmatprep.subr.bf16.mxu1 %v11249_v47  ;;  %v6194_v47 = vsel %vm308_vm1, %v6189_v27, %v6193_v10 }
 0x526   :  { %v9716_v54 = vadd.f32 %v9715_v23, %v9714_v22  ;;  %v13309_v46 = vadd.f32 %v9713_v35, %v13226_v43  ;;  %v6197_v22 = vrot.slane %v13241_v57, 1  ;;  %v11260_v57 = vld [vmem:[#allocation12 + $0x438] sm:$0xff]  }
 0x527   :  { %6348 = vmatmul.mubr.bf16.gmra.mrb[172].mxu1 %v6184_v56  ;;  %v6192_v56 = vsel %vm308_vm1, %v6187_v26, %v6191_v0 }
 0x528   :  { %6355 = vmatprep.mubr.bf16.mxu1 %v6190_v2  ;;  %9988 = vmatpush3.bf16.msra.mxu1 %v11250_v13  ;;  %v13313_v11 = vadd.f32 %v9716_v54, %v13233_v20  ;;  %v6188_v20 = vsel %vm308_vm1, %v6183_v53, %v6187_v26  ;;  %v11259_v53 = vld [vmem:[#allocation12 + $0x478] sm:$0xff]   ;;  %v6198_v2 = vsel %vm308_vm1, %v6193_v10, %v6197_v22 }
 0x529   :  { %9989 = vmatprep.subr.bf16.mxu1 %v11251_v9 }
 0x52a   :  { %v9717_v58 = vpop.f32.mrb[68].mxu1 }
 0x52b   :  { %v9718_v33 = vpop.f32.mrb[69].mxu1 }
 0x52c   :  { %v9719_v30 = vadd.f32 %v9718_v33, %v9717_v58  ;;  %v9720_v43 = vpop.f32.mrb[70].mxu1  ;;  %9990 = vmatpush3.bf16.msra.mxu1 %v11252_v38  ;;  %v11261_v38 = vld [vmem:[#allocation12 + $0x4c0] sm:$0xff]   ;;  %v6195_v58 = vrot.slane %v13254_v50, 1  ;;  %v13342_v50 = vld [vmem:[#allocation2 + $0x18] sm:$0xff] }
 0x52d   :  { %v9721_v7 = vpop.f32.mrb[71].mxu1  ;;  %9991 = vmatprep.subr.bf16.mxu1 %v11253_v62  ;;  %v6398_v43 = vld [vmem:[#allocation2 + $0x8] sm:$0x88] }
 0x52e   :  { %v13318_v55 = vadd.f32 %v9719_v30, %v13245_v48  ;;  %v11258_v48 = vld [vmem:[#allocation12 + $0x430] sm:$0xff]  }
 0x52f   :  { %6356 = vmatmul.mubr.bf16.gmra.mrb[176].mxu1 %v6188_v20  ;;  %v11339_v7 = vld [vmem:[#allocation2 + $0x10] sm:$0xff] }
 0x530   :  { %6363 = vmatprep.mubr.bf16.mxu1 %v6194_v47  ;;  %9992 = vmatpush3.bf16.msra.mxu1 %v11254_v39  ;;  %v6196_v39 = vsel %vm308_vm1, %v6191_v0, %v6195_v58  ;;  %v11341_v47 = vld [vmem:[#allocation2 + $0x20] sm:$0xff] }
 0x531   :  { %9993 = vmatprep.subr.bf16.mxu1 %v11255_v1  ;;  %v13337_v1 = vcombine.high %v6398_v43, %v11339_v7 }
 0x532   :  { %v9739_v31 = vpop.f32.mrb[72].mxu1 }
 0x533   :  { %v9740_v35 = vpop.f32.mrb[73].mxu1 }
 0x534   :  { %v9741_v13 = vadd.f32 %v9740_v35, %v9739_v31  ;;  %v9742_v23 = vpop.f32.mrb[74].mxu1  ;;  %9994 = vmatpush3.bf16.msra.mxu1 %v11256_v15  ;;  %v13345_v15 = vcombine.high %v13342_v50, %v11341_v47  ;;  %v6493_v31 = vrot.slane %v13337_v1, 3 }
 0x535   :  { %v9743_v9 = vpop.f32.mrb[75].mxu1  ;;  %9995 = vmatprep.subr.bf16.mxu1 %v11257_v21 }
 0x536   :  { %v13325_v27 = vadd.f32 %v9741_v13, %v13260_v51  ;;  %v9744_v54 = vadd.f32 %v9743_v9, %v9742_v23  ;;  %v6494_v23 = vrot.slane %v13345_v15, 3 }
 0x537   :  { %6364 = vmatmul.mubr.bf16.gmra.mrb[180].mxu1 %v6192_v56 }
 0x538   :  { %v13330_v17 = vadd.f32 %v9744_v54, %v13266_v8  ;;  %6371 = vmatprep.mubr.bf16.mxu1 %v6198_v2  ;;  %9996 = vmatpush3.bf16.msra.mxu1 %v11258_v48  ;;  %v6495_v9 = vsel %vm1898_vm4, %v6493_v31, %v6494_v23  ;;  %v11343_v54 = vld [vmem:[#allocation2 + $0x30] sm:$0xff]  ;;  %v11345_v31 = vld [vmem:[#allocation2 + $0x40] sm:$0xff] }
 0x539   :  { %9997 = vmatprep.subr.bf16.mxu1 %v11259_v53  ;;  %v11342_v53 = vld [vmem:[#allocation2 + $0x28] sm:$0xff] }
 0x53a   :  { %v9745_v62 = vpop.f32.mrb[76].mxu1  ;;  %v13355_v56 = vcombine.high %v11342_v53, %v11343_v54 }
 0x53b   :  { %v9746_v33 = vpop.f32.mrb[77].mxu1 }
 0x53c   :  { %v9747_v51 = vadd.f32 %v9746_v33, %v9745_v62  ;;  %v9748_v30 = vpop.f32.mrb[78].mxu1  ;;  %9998 = vmatpush3.bf16.msra.mxu1 %v11260_v57  ;;  %v13361_v57 = vcombine.low %v13342_v50, %v11341_v47  ;;  %v6498_v33 = vrot.slane %v13355_v56, 3  ;;  %v13370_v47 = vcombine.low %v11342_v53, %v11343_v54 }
 0x53d   :  { %v9749_v26 = vpop.f32.mrb[79].mxu1  ;;  %10035 = vmatprep.subr.bf16.mxu1 %v11261_v38 }
 0x53e   :  { %v13334_v10 = vadd.f32 %v9747_v51, %v13275_v14  ;;  %v9750_v8 = vadd.f32 %v9749_v26, %v9748_v30  ;;  %v6491_v30 = vrot.slane %v13361_v57, 3 }
 0x53f   :  { %6372 = vmatmul.mubr.bf16.gmra.mrb[184].mxu1 %v6196_v39 }
 0x540   :  { %v13340_v20 = vadd.f32 %v9750_v8, %v13279_v25  ;;  %6379 = vmatprep.mubr.bf16.mxu1 %v6197_v22  ;;  %v13352_v22 = vcombine.low %v6398_v43, %v11339_v7  ;;  %v11262_v43 = vld [vmem:[#allocation12 + $0x480] sm:$0xff]   ;;  %v11263_v8 = vld [vmem:[#allocation12 + $0x4c8] sm:$0xff]  }
 0x542   :  { %v9751_v21 = vpop.f32.mrb[80].mxu1 }
 0x543   :  { %v9752_v14 = vpop.f32.mrb[81].mxu1 }
 0x544   :  { %v9753_v35 = vadd.f32 %v9752_v14, %v9751_v21  ;;  %v9754_v0 = vpop.f32.mrb[82].mxu1  ;;  %v6499_v21 = vsel %vm1898_vm4, %v6494_v23, %v6498_v33  ;;  %v11344_v14 = vld [vmem:[#allocation2 + $0x38] sm:$0xff] }
 0x545   :  { %v9755_v13 = vpop.f32.mrb[83].mxu1 }
 0x546   :  { %v13350_v48 = vadd.f32 %v9753_v35, %v13289_v63  ;;  %v9756_v25 = vadd.f32 %v9755_v13, %v9754_v0  ;;  %v6490_v63 = vrot.slane %v13352_v22, 3  ;;  %v13373_v35 = vcombine.high %v11344_v14, %v11345_v31  ;;  %v11264_v13 = vld [vmem:[#allocation12 + $0x488] sm:$0xff]  }
 0x547   :  { %6380 = vmatmul.mubr.bf16.gmra.mrb[188].mxu1 %v6195_v58 }
 0x548   :  { %v13358_v2 = vadd.f32 %v9756_v25, %v13293_v3  ;;  %6652 = vmatprep.mubr.bf16.mxu1 %v6495_v9  ;;  %v6492_v7 = vsel %vm1898_vm4, %v6490_v63, %v6491_v30  ;;  %v6496_v9 = vrot.slane %v13370_v47, 3  ;;  %v6502_v54 = vrot.slane %v13373_v35, 3  ;;  %v11266_v63 = vld [vmem:[#allocation12 + $0x490] sm:$0xff]  }
 0x54a   :  { %v9757_v38 = vpop.f32.mrb[84].mxu1 }
 0x54b   :  { %v9758_v62 = vpop.f32.mrb[85].mxu1 }
 0x54c   :  { %v9759_v58 = vadd.f32 %v9758_v62, %v9757_v38  ;;  %v9760_v51 = vpop.f32.mrb[86].mxu1 }
 0x54d   :  { %v9761_v26 = vpop.f32.mrb[87].mxu1 }
 0x54e   :  { %v13367_v3 = vadd.f32 %v9759_v58, %v13299_v60  ;;  %v9762_v39 = vadd.f32 %v9761_v26, %v9760_v51  ;;  %v11265_v60 = vld [vmem:[#allocation12 + $0x4d0] sm:$0xff]   ;;  %v11267_v58 = vld [vmem:[#allocation12 + $0x4d8] sm:$0xff]   ;;  %v13384_v26 = vcombine.low %v11344_v14, %v11345_v31 }
 0x54f   :  { %6653 = vmatmul.mubr.bf16.vlgmr.msra.gmra.mrb[192].mxu1 %v6492_v7  ;;  %v11347_v7 = vld [vmem:[#allocation2 + $0x50] sm:$0xff] }
 0x550   :  { %v13376_v0 = vadd.f32 %v9762_v39, %v13303_v4  ;;  %10036 = vmatpush3.bf16.msra.mxu1 %v11262_v43  ;;  %6660 = vmatprep.mubr.bf16.mxu1 %v6499_v21  ;;  %v6497_v43 = vsel %vm1898_vm4, %v6491_v30, %v6496_v9  ;;  %v11346_v39 = vld [vmem:[#allocation2 + $0x48] sm:$0xff]  ;;  %v6500_v30 = vrot.slane %v13384_v26, 3 }
 0x551   :  { %10037 = vmatprep.subr.bf16.mxu1 %v11263_v8  ;;  %v6503_v8 = vsel %vm1898_vm4, %v6498_v33, %v6502_v54  ;;  %v13387_v21 = vcombine.high %v11346_v39, %v11347_v7 }
 0x552   :  { %v9763_v25 = vpop.f32.mrb[88].mxu1 }
 0x553   :  { %v9764_v53 = vpop.f32.mrb[89].mxu1  ;;  %v6506_v31 = vrot.slane %v13387_v21, 3 }
 0x554   :  { %v9765_v38 = vadd.f32 %v9764_v53, %v9763_v25  ;;  %v9766_v23 = vpop.f32.mrb[90].mxu1  ;;  %10038 = vmatpush3.bf16.msra.mxu1 %v11264_v13 }
 0x555   :  { %v9767_v62 = vpop.f32.mrb[91].mxu1  ;;  %10039 = vmatprep.subr.bf16.mxu1 %v11265_v60  ;;  %v11268_v60 = vld [vmem:[#allocation12 + $0x498] sm:$0xff]  }
 0x556   :  { %v13381_v4 = vadd.f32 %v9765_v38, %v13309_v46  ;;  %v9768_v51 = vadd.f32 %v9767_v62, %v9766_v23  ;;  %v11269_v46 = vld [vmem:[#allocation12 + $0x4e0] sm:$0xff]  }
 0x557   :  { %6661 = vmatmul.mubr.bf16.gmra.mrb[196].mxu1 %v6497_v43  ;;  %v11270_v38 = vld [vmem:[#allocation12 + $0x4a0] sm:$0xff]   ;;  %v6507_v43 = vsel %vm1898_vm4, %v6502_v54, %v6506_v31  ;;  %v11277_v54 = vld [vmem:[#allocation12 + $0x4f8] sm:$0xff]  }
 0x558   :  { %v13390_v13 = vadd.f32 %v9768_v51, %v13313_v11  ;;  %6668 = vmatprep.mubr.bf16.mxu1 %v6503_v8  ;;  %10040 = vmatpush3.bf16.msra.mxu1 %v11266_v63  ;;  %v6409_v23 = vld [vmem:[#allocation2 + $0x60] sm:$0x11]  ;;  %v11272_v11 = vld [vmem:[#allocation12 + $0x4e8] sm:$0xff]   ;;  %v6501_v63 = vsel %vm1898_vm4, %v6496_v9, %v6500_v30  ;;  %v13401_v8 = vld [vmem:[#allocation2 + $0x58] sm:$0xff] }
 0x559   :  { %10041 = vmatprep.subr.bf16.mxu1 %v11267_v58  ;;  %v13398_v58 = vcombine.low %v11346_v39, %v11347_v7  ;;  %v11276_v7 = vld [vmem:[#allocation12 + $0x4b0] sm:$0xff]  }
 0x55a   :  { %v9769_v25 = vpop.f32.mrb[92].mxu1 }
 0x55b   :  { %v9770_v14 = vpop.f32.mrb[93].mxu1 }
 0x55c   :  { %v9771_v53 = vadd.f32 %v9770_v14, %v9769_v25  ;;  %v9772_v33 = vpop.f32.mrb[94].mxu1  ;;  %10042 = vmatpush3.bf16.msra.mxu1 %v11268_v60  ;;  %v9382_v25 = vcombine.high %v13401_v8, %v6409_v23  ;;  %v11273_v60 = vld [vmem:[#allocation12 + $0x4a8] sm:$0xff]  }
 0x55d   :  { %v9773_v62 = vpop.f32.mrb[95].mxu1  ;;  %10043 = vmatprep.subr.bf16.mxu1 %v11269_v46  ;;  %v11275_v46 = vld [vmem:[#allocation12 + $0x4f0] sm:$0xff]  }
 0x55e   :  { %v13395_v51 = vadd.f32 %v9771_v53, %v13318_v55  ;;  %v6504_v55 = vrot.slane %v13398_v58, 3  ;;  %v6510_v33 = vrot.slane %v9382_v25, 3 }
 0x55f   :  { %6669 = vmatmul.mubr.bf16.gmra.mrb[200].mxu1 %v6501_v63 }
 0x560   :  { %6676 = vmatprep.mubr.bf16.mxu1 %v6507_v43  ;;  %10044 = vmatpush3.bf16.msra.mxu1 %v11270_v38  ;;  %v6505_v38 = vsel %vm1898_vm4, %v6500_v30, %v6504_v55  ;;  %v6511_v61 = vsel %vm1898_vm4, %v6506_v31, %v6510_v33  ;;  %v6770_v30 = vshll.u32 %v13337_v1, 16  ;;  %v6775_v31 = vshrl.u32 %v13345_v15, 16 }
 0x561   :  { %10045 = vmatprep.subr.bf16.mxu1 %v11272_v11  ;;  %v9381_v11 = vcombine.low %v13401_v8, %v6409_v23 }
 0x562   :  { %v9791_v14 = vpop.f32.mrb[96].mxu1 }
 0x563   :  { %v9792_v53 = vpop.f32.mrb[97].mxu1 }
 0x564   :  { %v9793_v9 = vadd.f32 %v9792_v53, %v9791_v14  ;;  %v9794_v39 = vpop.f32.mrb[98].mxu1  ;;  %10046 = vmatpush3.bf16.msra.mxu1 %v11273_v60  ;;  %v11278_v60 = vld [vmem:[#allocation12 + $0x4b8] sm:$0xff]   ;;  %v6508_v53 = vrot.slane %v9381_v11, 3  ;;  %v6777_v11 = vrot.slane %v6775_v31, 3 }
 0x565   :  { %v9795_v62 = vpop.f32.mrb[99].mxu1  ;;  %10047 = vmatprep.subr.bf16.mxu1 %v11275_v46  ;;  %v11279_v46 = vld [vmem:[#allocation12 + $0x540] sm:$0xff]  }
 0x566   :  { %v13406_v63 = vadd.f32 %v9793_v9, %v13325_v27  ;;  %v9796_v43 = vadd.f32 %v9795_v62, %v9794_v39  ;;  %v6767_v9 = vshrl.u32 %v13337_v1, 16 }
 0x567   :  { %6677 = vmatmul.mubr.bf16.gmra.mrb[204].mxu1 %v6505_v38  ;;  %v6772_v38 = vrot.slane %v6770_v30, 4  ;;  %v6758_v30 = vshrl.u32 %v13361_v57, 16 }
 0x568   :  { %v13412_v25 = vadd.f32 %v9796_v43, %v13330_v17  ;;  %6684 = vmatprep.mubr.bf16.mxu1 %v6511_v61  ;;  %10048 = vmatpush3.bf16.msra.mxu1 %v11276_v7  ;;  %v6778_v17 = vshll.u32 %v13345_v15, 16  ;;  %v6769_v43 = vrot.slane %v6767_v9, 3  ;;  %v6753_v15 = vshll.u32 %v13352_v22, 16 }
 0x569   :  { %10049 = vmatprep.subr.bf16.mxu1 %v11277_v54  ;;  %v6509_v54 = vsel %vm1898_vm4, %v6504_v55, %v6508_v53  ;;  %v6796_v55 = vshll.u32 %v13355_v56, 16 }
 0x56a   :  { %v9797_v14 = vpop.f32.mrb[100].mxu1 }
 0x56b   :  { %v9798_v27 = vpop.f32.mrb[101].mxu1 }
 0x56c   :  { %v9799_v39 = vadd.f32 %v9798_v27, %v9797_v14  ;;  %v9800_v23 = vpop.f32.mrb[102].mxu1  ;;  %10050 = vmatpush3.bf16.msra.mxu1 %v11278_v60  ;;  %v6780_v60 = vrot.slane %v6778_v17, 4  ;;  %v6750_v27 = vshrl.u32 %v13352_v22, 16  ;;  %v6755_v22 = vrot.slane %v6753_v15, 4 }
 0x56d   :  { %v9801_v62 = vpop.f32.mrb[103].mxu1  ;;  %10087 = vmatprep.subr.bf16.mxu1 %v11279_v46  ;;  %v6814_v15 = vshll.u32 %v13373_v35, 16 }
 0x56e   :  { %v13419_v61 = vadd.f32 %v9799_v39, %v13334_v10  ;;  %v9802_v7 = vadd.f32 %v9801_v62, %v9800_v23  ;;  %v6773_v10 = vor.u32 %v6772_v38, %v6769_v43  ;;  %v6793_v39 = vshrl.u32 %v13355_v56, 16 }
 0x56f   :  { %6685 = vmatmul.mubr.bf16.gmra.mrb[208].mxu1 %v6509_v54  ;;  %v6781_v62 = vor.u32 %v6780_v60, %v6777_v11  ;;  %v6798_v38 = vrot.slane %v6796_v55, 4 }
 0x570   :  { %v13423_v1 = vadd.f32 %v9802_v7, %v13340_v20  ;;  %6692 = vmatprep.mubr.bf16.mxu1 %v6510_v33  ;;  %v6761_v20 = vshll.u32 %v13361_v57, 16  ;;  %v6752_v7 = vrot.slane %v6750_v27, 3  ;;  %v6795_v43 = vrot.slane %v6793_v39, 3 }
 0x571   :  { %v6782_v54 = vsel %vm979_vm3, %v6773_v10, %v6781_v62  ;;  %v6784_v57 = vshrl.u32 %v13370_v47, 16 }
 0x572   :  { %v9803_v14 = vpop.f32.mrb[104].mxu1  ;;  %v6756_v60 = vor.u32 %v6755_v22, %v6752_v7  ;;  %v6799_v27 = vor.u32 %v6798_v38, %v6795_v43  ;;  %v6816_v43 = vrot.slane %v6814_v15, 4  ;;  %v11282_v38 = vld [vmem:[#allocation12 + $0x508] sm:$0xff]   ;;  %v11284_v15 = vld [vmem:[#allocation12 + $0x510] sm:$0xff]  }
 0x573   :  { %v9804_v46 = vpop.f32.mrb[105].mxu1 }
 0x574   :  { %v9805_v23 = vadd.f32 %v9804_v46, %v9803_v14  ;;  %v9806_v9 = vpop.f32.mrb[106].mxu1  ;;  %v6760_v14 = vrot.slane %v6758_v30, 3  ;;  %v6763_v46 = vrot.slane %v6761_v20, 4  ;;  %v6786_v30 = vrot.slane %v6784_v57, 3 }
 0x575   :  { %v9807_v33 = vpop.f32.mrb[107].mxu1  ;;  %v6800_v22 = vsel %vm979_vm3, %v6781_v62, %v6799_v27  ;;  %v6829_v62 = vshrl.u32 %v13387_v21, 16 }
 0x576   :  { %v13432_v31 = vadd.f32 %v9805_v23, %v13350_v48  ;;  %v9808_v17 = vadd.f32 %v9807_v33, %v9806_v9  ;;  %v6787_v48 = vshll.u32 %v13370_v47, 16  ;;  %v6764_v55 = vor.u32 %v6763_v46, %v6760_v14  ;;  %v11281_v33 = vld [vmem:[#allocation12 + $0x548] sm:$0xff]   ;;  %v11283_v14 = vld [vmem:[#allocation12 + $0x550] sm:$0xff]  }
 0x577   :  { %6693 = vmatmul.mubr.bf16.gmra.mrb[212].mxu1 %v6508_v53  ;;  %v6811_v53 = vshrl.u32 %v13373_v35, 16 }
 0x578   :  { %v13436_v56 = vadd.f32 %v9808_v17, %v13358_v2  ;;  %6995 = vmatprep.mubr.bf16.mxu1 %v6782_v54  ;;  %v11280_v2 = vld [vmem:[#allocation12 + $0x500] sm:$0xff]   ;;  %v6765_v7 = vsel %vm979_vm3, %v6756_v60, %v6764_v55  ;;  %v6789_v47 = vrot.slane %v6787_v48, 4 }
 0x579   :  { %v6813_v54 = vrot.slane %v6811_v53, 3 }
 0x57a   :  { %v9809_v11 = vpop.f32.mrb[108].mxu1  ;;  %v6790_v57 = vor.u32 %v6789_v47, %v6786_v30 }
 0x57b   :  { %v9810_v23 = vpop.f32.mrb[109].mxu1  ;;  %v6817_v48 = vor.u32 %v6816_v43, %v6813_v54  ;;  %v11286_v43 = vld [vmem:[#allocation12 + $0x518] sm:$0xff]  }
 0x57c   :  { %v9811_v10 = vadd.f32 %v9810_v23, %v9809_v11  ;;  %v9812_v39 = vpop.f32.mrb[110].mxu1  ;;  %v6805_v11 = vshll.u32 %v13384_v26, 16  ;;  %v6832_v23 = vshll.u32 %v13387_v21, 16  ;;  %v6791_v30 = vsel %vm979_vm3, %v6764_v55, %v6790_v57 }
 0x57d   :  { %v9813_v9 = vpop.f32.mrb[111].mxu1  ;;  %v6818_v21 = vsel %vm979_vm3, %v6799_v27, %v6817_v48  ;;  %v6820_v55 = vshrl.u32 %v13398_v58, 16 }
 0x57e   :  { %v13443_v20 = vadd.f32 %v9811_v10, %v13367_v3  ;;  %v9814_v17 = vadd.f32 %v9813_v9, %v9812_v39  ;;  %v6802_v3 = vshrl.u32 %v13384_v26, 16  ;;  %v13454_v10 = vld [vmem:[#allocation2 + $0x60] sm:$0x33]  ;;  %v6834_v47 = vrot.slane %v6832_v23, 4 }
 0x57f   :  { %6996 = vmatmul.mubr.bf16.vlgmr.msra.gmra.mrb[216].mxu1 %v6765_v7  ;;  %v11285_v9 = vld [vmem:[#allocation12 + $0x558] sm:$0xff]   ;;  %v6831_v7 = vrot.slane %v6829_v62, 3 }
 0x580   :  { %v13448_v35 = vadd.f32 %v9814_v17, %v13376_v0  ;;  %10088 = vmatpush3.bf16.msra.mxu1 %v11280_v2  ;;  %7003 = vmatprep.mubr.bf16.mxu1 %v6800_v22  ;;  %v6804_v2 = vrot.slane %v6802_v3, 3  ;;  %v6807_v17 = vrot.slane %v6805_v11, 4  ;;  %v9400_v22 = vcombine.high %v13401_v8, %v13454_v10 }
 0x581   :  { %10089 = vmatprep.subr.bf16.mxu1 %v11281_v33  ;;  %v6823_v3 = vshll.u32 %v13398_v58, 16  ;;  %v6822_v58 = vrot.slane %v6820_v55, 3  ;;  %v11295_v55 = vld [vmem:[#allocation12 + $0x530] sm:$0xff]  }
 0x582   :  { %v9815_v46 = vpop.f32.mrb[112].mxu1  ;;  %v6847_v11 = vshrl.u32 %v9400_v22, 16 }
 0x583   :  { %v9816_v60 = vpop.f32.mrb[113].mxu1 }
 0x584   :  { %v9817_v53 = vadd.f32 %v9816_v60, %v9815_v46  ;;  %v9818_v0 = vpop.f32.mrb[114].mxu1  ;;  %10090 = vmatpush3.bf16.msra.mxu1 %v11282_v38  ;;  %v6835_v46 = vor.u32 %v6834_v47, %v6831_v7  ;;  %v6850_v60 = vshll.u32 %v9400_v22, 16  ;;  %v11294_v47 = vld [vmem:[#allocation12 + $0x570] sm:$0xff]  }
 0x585   :  { %v9819_v39 = vpop.f32.mrb[115].mxu1  ;;  %10091 = vmatprep.subr.bf16.mxu1 %v11283_v14  ;;  %v6808_v14 = vor.u32 %v6807_v17, %v6804_v2 }
 0x586   :  { %v13457_v33 = vadd.f32 %v9817_v53, %v13381_v4  ;;  %v9820_v26 = vadd.f32 %v9819_v39, %v9818_v0  ;;  %v11287_v4 = vld [vmem:[#allocation12 + $0x560] sm:$0xff]   ;;  %v11291_v0 = vld [vmem:[#allocation12 + $0x568] sm:$0xff]   ;;  %v6852_v17 = vrot.slane %v6850_v60, 4 }
 0x587   :  { %7004 = vmatmul.mubr.bf16.gmra.mrb[220].mxu1 %v6791_v30  ;;  %v6809_v2 = vsel %vm979_vm3, %v6790_v57, %v6808_v14  ;;  %v6849_v30 = vrot.slane %v6847_v11, 3 }
 0x588   :  { %v13464_v54 = vadd.f32 %v9820_v26, %v13390_v13  ;;  %7011 = vmatprep.mubr.bf16.mxu1 %v6818_v21  ;;  %10092 = vmatpush3.bf16.msra.mxu1 %v11284_v15  ;;  %v11288_v13 = vld [vmem:[#allocation12 + $0x520] sm:$0xff]   ;;  %v9399_v15 = vcombine.low %v13401_v8, %v13454_v10  ;;  %v6836_v26 = vsel %vm979_vm3, %v6817_v48, %v6835_v46  ;;  %v11292_v21 = vld [vmem:[#allocation12 + $0x528] sm:$0xff]   ;;  %v11296_v48 = vld [vmem:[#allocation12 + $0x578] sm:$0xff]  }
 0x589   :  { %10093 = vmatprep.subr.bf16.mxu1 %v11285_v9  ;;  %v6825_v9 = vrot.slane %v6823_v3, 4 }
 0x58a   :  { %v9821_v38 = vpop.f32.mrb[116].mxu1  ;;  %v6838_v7 = vshrl.u32 %v9399_v15, 16 }
 0x58b   :  { %v9822_v27 = vpop.f32.mrb[117].mxu1  ;;  %v6826_v8 = vor.u32 %v6825_v9, %v6822_v58 }
 0x58c   :  { %v9823_v62 = vadd.f32 %v9822_v27, %v9821_v38  ;;  %v9824_v23 = vpop.f32.mrb[118].mxu1  ;;  %10094 = vmatpush3.bf16.msra.mxu1 %v11286_v43  ;;  %v6841_v43 = vshll.u32 %v9399_v15, 16  ;;  %v6840_v27 = vrot.slane %v6838_v7, 3  ;;  %v11298_v15 = vld [vmem:[#allocation12 + $0x640] sm:$0xff]  }
 0x58d   :  { %v9825_v53 = vpop.f32.mrb[119].mxu1  ;;  %10095 = vmatprep.subr.bf16.mxu1 %v11287_v4  ;;  %v6853_v4 = vor.u32 %v6852_v17, %v6849_v30 }
 0x58e   :  { %v13471_v39 = vadd.f32 %v9823_v62, %v13395_v51  ;;  %v6827_v62 = vsel %vm979_vm3, %v6808_v14, %v6826_v8  ;;  %v6843_v23 = vrot.slane %v6841_v43, 4 }
 0x58f   :  { %7012 = vmatmul.mubr.bf16.gmra.mrb[224].mxu1 %v6809_v2 }
 0x590   :  { %7019 = vmatprep.mubr.bf16.mxu1 %v6836_v26  ;;  %10096 = vmatpush3.bf16.msra.mxu1 %v11288_v13  ;;  %v6854_v13 = vsel %vm979_vm3, %v6835_v46, %v6853_v4  ;;  %v6844_v58 = vor.u32 %v6843_v23, %v6840_v27  ;;  %v11300_v27 = vld [vmem:[#allocation12 + $0x648] sm:$0xff]  }
 0x591   :  { %10097 = vmatprep.subr.bf16.mxu1 %v11291_v0  ;;  %v11297_v0 = vld [vmem:[#allocation12 + $0x538] sm:$0xff]  }
 0x592   :  { %v9843_v22 = vpop.f32.mrb[120].mxu1 }
 0x593   :  { %v9844_v51 = vpop.f32.mrb[121].mxu1 }
 0x594   :  { %v9845_v38 = vadd.f32 %v9844_v51, %v9843_v22  ;;  %v9846_v57 = vpop.f32.mrb[122].mxu1  ;;  %10098 = vmatpush3.bf16.msra.mxu1 %v11292_v21 }
 0x595   :  { %v9847_v3 = vpop.f32.mrb[123].mxu1  ;;  %10099 = vmatprep.subr.bf16.mxu1 %v11294_v47 }
 0x596   :  { %v13476_v11 = vadd.f32 %v9845_v38, %v13406_v63  ;;  %v9848_v60 = vadd.f32 %v9847_v3, %v9846_v57 }
 0x597   :  { %7020 = vmatmul.mubr.bf16.gmra.mrb[228].mxu1 %v6827_v62 }
 0x598   :  { %v13481_v53 = vadd.f32 %v9848_v60, %v13412_v25  ;;  %7027 = vmatprep.mubr.bf16.mxu1 %v6854_v13  ;;  %10100 = vmatpush3.bf16.msra.mxu1 %v11295_v55  ;;  %v6845_v25 = vsel %vm979_vm3, %v6826_v8, %v6844_v58 }
 0x599   :  { %10101 = vmatprep.subr.bf16.mxu1 %v11296_v48 }
 0x59a   :  { %v9849_v2 = vpop.f32.mrb[124].mxu1 }
 0x59b   :  { %v9850_v9 = vpop.f32.mrb[125].mxu1 }
 0x59c   :  { %v9851_v63 = vadd.f32 %v9850_v9, %v9849_v2  ;;  %v9852_v26 = vpop.f32.mrb[126].mxu1  ;;  %10102 = vmatpush3.bf16.msra.mxu1 %v11297_v0  ;;  %v11304_v2 = vld [vmem:[#allocation12 + $0x658] sm:$0xff]   ;;  %v11306_v9 = vld [vmem:[#allocation12 + $0x660] sm:$0xff]  }
 0x59d   :  { %v9853_v30 = vpop.f32.mrb[127].mxu1  ;;  %10191 = vmatprep.subr.bf16.mxu1 %v11298_v15  ;;  %v11303_v15 = vld [vmem:[#allocation12 + $0x610] sm:$0xff]  }
 0x59e   :  { %v13484_v14 = vadd.f32 %v9851_v63, %v13419_v61  ;;  %v9854_v46 = vadd.f32 %v9853_v30, %v9852_v26 }
 0x59f   :  { %7028 = vmatmul.mubr.bf16.gmra.mrb[232].mxu1 %v6845_v25  ;;  %v11307_v25 = vld [vmem:[#allocation12 + $0x620] sm:$0xff]  }
 0x5a0   :  { %v13488_v17 = vadd.f32 %v9854_v46, %v13423_v1  ;;  %7035 = vmatprep.mubr.bf16.mxu1 %v6853_v4  ;;  %v11299_v4 = vld [vmem:[#allocation12 + $0x600] sm:$0xff]  }
 0x5a2   :  { %v9855_v21 = vpop.f32.mrb[128].mxu1 }
 0x5a3   :  { %v9856_v7 = vpop.f32.mrb[129].mxu1 }
 0x5a4   :  { %v9857_v47 = vadd.f32 %v9856_v7, %v9855_v21  ;;  %v9858_v22 = vpop.f32.mrb[130].mxu1  ;;  %v11308_v21 = vld [vmem:[#allocation12 + $0x668] sm:$0xff]  }
 0x5a5   :  { %v9859_v43 = vpop.f32.mrb[131].mxu1 }
 0x5a6   :  { %v13491_v51 = vadd.f32 %v9857_v47, %v13432_v31  ;;  %v9860_v38 = vadd.f32 %v9859_v43, %v9858_v22 }
 0x5a7   :  { %7036 = vmatmul.mubr.bf16.gmra.mrb[236].mxu1 %v6844_v58  ;;  %v11305_v58 = vld [vmem:[#allocation12 + $0x618] sm:$0xff]  }
 0x5a8   :  { %v13494_v61 = vadd.f32 %v9860_v38, %v13436_v56  ;;  %7238 = vmatprep.mubr.bf16.mxu1 %v12553_v28  ;;  %v11301_v28 = vld [vmem:[#allocation12 + $0x608] sm:$0xff]   ;;  %v11302_v56 = vld [vmem:[#allocation12 + $0x650] sm:$0xff]  }
 0x5a9   :  { %v11311_v38 = vld [vmem:[#allocation12 + $0x630] sm:$0xff]  }
 0x5aa   :  { %v9861_v8 = vpop.f32.mrb[132].mxu1 }
 0x5ab   :  { %v9862_v57 = vpop.f32.mrb[133].mxu1 }
 0x5ac   :  { %v9863_v1 = vadd.f32 %v9862_v57, %v9861_v8  ;;  %v9864_v55 = vpop.f32.mrb[134].mxu1  ;;  %v7628_v8 = vld [vmem:[#allocation2 + $0x10] sm:$0xcc] }
 0x5ad   :  { %v9865_v3 = vpop.f32.mrb[135].mxu1 }
 0x5ae   :  { %v13498_v48 = vadd.f32 %v9863_v1, %v13443_v20  ;;  %v9866_v60 = vadd.f32 %v9865_v3, %v9864_v55  ;;  %v11313_v1 = vld [vmem:[#allocation12 + $0x678] sm:$0xff]   ;;  %v11315_v3 = vld [vmem:[#allocation12 + $0x740] sm:$0xff]  }
 0x5af   :  { %7239 = vmatmul.mubr.bf16.vlgmr.msra.gmra.mrb[240].mxu1 %v12558_v59 }
 0x5b0   :  { %v13502_v31 = vadd.f32 %v9866_v60, %v13448_v35  ;;  %10192 = vmatpush3.bf16.msra.mxu1 %v11299_v4  ;;  %7246 = vmatprep.mubr.bf16.mxu1 %v12606_v45  ;;  %v11314_v4 = vld [vmem:[#allocation12 + $0x638] sm:$0xff]  }
 0x5b1   :  { %10193 = vmatprep.subr.bf16.mxu1 %v11300_v27 }
 0x5b2   :  { %v9867_v62 = vpop.f32.mrb[136].mxu1 }
 0x5b3   :  { %v9868_v23 = vpop.f32.mrb[137].mxu1 }
 0x5b4   :  { %v9869_v13 = vadd.f32 %v9868_v23, %v9867_v62  ;;  %v9870_v0 = vpop.f32.mrb[138].mxu1  ;;  %10194 = vmatpush3.bf16.msra.mxu1 %v11301_v28 }
 0x5b5   :  { %v9871_v20 = vpop.f32.mrb[139].mxu1  ;;  %10195 = vmatprep.subr.bf16.mxu1 %v11302_v56 }
 0x5b6   :  { %v13506_v59 = vadd.f32 %v9869_v13, %v13457_v33  ;;  %v9872_v35 = vadd.f32 %v9871_v20, %v9870_v0  ;;  %v9463_v13 = vcombine.low %v7628_v8, %v13342_v50 }
 0x5b7   :  { %7247 = vmatmul.mubr.bf16.gmra.mrb[244].mxu1 %v12610_v24 }
 0x5b8   :  { %v13510_v45 = vadd.f32 %v9872_v35, %v13464_v54  ;;  %7254 = vmatprep.mubr.bf16.mxu1 %v12684_v41  ;;  %10196 = vmatpush3.bf16.msra.mxu1 %v11303_v15  ;;  %v11309_v41 = vld [vmem:[#allocation12 + $0x628] sm:$0xff]   ;;  %v11310_v54 = vld [vmem:[#allocation12 + $0x670] sm:$0xff]   ;;  %v7751_v35 = vrot.slane %v12619_v44, 3 }
 0x5b9   :  { %10197 = vmatprep.subr.bf16.mxu1 %v11304_v2  ;;  %v7748_v2 = vrot.slane %v12645_v32, 2 }
 0x5ba   :  { %v9873_v63 = vpop.f32.mrb[140].mxu1 }
 0x5bb   :  { %v9874_v26 = vpop.f32.mrb[141].mxu1 }
 0x5bc   :  { %v9875_v30 = vadd.f32 %v9874_v26, %v9873_v63  ;;  %v9876_v46 = vpop.f32.mrb[142].mxu1  ;;  %10198 = vmatpush3.bf16.msra.mxu1 %v11305_v58  ;;  %v7724_v63 = vshll.u32 %v9463_v13, 16 }
 0x5bd   :  { %v9877_v33 = vpop.f32.mrb[143].mxu1  ;;  %10199 = vmatprep.subr.bf16.mxu1 %v11306_v9  ;;  %v7721_v9 = vshrl.u32 %v9463_v13, 16 }
 0x5be   :  { %v13514_v24 = vadd.f32 %v9875_v30, %v13471_v39 }
 0x5bf   :  { %7255 = vmatmul.mubr.bf16.gmra.mrb[248].mxu1 %v12688_v29 }
 0x5c0   :  { %7262 = vmatprep.mubr.bf16.mxu1 %v12732_v40  ;;  %10200 = vmatpush3.bf16.msra.mxu1 %v11307_v25  ;;  %v9464_v40 = vcombine.high %v7628_v8, %v13342_v50  ;;  %v7752_v25 = vor.u32 %v7751_v35, %v7748_v2  ;;  %v11321_v2 = vld [vmem:[#allocation12 + $0x758] sm:$0xff]  }
 0x5c1   :  { %10201 = vmatprep.subr.bf16.mxu1 %v11308_v21  ;;  %v7723_v21 = vrot.slane %v7721_v9, 2 }
 0x5c2   :  { %v9895_v7 = vpop.f32.mrb[144].mxu1  ;;  %v7738_v28 = vshrl.u32 %v9464_v40, 16  ;;  %v7741_v56 = vshll.u32 %v9464_v40, 16  ;;  %v11317_v40 = vld [vmem:[#allocation12 + $0x748] sm:$0xff]  }
 0x5c3   :  { %v9896_v47 = vpop.f32.mrb[145].mxu1 }
 0x5c4   :  { %v9897_v22 = vadd.f32 %v9896_v47, %v9895_v7  ;;  %v9898_v43 = vpop.f32.mrb[146].mxu1  ;;  %10202 = vmatpush3.bf16.msra.mxu1 %v11309_v41  ;;  %v7740_v0 = vrot.slane %v7738_v28, 2  ;;  %v7743_v15 = vrot.slane %v7741_v56, 3  ;;  %v7726_v41 = vrot.slane %v7724_v63, 3  ;;  %v13844_v28 = vld [vmem:[#allocation23_spill] sm:$0xff] }
 0x5c5   :  { %v9899_v57 = vpop.f32.mrb[147].mxu1  ;;  %10203 = vmatprep.subr.bf16.mxu1 %v11310_v54  ;;  %v7766_v7 = vrot.slane %v12735_v42, 2  ;;  %v7769_v47 = vrot.slane %v12700_v37, 3  ;;  %v7787_v56 = vrot.slane %v13844_v28, 3  ;;  %v13846_v63 = vld [vmem:[#allocation27_spill] sm:$0xff] }
 0x5c6   :  { %v13519_v39 = vadd.f32 %v9897_v22, %v13476_v11  ;;  %v9900_v29 = vadd.f32 %v9899_v57, %v9898_v43  ;;  %v7744_v50 = vor.u32 %v7743_v15, %v7740_v0  ;;  %v7727_v22 = vor.u32 %v7726_v41, %v7723_v21  ;;  %v11320_v0 = vld [vmem:[#allocation12 + $0x710] sm:$0xff]  }
 0x5c7   :  { %7263 = vmatmul.mubr.bf16.gmra.mrb[252].mxu1 %v12738_v52  ;;  %v9428_v52 = vcombine.high %v13454_v10, %v13454_v10  ;;  %v7770_v8 = vor.u32 %v7769_v47, %v7766_v7  ;;  %v13848_v21 = vld [vmem:[#allocation31_spill] sm:$0xff] }
 0x5c8   :  { %v13524_v55 = vadd.f32 %v9900_v29, %v13481_v53  ;;  %7270 = vmatprep.mubr.bf16.mxu1 %v12764_v19  ;;  %10204 = vmatpush3.bf16.msra.mxu1 %v11311_v38  ;;  %v7753_v54 = vsel %vm2705_vm5, %v7744_v50, %v7752_v25  ;;  %v7818_v41 = vshrl.u32 %v13848_v21, 16 }
 0x5c9   :  { %10205 = vmatprep.subr.bf16.mxu1 %v11313_v1  ;;  %v11316_v1 = vld [vmem:[#allocation12 + $0x700] sm:$0xff]  }
 0x5ca   :  { %v9901_v27 = vpop.f32.mrb[148].mxu1 }
 0x5cb   :  { %v9902_v60 = vpop.f32.mrb[149].mxu1 }
 0x5cc   :  { %v9903_v11 = vadd.f32 %v9902_v60, %v9901_v27  ;;  %v9904_v62 = vpop.f32.mrb[150].mxu1  ;;  %10206 = vmatpush3.bf16.msra.mxu1 %v11314_v4  ;;  %v7736_v27 = vsel %vm2705_vm5, %v7727_v22, %v13809_v18  ;;  %v7784_v60 = vrot.slane %v12771_v49, 2  ;;  %v11324_v22 = vld [vmem:[#allocation12 + $0x720] sm:$0xff]  }
 0x5cd   :  { %v9905_v23 = vpop.f32.mrb[151].mxu1  ;;  %10295 = vmatprep.subr.bf16.mxu1 %v11315_v3 }
 0x5ce   :  { %v13530_v53 = vadd.f32 %v9903_v11, %v13484_v14  ;;  %v9906_v19 = vadd.f32 %v9905_v23, %v9904_v62  ;;  %v9427_v14 = vcombine.low %v13454_v10, %v13454_v10  ;;  %v11318_v62 = vld [vmem:[#allocation12 + $0x708] sm:$0xff]  }
 0x5cf   :  { %7271 = vmatmul.mubr.bf16.gmra.mrb[0].mxu1 %v12766_v6 }
 0x5d0   :  { %v13535_v20 = vadd.f32 %v9906_v19, %v13488_v17  ;;  %7278 = vmatprep.mubr.bf16.mxu1 %v9428_v52  ;;  %v7788_v19 = vor.u32 %v7787_v56, %v7784_v60 }
 0x5d2   :  { %v9907_v58 = vpop.f32.mrb[152].mxu1  ;;  %v7789_v9 = vsel %vm2705_vm5, %v7770_v8, %v7788_v19 }
 0x5d3   :  { %v9908_v26 = vpop.f32.mrb[153].mxu1 }
 0x5d4   :  { %v9909_v30 = vadd.f32 %v9908_v26, %v9907_v58  ;;  %v9910_v6 = vpop.f32.mrb[154].mxu1  ;;  %v13845_v58 = vld [vmem:[#allocation21_spill] sm:$0xff] }
 0x5d5   :  { %v9911_v46 = vpop.f32.mrb[155].mxu1  ;;  %v13847_v26 = vld [vmem:[#allocation25_spill] sm:$0xff] }
 0x5d6   :  { %v13542_v17 = vadd.f32 %v9909_v30, %v13491_v51  ;;  %v9912_v33 = vadd.f32 %v9911_v46, %v9910_v6  ;;  %v7805_v50 = vrot.slane %v13847_v26, 3  ;;  %v11322_v6 = vld [vmem:[#allocation12 + $0x718] sm:$0xff]   ;;  %v11323_v46 = vld [vmem:[#allocation12 + $0x760] sm:$0xff]  }
 0x5d7   :  { %7279 = vmatmul.mubr.bf16.gmra.mrb[4].mxu1 %v9427_v14  ;;  %v7802_v14 = vrot.slane %v13846_v63, 2 }
 0x5d8   :  { %v13548_v10 = vadd.f32 %v9912_v33, %v13494_v61  ;;  %7966 = vmatprep.mubr.bf16.mxu1 %v7753_v54  ;;  %v7771_v61 = vsel %vm2705_vm5, %v7752_v25, %v7770_v8  ;;  %v7821_v54 = vshll.u32 %v13848_v21, 16  ;;  %v13849_v8 = vld [vmem:[#allocation28_spill] sm:$0xff] }
 0x5d9   :  { %v7806_v33 = vor.u32 %v7805_v50, %v7802_v14 }
 0x5da   :  { %v9913_v43 = vpop.f32.mrb[156].mxu1 }
 0x5db   :  { %v9914_v38 = vpop.f32.mrb[157].mxu1 }
 0x5dc   :  { %v9915_v51 = vadd.f32 %v9914_v38, %v9913_v43  ;;  %v9916_v57 = vpop.f32.mrb[158].mxu1 }
 0x5dd   :  { %v9917_v29 = vpop.f32.mrb[159].mxu1 }
 0x5de   :  { %v13551_v4 = vadd.f32 %v9915_v51, %v13498_v48  ;;  %v9918_v3 = vadd.f32 %v9917_v29, %v9916_v57  ;;  %v11319_v48 = vld [vmem:[#allocation12 + $0x750] sm:$0xff]   ;;  %v7807_v51 = vsel %vm2705_vm5, %v7788_v19, %v7806_v33  ;;  %v7820_v57 = vrot.slane %v7818_v41, 2  ;;  %v11326_v29 = vld [vmem:[#allocation12 + $0x728] sm:$0xff]  }
 0x5df   :  { %7967 = vmatmul.mubr.bf16.vlgmr.msra.gmra.mrb[8].mxu1 %v7736_v27  ;;  %v13850_v19 = vld [vmem:[#allocation26_spill] sm:$0xff]  ;;  %v8342_v41 = vrot.slane %v12645_v32, 3  ;;  %v8351_v32 = vrot.slane %v12700_v37, 4  ;;  %v8358_v37 = vrot.slane %v12771_v49, 3 }
 0x5e0   :  { %v13559_v11 = vadd.f32 %v9918_v3, %v13502_v31  ;;  %10296 = vmatpush3.bf16.msra.mxu1 %v11316_v1  ;;  %7974 = vmatprep.mubr.bf16.mxu1 %v7771_v61  ;;  %v7823_v1 = vrot.slane %v7821_v54, 3  ;;  %v8343_v54 = vrot.slane %v12619_v44, 4 }
 0x5e1   :  { %10297 = vmatprep.subr.bf16.mxu1 %v11317_v40  ;;  %v11327_v40 = vld [vmem:[#allocation12 + $0x770] sm:$0xff]  }
 0x5e2   :  { %v9919_v52 = vpop.f32.mrb[160].mxu1  ;;  %v7824_v61 = vor.u32 %v7823_v1, %v7820_v57  ;;  %v13853_v1 = vld [vmem:[#allocation29_spill] sm:$0xff] }
 0x5e3   :  { %v9920_v23 = vpop.f32.mrb[161].mxu1 }
 0x5e4   :  { %v9921_v13 = vadd.f32 %v9920_v23, %v9919_v52  ;;  %v9922_v18 = vpop.f32.mrb[162].mxu1  ;;  %10298 = vmatpush3.bf16.msra.mxu1 %v11318_v62  ;;  %v11328_v62 = vld [vmem:[#allocation12 + $0x730] sm:$0xff]  }
 0x5e5   :  { %v9923_v15 = vpop.f32.mrb[163].mxu1  ;;  %10299 = vmatprep.subr.bf16.mxu1 %v11319_v48  ;;  %v11329_v48 = vld [vmem:[#allocation12 + $0x778] sm:$0xff]  }
 0x5e6   :  { %v13562_v35 = vadd.f32 %v9921_v13, %v13506_v59  ;;  %v9924_v31 = vadd.f32 %v9923_v15, %v9922_v18  ;;  %v7825_v13 = vsel %vm2705_vm5, %v7806_v33, %v7824_v61 }
 0x5e7   :  { %7975 = vmatmul.mubr.bf16.gmra.mrb[12].mxu1 %v13845_v58 }
 0x5e8   :  { %v13569_v30 = vadd.f32 %v9924_v31, %v13510_v45  ;;  %7982 = vmatprep.mubr.bf16.mxu1 %v7789_v9  ;;  %10300 = vmatpush3.bf16.msra.mxu1 %v11320_v0  ;;  %v11325_v45 = vld [vmem:[#allocation12 + $0x768] sm:$0xff]   ;;  %v11330_v0 = vld [vmem:[#allocation12 + $0x738] sm:$0xff]  }
 0x5e9   :  { %10301 = vmatprep.subr.bf16.mxu1 %v11321_v2  ;;  %v13851_v31 = vld [vmem:[#allocation30_spill] sm:$0xff] }
 0x5ea   :  { %v9925_v25 = vpop.f32.mrb[164].mxu1  ;;  %v8335_v58 = vshrl.u32 %v13851_v31, 16  ;;  %v8338_v9 = vshll.u32 %v13851_v31, 16  ;;  %v11352_v31 = vld [vmem:[#allocation12 + $0x788] sm:$0xff]  }
 0x5eb   :  { %v9926_v59 = vpop.f32.mrb[165].mxu1 }
 0x5ec   :  { %v9927_v7 = vadd.f32 %v9926_v59, %v9925_v25  ;;  %v9928_v47 = vpop.f32.mrb[166].mxu1  ;;  %10302 = vmatpush3.bf16.msra.mxu1 %v11322_v6  ;;  %v11349_v6 = vld [vmem:[#allocation12 + $0x7c0] sm:$0xff]   ;;  %v8337_v59 = vrot.slane %v8335_v58, 3  ;;  %v8340_v33 = vrot.slane %v8338_v9, 4  ;;  %v11353_v9 = vld [vmem:[#allocation12 + $0x7d0] sm:$0xff]  }
 0x5ed   :  { %v9929_v43 = vpop.f32.mrb[167].mxu1  ;;  %10303 = vmatprep.subr.bf16.mxu1 %v11323_v46  ;;  %v13852_v25 = vld [vmem:[#allocation22_spill] sm:$0xff] }
 0x5ee   :  { %v13574_v38 = vadd.f32 %v9927_v7, %v13514_v24  ;;  %v13617_v58 = vld [vmem:[#allocation2 + $0x68] sm:$0x33] }
 0x5ef   :  { %7983 = vmatmul.mubr.bf16.gmra.mrb[16].mxu1 %v13849_v8  ;;  %v8344_v8 = vor.u32 %v8343_v54, %v8342_v41 }
 0x5f0   :  { %7990 = vmatprep.mubr.bf16.mxu1 %v7807_v51  ;;  %10304 = vmatpush3.bf16.msra.mxu1 %v11324_v22  ;;  %v8341_v22 = vor.u32 %v8340_v33, %v8337_v59  ;;  %v11356_v33 = vld [vmem:[#allocation12 + $0x7d8] sm:$0xff]  }
 0x5f1   :  { %10305 = vmatprep.subr.bf16.mxu1 %v11325_v45 }
 0x5f2   :  { %v9947_v3 = vpop.f32.mrb[168].mxu1 }
 0x5f3   :  { %v9948_v27 = vpop.f32.mrb[169].mxu1 }
 0x5f4   :  { %v9949_v60 = vadd.f32 %v9948_v27, %v9947_v3  ;;  %v9950_v56 = vpop.f32.mrb[170].mxu1  ;;  %10306 = vmatpush3.bf16.msra.mxu1 %v11326_v29  ;;  %v8350_v29 = vrot.slane %v12735_v42, 3 }
 0x5f5   :  { %v9951_v24 = vpop.f32.mrb[171].mxu1  ;;  %10307 = vmatprep.subr.bf16.mxu1 %v11327_v40 }
 0x5f6   :  { %v13579_v52 = vadd.f32 %v9949_v60, %v13519_v39  ;;  %v9952_v23 = vadd.f32 %v9951_v24, %v9950_v56  ;;  %v8352_v27 = vor.u32 %v8351_v32, %v8350_v29  ;;  %v13854_v24 = vld [vmem:[#allocation24_spill] sm:$0xff]  ;;  %v11359_v32 = vld [vmem:[#allocation12 + $0x7a0] sm:$0xff]  }
 0x5f7   :  { %7991 = vmatmul.mubr.bf16.gmra.mrb[20].mxu1 %v13850_v19  ;;  %v11351_v19 = vld [vmem:[#allocation12 + $0x7c8] sm:$0xff]  }
 0x5f8   :  { %v13584_v18 = vadd.f32 %v9952_v23, %v13524_v55  ;;  %7998 = vmatprep.mubr.bf16.mxu1 %v7825_v13  ;;  %10308 = vmatpush3.bf16.msra.mxu1 %v11328_v62  ;;  %v8353_v42 = vsel %vm979_vm3, %v8344_v8, %v8352_v27  ;;  %v11350_v23 = vld [vmem:[#allocation12 + $0x780] sm:$0xff]  }
 0x5f9   :  { %10309 = vmatprep.subr.bf16.mxu1 %v11329_v48 }
 0x5fa   :  { %v9953_v15 = vpop.f32.mrb[172].mxu1 }
 0x5fb   :  { %v9954_v2 = vpop.f32.mrb[173].mxu1 }
 0x5fc   :  { %v9955_v39 = vadd.f32 %v9954_v2, %v9953_v15  ;;  %v9956_v14 = vpop.f32.mrb[174].mxu1  ;;  %10310 = vmatpush3.bf16.msra.mxu1 %v11330_v0 }
 0x5fd   :  { %v9957_v50 = vpop.f32.mrb[175].mxu1  ;;  %10399 = vmatprep.subr.bf16.mxu1 %v11349_v6  ;;  %v8367_v6 = vrot.slane %v13847_v26, 4 }
 0x5fe   :  { %v13589_v46 = vadd.f32 %v9955_v39, %v13530_v53  ;;  %v9958_v55 = vadd.f32 %v9957_v50, %v9956_v14  ;;  %v13855_v39 = vld [vmem:[#allocation32_spill] sm:$0xff]  ;;  %v8366_v50 = vrot.slane %v13846_v63, 3 }
 0x5ff   :  { %7999 = vmatmul.mubr.bf16.gmra.mrb[24].mxu1 %v13852_v25 }
 0x600   :  { %v13593_v21 = vadd.f32 %v9958_v55, %v13535_v20  ;;  %8006 = vmatprep.mubr.bf16.mxu1 %v7824_v61  ;;  %v8345_v20 = vsel %vm979_vm3, %v8341_v22, %v8344_v8  ;;  %v13626_v55 = vld [vmem:[#allocation2] sm:$0xff] }
 0x601   :  { %v9510_v25 = vcombine.high %v13626_v55, %v13617_v58  ;;  %v9509_v8 = vcombine.low %v13626_v55, %v13617_v58 }
 0x602   :  { %v9959_v7 = vpop.f32.mrb[176].mxu1 }
 0x603   :  { %v9960_v47 = vpop.f32.mrb[177].mxu1  ;;  %v8383_v63 = vshll.u32 %v9510_v25, 16 }
 0x604   :  { %v9961_v43 = vadd.f32 %v9960_v47, %v9959_v7  ;;  %v9962_v45 = vpop.f32.mrb[178].mxu1  ;;  %v8368_v7 = vor.u32 %v8367_v6, %v8366_v50  ;;  %v8380_v47 = vshrl.u32 %v9510_v25, 16 }
 0x605   :  { %v9963_v53 = vpop.f32.mrb[179].mxu1  ;;  %v8385_v29 = vrot.slane %v8383_v63, 4 }
 0x606   :  { %v13598_v51 = vadd.f32 %v9961_v43, %v13542_v17  ;;  %v9964_v57 = vadd.f32 %v9963_v53, %v9962_v45  ;;  %v11357_v43 = vld [vmem:[#allocation12 + $0x798] sm:$0xff]   ;;  %v11358_v53 = vld [vmem:[#allocation12 + $0x7e0] sm:$0xff]  }
 0x607   :  { %8007 = vmatmul.mubr.bf16.gmra.mrb[28].mxu1 %v13853_v1 }
 0x608   :  { %v13605_v44 = vadd.f32 %v9964_v57, %v13548_v10  ;;  %8528 = vmatprep.mubr.bf16.mxu1 %v8345_v20  ;;  %v8359_v10 = vrot.slane %v13844_v28, 4  ;;  %v13856_v57 = vld [vmem:[#allocation33_spill] sm:$0xff]  ;;  %v8382_v20 = vrot.slane %v8380_v47, 3 }
 0x60a   :  { %v9965_v40 = vpop.f32.mrb[180].mxu1  ;;  %v8360_v0 = vor.u32 %v8359_v10, %v8358_v37  ;;  %v11362_v37 = vld [vmem:[#allocation12 + $0x7f0] sm:$0xff]  }
 0x60b   :  { %v9966_v3 = vpop.f32.mrb[181].mxu1 }
 0x60c   :  { %v9967_v61 = vadd.f32 %v9966_v3, %v9965_v40  ;;  %v9968_v60 = vpop.f32.mrb[182].mxu1  ;;  %v8361_v14 = vsel %vm979_vm3, %v8352_v27, %v8360_v0  ;;  %v8369_v1 = vsel %vm979_vm3, %v8360_v0, %v8368_v7  ;;  %v11360_v40 = vld [vmem:[#allocation12 + $0x7e8] sm:$0xff]   ;;  %v8371_v27 = vshrl.u32 %v9509_v8, 16 }
 0x60d   :  { %v9969_v17 = vpop.f32.mrb[183].mxu1 }
 0x60e   :  { %v13608_v56 = vadd.f32 %v9967_v61, %v13551_v4  ;;  %v9970_v62 = vadd.f32 %v9969_v17, %v9968_v60  ;;  %v8374_v61 = vshll.u32 %v9509_v8, 16 }
 0x60f   :  { %8529 = vmatmul.mubr.bf16.vlgmr.msra.gmra.mrb[32].mxu1 %v13854_v24  ;;  %v11361_v24 = vld [vmem:[#allocation12 + $0x7a8] sm:$0xff]  }
 0x610   :  { %v13615_v48 = vadd.f32 %v9970_v62, %v13559_v11  ;;  %10407 = vmatpush3.bf16.msra.mxu1 %v11350_v23  ;;  %8536 = vmatprep.mubr.bf16.mxu1 %v8353_v42 }
 0x611   :  { %10400 = vmatprep.subr.bf16.mxu1 %v11351_v19  ;;  %v8373_v19 = vrot.slane %v8371_v27, 3 }
 0x612   :  { %v9971_v13 = vpop.f32.mrb[184].mxu1 }
 0x613   :  { %v9972_v4 = vpop.f32.mrb[185].mxu1 }
 0x614   :  { %v9973_v15 = vadd.f32 %v9972_v4, %v9971_v13  ;;  %v9974_v2 = vpop.f32.mrb[186].mxu1  ;;  %10408 = vmatpush3.bf16.msra.mxu1 %v11352_v31  ;;  %v8376_v13 = vrot.slane %v8374_v61, 4  ;;  %v13857_v4 = vld [vmem:[#allocation35_spill] sm:$0xff]  ;;  %v11364_v31 = vld [vmem:[#allocation12 + $0x7f8] sm:$0xff]  }
 0x615   :  { %v9975_v49 = vpop.f32.mrb[187].mxu1  ;;  %10401 = vmatprep.subr.bf16.mxu1 %v11353_v9 }
 0x616   :  { %v13620_v28 = vadd.f32 %v9973_v15, %v13562_v35  ;;  %v9976_v11 = vadd.f32 %v9975_v49, %v9974_v2  ;;  %v11355_v35 = vld [vmem:[#allocation12 + $0x790] sm:$0xff]   ;;  %v8377_v9 = vor.u32 %v8376_v13, %v8373_v19 }
 0x617   :  { %8537 = vmatmul.mubr.bf16.gmra.mrb[36].mxu1 %v13855_v39  ;;  %v11363_v2 = vld [vmem:[#allocation12 + $0x7b0] sm:$0xff]  }
 0x618   :  { %v13631_v59 = vadd.f32 %v9976_v11, %v13569_v30  ;;  %8544 = vmatprep.mubr.bf16.mxu1 %v8361_v14  ;;  %10409 = vmatpush3.bf16.msra.mxu1 %v11355_v35  ;;  %v11365_v14 = vld [vmem:[#allocation12 + $0x7b8] sm:$0xff]   ;;  %v13858_v35 = vld [vmem:[#allocation34_spill] sm:$0xff] }
 0x619   :  { %10402 = vmatprep.subr.bf16.mxu1 %v11356_v33 }
 0x61a   :  { %v9977_v41 = vpop.f32.mrb[188].mxu1 }
 0x61b   :  { %v9978_v54 = vpop.f32.mrb[189].mxu1 }
 0x61c   :  { %v9979_v22 = vadd.f32 %v9978_v54, %v9977_v41  ;;  %v9980_v26 = vpop.f32.mrb[190].mxu1  ;;  %10410 = vmatpush3.bf16.msra.mxu1 %v11357_v43  ;;  %v11366_v43 = vld [vmem:[#allocation2 + $0x48] sm:$0xff] }
 0x61d   :  { %v9981_v45 = vpop.f32.mrb[191].mxu1  ;;  %10403 = vmatprep.subr.bf16.mxu1 %v11358_v53 }
 0x61e   :  { %v13634_v30 = vadd.f32 %v9979_v22, %v13574_v38  ;;  %v8386_v38 = vor.u32 %v8385_v29, %v8382_v20 }
 0x61f   :  { %8545 = vmatmul.mubr.bf16.gmra.mrb[40].mxu1 %v13856_v57 }
 0x620   :  { %8552 = vmatprep.mubr.bf16.mxu1 %v8369_v1  ;;  %10411 = vmatpush3.bf16.msra.mxu1 %v11359_v32  ;;  %v8387_v0 = vsel %vm979_vm3, %v8368_v7, %v8386_v38 }
 0x621   :  { %10404 = vmatprep.subr.bf16.mxu1 %v11360_v40 }
 0x622   :  { %v9999_v3 = vpop.f32.mrb[192].mxu1 }
 0x623   :  { %v10000_v60 = vpop.f32.mrb[193].mxu1 }
 0x624   :  { %v10001_v17 = vadd.f32 %v10000_v60, %v9999_v3  ;;  %v10002_v62 = vpop.f32.mrb[194].mxu1  ;;  %10412 = vmatpush3.bf16.msra.mxu1 %v11361_v24  ;;  %v11368_v3 = vld [vmem:[#allocation2 + $0x58] sm:$0xff] }
 0x625   :  { %v10003_v42 = vpop.f32.mrb[195].mxu1  ;;  %10405 = vmatprep.subr.bf16.mxu1 %v11362_v37 }
 0x626   :  { %v13641_v10 = vadd.f32 %v10001_v17, %v13579_v52  ;;  %v10004_v23 = vadd.f32 %v10003_v42, %v10002_v62  ;;  %v9538_v17 = vcombine.high %v13617_v58, %v13617_v58  ;;  %v9535_v62 = vcombine.low %v11368_v3, %v13626_v55 }
 0x627   :  { %8553 = vmatmul.mubr.bf16.gmra.mrb[44].mxu1 %v13857_v4 }
 0x628   :  { %v13646_v15 = vadd.f32 %v10004_v23, %v13584_v18  ;;  %8560 = vmatprep.mubr.bf16.mxu1 %v8387_v0  ;;  %10413 = vmatpush3.bf16.msra.mxu1 %v11363_v2  ;;  %v8378_v18 = vsel %vm979_vm3, %v13858_v35, %v8377_v9 }
 0x629   :  { %10406 = vmatprep.subr.bf16.mxu1 %v11364_v31 }
 0x62a   :  { %v10005_v49 = vpop.f32.mrb[196].mxu1 }
 0x62b   :  { %v10006_v11 = vpop.f32.mrb[197].mxu1 }
 0x62c   :  { %v10007_v52 = vadd.f32 %v10006_v11, %v10005_v49  ;;  %v10008_v39 = vpop.f32.mrb[198].mxu1  ;;  %10414 = vmatpush3.bf16.msra.mxu1 %v11365_v14 }
 0x62d   :  { %v10009_v50 = vpop.f32.mrb[199].mxu1 }
 0x62e   :  { %v13649_v6 = vadd.f32 %v10007_v52, %v13589_v46  ;;  %v10010_v25 = vadd.f32 %v10009_v50, %v10008_v39  ;;  %v11367_v46 = vld [vmem:[#allocation2 + $0x50] sm:$0xff] }
 0x62f   :  { %8561 = vmatmul.mubr.bf16.gmra.mrb[48].mxu1 %v8378_v18  ;;  %v9534_v45 = vcombine.high %v11366_v43, %v11367_v46  ;;  %v9533_v20 = vcombine.low %v11366_v43, %v11367_v46 }
 0x630   :  { %v13654_v33 = vadd.f32 %v10010_v25, %v13593_v21  ;;  %8568 = vmatprep.mubr.bf16.mxu1 %v8386_v38 }
 0x632   :  { %v10011_v41 = vpop.f32.mrb[200].mxu1 }
 0x633   :  { %v10012_v54 = vpop.f32.mrb[201].mxu1 }
 0x634   :  { %v10013_v7 = vadd.f32 %v10012_v54, %v10011_v41  ;;  %v10014_v47 = vpop.f32.mrb[202].mxu1 }
 0x635   :  { %v10015_v63 = vpop.f32.mrb[203].mxu1 }
 0x636   :  { %v6704_v22 = vadd.f32 %v10013_v7, %v13598_v51  ;;  %v10016_v26 = vadd.f32 %v10015_v63, %v10014_v47  ;;  %v9536_v51 = vcombine.high %v11368_v3, %v13626_v55 }
 0x637   :  { %8569 = vmatmul.mubr.bf16.gmra.mrb[52].mxu1 %v8377_v9 }
 0x638   :  { %v6705_v53 = vadd.f32 %v10016_v26, %v13605_v44  ;;  %8795 = vmatprep.mubr.bf16.mxu1 %v9534_v45 }
 0x63a   :  { %v10017_v8 = vpop.f32.mrb[204].mxu1 }
 0x63b   :  { %v10018_v57 = vpop.f32.mrb[205].mxu1 }
 0x63c   :  { %v10019_v21 = vadd.f32 %v10018_v57, %v10017_v8  ;;  %v10020_v1 = vpop.f32.mrb[206].mxu1 }
 0x63d   :  { %v10021_v29 = vpop.f32.mrb[207].mxu1 }
 0x63e   :  { %v6706_v32 = vadd.f32 %v10019_v21, %v13608_v56  ;;  %v10022_v40 = vadd.f32 %v10021_v29, %v10020_v1 }
 0x63f   :  { %8796 = vmatmul.mubr.bf16.vlgmr.msra.gmra.mrb[56].mxu1 %v9533_v20 }
 0x640   :  { %v6707_v27 = vadd.f32 %v10022_v40, %v13615_v48  ;;  %8803 = vmatprep.mubr.bf16.mxu1 %v9536_v51  ;;  %v9537_v48 = vcombine.low %v13617_v58, %v13617_v58 }
 0x642   :  { %v10023_v61 = vpop.f32.mrb[208].mxu1 }
 0x643   :  { %v10024_v60 = vpop.f32.mrb[209].mxu1 }
 0x644   :  { %v10025_v44 = vadd.f32 %v10024_v60, %v10023_v61  ;;  %v10026_v38 = vpop.f32.mrb[210].mxu1 }
 0x645   :  { %v10027_v24 = vpop.f32.mrb[211].mxu1 }
 0x646   :  { %v6708_v56 = vadd.f32 %v10025_v44, %v13620_v28  ;;  %v10028_v42 = vadd.f32 %v10027_v24, %v10026_v38 }
 0x647   :  { %8804 = vmatmul.mubr.bf16.gmra.mrb[60].mxu1 %v9535_v62 }
 0x648   :  { %v6709_v37 = vadd.f32 %v10028_v42, %v13631_v59  ;;  %8811 = vmatprep.mubr.bf16.mxu1 %v9538_v17 }
 0x64a   :  { %v10029_v23 = vpop.f32.mrb[212].mxu1 }
 0x64b   :  { %v10030_v19 = vpop.f32.mrb[213].mxu1 }
 0x64c   :  { %v10031_v13 = vadd.f32 %v10030_v19, %v10029_v23  ;;  %v10032_v4 = vpop.f32.mrb[214].mxu1 }
 0x64d   :  { %v10033_v0 = vpop.f32.mrb[215].mxu1  ;;  %v13859_v4 = vld [vmem:[#allocation36_spill] sm:$0xff] }
 0x64e   :  { %v6710_v2 = vadd.f32 %v10031_v13, %v13634_v30 }
 0x64f   :  { %8812 = vmatmul.mubr.bf16.gmra.mrb[64].mxu1 %v9537_v48 }
 0x652   :  { %v10051_v55 = vpop.f32.mrb[216].mxu1 }
 0x653   :  { %v10052_v31 = vpop.f32.mrb[217].mxu1 }
 0x654   :  { %v10053_v49 = vadd.f32 %v10052_v31, %v10051_v55  ;;  %v10054_v28 = vpop.f32.mrb[218].mxu1 }
 0x655   :  { %v10055_v9 = vpop.f32.mrb[219].mxu1 }
 0x656   :  { %v7043_v11 = vadd.f32 %v10053_v49, %v13641_v10  ;;  %v10056_v59 = vadd.f32 %v10055_v9, %v10054_v28 }
 0x658   :  { %v7044_v52 = vadd.f32 %v10056_v59, %v13646_v15 }
 0x65a   :  { %v10057_v39 = vpop.f32.mrb[220].mxu1 }
 0x65b   :  { %v10058_v14 = vpop.f32.mrb[221].mxu1 }
 0x65c   :  { %v10059_v58 = vadd.f32 %v10058_v14, %v10057_v39  ;;  %v10060_v50 = vpop.f32.mrb[222].mxu1  ;;  %v13861_v14 = vld [vmem:[#allocation38_spill] sm:$0xff] }
 0x65d   :  { %v10061_v25 = vpop.f32.mrb[223].mxu1 }
 0x65e   :  { %v7045_v35 = vadd.f32 %v10059_v58, %v13649_v6  ;;  %v10062_v18 = vadd.f32 %v10061_v25, %v10060_v50  ;;  %v13862_v25 = vld [vmem:[#allocation39_spill] sm:$0xff] }
 0x660   :  { %v7046_v30 = vadd.f32 %v10062_v18, %v13654_v33 }
 0x662   :  { %v10063_v41 = vpop.f32.mrb[224].mxu1 }
 0x663   :  { %v10064_v54 = vpop.f32.mrb[225].mxu1 }
 0x664   :  { %v10065_v7 = vadd.f32 %v10064_v54, %v10063_v41  ;;  %v10066_v47 = vpop.f32.mrb[226].mxu1 }
 0x665   :  { %v10067_v63 = vpop.f32.mrb[227].mxu1 }
 0x666   :  { %v7047_v26 = vadd.f32 %v10065_v7, %v6704_v22  ;;  %v10068_v10 = vadd.f32 %v10067_v63, %v10066_v47 }
 0x668   :  { %v7048_v43 = vadd.f32 %v10068_v10, %v6705_v53  ;;  %v13863_v10 = vld [vmem:[#allocation40_spill] sm:$0xff] }
 0x66a   :  { %v10069_v46 = vpop.f32.mrb[228].mxu1 }
 0x66b   :  { %v10070_v15 = vpop.f32.mrb[229].mxu1 }
 0x66c   :  { %v10071_v45 = vadd.f32 %v10070_v15, %v10069_v46  ;;  %v10072_v8 = vpop.f32.mrb[230].mxu1 }
 0x66d   :  { %v10073_v57 = vpop.f32.mrb[231].mxu1 }
 0x66e   :  { %v7049_v21 = vadd.f32 %v10071_v45, %v6706_v32  ;;  %v10074_v1 = vadd.f32 %v10073_v57, %v10072_v8  ;;  %v13864_v45 = vld [vmem:[#allocation41_spill] sm:$0xff] }
 0x670   :  { %v7050_v20 = vadd.f32 %v10074_v1, %v6707_v27 }
 0x672   :  { %v10075_v6 = vpop.f32.mrb[232].mxu1 }
 0x673   :  { %v10076_v29 = vpop.f32.mrb[233].mxu1 }
 0x674   :  { %v10077_v40 = vadd.f32 %v10076_v29, %v10075_v6  ;;  %v10078_v33 = vpop.f32.mrb[234].mxu1 }
 0x675   :  { %v10079_v3 = vpop.f32.mrb[235].mxu1 }
 0x676   :  { %v7051_v51 = vadd.f32 %v10077_v40, %v6708_v56  ;;  %v10080_v61 = vadd.f32 %v10079_v3, %v10078_v33  ;;  %v13860_v56 = vld [vmem:[#allocation37_spill] sm:$0xff]  ;;  %v13865_v33 = vld [vmem:[#allocation42_spill] sm:$0xff] }
 0x678   :  { %v7052_v60 = vadd.f32 %v10080_v61, %v6709_v37 }
 0x67a   :  { %v10081_v44 = vpop.f32.mrb[236].mxu1 }
 0x67b   :  { %v10082_v22 = vpop.f32.mrb[237].mxu1 }
 0x67c   :  { %v10083_v38 = vadd.f32 %v10082_v22, %v10081_v44  ;;  %v10084_v53 = vpop.f32.mrb[238].mxu1  ;;  %v13866_v44 = vld [vmem:[#allocation43_spill] sm:$0xff] }
 0x67d   :  { %v10085_v17 = vpop.f32.mrb[239].mxu1 }
 0x67e   :  { %v7053_v62 = vadd.f32 %v10083_v38, %v6710_v2 }
 0x682   :  { %v10103_v24 = vpop.f32.mrb[240].mxu1 }
 0x683   :  { %v10104_v42 = vpop.f32.mrb[241].mxu1 }
 0x684   :  { %v10105_v23 = vadd.f32 %v10104_v42, %v10103_v24  ;;  %v10106_v32 = vpop.f32.mrb[242].mxu1 }
 0x685   :  { %v10107_v48 = vpop.f32.mrb[243].mxu1 }
 0x686   :  { %v7286_v27 = vadd.f32 %v10105_v23, %v7043_v11  ;;  %v10108_v19 = vadd.f32 %v10107_v48, %v10106_v32  ;;  %v13867_v23 = vld [vmem:[#allocation44_spill] sm:$0xff] }
 0x688   :  { %v7287_v13 = vadd.f32 %v10108_v19, %v7044_v52  ;;  %v7617_v0 = vadd.f32 %v13859_v4, %v7286_v27  ;;  %v13868_v27 = vld [vmem:[#allocation45_spill] sm:$0xff] }
 0x68a   :  { %v10109_v55 = vpop.f32.mrb[244].mxu1  ;;  %v7618_v31 = vadd.f32 %v13860_v56, %v7287_v13  ;;  %v13869_v56 = vld [vmem:[#allocation46_spill] sm:$0xff] }
 0x68b   :  { %v10110_v37 = vpop.f32.mrb[245].mxu1 }
 0x68c   :  { %v10111_v49 = vadd.f32 %v10110_v37, %v10109_v55  ;;  %v10112_v28 = vpop.f32.mrb[246].mxu1 }
 0x68d   :  { %v10113_v9 = vpop.f32.mrb[247].mxu1 }
 0x68e   :  { %v7288_v59 = vadd.f32 %v10111_v49, %v7045_v35  ;;  %v10114_v39 = vadd.f32 %v10113_v9, %v10112_v28 }
 0x690   :  { %v7289_v2 = vadd.f32 %v10114_v39, %v7046_v30  ;;  %v7619_v58 = vadd.f32 %v13861_v14, %v7288_v59  ;;  %v13870_v14 = vld [vmem:[#allocation47_spill] sm:$0xff] }
 0x692   :  { %v10115_v50 = vpop.f32.mrb[248].mxu1  ;;  %v7620_v18 = vadd.f32 %v13862_v25, %v7289_v2 }
 0x693   :  { %v10116_v11 = vpop.f32.mrb[249].mxu1 }
 0x694   :  { %v10117_v41 = vadd.f32 %v10116_v11, %v10115_v50  ;;  %v10118_v52 = vpop.f32.mrb[250].mxu1  ;;  %v13871_v11 = vld [vmem:[#allocation48_spill] sm:$0xff] }
 0x695   :  { %v10119_v54 = vpop.f32.mrb[251].mxu1 }
 0x696   :  { %v7290_v7 = vadd.f32 %v10117_v41, %v7047_v26  ;;  %v10120_v47 = vadd.f32 %v10119_v54, %v10118_v52 }
 0x698   :  { %v7291_v63 = vadd.f32 %v10120_v47, %v7048_v43  ;;  %v7621_v46 = vadd.f32 %v13863_v10, %v7290_v7 }
 0x69a   :  { %v10121_v15 = vpop.f32.mrb[252].mxu1  ;;  %v7622_v8 = vadd.f32 %v13864_v45, %v7291_v63 }
 0x69b   :  { %v10122_v35 = vpop.f32.mrb[253].mxu1 }
 0x69c   :  { %v10123_v57 = vadd.f32 %v10122_v35, %v10121_v15  ;;  %v10124_v30 = vpop.f32.mrb[254].mxu1  ;;  %v13872_v15 = vld [vmem:[#allocation49_spill] sm:$0xff] }
 0x69d   :  { %v10125_v1 = vpop.f32.mrb[255].mxu1 }
 0x69e   :  { %v7292_v6 = vadd.f32 %v10123_v57, %v7049_v21  ;;  %v10126_v29 = vadd.f32 %v10125_v1, %v10124_v30  ;;  %v13873_v57 = vld [vmem:[#allocation50_spill] sm:$0xff] }
 0x6a0   :  { %v7293_v40 = vadd.f32 %v10126_v29, %v7050_v20  ;;  %v7623_v3 = vadd.f32 %v13865_v33, %v7292_v6 }
 0x6a2   :  { %v10127_v61 = vpop.f32.mrb[0].mxu1  ;;  %v7624_v22 = vadd.f32 %v13866_v44, %v7293_v40 }
 0x6a3   :  { %v10128_v26 = vpop.f32.mrb[1].mxu1 }
 0x6a4   :  { %v10129_v38 = vadd.f32 %v10128_v26, %v10127_v61  ;;  %v10130_v43 = vpop.f32.mrb[2].mxu1  ;;  %v13874_v61 = vld [vmem:[#allocation51_spill] sm:$0xff] }
 0x6a5   :  { %v10131_v53 = vpop.f32.mrb[3].mxu1 }
 0x6a6   :  { %v7294_v17 = vadd.f32 %v10129_v38, %v7051_v51  ;;  %v10132_v24 = vadd.f32 %v10131_v53, %v10130_v43  ;;  %v13875_v38 = vld [vmem:[#allocation52_spill] sm:$0xff] }
 0x6a8   :  { %v7295_v42 = vadd.f32 %v10132_v24, %v7052_v60  ;;  %v7625_v32 = vadd.f32 %v13867_v23, %v7294_v17 }
 0x6aa   :  { %v10133_v48 = vpop.f32.mrb[4].mxu1  ;;  %v7626_v19 = vadd.f32 %v13868_v27, %v7295_v42 }
 0x6ab   :  { %v10134_v21 = vpop.f32.mrb[5].mxu1 }
 0x6ac   :  { %v10135_v13 = vadd.f32 %v10134_v21, %v10133_v48  ;;  %v10136_v20 = vpop.f32.mrb[6].mxu1  ;;  %v13876_v48 = vld [vmem:[#allocation53_spill] sm:$0xff]  ;;  %v13877_v21 = vld [vmem:[#allocation54_spill] sm:$0xff] }
 0x6ad   :  { %v10137_v4 = vpop.f32.mrb[7].mxu1 }
 0x6ae   :  { %v7296_v55 = vadd.f32 %v10135_v13, %v7053_v62 }
 0x6b0   :  { %v7627_v37 = vadd.f32 %v13869_v56, %v7296_v55 }
 0x6b2   :  { %v10207_v49 = vpop.f32.mrb[8].mxu1 }
 0x6b3   :  { %v10208_v28 = vpop.f32.mrb[9].mxu1 }
 0x6b4   :  { %v10209_v9 = vadd.f32 %v10208_v28, %v10207_v49  ;;  %v10210_v59 = vpop.f32.mrb[10].mxu1 }
 0x6b5   :  { %v10211_v39 = vpop.f32.mrb[11].mxu1 }
 0x6b6   :  { %v8014_v51 = vadd.f32 %v10209_v9, %v7617_v0  ;;  %v10212_v2 = vadd.f32 %v10211_v39, %v10210_v59  ;;  %v13878_v9 = vld [vmem:[#allocation55_spill] sm:$0xff]  ;;  %v13879_v39 = vld [vmem:[#allocation56_spill] sm:$0xff] }
 0x6b8   :  { %v8015_v60 = vadd.f32 %v10212_v2, %v7618_v31  ;;  %v8273_v50 = vadd.f32 %v13870_v14, %v8014_v51 }
 0x6ba   :  { %v10213_v25 = vpop.f32.mrb[12].mxu1  ;;  %v8274_v41 = vadd.f32 %v13871_v11, %v8015_v60  ;;  %v13880_v11 = vld [vmem:[#allocation57_spill] sm:$0xff] }
 0x6bb   :  { %v10214_v52 = vpop.f32.mrb[13].mxu1 }
 0x6bc   :  { %v10215_v54 = vadd.f32 %v10214_v52, %v10213_v25  ;;  %v10216_v7 = vpop.f32.mrb[14].mxu1 }
 0x6bd   :  { %v10217_v47 = vpop.f32.mrb[15].mxu1 }
 0x6be   :  { %v8016_v62 = vadd.f32 %v10215_v54, %v7619_v58  ;;  %v10218_v63 = vadd.f32 %v10217_v47, %v10216_v7 }
 0x6c0   :  { %v8017_v10 = vadd.f32 %v10218_v63, %v7620_v18  ;;  %v8275_v45 = vadd.f32 %v13872_v15, %v8016_v62 }
 0x6c2   :  { %v10219_v35 = vpop.f32.mrb[16].mxu1  ;;  %v8276_v30 = vadd.f32 %v13873_v57, %v8017_v10  ;;  %v13709_v10 = vld [vmem:[#allocation14] ss:$0 sm:$0xff] }
 0x6c3   :  { %v10220_v0 = vpop.f32.mrb[17].mxu1 }
 0x6c4   :  { %v10221_v1 = vadd.f32 %v10220_v0, %v10219_v35  ;;  %v10222_v31 = vpop.f32.mrb[18].mxu1 }
 0x6c5   :  { %v10223_v6 = vpop.f32.mrb[19].mxu1 }
 0x6c6   :  { %v8018_v29 = vadd.f32 %v10221_v1, %v7621_v46  ;;  %v10224_v40 = vadd.f32 %v10223_v6, %v10222_v31 }
 0x6c8   :  { %v8019_v33 = vadd.f32 %v10224_v40, %v7622_v8  ;;  %v13689_v44 = vadd.f32 %v13874_v61, %v8018_v29 }
 0x6ca   :  { %v10225_v26 = vpop.f32.mrb[20].mxu1  ;;  %v13692_v58 = vadd.f32 %v13875_v38, %v8019_v33 }
 0x6cb   :  { %v10226_v18 = vpop.f32.mrb[21].mxu1 }
 0x6cc   :  { %v10227_v43 = vadd.f32 %v10226_v18, %v10225_v26  ;;  %v10228_v53 = vpop.f32.mrb[22].mxu1 }
 0x6cd   :  { %v10229_v17 = vpop.f32.mrb[23].mxu1 }
 0x6ce   :  { %v8020_v24 = vadd.f32 %v10227_v43, %v7623_v3  ;;  %v10230_v42 = vadd.f32 %v10229_v17, %v10228_v53 }
 0x6d0   :  { %v8021_v23 = vadd.f32 %v10230_v42, %v7624_v22  ;;  %v13695_v27 = vadd.f32 %v13876_v48, %v8020_v24 }
 0x6d2   :  { %v10231_v46 = vpop.f32.mrb[24].mxu1  ;;  %v13698_v8 = vadd.f32 %v13877_v21, %v8021_v23  ;;  %v13881_v23 = vld [vmem:[#allocation58_spill] sm:$0xff] }
 0x6d3   :  { %v10232_v13 = vpop.f32.mrb[25].mxu1 }
 0x6d4   :  { %v10233_v20 = vadd.f32 %v10232_v13, %v10231_v46  ;;  %v10234_v4 = vpop.f32.mrb[26].mxu1 }
 0x6d5   :  { %v10235_v55 = vpop.f32.mrb[27].mxu1 }
 0x6d6   :  { %v8022_v56 = vadd.f32 %v10233_v20, %v7625_v32  ;;  %v10236_v49 = vadd.f32 %v10235_v55, %v10234_v4 }
 0x6d8   :  { %v8023_v28 = vadd.f32 %v10236_v49, %v7626_v19  ;;  %v13701_v59 = vadd.f32 %v13878_v9, %v8022_v56 }
 0x6da   :  { %v10237_v3 = vpop.f32.mrb[28].mxu1  ;;  %v13704_v22 = vadd.f32 %v13879_v39, %v8023_v28 }
 0x6db   :  { %v10238_v51 = vpop.f32.mrb[29].mxu1 }
 0x6dc   :  { %v10239_v2 = vadd.f32 %v10238_v51, %v10237_v3  ;;  %v10240_v60 = vpop.f32.mrb[30].mxu1 }
 0x6dd   :  { %v10241_v14 = vpop.f32.mrb[31].mxu1 }
 0x6de   :  { %v8024_v25 = vadd.f32 %v10239_v2, %v7627_v37 }
 0x6e0   :  { %v13707_v52 = vadd.f32 %v13880_v11, %v8024_v25 }
 0x6e2   :  { %v10311_v54 = vpop.f32.mrb[32].mxu1 }
 0x6e3   :  { %v10312_v7 = vpop.f32.mrb[33].mxu1 }
 0x6e4   :  { %v10313_v32 = vadd.f32 %v10312_v7, %v10311_v54  ;;  %v10314_v47 = vpop.f32.mrb[34].mxu1 }
 0x6e5   :  { %v10315_v19 = vpop.f32.mrb[35].mxu1 }
 0x6e6   :  { %v8576_v62 = vadd.f32 %v10313_v32, %v8273_v50  ;;  %v10316_v63 = vadd.f32 %v10315_v19, %v10314_v47 }
 0x6e8   :  { %v8819_v15 = vadd.f32 %v13252_v34, %v8576_v62  ;;  %v8577_v35 = vadd.f32 %v10316_v63, %v8274_v41 }
 0x6ea   :  { %v8837_v57 = vadd.f32 %v13709_v10, %v8819_v15  ;;  %v8820_v0 = vadd.f32 %v13256_v16, %v8577_v35  ;;  %v10317_v37 = vpop.f32.mrb[36].mxu1 }
 0x6eb   :  { %v10318_v1 = vpop.f32.mrb[37].mxu1 }
 0x6ec   :  { %8848 = vst [vmem:[#allocation15] sm:$0xff] %v8837_v57  ;;  %v8838_v31 = vadd.f32 %v13709_v10, %v8820_v0  ;;  %v10319_v6 = vadd.f32 %v10318_v1, %v10317_v37  ;;  %v10320_v29 = vpop.f32.mrb[38].mxu1 }
 0x6ed   :  { %v10321_v40 = vpop.f32.mrb[39].mxu1 }
 0x6ee   :  { %8849 = vst [vmem:[#allocation15 + $0x8] sm:$0xff] %v8838_v31  ;;  %v8578_v50 = vadd.f32 %v10319_v6, %v8275_v45  ;;  %v10322_v33 = vadd.f32 %v10321_v40, %v10320_v29 }
 0x6f0   :  { %v8821_v61 = vadd.f32 %v13269_v12, %v8578_v50  ;;  %v8579_v26 = vadd.f32 %v10322_v33, %v8276_v30 }
 0x6f2   :  { %v8839_v34 = vadd.f32 %v13709_v10, %v8821_v61  ;;  %v8822_v41 = vadd.f32 %v13271_v5, %v8579_v26  ;;  %v10323_v38 = vpop.f32.mrb[40].mxu1 }
 0x6f3   :  { %v10324_v16 = vpop.f32.mrb[41].mxu1 }
 0x6f4   :  { %8850 = vst [vmem:[#allocation15 + $0x10] sm:$0xff] %v8839_v34  ;;  %v8840_v18 = vadd.f32 %v13709_v10, %v8822_v41  ;;  %v10325_v43 = vadd.f32 %v10324_v16, %v10323_v38  ;;  %v10326_v53 = vpop.f32.mrb[42].mxu1 }
 0x6f5   :  { %v10327_v17 = vpop.f32.mrb[43].mxu1 }
 0x6f6   :  { %8851 = vst [vmem:[#allocation15 + $0x18] sm:$0xff] %v8840_v18  ;;  %v8580_v24 = vadd.f32 %v10325_v43, %v13689_v44  ;;  %v10328_v45 = vadd.f32 %v10327_v17, %v10326_v53 }
 0x6f8   :  { %v8823_v42 = vadd.f32 %v13283_v36, %v8580_v24  ;;  %v8581_v12 = vadd.f32 %v10328_v45, %v13692_v58 }
 0x6fa   :  { %v8841_v30 = vadd.f32 %v13709_v10, %v8823_v42  ;;  %v8824_v5 = vadd.f32 %v13881_v23, %v8581_v12  ;;  %v10329_v48 = vpop.f32.mrb[44].mxu1 }
 0x6fb   :  { %v10330_v46 = vpop.f32.mrb[45].mxu1 }
 0x6fc   :  { %8852 = vst [vmem:[#allocation15 + $0x20] sm:$0xff] %v8841_v30  ;;  %v8842_v21 = vadd.f32 %v13709_v10, %v8824_v5  ;;  %v10331_v13 = vadd.f32 %v10330_v46, %v10329_v48  ;;  %v10332_v20 = vpop.f32.mrb[46].mxu1 }
 0x6fd   :  { %v10333_v4 = vpop.f32.mrb[47].mxu1 }
 0x6fe   :  { %8853 = vst [vmem:[#allocation15 + $0x28] sm:$0xff] %v8842_v21  ;;  %v8582_v44 = vadd.f32 %v10331_v13, %v13695_v27  ;;  %v10334_v55 = vadd.f32 %v10333_v4, %v10332_v20 }
 0x700   :  { %v8583_v36 = vadd.f32 %v10334_v55, %v13698_v8 }
 0x702   :  { %v10335_v56 = vpop.f32.mrb[48].mxu1 }
 0x703   :  { %v10336_v58 = vpop.f32.mrb[49].mxu1 }
 0x704   :  { %v10337_v49 = vadd.f32 %v10336_v58, %v10335_v56  ;;  %v10338_v28 = vpop.f32.mrb[50].mxu1 }
 0x705   :  { %v10339_v9 = vpop.f32.mrb[51].mxu1 }
 0x706   :  { %v8584_v3 = vadd.f32 %v10337_v49, %v13701_v59  ;;  %v10340_v39 = vadd.f32 %v10339_v9, %v10338_v28 }
 0x708   :  { %v8585_v51 = vadd.f32 %v10340_v39, %v13704_v22 }
 0x70a   :  { %v10341_v2 = vpop.f32.mrb[52].mxu1 }
 0x70b   :  { %v10342_v60 = vpop.f32.mrb[53].mxu1 }
 0x70c   :  { %v10343_v14 = vadd.f32 %v10342_v60, %v10341_v2  ;;  %v10344_v25 = vpop.f32.mrb[54].mxu1 }
 0x70d   :  { %v10345_v11 = vpop.f32.mrb[55].mxu1 }
 0x70e   :  { %v8586_v27 = vadd.f32 %v10343_v14, %v13707_v52 }
 0x712   :  { %v10381_v54 = vpop.f32.mrb[56].mxu1 }
 0x713   :  { %v10382_v7 = vpop.f32.mrb[57].mxu1 }
 0x714   :  { %v10383_v8 = vadd.f32 %v10382_v7, %v10381_v54  ;;  %v10384_v32 = vpop.f32.mrb[58].mxu1 }
 0x715   :  { %v10385_v47 = vpop.f32.mrb[59].mxu1 }
 0x716   :  { %v8825_v19 = vadd.f32 %v10383_v8, %v8582_v44  ;;  %v10386_v62 = vadd.f32 %v10385_v47, %v10384_v32 }
 0x718   :  { %v8843_v63 = vadd.f32 %v13709_v10, %v8825_v19  ;;  %v8826_v59 = vadd.f32 %v10386_v62, %v8583_v36 }
 0x71a   :  { %8854 = vst [vmem:[#allocation15 + $0x30] sm:$0xff] %v8843_v63  ;;  %v8844_v22 = vadd.f32 %v13709_v10, %v8826_v59  ;;  %v10387_v15 = vpop.f32.mrb[60].mxu1 }
 0x71b   :  { %v10388_v35 = vpop.f32.mrb[61].mxu1 }
 0x71c   :  { %8855 = vst [vmem:[#allocation15 + $0x38] sm:$0xff] %v8844_v22  ;;  %v10389_v57 = vadd.f32 %v10388_v35, %v10387_v15  ;;  %v10390_v0 = vpop.f32.mrb[62].mxu1 }
 0x71d   :  { %v10391_v37 = vpop.f32.mrb[63].mxu1 }
 0x71e   :  { %v8827_v52 = vadd.f32 %v10389_v57, %v8584_v3  ;;  %v10392_v1 = vadd.f32 %v10391_v37, %v10390_v0 }
 0x720   :  { %v8845_v31 = vadd.f32 %v13709_v10, %v8827_v52  ;;  %v8828_v6 = vadd.f32 %v10392_v1, %v8585_v51 }
 0x722   :  { %8856 = vst [vmem:[#allocation15 + $0x40] sm:$0xff] %v8845_v31  ;;  %v8846_v29 = vadd.f32 %v13709_v10, %v8828_v6  ;;  %v10393_v40 = vpop.f32.mrb[64].mxu1 }
 0x723   :  { %v10394_v50 = vpop.f32.mrb[65].mxu1 }
 0x724   :  { %8857 = vst [vmem:[#allocation15 + $0x48] sm:$0xff] %v8846_v29  ;;  %v10395_v33 = vadd.f32 %v10394_v50, %v10393_v40  ;;  %v10396_v61 = vpop.f32.mrb[66].mxu1 }
 0x725   :  { %v10397_v26 = vpop.f32.mrb[67].mxu1 }
 0x726   :  { %v8829_v34 = vadd.f32 %v10395_v33, %v8586_v27 }
 0x728   :  { %v8847_v41 = vadd.f32 %v13709_v10, %v8829_v34 }
 0x72a   :  { %8858 = vst [vmem:[#allocation15 + $0x50] sm:$0xf] %v8847_v41 }
 0x72b   :  { %11548 = shalt.err (!%p11545_p4)
}
 0x72c   :  { %s11549_s17 = scalar_lea.hbm %s13757_s7, 1408 }
 0x72d   :  { %p11550_p5 = scmp.ne.s32.totalorder %s13757_s7, %s11549_s17  ;;  %p11553_p6 = scmp.lt.u32.totalorder %s11549_s17, %s13757_s7 }
 0x72f   :  { %p11555_p7 = pnand %p11553_p6, %p11550_p5 }
 0x731   :  { %11558 = shalt.err (!%p11555_p7)
}
 0x732   :  { %8870 = dma.vmem_to_hbm [thread:$0]  %s8865_s19, 1408, %s13757_s7, [#allocation5], %s11570_s11, %s11570_s11, %s11571_s12  }
 0x733   :  { %11567 = dma.done.wait [#allocation5], 1408  }
 0x734   :  { %11568 = vsyncadd [#allocation5], 4294965888 }
 0x735   :  { %8874 = vsyncpa [#allocation4], 1 }
 0x736   :  { %8875 = vsyncpa [#allocation7], 1 }
 0x737   :  { %8876 = vsyncpa [#allocation10], 1 }
 0x738   :  { %8877 = vsyncpa [#allocation13], 1 }
 0x739   :  { %8878 = vsyncpa [#allocation5], 1 }

</bundles_post_ra>
